<compile_context>
chip_gen: v6e
topology: v6e:2x2x1
jax: 0.10.0
libtpu: 0.0.40
codegen_flags: <defaults>
</compile_context>

<pallas_src>
import functools
import math

import jax
import jax.numpy as jnp
import numpy as np
from jax.experimental import pallas as pl

BN_EPS = 1e-5
BF16 = jnp.bfloat16
F32 = jnp.float32


# ----------------------------------------------------------------------------
# Host-built gather matrices (spatial structure realized on the MXU)
# ----------------------------------------------------------------------------
def conv3x3_shift_mats(n, h, w):
  """(9, M, M) 0/1 matrices: (a @ S[t])[:, (nn,y,x)] = a[:, (nn,y+dy-1,x+dx-1)].

  Out-of-bounds taps correspond to all-zero columns, i.e. exact zero padding.
  """
  m = n * h * w
  mats = np.zeros((9, m, m), np.float32)
  for dy in range(3):
    for dx in range(3):
      t = dy * 3 + dx
      for yy in range(h):
        sy = yy + dy - 1
        if not 0 <= sy < h:
          continue
        for xx in range(w):
          sx = xx + dx - 1
          if not 0 <= sx < w:
            continue
          for nn in range(n):
            mats[t, (nn * h + sy) * w + sx, (nn * h + yy) * w + xx] = 1.0
  return mats


def maxpool3x3s2_select_mats(n, h, w):
  """9 selection matrices for MaxPool2d(kernel=3, stride=2, padding=1).

  Inputs are post-ReLU (>= 0), so an out-of-bounds tap contributing 0 is
  equivalent to PyTorch's -inf padding.
  """
  ho = (h + 2 - 3) // 2 + 1
  wo = (w + 2 - 3) // 2 + 1
  mats = np.zeros((9, n * h * w, n * ho * wo), np.float32)
  for dy in range(3):
    for dx in range(3):
      t = dy * 3 + dx
      for yo in range(ho):
        sy = 2 * yo + dy - 1
        if not 0 <= sy < h:
          continue
        for xo in range(wo):
          sx = 2 * xo + dx - 1
          if not 0 <= sx < w:
            continue
          for nn in range(n):
            mats[t, (nn * h + sy) * w + sx, (nn * ho + yo) * wo + xo] = 1.0
  return mats, ho, wo


def avgpool2x2_mat(n, h, w):
  """(M_in, M_out) matrix with 0.25 entries implementing AvgPool2d(2, 2)."""
  ho, wo = h // 2, w // 2
  mat = np.zeros((n * h * w, n * ho * wo), np.float32)
  for yo in range(ho):
    for xo in range(wo):
      for dy in range(2):
        for dx in range(2):
          for nn in range(n):
            mat[(nn * h + 2 * yo + dy) * w + 2 * xo + dx,
                (nn * ho + yo) * wo + xo] = 0.25
  return mat, ho, wo


def gap_mat(n, h, w):
  """(M, N) matrix implementing per-image global average pooling."""
  mat = np.zeros((n * h * w, n), np.float32)
  for nn in range(n):
    mat[nn * h * w:(nn + 1) * h * w, nn] = 1.0 / (h * w)
  return mat


# ----------------------------------------------------------------------------
# Pallas kernels (single grid step, whole-array VMEM blocks)
# ----------------------------------------------------------------------------
def _stem_kernel(p_ref, w_ref, b_ref, sel_ref, o_ref, *, n_tap):
  """Stem: (folded-BN conv7x7) matmul + bias + ReLU, then 3x3/s2 maxpool."""
  h = jnp.dot(w_ref[...], p_ref[...], preferred_element_type=F32)
  h = jnp.maximum(h + b_ref[...], 0.0).astype(BF16)
  out = None
  for t in range(n_tap):
    v = jnp.dot(h, sel_ref[t], preferred_element_type=F32)
    out = v if out is None else jnp.maximum(out, v)
  o_ref[...] = out.astype(o_ref.dtype)


def _dense_layer_kernel(*refs, n_seg):
  """BN1+ReLU -> 1x1 conv (+folded BN2, bias, ReLU) -> 3x3 conv, fully fused.

  Inputs per segment: x_j (C_j, M), scale_j (C_j,1), shift_j (C_j,1); then
  w1t (4k, sum C_j), b2 (4k,1), shift mats (9, M, M), w2 (k, 9*4k); output
  (k, M).  Segments and the nine conv taps are each merged into one deep-K
  dot; the 4k-channel intermediate stays in VMEM.
  """
  idx = 0
  hs = []
  for _ in range(n_seg):
    x = refs[idx][...]
    s = refs[idx + 1][...]
    b = refs[idx + 2][...]
    idx += 3
    hs.append(jnp.maximum(x.astype(F32) * s + b, 0.0))
  h = (hs[0] if n_seg == 1 else jnp.concatenate(hs, axis=0)).astype(BF16)

  w1_ref, b2_ref, sh_ref, w2_ref = refs[idx], refs[idx + 1], refs[idx + 2], refs[idx + 3]
  o_ref = refs[idx + 4]

  a = jnp.dot(w1_ref[...], h, preferred_element_type=F32)       # (4k, M)
  a = jnp.maximum(a + b2_ref[...], 0.0).astype(BF16)

  taps = [jnp.dot(a, sh_ref[t], preferred_element_type=F32) for t in range(9)]
  tap_mat = jnp.concatenate(taps, axis=0).astype(BF16)           # (9*4k, M)
  out = jnp.dot(w2_ref[...], tap_mat, preferred_element_type=F32)
  o_ref[...] = out.astype(o_ref.dtype)


def _transition_kernel(*refs, n_seg):
  """BN+ReLU -> 1x1 conv -> 2x2 avgpool (pool folded in as a matmul)."""
  idx = 0
  hs = []
  for _ in range(n_seg):
    x = refs[idx][...]
    s = refs[idx + 1][...]
    b = refs[idx + 2][...]
    idx += 3
    hs.append(jnp.maximum(x.astype(F32) * s + b, 0.0))
  h = (hs[0] if n_seg == 1 else jnp.concatenate(hs, axis=0)).astype(BF16)
  w_ref, p_ref, o_ref = refs[idx], refs[idx + 1], refs[idx + 2]
  hc = jnp.dot(w_ref[...], h, preferred_element_type=F32).astype(BF16)
  out = jnp.dot(hc, p_ref[...], preferred_element_type=F32)
  o_ref[...] = out.astype(o_ref.dtype)


def _head_kernel(*refs, n_seg):
  """Global average pool (matmul) + linear classifier."""
  idx = 0
  xs = []
  for _ in range(n_seg):
    xs.append(refs[idx][...].astype(F32))
    idx += 1
  x = (xs[0] if n_seg == 1 else jnp.concatenate(xs, axis=0)).astype(BF16)
  gap_ref, w_ref, b_ref, o_ref = refs[idx], refs[idx + 1], refs[idx + 2], refs[idx + 3]
  g = jnp.dot(x, gap_ref[...], preferred_element_type=F32).astype(BF16)   # (C, N)
  logits = jnp.dot(w_ref[...], g, preferred_element_type=F32) + b_ref[...]
  o_ref[...] = logits.astype(o_ref.dtype)


# ----------------------------------------------------------------------------
# Plain-JAX glue: BN folding, stem im2col (channel-major)
# ----------------------------------------------------------------------------
def bn_fold(bn):
  scale = bn["gamma"] / jnp.sqrt(bn["var"] + BN_EPS)
  shift = bn["beta"] - bn["mean"] * scale
  return scale, shift


def im2col_cm(x_cm, kh, kw, stride, pad):
  """x_cm: (C, N, H, W) -> (kh*kw*C, N*Ho*Wo), rows [(dy,dx) major, C minor]."""
  c, n, h, w = x_cm.shape
  xp = jnp.pad(x_cm, ((0, 0), (0, 0), (pad, pad), (pad, pad)))
  ho = (h + 2 * pad - kh) // stride + 1
  wo = (w + 2 * pad - kw) // stride + 1
  rows = []
  for dy in range(kh):
    for dx in range(kw):
      rows.append(xp[:, :, dy:dy + ho * stride:stride,
                     dx:dx + wo * stride:stride])
  cols = jnp.concatenate(rows, axis=0)          # (kh*kw*C, N, Ho, Wo)
  return cols.reshape(kh * kw * c, n * ho * wo), ho, wo


# ----------------------------------------------------------------------------
# Stage wrappers (one pallas_call each)
# ----------------------------------------------------------------------------
def stem_stage(patches_cm, w_folded, shift, sel_mats, m_out):
  co = w_folded.shape[0]
  kernel = functools.partial(_stem_kernel, n_tap=sel_mats.shape[0])
  return pl.pallas_call(
      kernel,
      out_shape=jax.ShapeDtypeStruct((co, m_out), BF16),
  )(patches_cm.astype(BF16), w_folded.astype(BF16),
    shift.reshape(co, 1).astype(F32), sel_mats)


def dense_layer(features, p, n, hh, ww):
  m = n * hh * ww
  k4 = p["w1"].shape[0]                     # 4k
  kk = p["w2"].shape[0]                     # k
  s1, b1 = bn_fold(p["bn1"])
  s2, b2 = bn_fold(p["bn2"])
  w1t = p["w1"].reshape(k4, -1) * s2[:, None]                    # fold BN2 scale
  w2f = jnp.transpose(p["w2"], (0, 2, 3, 1)).reshape(kk, 9 * k4)
  sh = jnp.asarray(conv3x3_shift_mats(n, hh, ww), dtype=BF16)    # (9, M, M)

  operands = []
  off = 0
  for f in features:
    cj = f.shape[0]
    operands += [f,
                 s1[off:off + cj].reshape(cj, 1).astype(F32),
                 b1[off:off + cj].reshape(cj, 1).astype(F32)]
    off += cj
  operands += [w1t.astype(BF16), b2.reshape(k4, 1).astype(F32), sh,
               w2f.astype(BF16)]

  kernel = functools.partial(_dense_layer_kernel, n_seg=len(features))
  return pl.pallas_call(
      kernel,
      out_shape=jax.ShapeDtypeStruct((kk, m), BF16),
  )(*operands)


def transition(features, p, n, hh, ww):
  s, b = bn_fold(p["bn"])
  co = p["w"].shape[0]
  wt = p["w"].reshape(co, -1)
  pm, ho, wo = avgpool2x2_mat(n, hh, ww)

  operands = []
  off = 0
  for f in features:
    cj = f.shape[0]
    operands += [f,
                 s[off:off + cj].reshape(cj, 1).astype(F32),
                 b[off:off + cj].reshape(cj, 1).astype(F32)]
    off += cj
  operands += [wt.astype(BF16), jnp.asarray(pm, dtype=BF16)]

  kernel = functools.partial(_transition_kernel, n_seg=len(features))
  out = pl.pallas_call(
      kernel,
      out_shape=jax.ShapeDtypeStruct((co, n * ho * wo), BF16),
  )(*operands)
  return out, ho, wo


def head(features, p_fc, n, hh, ww):
  gm = jnp.asarray(gap_mat(n, hh, ww), dtype=BF16)
  classes = p_fc["w"].shape[0]
  operands = list(features) + [gm, p_fc["w"].astype(BF16),
                               p_fc["b"].reshape(classes, 1).astype(F32)]
  kernel = functools.partial(_head_kernel, n_seg=len(features))
  logits = pl.pallas_call(
      kernel,
      out_shape=jax.ShapeDtypeStruct((classes, n), F32),
  )(*operands)
  return logits.T                                              # (N, classes)


# ----------------------------------------------------------------------------
# Parameter initialization (deterministic, synthetic, PyTorch weight layout)
# ----------------------------------------------------------------------------
class KeyGen:

  def __init__(self, key):
    self.key = key

  def __call__(self):
    self.key, sub = jax.random.split(self.key)
    return sub


def init_bn(kg, c):
  return dict(
      gamma=jax.random.uniform(kg(), (c,), minval=0.5, maxval=1.5),
      beta=jax.random.normal(kg(), (c,)) * 0.1,
      mean=jax.random.normal(kg(), (c,)) * 0.1,
      var=jax.random.uniform(kg(), (c,), minval=0.5, maxval=1.5),
  )


def init_conv(kg, cin, cout, kh, kw):
  # PyTorch layout (Cout, Cin, KH, KW).
  return jax.random.normal(kg(), (cout, cin, kh, kw)) / math.sqrt(cin * kh * kw)


def init_densenet(key, k=8, config=(2, 2, 2, 2), num_classes=16):
  kg = KeyGen(key)
  params = {}
  nf = 2 * k
  params["stem"] = dict(w=init_conv(kg, 3, 2 * k, 7, 7), bn=init_bn(kg, 2 * k))
  blocks, transitions = [], []
  for bi, layers in enumerate(config):
    blk = []
    for i in range(layers):
      cin = nf + i * k
      blk.append(dict(
          bn1=init_bn(kg, cin), w1=init_conv(kg, cin, 4 * k, 1, 1),
          bn2=init_bn(kg, 4 * k), w2=init_conv(kg, 4 * k, k, 3, 3)))
    blocks.append(blk)
    nf += layers * k
    if bi < len(config) - 1:
      transitions.append(dict(bn=init_bn(kg, nf),
                              w=init_conv(kg, nf, nf // 2, 1, 1)))
      nf = nf // 2
  params["blocks"] = blocks
  params["transitions"] = transitions
  params["fc"] = dict(
      w=jax.random.normal(kg(), (num_classes, nf)) / math.sqrt(nf),
      b=jax.random.normal(kg(), (num_classes,)) * 0.01)
  return params


# ----------------------------------------------------------------------------
# Forward pass
# ----------------------------------------------------------------------------
def densenet_forward(x_nchw, params):
  n = x_nchw.shape[0]
  x_cm = jnp.transpose(x_nchw, (1, 0, 2, 3))                 # (C, N, H, W)

  # Stem: Conv7x7/s2/p3 (no bias) + BN + ReLU, fused with MaxPool 3x3/s2/p1.
  patches, ho, wo = im2col_cm(x_cm, 7, 7, 2, 3)              # (147, N*16*16)
  s, b = bn_fold(params["stem"]["bn"])
  co = params["stem"]["w"].shape[0]
  w_stem = jnp.transpose(params["stem"]["w"], (0, 2, 3, 1)).reshape(co, -1)
  w_stem = w_stem * s[:, None]                               # fold BN scale
  sel, hh, ww = maxpool3x3s2_select_mats(n, ho, wo)
  x = stem_stage(patches, w_stem, b, jnp.asarray(sel, dtype=BF16),
                 n * hh * ww)                                # (2k, N*8*8)

  # Dense blocks + transitions; feature map kept as channel-segment list.
  features = [x]
  n_blocks = len(params["blocks"])
  for bi, blk in enumerate(params["blocks"]):
    for lp in blk:
      features.append(dense_layer(features, lp, n, hh, ww))
    if bi < n_blocks - 1:
      t, hh, ww = transition(features, params["transitions"][bi], n, hh, ww)
      features = [t]

  # Global average pool + classifier (single fused kernel).
  return head(features, params["fc"], n, hh, ww)


# ----------------------------------------------------------------------------
if __name__ == "__main__":
  key = jax.random.PRNGKey(0)
  pkey, xkey = jax.random.split(key)

  k = 8
  config = (2, 2, 2, 2)
  num_classes = 16
  params = init_densenet(pkey, k=k, config=config, num_classes=num_classes)

  # Small input, NCHW like PyTorch: (batch=2, channels=3, 32, 32)
  x = jax.random.normal(xkey, (2, 3, 32, 32), dtype=jnp.float32)

  fwd = jax.jit(densenet_forward)
  out = jax.block_until_ready(fwd(x, params))
  assert out.shape == (2, num_classes), out.shape
  assert bool(jnp.all(jnp.isfinite(out)))
  print("KERNEL_OK")
</pallas_src>

<mosaic_0001>
module attributes {stable_mosaic.version = 11 : i64} {
  func.func @_stem_kernel(%arg0: memref<147x512xbf16, #tpu.memory_space<vmem>>, %arg1: memref<16x147xbf16, #tpu.memory_space<vmem>>, %arg2: memref<16x1xf32, #tpu.memory_space<vmem>>, %arg3: memref<9x512x128xbf16, #tpu.memory_space<vmem>>, %arg4: memref<16x128xbf16, #tpu.memory_space<vmem>>) attributes {dimension_semantics = [], scalar_prefetch = 0 : i64, scratch_operands = 0 : i64, tpu.core_type = #tpu.core_type<tc>} {
    %c0 = arith.constant 0 : index
    %c0_0 = arith.constant 0 : index
    %0 = vector.load %arg1[%c0, %c0_0] : memref<16x147xbf16, #tpu.memory_space<vmem>>, vector<16x147xbf16>
    %c0_1 = arith.constant 0 : index
    %c0_2 = arith.constant 0 : index
    %1 = vector.load %arg0[%c0_1, %c0_2] : memref<147x512xbf16, #tpu.memory_space<vmem>>, vector<147x512xbf16>
    %cst = arith.constant dense<0.000000e+00> : vector<16x512xf32>
    %2 = tpu.matmul %0, %1, %cst {dimension_numbers = #tpu.dot_dimension_numbers<[1], [0], [0], [1], [0, 0, 1, 1], [], []>} : vector<16x147xbf16>, vector<147x512xbf16>, vector<16x512xf32> -> vector<16x512xf32>
    %c0_3 = arith.constant 0 : index
    %c0_4 = arith.constant 0 : index
    %3 = vector.load %arg2[%c0_3, %c0_4] : memref<16x1xf32, #tpu.memory_space<vmem>>, vector<16x1xf32>
    %4 = vector.broadcast %3 : vector<16x1xf32> to vector<16x512xf32>
    %5 = arith.addf %2, %4 : vector<16x512xf32>
    %cst_5 = arith.constant 0.000000e+00 : f32
    %6 = vector.broadcast %cst_5 : f32 to vector<16x512xf32>
    %7 = arith.maximumf %5, %6 : vector<16x512xf32>
    %8 = arith.truncf %7 : vector<16x512xf32> to vector<16x512xbf16>
    %c0_6 = arith.constant 0 : index
    %c0_7 = arith.constant 0 : index
    %c0_8 = arith.constant 0 : index
    %9 = vector.load %arg3[%c0_6, %c0_7, %c0_8] : memref<9x512x128xbf16, #tpu.memory_space<vmem>>, vector<1x512x128xbf16>
    %10 = vector.shape_cast %9 : vector<1x512x128xbf16> to vector<512x128xbf16>
    %cst_9 = arith.constant dense<0.000000e+00> : vector<16x128xf32>
    %11 = tpu.matmul %8, %10, %cst_9 {dimension_numbers = #tpu.dot_dimension_numbers<[1], [0], [0], [1], [0, 0, 1, 1], [], []>} : vector<16x512xbf16>, vector<512x128xbf16>, vector<16x128xf32> -> vector<16x128xf32>
    %c1 = arith.constant 1 : index
    %c0_10 = arith.constant 0 : index
    %c0_11 = arith.constant 0 : index
    %12 = vector.load %arg3[%c1, %c0_10, %c0_11] : memref<9x512x128xbf16, #tpu.memory_space<vmem>>, vector<1x512x128xbf16>
    %13 = vector.shape_cast %12 : vector<1x512x128xbf16> to vector<512x128xbf16>
    %cst_12 = arith.constant dense<0.000000e+00> : vector<16x128xf32>
    %14 = tpu.matmul %8, %13, %cst_12 {dimension_numbers = #tpu.dot_dimension_numbers<[1], [0], [0], [1], [0, 0, 1, 1], [], []>} : vector<16x512xbf16>, vector<512x128xbf16>, vector<16x128xf32> -> vector<16x128xf32>
    %15 = arith.maximumf %11, %14 : vector<16x128xf32>
    %c2 = arith.constant 2 : index
    %c0_13 = arith.constant 0 : index
    %c0_14 = arith.constant 0 : index
    %16 = vector.load %arg3[%c2, %c0_13, %c0_14] : memref<9x512x128xbf16, #tpu.memory_space<vmem>>, vector<1x512x128xbf16>
    %17 = vector.shape_cast %16 : vector<1x512x128xbf16> to vector<512x128xbf16>
    %cst_15 = arith.constant dense<0.000000e+00> : vector<16x128xf32>
    %18 = tpu.matmul %8, %17, %cst_15 {dimension_numbers = #tpu.dot_dimension_numbers<[1], [0], [0], [1], [0, 0, 1, 1], [], []>} : vector<16x512xbf16>, vector<512x128xbf16>, vector<16x128xf32> -> vector<16x128xf32>
    %19 = arith.maximumf %15, %18 : vector<16x128xf32>
    %c3 = arith.constant 3 : index
    %c0_16 = arith.constant 0 : index
    %c0_17 = arith.constant 0 : index
    %20 = vector.load %arg3[%c3, %c0_16, %c0_17] : memref<9x512x128xbf16, #tpu.memory_space<vmem>>, vector<1x512x128xbf16>
    %21 = vector.shape_cast %20 : vector<1x512x128xbf16> to vector<512x128xbf16>
    %cst_18 = arith.constant dense<0.000000e+00> : vector<16x128xf32>
    %22 = tpu.matmul %8, %21, %cst_18 {dimension_numbers = #tpu.dot_dimension_numbers<[1], [0], [0], [1], [0, 0, 1, 1], [], []>} : vector<16x512xbf16>, vector<512x128xbf16>, vector<16x128xf32> -> vector<16x128xf32>
    %23 = arith.maximumf %19, %22 : vector<16x128xf32>
    %c4 = arith.constant 4 : index
    %c0_19 = arith.constant 0 : index
    %c0_20 = arith.constant 0 : index
    %24 = vector.load %arg3[%c4, %c0_19, %c0_20] : memref<9x512x128xbf16, #tpu.memory_space<vmem>>, vector<1x512x128xbf16>
    %25 = vector.shape_cast %24 : vector<1x512x128xbf16> to vector<512x128xbf16>
    %cst_21 = arith.constant dense<0.000000e+00> : vector<16x128xf32>
    %26 = tpu.matmul %8, %25, %cst_21 {dimension_numbers = #tpu.dot_dimension_numbers<[1], [0], [0], [1], [0, 0, 1, 1], [], []>} : vector<16x512xbf16>, vector<512x128xbf16>, vector<16x128xf32> -> vector<16x128xf32>
    %27 = arith.maximumf %23, %26 : vector<16x128xf32>
    %c5 = arith.constant 5 : index
    %c0_22 = arith.constant 0 : index
    %c0_23 = arith.constant 0 : index
    %28 = vector.load %arg3[%c5, %c0_22, %c0_23] : memref<9x512x128xbf16, #tpu.memory_space<vmem>>, vector<1x512x128xbf16>
    %29 = vector.shape_cast %28 : vector<1x512x128xbf16> to vector<512x128xbf16>
    %cst_24 = arith.constant dense<0.000000e+00> : vector<16x128xf32>
    %30 = tpu.matmul %8, %29, %cst_24 {dimension_numbers = #tpu.dot_dimension_numbers<[1], [0], [0], [1], [0, 0, 1, 1], [], []>} : vector<16x512xbf16>, vector<512x128xbf16>, vector<16x128xf32> -> vector<16x128xf32>
    %31 = arith.maximumf %27, %30 : vector<16x128xf32>
    %c6 = arith.constant 6 : index
    %c0_25 = arith.constant 0 : index
    %c0_26 = arith.constant 0 : index
    %32 = vector.load %arg3[%c6, %c0_25, %c0_26] : memref<9x512x128xbf16, #tpu.memory_space<vmem>>, vector<1x512x128xbf16>
    %33 = vector.shape_cast %32 : vector<1x512x128xbf16> to vector<512x128xbf16>
    %cst_27 = arith.constant dense<0.000000e+00> : vector<16x128xf32>
    %34 = tpu.matmul %8, %33, %cst_27 {dimension_numbers = #tpu.dot_dimension_numbers<[1], [0], [0], [1], [0, 0, 1, 1], [], []>} : vector<16x512xbf16>, vector<512x128xbf16>, vector<16x128xf32> -> vector<16x128xf32>
    %35 = arith.maximumf %31, %34 : vector<16x128xf32>
    %c7 = arith.constant 7 : index
    %c0_28 = arith.constant 0 : index
    %c0_29 = arith.constant 0 : index
    %36 = vector.load %arg3[%c7, %c0_28, %c0_29] : memref<9x512x128xbf16, #tpu.memory_space<vmem>>, vector<1x512x128xbf16>
    %37 = vector.shape_cast %36 : vector<1x512x128xbf16> to vector<512x128xbf16>
    %cst_30 = arith.constant dense<0.000000e+00> : vector<16x128xf32>
    %38 = tpu.matmul %8, %37, %cst_30 {dimension_numbers = #tpu.dot_dimension_numbers<[1], [0], [0], [1], [0, 0, 1, 1], [], []>} : vector<16x512xbf16>, vector<512x128xbf16>, vector<16x128xf32> -> vector<16x128xf32>
    %39 = arith.maximumf %35, %38 : vector<16x128xf32>
    %c8 = arith.constant 8 : index
    %c0_31 = arith.constant 0 : index
    %c0_32 = arith.constant 0 : index
    %40 = vector.load %arg3[%c8, %c0_31, %c0_32] : memref<9x512x128xbf16, #tpu.memory_space<vmem>>, vector<1x512x128xbf16>
    %41 = vector.shape_cast %40 : vector<1x512x128xbf16> to vector<512x128xbf16>
    %cst_33 = arith.constant dense<0.000000e+00> : vector<16x128xf32>
    %42 = tpu.matmul %8, %41, %cst_33 {dimension_numbers = #tpu.dot_dimension_numbers<[1], [0], [0], [1], [0, 0, 1, 1], [], []>} : vector<16x512xbf16>, vector<512x128xbf16>, vector<16x128xf32> -> vector<16x128xf32>
    %43 = arith.maximumf %39, %42 : vector<16x128xf32>
    %44 = arith.truncf %43 : vector<16x128xf32> to vector<16x128xbf16>
    %c0_34 = arith.constant 0 : index
    %c0_35 = arith.constant 0 : index
    %45 = vector.load %arg4[%c0_34, %c0_35] : memref<16x128xbf16, #tpu.memory_space<vmem>>, vector<16x128xbf16>
    tpu.vector_store %arg4[%c0_34, %c0_35], %44 {strides = array<i32>} : memref<16x128xbf16, #tpu.memory_space<vmem>>, vector<16x128xbf16>,
    return
  }
}

module attributes {stable_mosaic.version = 11 : i64} {
  func.func @_dense_layer_kernel(%arg0: memref<16x128xbf16, #tpu.memory_space<vmem>>, %arg1: memref<16x1xf32, #tpu.memory_space<vmem>>, %arg2: memref<16x1xf32, #tpu.memory_space<vmem>>, %arg3: memref<8x128xbf16, #tpu.memory_space<vmem>>, %arg4: memref<8x1xf32, #tpu.memory_space<vmem>>, %arg5: memref<8x1xf32, #tpu.memory_space<vmem>>, %arg6: memref<32x24xbf16, #tpu.memory_space<vmem>>, %arg7: memref<32x1xf32, #tpu.memory_space<vmem>>, %arg8: memref<9x128x128xbf16, #tpu.memory_space<vmem>>, %arg9: memref<8x288xbf16, #tpu.memory_space<vmem>>, %arg10: memref<8x128xbf16, #tpu.memory_space<vmem>>) attributes {dimension_semantics = [], scalar_prefetch = 0 : i64, scratch_operands = 0 : i64, tpu.core_type = #tpu.core_type<tc>} {
    %c0 = arith.constant 0 : index
    %c0_0 = arith.constant 0 : index
    %0 = vector.load %arg0[%c0, %c0_0] : memref<16x128xbf16, #tpu.memory_space<vmem>>, vector<16x128xbf16>
    %c0_1 = arith.constant 0 : index
    %c0_2 = arith.constant 0 : index
    %1 = vector.load %arg1[%c0_1, %c0_2] : memref<16x1xf32, #tpu.memory_space<vmem>>, vector<16x1xf32>
    %c0_3 = arith.constant 0 : index
    %c0_4 = arith.constant 0 : index
    %2 = vector.load %arg2[%c0_3, %c0_4] : memref<16x1xf32, #tpu.memory_space<vmem>>, vector<16x1xf32>
    %3 = arith.extf %0 : vector<16x128xbf16> to vector<16x128xf32>
    %4 = vector.broadcast %1 : vector<16x1xf32> to vector<16x128xf32>
    %5 = arith.mulf %3, %4 : vector<16x128xf32>
    %6 = vector.broadcast %2 : vector<16x1xf32> to vector<16x128xf32>
    %7 = arith.addf %5, %6 : vector<16x128xf32>
    %cst = arith.constant 0.000000e+00 : f32
    %8 = vector.broadcast %cst : f32 to vector<16x128xf32>
    %9 = arith.maximumf %7, %8 : vector<16x128xf32>
    %c0_5 = arith.constant 0 : index
    %c0_6 = arith.constant 0 : index
    %10 = vector.load %arg3[%c0_5, %c0_6] : memref<8x128xbf16, #tpu.memory_space<vmem>>, vector<8x128xbf16>
    %c0_7 = arith.constant 0 : index
    %c0_8 = arith.constant 0 : index
    %11 = vector.load %arg4[%c0_7, %c0_8] : memref<8x1xf32, #tpu.memory_space<vmem>>, vector<8x1xf32>
    %c0_9 = arith.constant 0 : index
    %c0_10 = arith.constant 0 : index
    %12 = vector.load %arg5[%c0_9, %c0_10] : memref<8x1xf32, #tpu.memory_space<vmem>>, vector<8x1xf32>
    %13 = arith.extf %10 : vector<8x128xbf16> to vector<8x128xf32>
    %14 = vector.broadcast %11 : vector<8x1xf32> to vector<8x128xf32>
    %15 = arith.mulf %13, %14 : vector<8x128xf32>
    %16 = vector.broadcast %12 : vector<8x1xf32> to vector<8x128xf32>
    %17 = arith.addf %15, %16 : vector<8x128xf32>
    %cst_11 = arith.constant 0.000000e+00 : f32
    %18 = vector.broadcast %cst_11 : f32 to vector<8x128xf32>
    %19 = arith.maximumf %17, %18 : vector<8x128xf32>
    %20 = tpu.concatenate %9, %19 in 0 : vector<16x128xf32>, vector<8x128xf32> -> vector<24x128xf32>
    %21 = arith.truncf %20 : vector<24x128xf32> to vector<24x128xbf16>
    %c0_12 = arith.constant 0 : index
    %c0_13 = arith.constant 0 : index
    %22 = vector.load %arg6[%c0_12, %c0_13] : memref<32x24xbf16, #tpu.memory_space<vmem>>, vector<32x24xbf16>
    %cst_14 = arith.constant dense<0.000000e+00> : vector<32x128xf32>
    %23 = tpu.matmul %22, %21, %cst_14 {dimension_numbers = #tpu.dot_dimension_numbers<[1], [0], [0], [1], [0, 0, 1, 1], [], []>} : vector<32x24xbf16>, vector<24x128xbf16>, vector<32x128xf32> -> vector<32x128xf32>
    %c0_15 = arith.constant 0 : index
    %c0_16 = arith.constant 0 : index
    %24 = vector.load %arg7[%c0_15, %c0_16] : memref<32x1xf32, #tpu.memory_space<vmem>>, vector<32x1xf32>
    %25 = vector.broadcast %24 : vector<32x1xf32> to vector<32x128xf32>
    %26 = arith.addf %23, %25 : vector<32x128xf32>
    %cst_17 = arith.constant 0.000000e+00 : f32
    %27 = vector.broadcast %cst_17 : f32 to vector<32x128xf32>
    %28 = arith.maximumf %26, %27 : vector<32x128xf32>
    %29 = arith.truncf %28 : vector<32x128xf32> to vector<32x128xbf16>
    %c0_18 = arith.constant 0 : index
    %c0_19 = arith.constant 0 : index
    %c0_20 = arith.constant 0 : index
    %30 = vector.load %arg8[%c0_18, %c0_19, %c0_20] : memref<9x128x128xbf16, #tpu.memory_space<vmem>>, vector<1x128x128xbf16>
    %31 = vector.shape_cast %30 : vector<1x128x128xbf16> to vector<128x128xbf16>
    %cst_21 = arith.constant dense<0.000000e+00> : vector<32x128xf32>
    %32 = tpu.matmul %29, %31, %cst_21 {dimension_numbers = #tpu.dot_dimension_numbers<[1], [0], [0], [1], [0, 0, 1, 1], [], []>} : vector<32x128xbf16>, vector<128x128xbf16>, vector<32x128xf32> -> vector<32x128xf32>
    %c1 = arith.constant 1 : index
    %c0_22 = arith.constant 0 : index
    %c0_23 = arith.constant 0 : index
    %33 = vector.load %arg8[%c1, %c0_22, %c0_23] : memref<9x128x128xbf16, #tpu.memory_space<vmem>>, vector<1x128x128xbf16>
    %34 = vector.shape_cast %33 : vector<1x128x128xbf16> to vector<128x128xbf16>
    %cst_24 = arith.constant dense<0.000000e+00> : vector<32x128xf32>
    %35 = tpu.matmul %29, %34, %cst_24 {dimension_numbers = #tpu.dot_dimension_numbers<[1], [0], [0], [1], [0, 0, 1, 1], [], []>} : vector<32x128xbf16>, vector<128x128xbf16>, vector<32x128xf32> -> vector<32x128xf32>
    %c2 = arith.constant 2 : index
    %c0_25 = arith.constant 0 : index
    %c0_26 = arith.constant 0 : index
    %36 = vector.load %arg8[%c2, %c0_25, %c0_26] : memref<9x128x128xbf16, #tpu.memory_space<vmem>>, vector<1x128x128xbf16>
    %37 = vector.shape_cast %36 : vector<1x128x128xbf16> to vector<128x128xbf16>
    %cst_27 = arith.constant dense<0.000000e+00> : vector<32x128xf32>
    %38 = tpu.matmul %29, %37, %cst_27 {dimension_numbers = #tpu.dot_dimension_numbers<[1], [0], [0], [1], [0, 0, 1, 1], [], []>} : vector<32x128xbf16>, vector<128x128xbf16>, vector<32x128xf32> -> vector<32x128xf32>
    %c3 = arith.constant 3 : index
    %c0_28 = arith.constant 0 : index
    %c0_29 = arith.constant 0 : index
    %39 = vector.load %arg8[%c3, %c0_28, %c0_29] : memref<9x128x128xbf16, #tpu.memory_space<vmem>>, vector<1x128x128xbf16>
    %40 = vector.shape_cast %39 : vector<1x128x128xbf16> to vector<128x128xbf16>
    %cst_30 = arith.constant dense<0.000000e+00> : vector<32x128xf32>
    %41 = tpu.matmul %29, %40, %cst_30 {dimension_numbers = #tpu.dot_dimension_numbers<[1], [0], [0], [1], [0, 0, 1, 1], [], []>} : vector<32x128xbf16>, vector<128x128xbf16>, vector<32x128xf32> -> vector<32x128xf32>
    %c4 = arith.constant 4 : index
    %c0_31 = arith.constant 0 : index
    %c0_32 = arith.constant 0 : index
    %42 = vector.load %arg8[%c4, %c0_31, %c0_32] : memref<9x128x128xbf16, #tpu.memory_space<vmem>>, vector<1x128x128xbf16>
    %43 = vector.shape_cast %42 : vector<1x128x128xbf16> to vector<128x128xbf16>
    %cst_33 = arith.constant dense<0.000000e+00> : vector<32x128xf32>
    %44 = tpu.matmul %29, %43, %cst_33 {dimension_numbers = #tpu.dot_dimension_numbers<[1], [0], [0], [1], [0, 0, 1, 1], [], []>} : vector<32x128xbf16>, vector<128x128xbf16>, vector<32x128xf32> -> vector<32x128xf32>
    %c5 = arith.constant 5 : index
    %c0_34 = arith.constant 0 : index
    %c0_35 = arith.constant 0 : index
    %45 = vector.load %arg8[%c5, %c0_34, %c0_35] : memref<9x128x128xbf16, #tpu.memory_space<vmem>>, vector<1x128x128xbf16>
    %46 = vector.shape_cast %45 : vector<1x128x128xbf16> to vector<128x128xbf16>
    %cst_36 = arith.constant dense<0.000000e+00> : vector<32x128xf32>
    %47 = tpu.matmul %29, %46, %cst_36 {dimension_numbers = #tpu.dot_dimension_numbers<[1], [0], [0], [1], [0, 0, 1, 1], [], []>} : vector<32x128xbf16>, vector<128x128xbf16>, vector<32x128xf32> -> vector<32x128xf32>
    %c6 = arith.constant 6 : index
    %c0_37 = arith.constant 0 : index
    %c0_38 = arith.constant 0 : index
    %48 = vector.load %arg8[%c6, %c0_37, %c0_38] : memref<9x128x128xbf16, #tpu.memory_space<vmem>>, vector<1x128x128xbf16>
    %49 = vector.shape_cast %48 : vector<1x128x128xbf16> to vector<128x128xbf16>
    %cst_39 = arith.constant dense<0.000000e+00> : vector<32x128xf32>
    %50 = tpu.matmul %29, %49, %cst_39 {dimension_numbers = #tpu.dot_dimension_numbers<[1], [0], [0], [1], [0, 0, 1, 1], [], []>} : vector<32x128xbf16>, vector<128x128xbf16>, vector<32x128xf32> -> vector<32x128xf32>
    %c7 = arith.constant 7 : index
    %c0_40 = arith.constant 0 : index
    %c0_41 = arith.constant 0 : index
    %51 = vector.load %arg8[%c7, %c0_40, %c0_41] : memref<9x128x128xbf16, #tpu.memory_space<vmem>>, vector<1x128x128xbf16>
    %52 = vector.shape_cast %51 : vector<1x128x128xbf16> to vector<128x128xbf16>
    %cst_42 = arith.constant dense<0.000000e+00> : vector<32x128xf32>
    %53 = tpu.matmul %29, %52, %cst_42 {dimension_numbers = #tpu.dot_dimension_numbers<[1], [0], [0], [1], [0, 0, 1, 1], [], []>} : vector<32x128xbf16>, vector<128x128xbf16>, vector<32x128xf32> -> vector<32x128xf32>
    %c8 = arith.constant 8 : index
    %c0_43 = arith.constant 0 : index
    %c0_44 = arith.constant 0 : index
    %54 = vector.load %arg8[%c8, %c0_43, %c0_44] : memref<9x128x128xbf16, #tpu.memory_space<vmem>>, vector<1x128x128xbf16>
    %55 = vector.shape_cast %54 : vector<1x128x128xbf16> to vector<128x128xbf16>
    %cst_45 = arith.constant dense<0.000000e+00> : vector<32x128xf32>
    %56 = tpu.matmul %29, %55, %cst_45 {dimension_numbers = #tpu.dot_dimension_numbers<[1], [0], [0], [1], [0, 0, 1, 1], [], []>} : vector<32x128xbf16>, vector<128x128xbf16>, vector<32x128xf32> -> vector<32x128xf32>
    %57 = tpu.concatenate %32, %35, %38, %41, %44, %47, %50, %53, %56 in 0 : vector<32x128xf32>, vector<32x128xf32>, vector<32x128xf32>, vector<32x128xf32>, vector<32x128xf32>, vector<32x128xf32>, vector<32x128xf32>, vector<32x128xf32>, vector<32x128xf32> -> vector<288x128xf32>
    %58 = arith.truncf %57 : vector<288x128xf32> to vector<288x128xbf16>
    %c0_46 = arith.constant 0 : index
    %c0_47 = arith.constant 0 : index
    %59 = vector.load %arg9[%c0_46, %c0_47] : memref<8x288xbf16, #tpu.memory_space<vmem>>, vector<8x288xbf16>
    %cst_48 = arith.constant dense<0.000000e+00> : vector<8x128xf32>
    %60 = tpu.matmul %59, %58, %cst_48 {dimension_numbers = #tpu.dot_dimension_numbers<[1], [0], [0], [1], [0, 0, 1, 1], [], []>} : vector<8x288xbf16>, vector<288x128xbf16>, vector<8x128xf32> -> vector<8x128xf32>
    %61 = arith.truncf %60 : vector<8x128xf32> to vector<8x128xbf16>
    %c0_49 = arith.constant 0 : index
    %c0_50 = arith.constant 0 : index
    %62 = vector.load %arg10[%c0_49, %c0_50] : memref<8x128xbf16, #tpu.memory_space<vmem>>, vector<8x128xbf16>
    tpu.vector_store %arg10[%c0_49, %c0_50], %61 {strides = array<i32>} : memref<8x128xbf16, #tpu.memory_space<vmem>>, vector<8x128xbf16>,
    return
  }
}

module attributes {stable_mosaic.version = 11 : i64} {
  func.func @_dense_layer_kernel(%arg0: memref<16x128xbf16, #tpu.memory_space<vmem>>, %arg1: memref<16x1xf32, #tpu.memory_space<vmem>>, %arg2: memref<16x1xf32, #tpu.memory_space<vmem>>, %arg3: memref<32x16xbf16, #tpu.memory_space<vmem>>, %arg4: memref<32x1xf32, #tpu.memory_space<vmem>>, %arg5: memref<9x128x128xbf16, #tpu.memory_space<vmem>>, %arg6: memref<8x288xbf16, #tpu.memory_space<vmem>>, %arg7: memref<8x128xbf16, #tpu.memory_space<vmem>>) attributes {dimension_semantics = [], scalar_prefetch = 0 : i64, scratch_operands = 0 : i64, tpu.core_type = #tpu.core_type<tc>} {
    %c0 = arith.constant 0 : index
    %c0_0 = arith.constant 0 : index
    %0 = vector.load %arg0[%c0, %c0_0] : memref<16x128xbf16, #tpu.memory_space<vmem>>, vector<16x128xbf16>
    %c0_1 = arith.constant 0 : index
    %c0_2 = arith.constant 0 : index
    %1 = vector.load %arg1[%c0_1, %c0_2] : memref<16x1xf32, #tpu.memory_space<vmem>>, vector<16x1xf32>
    %c0_3 = arith.constant 0 : index
    %c0_4 = arith.constant 0 : index
    %2 = vector.load %arg2[%c0_3, %c0_4] : memref<16x1xf32, #tpu.memory_space<vmem>>, vector<16x1xf32>
    %3 = arith.extf %0 : vector<16x128xbf16> to vector<16x128xf32>
    %4 = vector.broadcast %1 : vector<16x1xf32> to vector<16x128xf32>
    %5 = arith.mulf %3, %4 : vector<16x128xf32>
    %6 = vector.broadcast %2 : vector<16x1xf32> to vector<16x128xf32>
    %7 = arith.addf %5, %6 : vector<16x128xf32>
    %cst = arith.constant 0.000000e+00 : f32
    %8 = vector.broadcast %cst : f32 to vector<16x128xf32>
    %9 = arith.maximumf %7, %8 : vector<16x128xf32>
    %10 = arith.truncf %9 : vector<16x128xf32> to vector<16x128xbf16>
    %c0_5 = arith.constant 0 : index
    %c0_6 = arith.constant 0 : index
    %11 = vector.load %arg3[%c0_5, %c0_6] : memref<32x16xbf16, #tpu.memory_space<vmem>>, vector<32x16xbf16>
    %cst_7 = arith.constant dense<0.000000e+00> : vector<32x128xf32>
    %12 = tpu.matmul %11, %10, %cst_7 {dimension_numbers = #tpu.dot_dimension_numbers<[1], [0], [0], [1], [0, 0, 1, 1], [], []>} : vector<32x16xbf16>, vector<16x128xbf16>, vector<32x128xf32> -> vector<32x128xf32>
    %c0_8 = arith.constant 0 : index
    %c0_9 = arith.constant 0 : index
    %13 = vector.load %arg4[%c0_8, %c0_9] : memref<32x1xf32, #tpu.memory_space<vmem>>, vector<32x1xf32>
    %14 = vector.broadcast %13 : vector<32x1xf32> to vector<32x128xf32>
    %15 = arith.addf %12, %14 : vector<32x128xf32>
    %cst_10 = arith.constant 0.000000e+00 : f32
    %16 = vector.broadcast %cst_10 : f32 to vector<32x128xf32>
    %17 = arith.maximumf %15, %16 : vector<32x128xf32>
    %18 = arith.truncf %17 : vector<32x128xf32> to vector<32x128xbf16>
    %c0_11 = arith.constant 0 : index
    %c0_12 = arith.constant 0 : index
    %c0_13 = arith.constant 0 : index
    %19 = vector.load %arg5[%c0_11, %c0_12, %c0_13] : memref<9x128x128xbf16, #tpu.memory_space<vmem>>, vector<1x128x128xbf16>
    %20 = vector.shape_cast %19 : vector<1x128x128xbf16> to vector<128x128xbf16>
    %cst_14 = arith.constant dense<0.000000e+00> : vector<32x128xf32>
    %21 = tpu.matmul %18, %20, %cst_14 {dimension_numbers = #tpu.dot_dimension_numbers<[1], [0], [0], [1], [0, 0, 1, 1], [], []>} : vector<32x128xbf16>, vector<128x128xbf16>, vector<32x128xf32> -> vector<32x128xf32>
    %c1 = arith.constant 1 : index
    %c0_15 = arith.constant 0 : index
    %c0_16 = arith.constant 0 : index
    %22 = vector.load %arg5[%c1, %c0_15, %c0_16] : memref<9x128x128xbf16, #tpu.memory_space<vmem>>, vector<1x128x128xbf16>
    %23 = vector.shape_cast %22 : vector<1x128x128xbf16> to vector<128x128xbf16>
    %cst_17 = arith.constant dense<0.000000e+00> : vector<32x128xf32>
    %24 = tpu.matmul %18, %23, %cst_17 {dimension_numbers = #tpu.dot_dimension_numbers<[1], [0], [0], [1], [0, 0, 1, 1], [], []>} : vector<32x128xbf16>, vector<128x128xbf16>, vector<32x128xf32> -> vector<32x128xf32>
    %c2 = arith.constant 2 : index
    %c0_18 = arith.constant 0 : index
    %c0_19 = arith.constant 0 : index
    %25 = vector.load %arg5[%c2, %c0_18, %c0_19] : memref<9x128x128xbf16, #tpu.memory_space<vmem>>, vector<1x128x128xbf16>
    %26 = vector.shape_cast %25 : vector<1x128x128xbf16> to vector<128x128xbf16>
    %cst_20 = arith.constant dense<0.000000e+00> : vector<32x128xf32>
    %27 = tpu.matmul %18, %26, %cst_20 {dimension_numbers = #tpu.dot_dimension_numbers<[1], [0], [0], [1], [0, 0, 1, 1], [], []>} : vector<32x128xbf16>, vector<128x128xbf16>, vector<32x128xf32> -> vector<32x128xf32>
    %c3 = arith.constant 3 : index
    %c0_21 = arith.constant 0 : index
    %c0_22 = arith.constant 0 : index
    %28 = vector.load %arg5[%c3, %c0_21, %c0_22] : memref<9x128x128xbf16, #tpu.memory_space<vmem>>, vector<1x128x128xbf16>
    %29 = vector.shape_cast %28 : vector<1x128x128xbf16> to vector<128x128xbf16>
    %cst_23 = arith.constant dense<0.000000e+00> : vector<32x128xf32>
    %30 = tpu.matmul %18, %29, %cst_23 {dimension_numbers = #tpu.dot_dimension_numbers<[1], [0], [0], [1], [0, 0, 1, 1], [], []>} : vector<32x128xbf16>, vector<128x128xbf16>, vector<32x128xf32> -> vector<32x128xf32>
    %c4 = arith.constant 4 : index
    %c0_24 = arith.constant 0 : index
    %c0_25 = arith.constant 0 : index
    %31 = vector.load %arg5[%c4, %c0_24, %c0_25] : memref<9x128x128xbf16, #tpu.memory_space<vmem>>, vector<1x128x128xbf16>
    %32 = vector.shape_cast %31 : vector<1x128x128xbf16> to vector<128x128xbf16>
    %cst_26 = arith.constant dense<0.000000e+00> : vector<32x128xf32>
    %33 = tpu.matmul %18, %32, %cst_26 {dimension_numbers = #tpu.dot_dimension_numbers<[1], [0], [0], [1], [0, 0, 1, 1], [], []>} : vector<32x128xbf16>, vector<128x128xbf16>, vector<32x128xf32> -> vector<32x128xf32>
    %c5 = arith.constant 5 : index
    %c0_27 = arith.constant 0 : index
    %c0_28 = arith.constant 0 : index
    %34 = vector.load %arg5[%c5, %c0_27, %c0_28] : memref<9x128x128xbf16, #tpu.memory_space<vmem>>, vector<1x128x128xbf16>
    %35 = vector.shape_cast %34 : vector<1x128x128xbf16> to vector<128x128xbf16>
    %cst_29 = arith.constant dense<0.000000e+00> : vector<32x128xf32>
    %36 = tpu.matmul %18, %35, %cst_29 {dimension_numbers = #tpu.dot_dimension_numbers<[1], [0], [0], [1], [0, 0, 1, 1], [], []>} : vector<32x128xbf16>, vector<128x128xbf16>, vector<32x128xf32> -> vector<32x128xf32>
    %c6 = arith.constant 6 : index
    %c0_30 = arith.constant 0 : index
    %c0_31 = arith.constant 0 : index
    %37 = vector.load %arg5[%c6, %c0_30, %c0_31] : memref<9x128x128xbf16, #tpu.memory_space<vmem>>, vector<1x128x128xbf16>
    %38 = vector.shape_cast %37 : vector<1x128x128xbf16> to vector<128x128xbf16>
    %cst_32 = arith.constant dense<0.000000e+00> : vector<32x128xf32>
    %39 = tpu.matmul %18, %38, %cst_32 {dimension_numbers = #tpu.dot_dimension_numbers<[1], [0], [0], [1], [0, 0, 1, 1], [], []>} : vector<32x128xbf16>, vector<128x128xbf16>, vector<32x128xf32> -> vector<32x128xf32>
    %c7 = arith.constant 7 : index
    %c0_33 = arith.constant 0 : index
    %c0_34 = arith.constant 0 : index
    %40 = vector.load %arg5[%c7, %c0_33, %c0_34] : memref<9x128x128xbf16, #tpu.memory_space<vmem>>, vector<1x128x128xbf16>
    %41 = vector.shape_cast %40 : vector<1x128x128xbf16> to vector<128x128xbf16>
    %cst_35 = arith.constant dense<0.000000e+00> : vector<32x128xf32>
    %42 = tpu.matmul %18, %41, %cst_35 {dimension_numbers = #tpu.dot_dimension_numbers<[1], [0], [0], [1], [0, 0, 1, 1], [], []>} : vector<32x128xbf16>, vector<128x128xbf16>, vector<32x128xf32> -> vector<32x128xf32>
    %c8 = arith.constant 8 : index
    %c0_36 = arith.constant 0 : index
    %c0_37 = arith.constant 0 : index
    %43 = vector.load %arg5[%c8, %c0_36, %c0_37] : memref<9x128x128xbf16, #tpu.memory_space<vmem>>, vector<1x128x128xbf16>
    %44 = vector.shape_cast %43 : vector<1x128x128xbf16> to vector<128x128xbf16>
    %cst_38 = arith.constant dense<0.000000e+00> : vector<32x128xf32>
    %45 = tpu.matmul %18, %44, %cst_38 {dimension_numbers = #tpu.dot_dimension_numbers<[1], [0], [0], [1], [0, 0, 1, 1], [], []>} : vector<32x128xbf16>, vector<128x128xbf16>, vector<32x128xf32> -> vector<32x128xf32>
    %46 = tpu.concatenate %21, %24, %27, %30, %33, %36, %39, %42, %45 in 0 : vector<32x128xf32>, vector<32x128xf32>, vector<32x128xf32>, vector<32x128xf32>, vector<32x128xf32>, vector<32x128xf32>, vector<32x128xf32>, vector<32x128xf32>, vector<32x128xf32> -> vector<288x128xf32>
    %47 = arith.truncf %46 : vector<288x128xf32> to vector<288x128xbf16>
    %c0_39 = arith.constant 0 : index
    %c0_40 = arith.constant 0 : index
    %48 = vector.load %arg6[%c0_39, %c0_40] : memref<8x288xbf16, #tpu.memory_space<vmem>>, vector<8x288xbf16>
    %cst_41 = arith.constant dense<0.000000e+00> : vector<8x128xf32>
    %49 = tpu.matmul %48, %47, %cst_41 {dimension_numbers = #tpu.dot_dimension_numbers<[1], [0], [0], [1], [0, 0, 1, 1], [], []>} : vector<8x288xbf16>, vector<288x128xbf16>, vector<8x128xf32> -> vector<8x128xf32>
    %50 = arith.truncf %49 : vector<8x128xf32> to vector<8x128xbf16>
    %c0_42 = arith.constant 0 : index
    %c0_43 = arith.constant 0 : index
    %51 = vector.load %arg7[%c0_42, %c0_43] : memref<8x128xbf16, #tpu.memory_space<vmem>>, vector<8x128xbf16>
    tpu.vector_store %arg7[%c0_42, %c0_43], %50 {strides = array<i32>} : memref<8x128xbf16, #tpu.memory_space<vmem>>, vector<8x128xbf16>,
    return
  }
}

module attributes {stable_mosaic.version = 11 : i64} {
  func.func @_transition_kernel(%arg0: memref<16x128xbf16, #tpu.memory_space<vmem>>, %arg1: memref<16x1xf32, #tpu.memory_space<vmem>>, %arg2: memref<16x1xf32, #tpu.memory_space<vmem>>, %arg3: memref<8x128xbf16, #tpu.memory_space<vmem>>, %arg4: memref<8x1xf32, #tpu.memory_space<vmem>>, %arg5: memref<8x1xf32, #tpu.memory_space<vmem>>, %arg6: memref<8x128xbf16, #tpu.memory_space<vmem>>, %arg7: memref<8x1xf32, #tpu.memory_space<vmem>>, %arg8: memref<8x1xf32, #tpu.memory_space<vmem>>, %arg9: memref<16x32xbf16, #tpu.memory_space<vmem>>, %arg10: memref<128x32xbf16, #tpu.memory_space<vmem>>, %arg11: memref<16x32xbf16, #tpu.memory_space<vmem>>) attributes {dimension_semantics = [], scalar_prefetch = 0 : i64, scratch_operands = 0 : i64, tpu.core_type = #tpu.core_type<tc>} {
    %c0 = arith.constant 0 : index
    %c0_0 = arith.constant 0 : index
    %0 = vector.load %arg0[%c0, %c0_0] : memref<16x128xbf16, #tpu.memory_space<vmem>>, vector<16x128xbf16>
    %c0_1 = arith.constant 0 : index
    %c0_2 = arith.constant 0 : index
    %1 = vector.load %arg1[%c0_1, %c0_2] : memref<16x1xf32, #tpu.memory_space<vmem>>, vector<16x1xf32>
    %c0_3 = arith.constant 0 : index
    %c0_4 = arith.constant 0 : index
    %2 = vector.load %arg2[%c0_3, %c0_4] : memref<16x1xf32, #tpu.memory_space<vmem>>, vector<16x1xf32>
    %3 = arith.extf %0 : vector<16x128xbf16> to vector<16x128xf32>
    %4 = vector.broadcast %1 : vector<16x1xf32> to vector<16x128xf32>
    %5 = arith.mulf %3, %4 : vector<16x128xf32>
    %6 = vector.broadcast %2 : vector<16x1xf32> to vector<16x128xf32>
    %7 = arith.addf %5, %6 : vector<16x128xf32>
    %cst = arith.constant 0.000000e+00 : f32
    %8 = vector.broadcast %cst : f32 to vector<16x128xf32>
    %9 = arith.maximumf %7, %8 : vector<16x128xf32>
    %c0_5 = arith.constant 0 : index
    %c0_6 = arith.constant 0 : index
    %10 = vector.load %arg3[%c0_5, %c0_6] : memref<8x128xbf16, #tpu.memory_space<vmem>>, vector<8x128xbf16>
    %c0_7 = arith.constant 0 : index
    %c0_8 = arith.constant 0 : index
    %11 = vector.load %arg4[%c0_7, %c0_8] : memref<8x1xf32, #tpu.memory_space<vmem>>, vector<8x1xf32>
    %c0_9 = arith.constant 0 : index
    %c0_10 = arith.constant 0 : index
    %12 = vector.load %arg5[%c0_9, %c0_10] : memref<8x1xf32, #tpu.memory_space<vmem>>, vector<8x1xf32>
    %13 = arith.extf %10 : vector<8x128xbf16> to vector<8x128xf32>
    %14 = vector.broadcast %11 : vector<8x1xf32> to vector<8x128xf32>
    %15 = arith.mulf %13, %14 : vector<8x128xf32>
    %16 = vector.broadcast %12 : vector<8x1xf32> to vector<8x128xf32>
    %17 = arith.addf %15, %16 : vector<8x128xf32>
    %cst_11 = arith.constant 0.000000e+00 : f32
    %18 = vector.broadcast %cst_11 : f32 to vector<8x128xf32>
    %19 = arith.maximumf %17, %18 : vector<8x128xf32>
    %c0_12 = arith.constant 0 : index
    %c0_13 = arith.constant 0 : index
    %20 = vector.load %arg6[%c0_12, %c0_13] : memref<8x128xbf16, #tpu.memory_space<vmem>>, vector<8x128xbf16>
    %c0_14 = arith.constant 0 : index
    %c0_15 = arith.constant 0 : index
    %21 = vector.load %arg7[%c0_14, %c0_15] : memref<8x1xf32, #tpu.memory_space<vmem>>, vector<8x1xf32>
    %c0_16 = arith.constant 0 : index
    %c0_17 = arith.constant 0 : index
    %22 = vector.load %arg8[%c0_16, %c0_17] : memref<8x1xf32, #tpu.memory_space<vmem>>, vector<8x1xf32>
    %23 = arith.extf %20 : vector<8x128xbf16> to vector<8x128xf32>
    %24 = vector.broadcast %21 : vector<8x1xf32> to vector<8x128xf32>
    %25 = arith.mulf %23, %24 : vector<8x128xf32>
    %26 = vector.broadcast %22 : vector<8x1xf32> to vector<8x128xf32>
    %27 = arith.addf %25, %26 : vector<8x128xf32>
    %cst_18 = arith.constant 0.000000e+00 : f32
    %28 = vector.broadcast %cst_18 : f32 to vector<8x128xf32>
    %29 = arith.maximumf %27, %28 : vector<8x128xf32>
    %30 = tpu.concatenate %9, %19, %29 in 0 : vector<16x128xf32>, vector<8x128xf32>, vector<8x128xf32> -> vector<32x128xf32>
    %31 = arith.truncf %30 : vector<32x128xf32> to vector<32x128xbf16>
    %c0_19 = arith.constant 0 : index
    %c0_20 = arith.constant 0 : index
    %32 = vector.load %arg9[%c0_19, %c0_20] : memref<16x32xbf16, #tpu.memory_space<vmem>>, vector<16x32xbf16>
    %cst_21 = arith.constant dense<0.000000e+00> : vector<16x128xf32>
    %33 = tpu.matmul %32, %31, %cst_21 {dimension_numbers = #tpu.dot_dimension_numbers<[1], [0], [0], [1], [0, 0, 1, 1], [], []>} : vector<16x32xbf16>, vector<32x128xbf16>, vector<16x128xf32> -> vector<16x128xf32>
    %34 = arith.truncf %33 : vector<16x128xf32> to vector<16x128xbf16>
    %c0_22 = arith.constant 0 : index
    %c0_23 = arith.constant 0 : index
    %35 = vector.load %arg10[%c0_22, %c0_23] : memref<128x32xbf16, #tpu.memory_space<vmem>>, vector<128x32xbf16>
    %cst_24 = arith.constant dense<0.000000e+00> : vector<16x32xf32>
    %36 = tpu.matmul %34, %35, %cst_24 {dimension_numbers = #tpu.dot_dimension_numbers<[1], [0], [0], [1], [0, 0, 1, 1], [], []>} : vector<16x128xbf16>, vector<128x32xbf16>, vector<16x32xf32> -> vector<16x32xf32>
    %37 = arith.truncf %36 : vector<16x32xf32> to vector<16x32xbf16>
    %c0_25 = arith.constant 0 : index
    %c0_26 = arith.constant 0 : index
    %38 = vector.load %arg11[%c0_25, %c0_26] : memref<16x32xbf16, #tpu.memory_space<vmem>>, vector<16x32xbf16>
    tpu.vector_store %arg11[%c0_25, %c0_26], %37 {strides = array<i32>} : memref<16x32xbf16, #tpu.memory_space<vmem>>, vector<16x32xbf16>,
    return
  }
}

module attributes {stable_mosaic.version = 11 : i64} {
  func.func @_dense_layer_kernel(%arg0: memref<16x32xbf16, #tpu.memory_space<vmem>>, %arg1: memref<16x1xf32, #tpu.memory_space<vmem>>, %arg2: memref<16x1xf32, #tpu.memory_space<vmem>>, %arg3: memref<8x32xbf16, #tpu.memory_space<vmem>>, %arg4: memref<8x1xf32, #tpu.memory_space<vmem>>, %arg5: memref<8x1xf32, #tpu.memory_space<vmem>>, %arg6: memref<32x24xbf16, #tpu.memory_space<vmem>>, %arg7: memref<32x1xf32, #tpu.memory_space<vmem>>, %arg8: memref<9x32x32xbf16, #tpu.memory_space<vmem>>, %arg9: memref<8x288xbf16, #tpu.memory_space<vmem>>, %arg10: memref<8x32xbf16, #tpu.memory_space<vmem>>) attributes {dimension_semantics = [], scalar_prefetch = 0 : i64, scratch_operands = 0 : i64, tpu.core_type = #tpu.core_type<tc>} {
    %c0 = arith.constant 0 : index
    %c0_0 = arith.constant 0 : index
    %0 = vector.load %arg0[%c0, %c0_0] : memref<16x32xbf16, #tpu.memory_space<vmem>>, vector<16x32xbf16>
    %c0_1 = arith.constant 0 : index
    %c0_2 = arith.constant 0 : index
    %1 = vector.load %arg1[%c0_1, %c0_2] : memref<16x1xf32, #tpu.memory_space<vmem>>, vector<16x1xf32>
    %c0_3 = arith.constant 0 : index
    %c0_4 = arith.constant 0 : index
    %2 = vector.load %arg2[%c0_3, %c0_4] : memref<16x1xf32, #tpu.memory_space<vmem>>, vector<16x1xf32>
    %3 = arith.extf %0 : vector<16x32xbf16> to vector<16x32xf32>
    %4 = vector.broadcast %1 : vector<16x1xf32> to vector<16x32xf32>
    %5 = arith.mulf %3, %4 : vector<16x32xf32>
    %6 = vector.broadcast %2 : vector<16x1xf32> to vector<16x32xf32>
    %7 = arith.addf %5, %6 : vector<16x32xf32>
    %cst = arith.constant 0.000000e+00 : f32
    %8 = vector.broadcast %cst : f32 to vector<16x32xf32>
    %9 = arith.maximumf %7, %8 : vector<16x32xf32>
    %c0_5 = arith.constant 0 : index
    %c0_6 = arith.constant 0 : index
    %10 = vector.load %arg3[%c0_5, %c0_6] : memref<8x32xbf16, #tpu.memory_space<vmem>>, vector<8x32xbf16>
    %c0_7 = arith.constant 0 : index
    %c0_8 = arith.constant 0 : index
    %11 = vector.load %arg4[%c0_7, %c0_8] : memref<8x1xf32, #tpu.memory_space<vmem>>, vector<8x1xf32>
    %c0_9 = arith.constant 0 : index
    %c0_10 = arith.constant 0 : index
    %12 = vector.load %arg5[%c0_9, %c0_10] : memref<8x1xf32, #tpu.memory_space<vmem>>, vector<8x1xf32>
    %13 = arith.extf %10 : vector<8x32xbf16> to vector<8x32xf32>
    %14 = vector.broadcast %11 : vector<8x1xf32> to vector<8x32xf32>
    %15 = arith.mulf %13, %14 : vector<8x32xf32>
    %16 = vector.broadcast %12 : vector<8x1xf32> to vector<8x32xf32>
    %17 = arith.addf %15, %16 : vector<8x32xf32>
    %cst_11 = arith.constant 0.000000e+00 : f32
    %18 = vector.broadcast %cst_11 : f32 to vector<8x32xf32>
    %19 = arith.maximumf %17, %18 : vector<8x32xf32>
    %20 = tpu.concatenate %9, %19 in 0 : vector<16x32xf32>, vector<8x32xf32> -> vector<24x32xf32>
    %21 = arith.truncf %20 : vector<24x32xf32> to vector<24x32xbf16>
    %c0_12 = arith.constant 0 : index
    %c0_13 = arith.constant 0 : index
    %22 = vector.load %arg6[%c0_12, %c0_13] : memref<32x24xbf16, #tpu.memory_space<vmem>>, vector<32x24xbf16>
    %cst_14 = arith.constant dense<0.000000e+00> : vector<32x32xf32>
    %23 = tpu.matmul %22, %21, %cst_14 {dimension_numbers = #tpu.dot_dimension_numbers<[1], [0], [0], [1], [0, 0, 1, 1], [], []>} : vector<32x24xbf16>, vector<24x32xbf16>, vector<32x32xf32> -> vector<32x32xf32>
    %c0_15 = arith.constant 0 : index
    %c0_16 = arith.constant 0 : index
    %24 = vector.load %arg7[%c0_15, %c0_16] : memref<32x1xf32, #tpu.memory_space<vmem>>, vector<32x1xf32>
    %25 = vector.broadcast %24 : vector<32x1xf32> to vector<32x32xf32>
    %26 = arith.addf %23, %25 : vector<32x32xf32>
    %cst_17 = arith.constant 0.000000e+00 : f32
    %27 = vector.broadcast %cst_17 : f32 to vector<32x32xf32>
    %28 = arith.maximumf %26, %27 : vector<32x32xf32>
    %29 = arith.truncf %28 : vector<32x32xf32> to vector<32x32xbf16>
    %c0_18 = arith.constant 0 : index
    %c0_19 = arith.constant 0 : index
    %c0_20 = arith.constant 0 : index
    %30 = vector.load %arg8[%c0_18, %c0_19, %c0_20] : memref<9x32x32xbf16, #tpu.memory_space<vmem>>, vector<1x32x32xbf16>
    %31 = vector.shape_cast %30 : vector<1x32x32xbf16> to vector<32x32xbf16>
    %cst_21 = arith.constant dense<0.000000e+00> : vector<32x32xf32>
    %32 = tpu.matmul %29, %31, %cst_21 {dimension_numbers = #tpu.dot_dimension_numbers<[1], [0], [0], [1], [0, 0, 1, 1], [], []>} : vector<32x32xbf16>, vector<32x32xbf16>, vector<32x32xf32> -> vector<32x32xf32>
    %c1 = arith.constant 1 : index
    %c0_22 = arith.constant 0 : index
    %c0_23 = arith.constant 0 : index
    %33 = vector.load %arg8[%c1, %c0_22, %c0_23] : memref<9x32x32xbf16, #tpu.memory_space<vmem>>, vector<1x32x32xbf16>
    %34 = vector.shape_cast %33 : vector<1x32x32xbf16> to vector<32x32xbf16>
    %cst_24 = arith.constant dense<0.000000e+00> : vector<32x32xf32>
    %35 = tpu.matmul %29, %34, %cst_24 {dimension_numbers = #tpu.dot_dimension_numbers<[1], [0], [0], [1], [0, 0, 1, 1], [], []>} : vector<32x32xbf16>, vector<32x32xbf16>, vector<32x32xf32> -> vector<32x32xf32>
    %c2 = arith.constant 2 : index
    %c0_25 = arith.constant 0 : index
    %c0_26 = arith.constant 0 : index
    %36 = vector.load %arg8[%c2, %c0_25, %c0_26] : memref<9x32x32xbf16, #tpu.memory_space<vmem>>, vector<1x32x32xbf16>
    %37 = vector.shape_cast %36 : vector<1x32x32xbf16> to vector<32x32xbf16>
    %cst_27 = arith.constant dense<0.000000e+00> : vector<32x32xf32>
    %38 = tpu.matmul %29, %37, %cst_27 {dimension_numbers = #tpu.dot_dimension_numbers<[1], [0], [0], [1], [0, 0, 1, 1], [], []>} : vector<32x32xbf16>, vector<32x32xbf16>, vector<32x32xf32> -> vector<32x32xf32>
    %c3 = arith.constant 3 : index
    %c0_28 = arith.constant 0 : index
    %c0_29 = arith.constant 0 : index
    %39 = vector.load %arg8[%c3, %c0_28, %c0_29] : memref<9x32x32xbf16, #tpu.memory_space<vmem>>, vector<1x32x32xbf16>
    %40 = vector.shape_cast %39 : vector<1x32x32xbf16> to vector<32x32xbf16>
    %cst_30 = arith.constant dense<0.000000e+00> : vector<32x32xf32>
    %41 = tpu.matmul %29, %40, %cst_30 {dimension_numbers = #tpu.dot_dimension_numbers<[1], [0], [0], [1], [0, 0, 1, 1], [], []>} : vector<32x32xbf16>, vector<32x32xbf16>, vector<32x32xf32> -> vector<32x32xf32>
    %c4 = arith.constant 4 : index
    %c0_31 = arith.constant 0 : index
    %c0_32 = arith.constant 0 : index
    %42 = vector.load %arg8[%c4, %c0_31, %c0_32] : memref<9x32x32xbf16, #tpu.memory_space<vmem>>, vector<1x32x32xbf16>
    %43 = vector.shape_cast %42 : vector<1x32x32xbf16> to vector<32x32xbf16>
    %cst_33 = arith.constant dense<0.000000e+00> : vector<32x32xf32>
    %44 = tpu.matmul %29, %43, %cst_33 {dimension_numbers = #tpu.dot_dimension_numbers<[1], [0], [0], [1], [0, 0, 1, 1], [], []>} : vector<32x32xbf16>, vector<32x32xbf16>, vector<32x32xf32> -> vector<32x32xf32>
    %c5 = arith.constant 5 : index
    %c0_34 = arith.constant 0 : index
    %c0_35 = arith.constant 0 : index
    %45 = vector.load %arg8[%c5, %c0_34, %c0_35] : memref<9x32x32xbf16, #tpu.memory_space<vmem>>, vector<1x32x32xbf16>
    %46 = vector.shape_cast %45 : vector<1x32x32xbf16> to vector<32x32xbf16>
    %cst_36 = arith.constant dense<0.000000e+00> : vector<32x32xf32>
    %47 = tpu.matmul %29, %46, %cst_36 {dimension_numbers = #tpu.dot_dimension_numbers<[1], [0], [0], [1], [0, 0, 1, 1], [], []>} : vector<32x32xbf16>, vector<32x32xbf16>, vector<32x32xf32> -> vector<32x32xf32>
    %c6 = arith.constant 6 : index
    %c0_37 = arith.constant 0 : index
    %c0_38 = arith.constant 0 : index
    %48 = vector.load %arg8[%c6, %c0_37, %c0_38] : memref<9x32x32xbf16, #tpu.memory_space<vmem>>, vector<1x32x32xbf16>
    %49 = vector.shape_cast %48 : vector<1x32x32xbf16> to vector<32x32xbf16>
    %cst_39 = arith.constant dense<0.000000e+00> : vector<32x32xf32>
    %50 = tpu.matmul %29, %49, %cst_39 {dimension_numbers = #tpu.dot_dimension_numbers<[1], [0], [0], [1], [0, 0, 1, 1], [], []>} : vector<32x32xbf16>, vector<32x32xbf16>, vector<32x32xf32> -> vector<32x32xf32>
    %c7 = arith.constant 7 : index
    %c0_40 = arith.constant 0 : index
    %c0_41 = arith.constant 0 : index
    %51 = vector.load %arg8[%c7, %c0_40, %c0_41] : memref<9x32x32xbf16, #tpu.memory_space<vmem>>, vector<1x32x32xbf16>
    %52 = vector.shape_cast %51 : vector<1x32x32xbf16> to vector<32x32xbf16>
    %cst_42 = arith.constant dense<0.000000e+00> : vector<32x32xf32>
    %53 = tpu.matmul %29, %52, %cst_42 {dimension_numbers = #tpu.dot_dimension_numbers<[1], [0], [0], [1], [0, 0, 1, 1], [], []>} : vector<32x32xbf16>, vector<32x32xbf16>, vector<32x32xf32> -> vector<32x32xf32>
    %c8 = arith.constant 8 : index
    %c0_43 = arith.constant 0 : index
    %c0_44 = arith.constant 0 : index
    %54 = vector.load %arg8[%c8, %c0_43, %c0_44] : memref<9x32x32xbf16, #tpu.memory_space<vmem>>, vector<1x32x32xbf16>
    %55 = vector.shape_cast %54 : vector<1x32x32xbf16> to vector<32x32xbf16>
    %cst_45 = arith.constant dense<0.000000e+00> : vector<32x32xf32>
    %56 = tpu.matmul %29, %55, %cst_45 {dimension_numbers = #tpu.dot_dimension_numbers<[1], [0], [0], [1], [0, 0, 1, 1], [], []>} : vector<32x32xbf16>, vector<32x32xbf16>, vector<32x32xf32> -> vector<32x32xf32>
    %57 = tpu.concatenate %32, %35, %38, %41, %44, %47, %50, %53, %56 in 0 : vector<32x32xf32>, vector<32x32xf32>, vector<32x32xf32>, vector<32x32xf32>, vector<32x32xf32>, vector<32x32xf32>, vector<32x32xf32>, vector<32x32xf32>, vector<32x32xf32> -> vector<288x32xf32>
    %58 = arith.truncf %57 : vector<288x32xf32> to vector<288x32xbf16>
    %c0_46 = arith.constant 0 : index
    %c0_47 = arith.constant 0 : index
    %59 = vector.load %arg9[%c0_46, %c0_47] : memref<8x288xbf16, #tpu.memory_space<vmem>>, vector<8x288xbf16>
    %cst_48 = arith.constant dense<0.000000e+00> : vector<8x32xf32>
    %60 = tpu.matmul %59, %58, %cst_48 {dimension_numbers = #tpu.dot_dimension_numbers<[1], [0], [0], [1], [0, 0, 1, 1], [], []>} : vector<8x288xbf16>, vector<288x32xbf16>, vector<8x32xf32> -> vector<8x32xf32>
    %61 = arith.truncf %60 : vector<8x32xf32> to vector<8x32xbf16>
    %c0_49 = arith.constant 0 : index
    %c0_50 = arith.constant 0 : index
    %62 = vector.load %arg10[%c0_49, %c0_50] : memref<8x32xbf16, #tpu.memory_space<vmem>>, vector<8x32xbf16>
    tpu.vector_store %arg10[%c0_49, %c0_50], %61 {strides = array<i32>} : memref<8x32xbf16, #tpu.memory_space<vmem>>, vector<8x32xbf16>,
    return
  }
}

module attributes {stable_mosaic.version = 11 : i64} {
  func.func @_dense_layer_kernel(%arg0: memref<16x32xbf16, #tpu.memory_space<vmem>>, %arg1: memref<16x1xf32, #tpu.memory_space<vmem>>, %arg2: memref<16x1xf32, #tpu.memory_space<vmem>>, %arg3: memref<32x16xbf16, #tpu.memory_space<vmem>>, %arg4: memref<32x1xf32, #tpu.memory_space<vmem>>, %arg5: memref<9x32x32xbf16, #tpu.memory_space<vmem>>, %arg6: memref<8x288xbf16, #tpu.memory_space<vmem>>, %arg7: memref<8x32xbf16, #tpu.memory_space<vmem>>) attributes {dimension_semantics = [], scalar_prefetch = 0 : i64, scratch_operands = 0 : i64, tpu.core_type = #tpu.core_type<tc>} {
    %c0 = arith.constant 0 : index
    %c0_0 = arith.constant 0 : index
    %0 = vector.load %arg0[%c0, %c0_0] : memref<16x32xbf16, #tpu.memory_space<vmem>>, vector<16x32xbf16>
    %c0_1 = arith.constant 0 : index
    %c0_2 = arith.constant 0 : index
    %1 = vector.load %arg1[%c0_1, %c0_2] : memref<16x1xf32, #tpu.memory_space<vmem>>, vector<16x1xf32>
    %c0_3 = arith.constant 0 : index
    %c0_4 = arith.constant 0 : index
    %2 = vector.load %arg2[%c0_3, %c0_4] : memref<16x1xf32, #tpu.memory_space<vmem>>, vector<16x1xf32>
    %3 = arith.extf %0 : vector<16x32xbf16> to vector<16x32xf32>
    %4 = vector.broadcast %1 : vector<16x1xf32> to vector<16x32xf32>
    %5 = arith.mulf %3, %4 : vector<16x32xf32>
    %6 = vector.broadcast %2 : vector<16x1xf32> to vector<16x32xf32>
    %7 = arith.addf %5, %6 : vector<16x32xf32>
    %cst = arith.constant 0.000000e+00 : f32
    %8 = vector.broadcast %cst : f32 to vector<16x32xf32>
    %9 = arith.maximumf %7, %8 : vector<16x32xf32>
    %10 = arith.truncf %9 : vector<16x32xf32> to vector<16x32xbf16>
    %c0_5 = arith.constant 0 : index
    %c0_6 = arith.constant 0 : index
    %11 = vector.load %arg3[%c0_5, %c0_6] : memref<32x16xbf16, #tpu.memory_space<vmem>>, vector<32x16xbf16>
    %cst_7 = arith.constant dense<0.000000e+00> : vector<32x32xf32>
    %12 = tpu.matmul %11, %10, %cst_7 {dimension_numbers = #tpu.dot_dimension_numbers<[1], [0], [0], [1], [0, 0, 1, 1], [], []>} : vector<32x16xbf16>, vector<16x32xbf16>, vector<32x32xf32> -> vector<32x32xf32>
    %c0_8 = arith.constant 0 : index
    %c0_9 = arith.constant 0 : index
    %13 = vector.load %arg4[%c0_8, %c0_9] : memref<32x1xf32, #tpu.memory_space<vmem>>, vector<32x1xf32>
    %14 = vector.broadcast %13 : vector<32x1xf32> to vector<32x32xf32>
    %15 = arith.addf %12, %14 : vector<32x32xf32>
    %cst_10 = arith.constant 0.000000e+00 : f32
    %16 = vector.broadcast %cst_10 : f32 to vector<32x32xf32>
    %17 = arith.maximumf %15, %16 : vector<32x32xf32>
    %18 = arith.truncf %17 : vector<32x32xf32> to vector<32x32xbf16>
    %c0_11 = arith.constant 0 : index
    %c0_12 = arith.constant 0 : index
    %c0_13 = arith.constant 0 : index
    %19 = vector.load %arg5[%c0_11, %c0_12, %c0_13] : memref<9x32x32xbf16, #tpu.memory_space<vmem>>, vector<1x32x32xbf16>
    %20 = vector.shape_cast %19 : vector<1x32x32xbf16> to vector<32x32xbf16>
    %cst_14 = arith.constant dense<0.000000e+00> : vector<32x32xf32>
    %21 = tpu.matmul %18, %20, %cst_14 {dimension_numbers = #tpu.dot_dimension_numbers<[1], [0], [0], [1], [0, 0, 1, 1], [], []>} : vector<32x32xbf16>, vector<32x32xbf16>, vector<32x32xf32> -> vector<32x32xf32>
    %c1 = arith.constant 1 : index
    %c0_15 = arith.constant 0 : index
    %c0_16 = arith.constant 0 : index
    %22 = vector.load %arg5[%c1, %c0_15, %c0_16] : memref<9x32x32xbf16, #tpu.memory_space<vmem>>, vector<1x32x32xbf16>
    %23 = vector.shape_cast %22 : vector<1x32x32xbf16> to vector<32x32xbf16>
    %cst_17 = arith.constant dense<0.000000e+00> : vector<32x32xf32>
    %24 = tpu.matmul %18, %23, %cst_17 {dimension_numbers = #tpu.dot_dimension_numbers<[1], [0], [0], [1], [0, 0, 1, 1], [], []>} : vector<32x32xbf16>, vector<32x32xbf16>, vector<32x32xf32> -> vector<32x32xf32>
    %c2 = arith.constant 2 : index
    %c0_18 = arith.constant 0 : index
    %c0_19 = arith.constant 0 : index
    %25 = vector.load %arg5[%c2, %c0_18, %c0_19] : memref<9x32x32xbf16, #tpu.memory_space<vmem>>, vector<1x32x32xbf16>
    %26 = vector.shape_cast %25 : vector<1x32x32xbf16> to vector<32x32xbf16>
    %cst_20 = arith.constant dense<0.000000e+00> : vector<32x32xf32>
    %27 = tpu.matmul %18, %26, %cst_20 {dimension_numbers = #tpu.dot_dimension_numbers<[1], [0], [0], [1], [0, 0, 1, 1], [], []>} : vector<32x32xbf16>, vector<32x32xbf16>, vector<32x32xf32> -> vector<32x32xf32>
    %c3 = arith.constant 3 : index
    %c0_21 = arith.constant 0 : index
    %c0_22 = arith.constant 0 : index
    %28 = vector.load %arg5[%c3, %c0_21, %c0_22] : memref<9x32x32xbf16, #tpu.memory_space<vmem>>, vector<1x32x32xbf16>
    %29 = vector.shape_cast %28 : vector<1x32x32xbf16> to vector<32x32xbf16>
    %cst_23 = arith.constant dense<0.000000e+00> : vector<32x32xf32>
    %30 = tpu.matmul %18, %29, %cst_23 {dimension_numbers = #tpu.dot_dimension_numbers<[1], [0], [0], [1], [0, 0, 1, 1], [], []>} : vector<32x32xbf16>, vector<32x32xbf16>, vector<32x32xf32> -> vector<32x32xf32>
    %c4 = arith.constant 4 : index
    %c0_24 = arith.constant 0 : index
    %c0_25 = arith.constant 0 : index
    %31 = vector.load %arg5[%c4, %c0_24, %c0_25] : memref<9x32x32xbf16, #tpu.memory_space<vmem>>, vector<1x32x32xbf16>
    %32 = vector.shape_cast %31 : vector<1x32x32xbf16> to vector<32x32xbf16>
    %cst_26 = arith.constant dense<0.000000e+00> : vector<32x32xf32>
    %33 = tpu.matmul %18, %32, %cst_26 {dimension_numbers = #tpu.dot_dimension_numbers<[1], [0], [0], [1], [0, 0, 1, 1], [], []>} : vector<32x32xbf16>, vector<32x32xbf16>, vector<32x32xf32> -> vector<32x32xf32>
    %c5 = arith.constant 5 : index
    %c0_27 = arith.constant 0 : index
    %c0_28 = arith.constant 0 : index
    %34 = vector.load %arg5[%c5, %c0_27, %c0_28] : memref<9x32x32xbf16, #tpu.memory_space<vmem>>, vector<1x32x32xbf16>
    %35 = vector.shape_cast %34 : vector<1x32x32xbf16> to vector<32x32xbf16>
    %cst_29 = arith.constant dense<0.000000e+00> : vector<32x32xf32>
    %36 = tpu.matmul %18, %35, %cst_29 {dimension_numbers = #tpu.dot_dimension_numbers<[1], [0], [0], [1], [0, 0, 1, 1], [], []>} : vector<32x32xbf16>, vector<32x32xbf16>, vector<32x32xf32> -> vector<32x32xf32>
    %c6 = arith.constant 6 : index
    %c0_30 = arith.constant 0 : index
    %c0_31 = arith.constant 0 : index
    %37 = vector.load %arg5[%c6, %c0_30, %c0_31] : memref<9x32x32xbf16, #tpu.memory_space<vmem>>, vector<1x32x32xbf16>
    %38 = vector.shape_cast %37 : vector<1x32x32xbf16> to vector<32x32xbf16>
    %cst_32 = arith.constant dense<0.000000e+00> : vector<32x32xf32>
    %39 = tpu.matmul %18, %38, %cst_32 {dimension_numbers = #tpu.dot_dimension_numbers<[1], [0], [0], [1], [0, 0, 1, 1], [], []>} : vector<32x32xbf16>, vector<32x32xbf16>, vector<32x32xf32> -> vector<32x32xf32>
    %c7 = arith.constant 7 : index
    %c0_33 = arith.constant 0 : index
    %c0_34 = arith.constant 0 : index
    %40 = vector.load %arg5[%c7, %c0_33, %c0_34] : memref<9x32x32xbf16, #tpu.memory_space<vmem>>, vector<1x32x32xbf16>
    %41 = vector.shape_cast %40 : vector<1x32x32xbf16> to vector<32x32xbf16>
    %cst_35 = arith.constant dense<0.000000e+00> : vector<32x32xf32>
    %42 = tpu.matmul %18, %41, %cst_35 {dimension_numbers = #tpu.dot_dimension_numbers<[1], [0], [0], [1], [0, 0, 1, 1], [], []>} : vector<32x32xbf16>, vector<32x32xbf16>, vector<32x32xf32> -> vector<32x32xf32>
    %c8 = arith.constant 8 : index
    %c0_36 = arith.constant 0 : index
    %c0_37 = arith.constant 0 : index
    %43 = vector.load %arg5[%c8, %c0_36, %c0_37] : memref<9x32x32xbf16, #tpu.memory_space<vmem>>, vector<1x32x32xbf16>
    %44 = vector.shape_cast %43 : vector<1x32x32xbf16> to vector<32x32xbf16>
    %cst_38 = arith.constant dense<0.000000e+00> : vector<32x32xf32>
    %45 = tpu.matmul %18, %44, %cst_38 {dimension_numbers = #tpu.dot_dimension_numbers<[1], [0], [0], [1], [0, 0, 1, 1], [], []>} : vector<32x32xbf16>, vector<32x32xbf16>, vector<32x32xf32> -> vector<32x32xf32>
    %46 = tpu.concatenate %21, %24, %27, %30, %33, %36, %39, %42, %45 in 0 : vector<32x32xf32>, vector<32x32xf32>, vector<32x32xf32>, vector<32x32xf32>, vector<32x32xf32>, vector<32x32xf32>, vector<32x32xf32>, vector<32x32xf32>, vector<32x32xf32> -> vector<288x32xf32>
    %47 = arith.truncf %46 : vector<288x32xf32> to vector<288x32xbf16>
    %c0_39 = arith.constant 0 : index
    %c0_40 = arith.constant 0 : index
    %48 = vector.load %arg6[%c0_39, %c0_40] : memref<8x288xbf16, #tpu.memory_space<vmem>>, vector<8x288xbf16>
    %cst_41 = arith.constant dense<0.000000e+00> : vector<8x32xf32>
    %49 = tpu.matmul %48, %47, %cst_41 {dimension_numbers = #tpu.dot_dimension_numbers<[1], [0], [0], [1], [0, 0, 1, 1], [], []>} : vector<8x288xbf16>, vector<288x32xbf16>, vector<8x32xf32> -> vector<8x32xf32>
    %50 = arith.truncf %49 : vector<8x32xf32> to vector<8x32xbf16>
    %c0_42 = arith.constant 0 : index
    %c0_43 = arith.constant 0 : index
    %51 = vector.load %arg7[%c0_42, %c0_43] : memref<8x32xbf16, #tpu.memory_space<vmem>>, vector<8x32xbf16>
    tpu.vector_store %arg7[%c0_42, %c0_43], %50 {strides = array<i32>} : memref<8x32xbf16, #tpu.memory_space<vmem>>, vector<8x32xbf16>,
    return
  }
}

module attributes {stable_mosaic.version = 11 : i64} {
  func.func @_transition_kernel(%arg0: memref<16x32xbf16, #tpu.memory_space<vmem>>, %arg1: memref<16x1xf32, #tpu.memory_space<vmem>>, %arg2: memref<16x1xf32, #tpu.memory_space<vmem>>, %arg3: memref<8x32xbf16, #tpu.memory_space<vmem>>, %arg4: memref<8x1xf32, #tpu.memory_space<vmem>>, %arg5: memref<8x1xf32, #tpu.memory_space<vmem>>, %arg6: memref<8x32xbf16, #tpu.memory_space<vmem>>, %arg7: memref<8x1xf32, #tpu.memory_space<vmem>>, %arg8: memref<8x1xf32, #tpu.memory_space<vmem>>, %arg9: memref<16x32xbf16, #tpu.memory_space<vmem>>, %arg10: memref<32x8xbf16, #tpu.memory_space<vmem>>, %arg11: memref<16x8xbf16, #tpu.memory_space<vmem>>) attributes {dimension_semantics = [], scalar_prefetch = 0 : i64, scratch_operands = 0 : i64, tpu.core_type = #tpu.core_type<tc>} {
    %c0 = arith.constant 0 : index
    %c0_0 = arith.constant 0 : index
    %0 = vector.load %arg0[%c0, %c0_0] : memref<16x32xbf16, #tpu.memory_space<vmem>>, vector<16x32xbf16>
    %c0_1 = arith.constant 0 : index
    %c0_2 = arith.constant 0 : index
    %1 = vector.load %arg1[%c0_1, %c0_2] : memref<16x1xf32, #tpu.memory_space<vmem>>, vector<16x1xf32>
    %c0_3 = arith.constant 0 : index
    %c0_4 = arith.constant 0 : index
    %2 = vector.load %arg2[%c0_3, %c0_4] : memref<16x1xf32, #tpu.memory_space<vmem>>, vector<16x1xf32>
    %3 = arith.extf %0 : vector<16x32xbf16> to vector<16x32xf32>
    %4 = vector.broadcast %1 : vector<16x1xf32> to vector<16x32xf32>
    %5 = arith.mulf %3, %4 : vector<16x32xf32>
    %6 = vector.broadcast %2 : vector<16x1xf32> to vector<16x32xf32>
    %7 = arith.addf %5, %6 : vector<16x32xf32>
    %cst = arith.constant 0.000000e+00 : f32
    %8 = vector.broadcast %cst : f32 to vector<16x32xf32>
    %9 = arith.maximumf %7, %8 : vector<16x32xf32>
    %c0_5 = arith.constant 0 : index
    %c0_6 = arith.constant 0 : index
    %10 = vector.load %arg3[%c0_5, %c0_6] : memref<8x32xbf16, #tpu.memory_space<vmem>>, vector<8x32xbf16>
    %c0_7 = arith.constant 0 : index
    %c0_8 = arith.constant 0 : index
    %11 = vector.load %arg4[%c0_7, %c0_8] : memref<8x1xf32, #tpu.memory_space<vmem>>, vector<8x1xf32>
    %c0_9 = arith.constant 0 : index
    %c0_10 = arith.constant 0 : index
    %12 = vector.load %arg5[%c0_9, %c0_10] : memref<8x1xf32, #tpu.memory_space<vmem>>, vector<8x1xf32>
    %13 = arith.extf %10 : vector<8x32xbf16> to vector<8x32xf32>
    %14 = vector.broadcast %11 : vector<8x1xf32> to vector<8x32xf32>
    %15 = arith.mulf %13, %14 : vector<8x32xf32>
    %16 = vector.broadcast %12 : vector<8x1xf32> to vector<8x32xf32>
    %17 = arith.addf %15, %16 : vector<8x32xf32>
    %cst_11 = arith.constant 0.000000e+00 : f32
    %18 = vector.broadcast %cst_11 : f32 to vector<8x32xf32>
    %19 = arith.maximumf %17, %18 : vector<8x32xf32>
    %c0_12 = arith.constant 0 : index
    %c0_13 = arith.constant 0 : index
    %20 = vector.load %arg6[%c0_12, %c0_13] : memref<8x32xbf16, #tpu.memory_space<vmem>>, vector<8x32xbf16>
    %c0_14 = arith.constant 0 : index
    %c0_15 = arith.constant 0 : index
    %21 = vector.load %arg7[%c0_14, %c0_15] : memref<8x1xf32, #tpu.memory_space<vmem>>, vector<8x1xf32>
    %c0_16 = arith.constant 0 : index
    %c0_17 = arith.constant 0 : index
    %22 = vector.load %arg8[%c0_16, %c0_17] : memref<8x1xf32, #tpu.memory_space<vmem>>, vector<8x1xf32>
    %23 = arith.extf %20 : vector<8x32xbf16> to vector<8x32xf32>
    %24 = vector.broadcast %21 : vector<8x1xf32> to vector<8x32xf32>
    %25 = arith.mulf %23, %24 : vector<8x32xf32>
    %26 = vector.broadcast %22 : vector<8x1xf32> to vector<8x32xf32>
    %27 = arith.addf %25, %26 : vector<8x32xf32>
    %cst_18 = arith.constant 0.000000e+00 : f32
    %28 = vector.broadcast %cst_18 : f32 to vector<8x32xf32>
    %29 = arith.maximumf %27, %28 : vector<8x32xf32>
    %30 = tpu.concatenate %9, %19, %29 in 0 : vector<16x32xf32>, vector<8x32xf32>, vector<8x32xf32> -> vector<32x32xf32>
    %31 = arith.truncf %30 : vector<32x32xf32> to vector<32x32xbf16>
    %c0_19 = arith.constant 0 : index
    %c0_20 = arith.constant 0 : index
    %32 = vector.load %arg9[%c0_19, %c0_20] : memref<16x32xbf16, #tpu.memory_space<vmem>>, vector<16x32xbf16>
    %cst_21 = arith.constant dense<0.000000e+00> : vector<16x32xf32>
    %33 = tpu.matmul %32, %31, %cst_21 {dimension_numbers = #tpu.dot_dimension_numbers<[1], [0], [0], [1], [0, 0, 1, 1], [], []>} : vector<16x32xbf16>, vector<32x32xbf16>, vector<16x32xf32> -> vector<16x32xf32>
    %34 = arith.truncf %33 : vector<16x32xf32> to vector<16x32xbf16>
    %c0_22 = arith.constant 0 : index
    %c0_23 = arith.constant 0 : index
    %35 = vector.load %arg10[%c0_22, %c0_23] : memref<32x8xbf16, #tpu.memory_space<vmem>>, vector<32x8xbf16>
    %cst_24 = arith.constant dense<0.000000e+00> : vector<16x8xf32>
    %36 = tpu.matmul %34, %35, %cst_24 {dimension_numbers = #tpu.dot_dimension_numbers<[1], [0], [0], [1], [0, 0, 1, 1], [], []>} : vector<16x32xbf16>, vector<32x8xbf16>, vector<16x8xf32> -> vector<16x8xf32>
    %37 = arith.truncf %36 : vector<16x8xf32> to vector<16x8xbf16>
    %c0_25 = arith.constant 0 : index
    %c0_26 = arith.constant 0 : index
    %38 = vector.load %arg11[%c0_25, %c0_26] : memref<16x8xbf16, #tpu.memory_space<vmem>>, vector<16x8xbf16>
    tpu.vector_store %arg11[%c0_25, %c0_26], %37 {strides = array<i32>} : memref<16x8xbf16, #tpu.memory_space<vmem>>, vector<16x8xbf16>,
    return
  }
}

module attributes {stable_mosaic.version = 11 : i64} {
  func.func @_dense_layer_kernel(%arg0: memref<16x8xbf16, #tpu.memory_space<vmem>>, %arg1: memref<16x1xf32, #tpu.memory_space<vmem>>, %arg2: memref<16x1xf32, #tpu.memory_space<vmem>>, %arg3: memref<32x16xbf16, #tpu.memory_space<vmem>>, %arg4: memref<32x1xf32, #tpu.memory_space<vmem>>, %arg5: memref<9x8x8xbf16, #tpu.memory_space<vmem>>, %arg6: memref<8x288xbf16, #tpu.memory_space<vmem>>, %arg7: memref<8x8xbf16, #tpu.memory_space<vmem>>) attributes {dimension_semantics = [], scalar_prefetch = 0 : i64, scratch_operands = 0 : i64, tpu.core_type = #tpu.core_type<tc>} {
    %c0 = arith.constant 0 : index
    %c0_0 = arith.constant 0 : index
    %0 = vector.load %arg0[%c0, %c0_0] : memref<16x8xbf16, #tpu.memory_space<vmem>>, vector<16x8xbf16>
    %c0_1 = arith.constant 0 : index
    %c0_2 = arith.constant 0 : index
    %1 = vector.load %arg1[%c0_1, %c0_2] : memref<16x1xf32, #tpu.memory_space<vmem>>, vector<16x1xf32>
    %c0_3 = arith.constant 0 : index
    %c0_4 = arith.constant 0 : index
    %2 = vector.load %arg2[%c0_3, %c0_4] : memref<16x1xf32, #tpu.memory_space<vmem>>, vector<16x1xf32>
    %3 = arith.extf %0 : vector<16x8xbf16> to vector<16x8xf32>
    %4 = vector.broadcast %1 : vector<16x1xf32> to vector<16x8xf32>
    %5 = arith.mulf %3, %4 : vector<16x8xf32>
    %6 = vector.broadcast %2 : vector<16x1xf32> to vector<16x8xf32>
    %7 = arith.addf %5, %6 : vector<16x8xf32>
    %cst = arith.constant 0.000000e+00 : f32
    %8 = vector.broadcast %cst : f32 to vector<16x8xf32>
    %9 = arith.maximumf %7, %8 : vector<16x8xf32>
    %10 = arith.truncf %9 : vector<16x8xf32> to vector<16x8xbf16>
    %c0_5 = arith.constant 0 : index
    %c0_6 = arith.constant 0 : index
    %11 = vector.load %arg3[%c0_5, %c0_6] : memref<32x16xbf16, #tpu.memory_space<vmem>>, vector<32x16xbf16>
    %cst_7 = arith.constant dense<0.000000e+00> : vector<32x8xf32>
    %12 = tpu.matmul %11, %10, %cst_7 {dimension_numbers = #tpu.dot_dimension_numbers<[1], [0], [0], [1], [0, 0, 1, 1], [], []>} : vector<32x16xbf16>, vector<16x8xbf16>, vector<32x8xf32> -> vector<32x8xf32>
    %c0_8 = arith.constant 0 : index
    %c0_9 = arith.constant 0 : index
    %13 = vector.load %arg4[%c0_8, %c0_9] : memref<32x1xf32, #tpu.memory_space<vmem>>, vector<32x1xf32>
    %14 = vector.broadcast %13 : vector<32x1xf32> to vector<32x8xf32>
    %15 = arith.addf %12, %14 : vector<32x8xf32>
    %cst_10 = arith.constant 0.000000e+00 : f32
    %16 = vector.broadcast %cst_10 : f32 to vector<32x8xf32>
    %17 = arith.maximumf %15, %16 : vector<32x8xf32>
    %18 = arith.truncf %17 : vector<32x8xf32> to vector<32x8xbf16>
    %c0_11 = arith.constant 0 : index
    %c0_12 = arith.constant 0 : index
    %c0_13 = arith.constant 0 : index
    %19 = vector.load %arg5[%c0_11, %c0_12, %c0_13] : memref<9x8x8xbf16, #tpu.memory_space<vmem>>, vector<1x8x8xbf16>
    %20 = vector.shape_cast %19 : vector<1x8x8xbf16> to vector<8x8xbf16>
    %cst_14 = arith.constant dense<0.000000e+00> : vector<32x8xf32>
    %21 = tpu.matmul %18, %20, %cst_14 {dimension_numbers = #tpu.dot_dimension_numbers<[1], [0], [0], [1], [0, 0, 1, 1], [], []>} : vector<32x8xbf16>, vector<8x8xbf16>, vector<32x8xf32> -> vector<32x8xf32>
    %c1 = arith.constant 1 : index
    %c0_15 = arith.constant 0 : index
    %c0_16 = arith.constant 0 : index
    %22 = vector.load %arg5[%c1, %c0_15, %c0_16] : memref<9x8x8xbf16, #tpu.memory_space<vmem>>, vector<1x8x8xbf16>
    %23 = vector.shape_cast %22 : vector<1x8x8xbf16> to vector<8x8xbf16>
    %cst_17 = arith.constant dense<0.000000e+00> : vector<32x8xf32>
    %24 = tpu.matmul %18, %23, %cst_17 {dimension_numbers = #tpu.dot_dimension_numbers<[1], [0], [0], [1], [0, 0, 1, 1], [], []>} : vector<32x8xbf16>, vector<8x8xbf16>, vector<32x8xf32> -> vector<32x8xf32>
    %c2 = arith.constant 2 : index
    %c0_18 = arith.constant 0 : index
    %c0_19 = arith.constant 0 : index
    %25 = vector.load %arg5[%c2, %c0_18, %c0_19] : memref<9x8x8xbf16, #tpu.memory_space<vmem>>, vector<1x8x8xbf16>
    %26 = vector.shape_cast %25 : vector<1x8x8xbf16> to vector<8x8xbf16>
    %cst_20 = arith.constant dense<0.000000e+00> : vector<32x8xf32>
    %27 = tpu.matmul %18, %26, %cst_20 {dimension_numbers = #tpu.dot_dimension_numbers<[1], [0], [0], [1], [0, 0, 1, 1], [], []>} : vector<32x8xbf16>, vector<8x8xbf16>, vector<32x8xf32> -> vector<32x8xf32>
    %c3 = arith.constant 3 : index
    %c0_21 = arith.constant 0 : index
    %c0_22 = arith.constant 0 : index
    %28 = vector.load %arg5[%c3, %c0_21, %c0_22] : memref<9x8x8xbf16, #tpu.memory_space<vmem>>, vector<1x8x8xbf16>
    %29 = vector.shape_cast %28 : vector<1x8x8xbf16> to vector<8x8xbf16>
    %cst_23 = arith.constant dense<0.000000e+00> : vector<32x8xf32>
    %30 = tpu.matmul %18, %29, %cst_23 {dimension_numbers = #tpu.dot_dimension_numbers<[1], [0], [0], [1], [0, 0, 1, 1], [], []>} : vector<32x8xbf16>, vector<8x8xbf16>, vector<32x8xf32> -> vector<32x8xf32>
    %c4 = arith.constant 4 : index
    %c0_24 = arith.constant 0 : index
    %c0_25 = arith.constant 0 : index
    %31 = vector.load %arg5[%c4, %c0_24, %c0_25] : memref<9x8x8xbf16, #tpu.memory_space<vmem>>, vector<1x8x8xbf16>
    %32 = vector.shape_cast %31 : vector<1x8x8xbf16> to vector<8x8xbf16>
    %cst_26 = arith.constant dense<0.000000e+00> : vector<32x8xf32>
    %33 = tpu.matmul %18, %32, %cst_26 {dimension_numbers = #tpu.dot_dimension_numbers<[1], [0], [0], [1], [0, 0, 1, 1], [], []>} : vector<32x8xbf16>, vector<8x8xbf16>, vector<32x8xf32> -> vector<32x8xf32>
    %c5 = arith.constant 5 : index
    %c0_27 = arith.constant 0 : index
    %c0_28 = arith.constant 0 : index
    %34 = vector.load %arg5[%c5, %c0_27, %c0_28] : memref<9x8x8xbf16, #tpu.memory_space<vmem>>, vector<1x8x8xbf16>
    %35 = vector.shape_cast %34 : vector<1x8x8xbf16> to vector<8x8xbf16>
    %cst_29 = arith.constant dense<0.000000e+00> : vector<32x8xf32>
    %36 = tpu.matmul %18, %35, %cst_29 {dimension_numbers = #tpu.dot_dimension_numbers<[1], [0], [0], [1], [0, 0, 1, 1], [], []>} : vector<32x8xbf16>, vector<8x8xbf16>, vector<32x8xf32> -> vector<32x8xf32>
    %c6 = arith.constant 6 : index
    %c0_30 = arith.constant 0 : index
    %c0_31 = arith.constant 0 : index
    %37 = vector.load %arg5[%c6, %c0_30, %c0_31] : memref<9x8x8xbf16, #tpu.memory_space<vmem>>, vector<1x8x8xbf16>
    %38 = vector.shape_cast %37 : vector<1x8x8xbf16> to vector<8x8xbf16>
    %cst_32 = arith.constant dense<0.000000e+00> : vector<32x8xf32>
    %39 = tpu.matmul %18, %38, %cst_32 {dimension_numbers = #tpu.dot_dimension_numbers<[1], [0], [0], [1], [0, 0, 1, 1], [], []>} : vector<32x8xbf16>, vector<8x8xbf16>, vector<32x8xf32> -> vector<32x8xf32>
    %c7 = arith.constant 7 : index
    %c0_33 = arith.constant 0 : index
    %c0_34 = arith.constant 0 : index
    %40 = vector.load %arg5[%c7, %c0_33, %c0_34] : memref<9x8x8xbf16, #tpu.memory_space<vmem>>, vector<1x8x8xbf16>
    %41 = vector.shape_cast %40 : vector<1x8x8xbf16> to vector<8x8xbf16>
    %cst_35 = arith.constant dense<0.000000e+00> : vector<32x8xf32>
    %42 = tpu.matmul %18, %41, %cst_35 {dimension_numbers = #tpu.dot_dimension_numbers<[1], [0], [0], [1], [0, 0, 1, 1], [], []>} : vector<32x8xbf16>, vector<8x8xbf16>, vector<32x8xf32> -> vector<32x8xf32>
    %c8 = arith.constant 8 : index
    %c0_36 = arith.constant 0 : index
    %c0_37 = arith.constant 0 : index
    %43 = vector.load %arg5[%c8, %c0_36, %c0_37] : memref<9x8x8xbf16, #tpu.memory_space<vmem>>, vector<1x8x8xbf16>
    %44 = vector.shape_cast %43 : vector<1x8x8xbf16> to vector<8x8xbf16>
    %cst_38 = arith.constant dense<0.000000e+00> : vector<32x8xf32>
    %45 = tpu.matmul %18, %44, %cst_38 {dimension_numbers = #tpu.dot_dimension_numbers<[1], [0], [0], [1], [0, 0, 1, 1], [], []>} : vector<32x8xbf16>, vector<8x8xbf16>, vector<32x8xf32> -> vector<32x8xf32>
    %46 = tpu.concatenate %21, %24, %27, %30, %33, %36, %39, %42, %45 in 0 : vector<32x8xf32>, vector<32x8xf32>, vector<32x8xf32>, vector<32x8xf32>, vector<32x8xf32>, vector<32x8xf32>, vector<32x8xf32>, vector<32x8xf32>, vector<32x8xf32> -> vector<288x8xf32>
    %47 = arith.truncf %46 : vector<288x8xf32> to vector<288x8xbf16>
    %c0_39 = arith.constant 0 : index
    %c0_40 = arith.constant 0 : index
    %48 = vector.load %arg6[%c0_39, %c0_40] : memref<8x288xbf16, #tpu.memory_space<vmem>>, vector<8x288xbf16>
    %cst_41 = arith.constant dense<0.000000e+00> : vector<8x8xf32>
    %49 = tpu.matmul %48, %47, %cst_41 {dimension_numbers = #tpu.dot_dimension_numbers<[1], [0], [0], [1], [0, 0, 1, 1], [], []>} : vector<8x288xbf16>, vector<288x8xbf16>, vector<8x8xf32> -> vector<8x8xf32>
    %50 = arith.truncf %49 : vector<8x8xf32> to vector<8x8xbf16>
    %c0_42 = arith.constant 0 : index
    %c0_43 = arith.constant 0 : index
    %51 = vector.load %arg7[%c0_42, %c0_43] : memref<8x8xbf16, #tpu.memory_space<vmem>>, vector<8x8xbf16>
    tpu.vector_store %arg7[%c0_42, %c0_43], %50 {strides = array<i32>} : memref<8x8xbf16, #tpu.memory_space<vmem>>, vector<8x8xbf16>,
    return
  }
}

module attributes {stable_mosaic.version = 11 : i64} {
  func.func @_transition_kernel(%arg0: memref<16x8xbf16, #tpu.memory_space<vmem>>, %arg1: memref<16x1xf32, #tpu.memory_space<vmem>>, %arg2: memref<16x1xf32, #tpu.memory_space<vmem>>, %arg3: memref<8x8xbf16, #tpu.memory_space<vmem>>, %arg4: memref<8x1xf32, #tpu.memory_space<vmem>>, %arg5: memref<8x1xf32, #tpu.memory_space<vmem>>, %arg6: memref<8x8xbf16, #tpu.memory_space<vmem>>, %arg7: memref<8x1xf32, #tpu.memory_space<vmem>>, %arg8: memref<8x1xf32, #tpu.memory_space<vmem>>, %arg9: memref<16x32xbf16, #tpu.memory_space<vmem>>, %arg10: memref<8x2xbf16, #tpu.memory_space<vmem>>, %arg11: memref<16x2xbf16, #tpu.memory_space<vmem>>) attributes {dimension_semantics = [], scalar_prefetch = 0 : i64, scratch_operands = 0 : i64, tpu.core_type = #tpu.core_type<tc>} {
    %c0 = arith.constant 0 : index
    %c0_0 = arith.constant 0 : index
    %0 = vector.load %arg0[%c0, %c0_0] : memref<16x8xbf16, #tpu.memory_space<vmem>>, vector<16x8xbf16>
    %c0_1 = arith.constant 0 : index
    %c0_2 = arith.constant 0 : index
    %1 = vector.load %arg1[%c0_1, %c0_2] : memref<16x1xf32, #tpu.memory_space<vmem>>, vector<16x1xf32>
    %c0_3 = arith.constant 0 : index
    %c0_4 = arith.constant 0 : index
    %2 = vector.load %arg2[%c0_3, %c0_4] : memref<16x1xf32, #tpu.memory_space<vmem>>, vector<16x1xf32>
    %3 = arith.extf %0 : vector<16x8xbf16> to vector<16x8xf32>
    %4 = vector.broadcast %1 : vector<16x1xf32> to vector<16x8xf32>
    %5 = arith.mulf %3, %4 : vector<16x8xf32>
    %6 = vector.broadcast %2 : vector<16x1xf32> to vector<16x8xf32>
    %7 = arith.addf %5, %6 : vector<16x8xf32>
    %cst = arith.constant 0.000000e+00 : f32
    %8 = vector.broadcast %cst : f32 to vector<16x8xf32>
    %9 = arith.maximumf %7, %8 : vector<16x8xf32>
    %c0_5 = arith.constant 0 : index
    %c0_6 = arith.constant 0 : index
    %10 = vector.load %arg3[%c0_5, %c0_6] : memref<8x8xbf16, #tpu.memory_space<vmem>>, vector<8x8xbf16>
    %c0_7 = arith.constant 0 : index
    %c0_8 = arith.constant 0 : index
    %11 = vector.load %arg4[%c0_7, %c0_8] : memref<8x1xf32, #tpu.memory_space<vmem>>, vector<8x1xf32>
    %c0_9 = arith.constant 0 : index
    %c0_10 = arith.constant 0 : index
    %12 = vector.load %arg5[%c0_9, %c0_10] : memref<8x1xf32, #tpu.memory_space<vmem>>, vector<8x1xf32>
    %13 = arith.extf %10 : vector<8x8xbf16> to vector<8x8xf32>
    %14 = vector.broadcast %11 : vector<8x1xf32> to vector<8x8xf32>
    %15 = arith.mulf %13, %14 : vector<8x8xf32>
    %16 = vector.broadcast %12 : vector<8x1xf32> to vector<8x8xf32>
    %17 = arith.addf %15, %16 : vector<8x8xf32>
    %cst_11 = arith.constant 0.000000e+00 : f32
    %18 = vector.broadcast %cst_11 : f32 to vector<8x8xf32>
    %19 = arith.maximumf %17, %18 : vector<8x8xf32>
    %c0_12 = arith.constant 0 : index
    %c0_13 = arith.constant 0 : index
    %20 = vector.load %arg6[%c0_12, %c0_13] : memref<8x8xbf16, #tpu.memory_space<vmem>>, vector<8x8xbf16>
    %c0_14 = arith.constant 0 : index
    %c0_15 = arith.constant 0 : index
    %21 = vector.load %arg7[%c0_14, %c0_15] : memref<8x1xf32, #tpu.memory_space<vmem>>, vector<8x1xf32>
    %c0_16 = arith.constant 0 : index
    %c0_17 = arith.constant 0 : index
    %22 = vector.load %arg8[%c0_16, %c0_17] : memref<8x1xf32, #tpu.memory_space<vmem>>, vector<8x1xf32>
    %23 = arith.extf %20 : vector<8x8xbf16> to vector<8x8xf32>
    %24 = vector.broadcast %21 : vector<8x1xf32> to vector<8x8xf32>
    %25 = arith.mulf %23, %24 : vector<8x8xf32>
    %26 = vector.broadcast %22 : vector<8x1xf32> to vector<8x8xf32>
    %27 = arith.addf %25, %26 : vector<8x8xf32>
    %cst_18 = arith.constant 0.000000e+00 : f32
    %28 = vector.broadcast %cst_18 : f32 to vector<8x8xf32>
    %29 = arith.maximumf %27, %28 : vector<8x8xf32>
    %30 = tpu.concatenate %9, %19, %29 in 0 : vector<16x8xf32>, vector<8x8xf32>, vector<8x8xf32> -> vector<32x8xf32>
    %31 = arith.truncf %30 : vector<32x8xf32> to vector<32x8xbf16>
    %c0_19 = arith.constant 0 : index
    %c0_20 = arith.constant 0 : index
    %32 = vector.load %arg9[%c0_19, %c0_20] : memref<16x32xbf16, #tpu.memory_space<vmem>>, vector<16x32xbf16>
    %cst_21 = arith.constant dense<0.000000e+00> : vector<16x8xf32>
    %33 = tpu.matmul %32, %31, %cst_21 {dimension_numbers = #tpu.dot_dimension_numbers<[1], [0], [0], [1], [0, 0, 1, 1], [], []>} : vector<16x32xbf16>, vector<32x8xbf16>, vector<16x8xf32> -> vector<16x8xf32>
    %34 = arith.truncf %33 : vector<16x8xf32> to vector<16x8xbf16>
    %c0_22 = arith.constant 0 : index
    %c0_23 = arith.constant 0 : index
    %35 = vector.load %arg10[%c0_22, %c0_23] : memref<8x2xbf16, #tpu.memory_space<vmem>>, vector<8x2xbf16>
    %cst_24 = arith.constant dense<0.000000e+00> : vector<16x2xf32>
    %36 = tpu.matmul %34, %35, %cst_24 {dimension_numbers = #tpu.dot_dimension_numbers<[1], [0], [0], [1], [0, 0, 1, 1], [], []>} : vector<16x8xbf16>, vector<8x2xbf16>, vector<16x2xf32> -> vector<16x2xf32>
    %37 = arith.truncf %36 : vector<16x2xf32> to vector<16x2xbf16>
    %c0_25 = arith.constant 0 : index
    %c0_26 = arith.constant 0 : index
    %38 = vector.load %arg11[%c0_25, %c0_26] : memref<16x2xbf16, #tpu.memory_space<vmem>>, vector<16x2xbf16>
    tpu.vector_store %arg11[%c0_25, %c0_26], %37 {strides = array<i32>} : memref<16x2xbf16, #tpu.memory_space<vmem>>, vector<16x2xbf16>,
    return
  }
}

module attributes {stable_mosaic.version = 11 : i64} {
  func.func @_dense_layer_kernel(%arg0: memref<16x8xbf16, #tpu.memory_space<vmem>>, %arg1: memref<16x1xf32, #tpu.memory_space<vmem>>, %arg2: memref<16x1xf32, #tpu.memory_space<vmem>>, %arg3: memref<8x8xbf16, #tpu.memory_space<vmem>>, %arg4: memref<8x1xf32, #tpu.memory_space<vmem>>, %arg5: memref<8x1xf32, #tpu.memory_space<vmem>>, %arg6: memref<32x24xbf16, #tpu.memory_space<vmem>>, %arg7: memref<32x1xf32, #tpu.memory_space<vmem>>, %arg8: memref<9x8x8xbf16, #tpu.memory_space<vmem>>, %arg9: memref<8x288xbf16, #tpu.memory_space<vmem>>, %arg10: memref<8x8xbf16, #tpu.memory_space<vmem>>) attributes {dimension_semantics = [], scalar_prefetch = 0 : i64, scratch_operands = 0 : i64, tpu.core_type = #tpu.core_type<tc>} {
    %c0 = arith.constant 0 : index
    %c0_0 = arith.constant 0 : index
    %0 = vector.load %arg0[%c0, %c0_0] : memref<16x8xbf16, #tpu.memory_space<vmem>>, vector<16x8xbf16>
    %c0_1 = arith.constant 0 : index
    %c0_2 = arith.constant 0 : index
    %1 = vector.load %arg1[%c0_1, %c0_2] : memref<16x1xf32, #tpu.memory_space<vmem>>, vector<16x1xf32>
    %c0_3 = arith.constant 0 : index
    %c0_4 = arith.constant 0 : index
    %2 = vector.load %arg2[%c0_3, %c0_4] : memref<16x1xf32, #tpu.memory_space<vmem>>, vector<16x1xf32>
    %3 = arith.extf %0 : vector<16x8xbf16> to vector<16x8xf32>
    %4 = vector.broadcast %1 : vector<16x1xf32> to vector<16x8xf32>
    %5 = arith.mulf %3, %4 : vector<16x8xf32>
    %6 = vector.broadcast %2 : vector<16x1xf32> to vector<16x8xf32>
    %7 = arith.addf %5, %6 : vector<16x8xf32>
    %cst = arith.constant 0.000000e+00 : f32
    %8 = vector.broadcast %cst : f32 to vector<16x8xf32>
    %9 = arith.maximumf %7, %8 : vector<16x8xf32>
    %c0_5 = arith.constant 0 : index
    %c0_6 = arith.constant 0 : index
    %10 = vector.load %arg3[%c0_5, %c0_6] : memref<8x8xbf16, #tpu.memory_space<vmem>>, vector<8x8xbf16>
    %c0_7 = arith.constant 0 : index
    %c0_8 = arith.constant 0 : index
    %11 = vector.load %arg4[%c0_7, %c0_8] : memref<8x1xf32, #tpu.memory_space<vmem>>, vector<8x1xf32>
    %c0_9 = arith.constant 0 : index
    %c0_10 = arith.constant 0 : index
    %12 = vector.load %arg5[%c0_9, %c0_10] : memref<8x1xf32, #tpu.memory_space<vmem>>, vector<8x1xf32>
    %13 = arith.extf %10 : vector<8x8xbf16> to vector<8x8xf32>
    %14 = vector.broadcast %11 : vector<8x1xf32> to vector<8x8xf32>
    %15 = arith.mulf %13, %14 : vector<8x8xf32>
    %16 = vector.broadcast %12 : vector<8x1xf32> to vector<8x8xf32>
    %17 = arith.addf %15, %16 : vector<8x8xf32>
    %cst_11 = arith.constant 0.000000e+00 : f32
    %18 = vector.broadcast %cst_11 : f32 to vector<8x8xf32>
    %19 = arith.maximumf %17, %18 : vector<8x8xf32>
    %20 = tpu.concatenate %9, %19 in 0 : vector<16x8xf32>, vector<8x8xf32> -> vector<24x8xf32>
    %21 = arith.truncf %20 : vector<24x8xf32> to vector<24x8xbf16>
    %c0_12 = arith.constant 0 : index
    %c0_13 = arith.constant 0 : index
    %22 = vector.load %arg6[%c0_12, %c0_13] : memref<32x24xbf16, #tpu.memory_space<vmem>>, vector<32x24xbf16>
    %cst_14 = arith.constant dense<0.000000e+00> : vector<32x8xf32>
    %23 = tpu.matmul %22, %21, %cst_14 {dimension_numbers = #tpu.dot_dimension_numbers<[1], [0], [0], [1], [0, 0, 1, 1], [], []>} : vector<32x24xbf16>, vector<24x8xbf16>, vector<32x8xf32> -> vector<32x8xf32>
    %c0_15 = arith.constant 0 : index
    %c0_16 = arith.constant 0 : index
    %24 = vector.load %arg7[%c0_15, %c0_16] : memref<32x1xf32, #tpu.memory_space<vmem>>, vector<32x1xf32>
    %25 = vector.broadcast %24 : vector<32x1xf32> to vector<32x8xf32>
    %26 = arith.addf %23, %25 : vector<32x8xf32>
    %cst_17 = arith.constant 0.000000e+00 : f32
    %27 = vector.broadcast %cst_17 : f32 to vector<32x8xf32>
    %28 = arith.maximumf %26, %27 : vector<32x8xf32>
    %29 = arith.truncf %28 : vector<32x8xf32> to vector<32x8xbf16>
    %c0_18 = arith.constant 0 : index
    %c0_19 = arith.constant 0 : index
    %c0_20 = arith.constant 0 : index
    %30 = vector.load %arg8[%c0_18, %c0_19, %c0_20] : memref<9x8x8xbf16, #tpu.memory_space<vmem>>, vector<1x8x8xbf16>
    %31 = vector.shape_cast %30 : vector<1x8x8xbf16> to vector<8x8xbf16>
    %cst_21 = arith.constant dense<0.000000e+00> : vector<32x8xf32>
    %32 = tpu.matmul %29, %31, %cst_21 {dimension_numbers = #tpu.dot_dimension_numbers<[1], [0], [0], [1], [0, 0, 1, 1], [], []>} : vector<32x8xbf16>, vector<8x8xbf16>, vector<32x8xf32> -> vector<32x8xf32>
    %c1 = arith.constant 1 : index
    %c0_22 = arith.constant 0 : index
    %c0_23 = arith.constant 0 : index
    %33 = vector.load %arg8[%c1, %c0_22, %c0_23] : memref<9x8x8xbf16, #tpu.memory_space<vmem>>, vector<1x8x8xbf16>
    %34 = vector.shape_cast %33 : vector<1x8x8xbf16> to vector<8x8xbf16>
    %cst_24 = arith.constant dense<0.000000e+00> : vector<32x8xf32>
    %35 = tpu.matmul %29, %34, %cst_24 {dimension_numbers = #tpu.dot_dimension_numbers<[1], [0], [0], [1], [0, 0, 1, 1], [], []>} : vector<32x8xbf16>, vector<8x8xbf16>, vector<32x8xf32> -> vector<32x8xf32>
    %c2 = arith.constant 2 : index
    %c0_25 = arith.constant 0 : index
    %c0_26 = arith.constant 0 : index
    %36 = vector.load %arg8[%c2, %c0_25, %c0_26] : memref<9x8x8xbf16, #tpu.memory_space<vmem>>, vector<1x8x8xbf16>
    %37 = vector.shape_cast %36 : vector<1x8x8xbf16> to vector<8x8xbf16>
    %cst_27 = arith.constant dense<0.000000e+00> : vector<32x8xf32>
    %38 = tpu.matmul %29, %37, %cst_27 {dimension_numbers = #tpu.dot_dimension_numbers<[1], [0], [0], [1], [0, 0, 1, 1], [], []>} : vector<32x8xbf16>, vector<8x8xbf16>, vector<32x8xf32> -> vector<32x8xf32>
    %c3 = arith.constant 3 : index
    %c0_28 = arith.constant 0 : index
    %c0_29 = arith.constant 0 : index
    %39 = vector.load %arg8[%c3, %c0_28, %c0_29] : memref<9x8x8xbf16, #tpu.memory_space<vmem>>, vector<1x8x8xbf16>
    %40 = vector.shape_cast %39 : vector<1x8x8xbf16> to vector<8x8xbf16>
    %cst_30 = arith.constant dense<0.000000e+00> : vector<32x8xf32>
    %41 = tpu.matmul %29, %40, %cst_30 {dimension_numbers = #tpu.dot_dimension_numbers<[1], [0], [0], [1], [0, 0, 1, 1], [], []>} : vector<32x8xbf16>, vector<8x8xbf16>, vector<32x8xf32> -> vector<32x8xf32>
    %c4 = arith.constant 4 : index
    %c0_31 = arith.constant 0 : index
    %c0_32 = arith.constant 0 : index
    %42 = vector.load %arg8[%c4, %c0_31, %c0_32] : memref<9x8x8xbf16, #tpu.memory_space<vmem>>, vector<1x8x8xbf16>
    %43 = vector.shape_cast %42 : vector<1x8x8xbf16> to vector<8x8xbf16>
    %cst_33 = arith.constant dense<0.000000e+00> : vector<32x8xf32>
    %44 = tpu.matmul %29, %43, %cst_33 {dimension_numbers = #tpu.dot_dimension_numbers<[1], [0], [0], [1], [0, 0, 1, 1], [], []>} : vector<32x8xbf16>, vector<8x8xbf16>, vector<32x8xf32> -> vector<32x8xf32>
    %c5 = arith.constant 5 : index
    %c0_34 = arith.constant 0 : index
    %c0_35 = arith.constant 0 : index
    %45 = vector.load %arg8[%c5, %c0_34, %c0_35] : memref<9x8x8xbf16, #tpu.memory_space<vmem>>, vector<1x8x8xbf16>
    %46 = vector.shape_cast %45 : vector<1x8x8xbf16> to vector<8x8xbf16>
    %cst_36 = arith.constant dense<0.000000e+00> : vector<32x8xf32>
    %47 = tpu.matmul %29, %46, %cst_36 {dimension_numbers = #tpu.dot_dimension_numbers<[1], [0], [0], [1], [0, 0, 1, 1], [], []>} : vector<32x8xbf16>, vector<8x8xbf16>, vector<32x8xf32> -> vector<32x8xf32>
    %c6 = arith.constant 6 : index
    %c0_37 = arith.constant 0 : index
    %c0_38 = arith.constant 0 : index
    %48 = vector.load %arg8[%c6, %c0_37, %c0_38] : memref<9x8x8xbf16, #tpu.memory_space<vmem>>, vector<1x8x8xbf16>
    %49 = vector.shape_cast %48 : vector<1x8x8xbf16> to vector<8x8xbf16>
    %cst_39 = arith.constant dense<0.000000e+00> : vector<32x8xf32>
    %50 = tpu.matmul %29, %49, %cst_39 {dimension_numbers = #tpu.dot_dimension_numbers<[1], [0], [0], [1], [0, 0, 1, 1], [], []>} : vector<32x8xbf16>, vector<8x8xbf16>, vector<32x8xf32> -> vector<32x8xf32>
    %c7 = arith.constant 7 : index
    %c0_40 = arith.constant 0 : index
    %c0_41 = arith.constant 0 : index
    %51 = vector.load %arg8[%c7, %c0_40, %c0_41] : memref<9x8x8xbf16, #tpu.memory_space<vmem>>, vector<1x8x8xbf16>
    %52 = vector.shape_cast %51 : vector<1x8x8xbf16> to vector<8x8xbf16>
    %cst_42 = arith.constant dense<0.000000e+00> : vector<32x8xf32>
    %53 = tpu.matmul %29, %52, %cst_42 {dimension_numbers = #tpu.dot_dimension_numbers<[1], [0], [0], [1], [0, 0, 1, 1], [], []>} : vector<32x8xbf16>, vector<8x8xbf16>, vector<32x8xf32> -> vector<32x8xf32>
    %c8 = arith.constant 8 : index
    %c0_43 = arith.constant 0 : index
    %c0_44 = arith.constant 0 : index
    %54 = vector.load %arg8[%c8, %c0_43, %c0_44] : memref<9x8x8xbf16, #tpu.memory_space<vmem>>, vector<1x8x8xbf16>
    %55 = vector.shape_cast %54 : vector<1x8x8xbf16> to vector<8x8xbf16>
    %cst_45 = arith.constant dense<0.000000e+00> : vector<32x8xf32>
    %56 = tpu.matmul %29, %55, %cst_45 {dimension_numbers = #tpu.dot_dimension_numbers<[1], [0], [0], [1], [0, 0, 1, 1], [], []>} : vector<32x8xbf16>, vector<8x8xbf16>, vector<32x8xf32> -> vector<32x8xf32>
    %57 = tpu.concatenate %32, %35, %38, %41, %44, %47, %50, %53, %56 in 0 : vector<32x8xf32>, vector<32x8xf32>, vector<32x8xf32>, vector<32x8xf32>, vector<32x8xf32>, vector<32x8xf32>, vector<32x8xf32>, vector<32x8xf32>, vector<32x8xf32> -> vector<288x8xf32>
    %58 = arith.truncf %57 : vector<288x8xf32> to vector<288x8xbf16>
    %c0_46 = arith.constant 0 : index
    %c0_47 = arith.constant 0 : index
    %59 = vector.load %arg9[%c0_46, %c0_47] : memref<8x288xbf16, #tpu.memory_space<vmem>>, vector<8x288xbf16>
    %cst_48 = arith.constant dense<0.000000e+00> : vector<8x8xf32>
    %60 = tpu.matmul %59, %58, %cst_48 {dimension_numbers = #tpu.dot_dimension_numbers<[1], [0], [0], [1], [0, 0, 1, 1], [], []>} : vector<8x288xbf16>, vector<288x8xbf16>, vector<8x8xf32> -> vector<8x8xf32>
    %61 = arith.truncf %60 : vector<8x8xf32> to vector<8x8xbf16>
    %c0_49 = arith.constant 0 : index
    %c0_50 = arith.constant 0 : index
    %62 = vector.load %arg10[%c0_49, %c0_50] : memref<8x8xbf16, #tpu.memory_space<vmem>>, vector<8x8xbf16>
    tpu.vector_store %arg10[%c0_49, %c0_50], %61 {strides = array<i32>} : memref<8x8xbf16, #tpu.memory_space<vmem>>, vector<8x8xbf16>,
    return
  }
}

module attributes {stable_mosaic.version = 11 : i64} {
  func.func @_dense_layer_kernel(%arg0: memref<16x2xbf16, #tpu.memory_space<vmem>>, %arg1: memref<16x1xf32, #tpu.memory_space<vmem>>, %arg2: memref<16x1xf32, #tpu.memory_space<vmem>>, %arg3: memref<32x16xbf16, #tpu.memory_space<vmem>>, %arg4: memref<32x1xf32, #tpu.memory_space<vmem>>, %arg5: memref<9x2x2xbf16, #tpu.memory_space<vmem>>, %arg6: memref<8x288xbf16, #tpu.memory_space<vmem>>, %arg7: memref<8x2xbf16, #tpu.memory_space<vmem>>) attributes {dimension_semantics = [], scalar_prefetch = 0 : i64, scratch_operands = 0 : i64, tpu.core_type = #tpu.core_type<tc>} {
    %c0 = arith.constant 0 : index
    %c0_0 = arith.constant 0 : index
    %0 = vector.load %arg0[%c0, %c0_0] : memref<16x2xbf16, #tpu.memory_space<vmem>>, vector<16x2xbf16>
    %c0_1 = arith.constant 0 : index
    %c0_2 = arith.constant 0 : index
    %1 = vector.load %arg1[%c0_1, %c0_2] : memref<16x1xf32, #tpu.memory_space<vmem>>, vector<16x1xf32>
    %c0_3 = arith.constant 0 : index
    %c0_4 = arith.constant 0 : index
    %2 = vector.load %arg2[%c0_3, %c0_4] : memref<16x1xf32, #tpu.memory_space<vmem>>, vector<16x1xf32>
    %3 = arith.extf %0 : vector<16x2xbf16> to vector<16x2xf32>
    %4 = vector.broadcast %1 : vector<16x1xf32> to vector<16x2xf32>
    %5 = arith.mulf %3, %4 : vector<16x2xf32>
    %6 = vector.broadcast %2 : vector<16x1xf32> to vector<16x2xf32>
    %7 = arith.addf %5, %6 : vector<16x2xf32>
    %cst = arith.constant 0.000000e+00 : f32
    %8 = vector.broadcast %cst : f32 to vector<16x2xf32>
    %9 = arith.maximumf %7, %8 : vector<16x2xf32>
    %10 = arith.truncf %9 : vector<16x2xf32> to vector<16x2xbf16>
    %c0_5 = arith.constant 0 : index
    %c0_6 = arith.constant 0 : index
    %11 = vector.load %arg3[%c0_5, %c0_6] : memref<32x16xbf16, #tpu.memory_space<vmem>>, vector<32x16xbf16>
    %cst_7 = arith.constant dense<0.000000e+00> : vector<32x2xf32>
    %12 = tpu.matmul %11, %10, %cst_7 {dimension_numbers = #tpu.dot_dimension_numbers<[1], [0], [0], [1], [0, 0, 1, 1], [], []>} : vector<32x16xbf16>, vector<16x2xbf16>, vector<32x2xf32> -> vector<32x2xf32>
    %c0_8 = arith.constant 0 : index
    %c0_9 = arith.constant 0 : index
    %13 = vector.load %arg4[%c0_8, %c0_9] : memref<32x1xf32, #tpu.memory_space<vmem>>, vector<32x1xf32>
    %14 = vector.broadcast %13 : vector<32x1xf32> to vector<32x2xf32>
    %15 = arith.addf %12, %14 : vector<32x2xf32>
    %cst_10 = arith.constant 0.000000e+00 : f32
    %16 = vector.broadcast %cst_10 : f32 to vector<32x2xf32>
    %17 = arith.maximumf %15, %16 : vector<32x2xf32>
    %18 = arith.truncf %17 : vector<32x2xf32> to vector<32x2xbf16>
    %c0_11 = arith.constant 0 : index
    %c0_12 = arith.constant 0 : index
    %c0_13 = arith.constant 0 : index
    %19 = vector.load %arg5[%c0_11, %c0_12, %c0_13] : memref<9x2x2xbf16, #tpu.memory_space<vmem>>, vector<1x2x2xbf16>
    %20 = vector.shape_cast %19 : vector<1x2x2xbf16> to vector<2x2xbf16>
    %cst_14 = arith.constant dense<0.000000e+00> : vector<32x2xf32>
    %21 = tpu.matmul %18, %20, %cst_14 {dimension_numbers = #tpu.dot_dimension_numbers<[1], [0], [0], [1], [0, 0, 1, 1], [], []>} : vector<32x2xbf16>, vector<2x2xbf16>, vector<32x2xf32> -> vector<32x2xf32>
    %c1 = arith.constant 1 : index
    %c0_15 = arith.constant 0 : index
    %c0_16 = arith.constant 0 : index
    %22 = vector.load %arg5[%c1, %c0_15, %c0_16] : memref<9x2x2xbf16, #tpu.memory_space<vmem>>, vector<1x2x2xbf16>
    %23 = vector.shape_cast %22 : vector<1x2x2xbf16> to vector<2x2xbf16>
    %cst_17 = arith.constant dense<0.000000e+00> : vector<32x2xf32>
    %24 = tpu.matmul %18, %23, %cst_17 {dimension_numbers = #tpu.dot_dimension_numbers<[1], [0], [0], [1], [0, 0, 1, 1], [], []>} : vector<32x2xbf16>, vector<2x2xbf16>, vector<32x2xf32> -> vector<32x2xf32>
    %c2 = arith.constant 2 : index
    %c0_18 = arith.constant 0 : index
    %c0_19 = arith.constant 0 : index
    %25 = vector.load %arg5[%c2, %c0_18, %c0_19] : memref<9x2x2xbf16, #tpu.memory_space<vmem>>, vector<1x2x2xbf16>
    %26 = vector.shape_cast %25 : vector<1x2x2xbf16> to vector<2x2xbf16>
    %cst_20 = arith.constant dense<0.000000e+00> : vector<32x2xf32>
    %27 = tpu.matmul %18, %26, %cst_20 {dimension_numbers = #tpu.dot_dimension_numbers<[1], [0], [0], [1], [0, 0, 1, 1], [], []>} : vector<32x2xbf16>, vector<2x2xbf16>, vector<32x2xf32> -> vector<32x2xf32>
    %c3 = arith.constant 3 : index
    %c0_21 = arith.constant 0 : index
    %c0_22 = arith.constant 0 : index
    %28 = vector.load %arg5[%c3, %c0_21, %c0_22] : memref<9x2x2xbf16, #tpu.memory_space<vmem>>, vector<1x2x2xbf16>
    %29 = vector.shape_cast %28 : vector<1x2x2xbf16> to vector<2x2xbf16>
    %cst_23 = arith.constant dense<0.000000e+00> : vector<32x2xf32>
    %30 = tpu.matmul %18, %29, %cst_23 {dimension_numbers = #tpu.dot_dimension_numbers<[1], [0], [0], [1], [0, 0, 1, 1], [], []>} : vector<32x2xbf16>, vector<2x2xbf16>, vector<32x2xf32> -> vector<32x2xf32>
    %c4 = arith.constant 4 : index
    %c0_24 = arith.constant 0 : index
    %c0_25 = arith.constant 0 : index
    %31 = vector.load %arg5[%c4, %c0_24, %c0_25] : memref<9x2x2xbf16, #tpu.memory_space<vmem>>, vector<1x2x2xbf16>
    %32 = vector.shape_cast %31 : vector<1x2x2xbf16> to vector<2x2xbf16>
    %cst_26 = arith.constant dense<0.000000e+00> : vector<32x2xf32>
    %33 = tpu.matmul %18, %32, %cst_26 {dimension_numbers = #tpu.dot_dimension_numbers<[1], [0], [0], [1], [0, 0, 1, 1], [], []>} : vector<32x2xbf16>, vector<2x2xbf16>, vector<32x2xf32> -> vector<32x2xf32>
    %c5 = arith.constant 5 : index
    %c0_27 = arith.constant 0 : index
    %c0_28 = arith.constant 0 : index
    %34 = vector.load %arg5[%c5, %c0_27, %c0_28] : memref<9x2x2xbf16, #tpu.memory_space<vmem>>, vector<1x2x2xbf16>
    %35 = vector.shape_cast %34 : vector<1x2x2xbf16> to vector<2x2xbf16>
    %cst_29 = arith.constant dense<0.000000e+00> : vector<32x2xf32>
    %36 = tpu.matmul %18, %35, %cst_29 {dimension_numbers = #tpu.dot_dimension_numbers<[1], [0], [0], [1], [0, 0, 1, 1], [], []>} : vector<32x2xbf16>, vector<2x2xbf16>, vector<32x2xf32> -> vector<32x2xf32>
    %c6 = arith.constant 6 : index
    %c0_30 = arith.constant 0 : index
    %c0_31 = arith.constant 0 : index
    %37 = vector.load %arg5[%c6, %c0_30, %c0_31] : memref<9x2x2xbf16, #tpu.memory_space<vmem>>, vector<1x2x2xbf16>
    %38 = vector.shape_cast %37 : vector<1x2x2xbf16> to vector<2x2xbf16>
    %cst_32 = arith.constant dense<0.000000e+00> : vector<32x2xf32>
    %39 = tpu.matmul %18, %38, %cst_32 {dimension_numbers = #tpu.dot_dimension_numbers<[1], [0], [0], [1], [0, 0, 1, 1], [], []>} : vector<32x2xbf16>, vector<2x2xbf16>, vector<32x2xf32> -> vector<32x2xf32>
    %c7 = arith.constant 7 : index
    %c0_33 = arith.constant 0 : index
    %c0_34 = arith.constant 0 : index
    %40 = vector.load %arg5[%c7, %c0_33, %c0_34] : memref<9x2x2xbf16, #tpu.memory_space<vmem>>, vector<1x2x2xbf16>
    %41 = vector.shape_cast %40 : vector<1x2x2xbf16> to vector<2x2xbf16>
    %cst_35 = arith.constant dense<0.000000e+00> : vector<32x2xf32>
    %42 = tpu.matmul %18, %41, %cst_35 {dimension_numbers = #tpu.dot_dimension_numbers<[1], [0], [0], [1], [0, 0, 1, 1], [], []>} : vector<32x2xbf16>, vector<2x2xbf16>, vector<32x2xf32> -> vector<32x2xf32>
    %c8 = arith.constant 8 : index
    %c0_36 = arith.constant 0 : index
    %c0_37 = arith.constant 0 : index
    %43 = vector.load %arg5[%c8, %c0_36, %c0_37] : memref<9x2x2xbf16, #tpu.memory_space<vmem>>, vector<1x2x2xbf16>
    %44 = vector.shape_cast %43 : vector<1x2x2xbf16> to vector<2x2xbf16>
    %cst_38 = arith.constant dense<0.000000e+00> : vector<32x2xf32>
    %45 = tpu.matmul %18, %44, %cst_38 {dimension_numbers = #tpu.dot_dimension_numbers<[1], [0], [0], [1], [0, 0, 1, 1], [], []>} : vector<32x2xbf16>, vector<2x2xbf16>, vector<32x2xf32> -> vector<32x2xf32>
    %46 = tpu.concatenate %21, %24, %27, %30, %33, %36, %39, %42, %45 in 0 : vector<32x2xf32>, vector<32x2xf32>, vector<32x2xf32>, vector<32x2xf32>, vector<32x2xf32>, vector<32x2xf32>, vector<32x2xf32>, vector<32x2xf32>, vector<32x2xf32> -> vector<288x2xf32>
    %47 = arith.truncf %46 : vector<288x2xf32> to vector<288x2xbf16>
    %c0_39 = arith.constant 0 : index
    %c0_40 = arith.constant 0 : index
    %48 = vector.load %arg6[%c0_39, %c0_40] : memref<8x288xbf16, #tpu.memory_space<vmem>>, vector<8x288xbf16>
    %cst_41 = arith.constant dense<0.000000e+00> : vector<8x2xf32>
    %49 = tpu.matmul %48, %47, %cst_41 {dimension_numbers = #tpu.dot_dimension_numbers<[1], [0], [0], [1], [0, 0, 1, 1], [], []>} : vector<8x288xbf16>, vector<288x2xbf16>, vector<8x2xf32> -> vector<8x2xf32>
    %50 = arith.truncf %49 : vector<8x2xf32> to vector<8x2xbf16>
    %c0_42 = arith.constant 0 : index
    %c0_43 = arith.constant 0 : index
    %51 = vector.load %arg7[%c0_42, %c0_43] : memref<8x2xbf16, #tpu.memory_space<vmem>>, vector<8x2xbf16>
    tpu.vector_store %arg7[%c0_42, %c0_43], %50 {strides = array<i32>} : memref<8x2xbf16, #tpu.memory_space<vmem>>, vector<8x2xbf16>,
    return
  }
}

module attributes {stable_mosaic.version = 11 : i64} {
  func.func @_dense_layer_kernel(%arg0: memref<16x2xbf16, #tpu.memory_space<vmem>>, %arg1: memref<16x1xf32, #tpu.memory_space<vmem>>, %arg2: memref<16x1xf32, #tpu.memory_space<vmem>>, %arg3: memref<8x2xbf16, #tpu.memory_space<vmem>>, %arg4: memref<8x1xf32, #tpu.memory_space<vmem>>, %arg5: memref<8x1xf32, #tpu.memory_space<vmem>>, %arg6: memref<32x24xbf16, #tpu.memory_space<vmem>>, %arg7: memref<32x1xf32, #tpu.memory_space<vmem>>, %arg8: memref<9x2x2xbf16, #tpu.memory_space<vmem>>, %arg9: memref<8x288xbf16, #tpu.memory_space<vmem>>, %arg10: memref<8x2xbf16, #tpu.memory_space<vmem>>) attributes {dimension_semantics = [], scalar_prefetch = 0 : i64, scratch_operands = 0 : i64, tpu.core_type = #tpu.core_type<tc>} {
    %c0 = arith.constant 0 : index
    %c0_0 = arith.constant 0 : index
    %0 = vector.load %arg0[%c0, %c0_0] : memref<16x2xbf16, #tpu.memory_space<vmem>>, vector<16x2xbf16>
    %c0_1 = arith.constant 0 : index
    %c0_2 = arith.constant 0 : index
    %1 = vector.load %arg1[%c0_1, %c0_2] : memref<16x1xf32, #tpu.memory_space<vmem>>, vector<16x1xf32>
    %c0_3 = arith.constant 0 : index
    %c0_4 = arith.constant 0 : index
    %2 = vector.load %arg2[%c0_3, %c0_4] : memref<16x1xf32, #tpu.memory_space<vmem>>, vector<16x1xf32>
    %3 = arith.extf %0 : vector<16x2xbf16> to vector<16x2xf32>
    %4 = vector.broadcast %1 : vector<16x1xf32> to vector<16x2xf32>
    %5 = arith.mulf %3, %4 : vector<16x2xf32>
    %6 = vector.broadcast %2 : vector<16x1xf32> to vector<16x2xf32>
    %7 = arith.addf %5, %6 : vector<16x2xf32>
    %cst = arith.constant 0.000000e+00 : f32
    %8 = vector.broadcast %cst : f32 to vector<16x2xf32>
    %9 = arith.maximumf %7, %8 : vector<16x2xf32>
    %c0_5 = arith.constant 0 : index
    %c0_6 = arith.constant 0 : index
    %10 = vector.load %arg3[%c0_5, %c0_6] : memref<8x2xbf16, #tpu.memory_space<vmem>>, vector<8x2xbf16>
    %c0_7 = arith.constant 0 : index
    %c0_8 = arith.constant 0 : index
    %11 = vector.load %arg4[%c0_7, %c0_8] : memref<8x1xf32, #tpu.memory_space<vmem>>, vector<8x1xf32>
    %c0_9 = arith.constant 0 : index
    %c0_10 = arith.constant 0 : index
    %12 = vector.load %arg5[%c0_9, %c0_10] : memref<8x1xf32, #tpu.memory_space<vmem>>, vector<8x1xf32>
    %13 = arith.extf %10 : vector<8x2xbf16> to vector<8x2xf32>
    %14 = vector.broadcast %11 : vector<8x1xf32> to vector<8x2xf32>
    %15 = arith.mulf %13, %14 : vector<8x2xf32>
    %16 = vector.broadcast %12 : vector<8x1xf32> to vector<8x2xf32>
    %17 = arith.addf %15, %16 : vector<8x2xf32>
    %cst_11 = arith.constant 0.000000e+00 : f32
    %18 = vector.broadcast %cst_11 : f32 to vector<8x2xf32>
    %19 = arith.maximumf %17, %18 : vector<8x2xf32>
    %20 = tpu.concatenate %9, %19 in 0 : vector<16x2xf32>, vector<8x2xf32> -> vector<24x2xf32>
    %21 = arith.truncf %20 : vector<24x2xf32> to vector<24x2xbf16>
    %c0_12 = arith.constant 0 : index
    %c0_13 = arith.constant 0 : index
    %22 = vector.load %arg6[%c0_12, %c0_13] : memref<32x24xbf16, #tpu.memory_space<vmem>>, vector<32x24xbf16>
    %cst_14 = arith.constant dense<0.000000e+00> : vector<32x2xf32>
    %23 = tpu.matmul %22, %21, %cst_14 {dimension_numbers = #tpu.dot_dimension_numbers<[1], [0], [0], [1], [0, 0, 1, 1], [], []>} : vector<32x24xbf16>, vector<24x2xbf16>, vector<32x2xf32> -> vector<32x2xf32>
    %c0_15 = arith.constant 0 : index
    %c0_16 = arith.constant 0 : index
    %24 = vector.load %arg7[%c0_15, %c0_16] : memref<32x1xf32, #tpu.memory_space<vmem>>, vector<32x1xf32>
    %25 = vector.broadcast %24 : vector<32x1xf32> to vector<32x2xf32>
    %26 = arith.addf %23, %25 : vector<32x2xf32>
    %cst_17 = arith.constant 0.000000e+00 : f32
    %27 = vector.broadcast %cst_17 : f32 to vector<32x2xf32>
    %28 = arith.maximumf %26, %27 : vector<32x2xf32>
    %29 = arith.truncf %28 : vector<32x2xf32> to vector<32x2xbf16>
    %c0_18 = arith.constant 0 : index
    %c0_19 = arith.constant 0 : index
    %c0_20 = arith.constant 0 : index
    %30 = vector.load %arg8[%c0_18, %c0_19, %c0_20] : memref<9x2x2xbf16, #tpu.memory_space<vmem>>, vector<1x2x2xbf16>
    %31 = vector.shape_cast %30 : vector<1x2x2xbf16> to vector<2x2xbf16>
    %cst_21 = arith.constant dense<0.000000e+00> : vector<32x2xf32>
    %32 = tpu.matmul %29, %31, %cst_21 {dimension_numbers = #tpu.dot_dimension_numbers<[1], [0], [0], [1], [0, 0, 1, 1], [], []>} : vector<32x2xbf16>, vector<2x2xbf16>, vector<32x2xf32> -> vector<32x2xf32>
    %c1 = arith.constant 1 : index
    %c0_22 = arith.constant 0 : index
    %c0_23 = arith.constant 0 : index
    %33 = vector.load %arg8[%c1, %c0_22, %c0_23] : memref<9x2x2xbf16, #tpu.memory_space<vmem>>, vector<1x2x2xbf16>
    %34 = vector.shape_cast %33 : vector<1x2x2xbf16> to vector<2x2xbf16>
    %cst_24 = arith.constant dense<0.000000e+00> : vector<32x2xf32>
    %35 = tpu.matmul %29, %34, %cst_24 {dimension_numbers = #tpu.dot_dimension_numbers<[1], [0], [0], [1], [0, 0, 1, 1], [], []>} : vector<32x2xbf16>, vector<2x2xbf16>, vector<32x2xf32> -> vector<32x2xf32>
    %c2 = arith.constant 2 : index
    %c0_25 = arith.constant 0 : index
    %c0_26 = arith.constant 0 : index
    %36 = vector.load %arg8[%c2, %c0_25, %c0_26] : memref<9x2x2xbf16, #tpu.memory_space<vmem>>, vector<1x2x2xbf16>
    %37 = vector.shape_cast %36 : vector<1x2x2xbf16> to vector<2x2xbf16>
    %cst_27 = arith.constant dense<0.000000e+00> : vector<32x2xf32>
    %38 = tpu.matmul %29, %37, %cst_27 {dimension_numbers = #tpu.dot_dimension_numbers<[1], [0], [0], [1], [0, 0, 1, 1], [], []>} : vector<32x2xbf16>, vector<2x2xbf16>, vector<32x2xf32> -> vector<32x2xf32>
    %c3 = arith.constant 3 : index
    %c0_28 = arith.constant 0 : index
    %c0_29 = arith.constant 0 : index
    %39 = vector.load %arg8[%c3, %c0_28, %c0_29] : memref<9x2x2xbf16, #tpu.memory_space<vmem>>, vector<1x2x2xbf16>
    %40 = vector.shape_cast %39 : vector<1x2x2xbf16> to vector<2x2xbf16>
    %cst_30 = arith.constant dense<0.000000e+00> : vector<32x2xf32>
    %41 = tpu.matmul %29, %40, %cst_30 {dimension_numbers = #tpu.dot_dimension_numbers<[1], [0], [0], [1], [0, 0, 1, 1], [], []>} : vector<32x2xbf16>, vector<2x2xbf16>, vector<32x2xf32> -> vector<32x2xf32>
    %c4 = arith.constant 4 : index
    %c0_31 = arith.constant 0 : index
    %c0_32 = arith.constant 0 : index
    %42 = vector.load %arg8[%c4, %c0_31, %c0_32] : memref<9x2x2xbf16, #tpu.memory_space<vmem>>, vector<1x2x2xbf16>
    %43 = vector.shape_cast %42 : vector<1x2x2xbf16> to vector<2x2xbf16>
    %cst_33 = arith.constant dense<0.000000e+00> : vector<32x2xf32>
    %44 = tpu.matmul %29, %43, %cst_33 {dimension_numbers = #tpu.dot_dimension_numbers<[1], [0], [0], [1], [0, 0, 1, 1], [], []>} : vector<32x2xbf16>, vector<2x2xbf16>, vector<32x2xf32> -> vector<32x2xf32>
    %c5 = arith.constant 5 : index
    %c0_34 = arith.constant 0 : index
    %c0_35 = arith.constant 0 : index
    %45 = vector.load %arg8[%c5, %c0_34, %c0_35] : memref<9x2x2xbf16, #tpu.memory_space<vmem>>, vector<1x2x2xbf16>
    %46 = vector.shape_cast %45 : vector<1x2x2xbf16> to vector<2x2xbf16>
    %cst_36 = arith.constant dense<0.000000e+00> : vector<32x2xf32>
    %47 = tpu.matmul %29, %46, %cst_36 {dimension_numbers = #tpu.dot_dimension_numbers<[1], [0], [0], [1], [0, 0, 1, 1], [], []>} : vector<32x2xbf16>, vector<2x2xbf16>, vector<32x2xf32> -> vector<32x2xf32>
    %c6 = arith.constant 6 : index
    %c0_37 = arith.constant 0 : index
    %c0_38 = arith.constant 0 : index
    %48 = vector.load %arg8[%c6, %c0_37, %c0_38] : memref<9x2x2xbf16, #tpu.memory_space<vmem>>, vector<1x2x2xbf16>
    %49 = vector.shape_cast %48 : vector<1x2x2xbf16> to vector<2x2xbf16>
    %cst_39 = arith.constant dense<0.000000e+00> : vector<32x2xf32>
    %50 = tpu.matmul %29, %49, %cst_39 {dimension_numbers = #tpu.dot_dimension_numbers<[1], [0], [0], [1], [0, 0, 1, 1], [], []>} : vector<32x2xbf16>, vector<2x2xbf16>, vector<32x2xf32> -> vector<32x2xf32>
    %c7 = arith.constant 7 : index
    %c0_40 = arith.constant 0 : index
    %c0_41 = arith.constant 0 : index
    %51 = vector.load %arg8[%c7, %c0_40, %c0_41] : memref<9x2x2xbf16, #tpu.memory_space<vmem>>, vector<1x2x2xbf16>
    %52 = vector.shape_cast %51 : vector<1x2x2xbf16> to vector<2x2xbf16>
    %cst_42 = arith.constant dense<0.000000e+00> : vector<32x2xf32>
    %53 = tpu.matmul %29, %52, %cst_42 {dimension_numbers = #tpu.dot_dimension_numbers<[1], [0], [0], [1], [0, 0, 1, 1], [], []>} : vector<32x2xbf16>, vector<2x2xbf16>, vector<32x2xf32> -> vector<32x2xf32>
    %c8 = arith.constant 8 : index
    %c0_43 = arith.constant 0 : index
    %c0_44 = arith.constant 0 : index
    %54 = vector.load %arg8[%c8, %c0_43, %c0_44] : memref<9x2x2xbf16, #tpu.memory_space<vmem>>, vector<1x2x2xbf16>
    %55 = vector.shape_cast %54 : vector<1x2x2xbf16> to vector<2x2xbf16>
    %cst_45 = arith.constant dense<0.000000e+00> : vector<32x2xf32>
    %56 = tpu.matmul %29, %55, %cst_45 {dimension_numbers = #tpu.dot_dimension_numbers<[1], [0], [0], [1], [0, 0, 1, 1], [], []>} : vector<32x2xbf16>, vector<2x2xbf16>, vector<32x2xf32> -> vector<32x2xf32>
    %57 = tpu.concatenate %32, %35, %38, %41, %44, %47, %50, %53, %56 in 0 : vector<32x2xf32>, vector<32x2xf32>, vector<32x2xf32>, vector<32x2xf32>, vector<32x2xf32>, vector<32x2xf32>, vector<32x2xf32>, vector<32x2xf32>, vector<32x2xf32> -> vector<288x2xf32>
    %58 = arith.truncf %57 : vector<288x2xf32> to vector<288x2xbf16>
    %c0_46 = arith.constant 0 : index
    %c0_47 = arith.constant 0 : index
    %59 = vector.load %arg9[%c0_46, %c0_47] : memref<8x288xbf16, #tpu.memory_space<vmem>>, vector<8x288xbf16>
    %cst_48 = arith.constant dense<0.000000e+00> : vector<8x2xf32>
    %60 = tpu.matmul %59, %58, %cst_48 {dimension_numbers = #tpu.dot_dimension_numbers<[1], [0], [0], [1], [0, 0, 1, 1], [], []>} : vector<8x288xbf16>, vector<288x2xbf16>, vector<8x2xf32> -> vector<8x2xf32>
    %61 = arith.truncf %60 : vector<8x2xf32> to vector<8x2xbf16>
    %c0_49 = arith.constant 0 : index
    %c0_50 = arith.constant 0 : index
    %62 = vector.load %arg10[%c0_49, %c0_50] : memref<8x2xbf16, #tpu.memory_space<vmem>>, vector<8x2xbf16>
    tpu.vector_store %arg10[%c0_49, %c0_50], %61 {strides = array<i32>} : memref<8x2xbf16, #tpu.memory_space<vmem>>, vector<8x2xbf16>,
    return
  }
}

module attributes {stable_mosaic.version = 11 : i64} {
  func.func @_head_kernel(%arg0: memref<16x2xbf16, #tpu.memory_space<vmem>>, %arg1: memref<8x2xbf16, #tpu.memory_space<vmem>>, %arg2: memref<8x2xbf16, #tpu.memory_space<vmem>>, %arg3: memref<2x2xbf16, #tpu.memory_space<vmem>>, %arg4: memref<16x32xbf16, #tpu.memory_space<vmem>>, %arg5: memref<16x1xf32, #tpu.memory_space<vmem>>, %arg6: memref<16x2xf32, #tpu.memory_space<vmem>>) attributes {dimension_semantics = [], scalar_prefetch = 0 : i64, scratch_operands = 0 : i64, tpu.core_type = #tpu.core_type<tc>} {
    %c0 = arith.constant 0 : index
    %c0_0 = arith.constant 0 : index
    %0 = vector.load %arg0[%c0, %c0_0] : memref<16x2xbf16, #tpu.memory_space<vmem>>, vector<16x2xbf16>
    %1 = arith.extf %0 : vector<16x2xbf16> to vector<16x2xf32>
    %c0_1 = arith.constant 0 : index
    %c0_2 = arith.constant 0 : index
    %2 = vector.load %arg1[%c0_1, %c0_2] : memref<8x2xbf16, #tpu.memory_space<vmem>>, vector<8x2xbf16>
    %3 = arith.extf %2 : vector<8x2xbf16> to vector<8x2xf32>
    %c0_3 = arith.constant 0 : index
    %c0_4 = arith.constant 0 : index
    %4 = vector.load %arg2[%c0_3, %c0_4] : memref<8x2xbf16, #tpu.memory_space<vmem>>, vector<8x2xbf16>
    %5 = arith.extf %4 : vector<8x2xbf16> to vector<8x2xf32>
    %6 = tpu.concatenate %1, %3, %5 in 0 : vector<16x2xf32>, vector<8x2xf32>, vector<8x2xf32> -> vector<32x2xf32>
    %7 = arith.truncf %6 : vector<32x2xf32> to vector<32x2xbf16>
    %c0_5 = arith.constant 0 : index
    %c0_6 = arith.constant 0 : index
    %8 = vector.load %arg3[%c0_5, %c0_6] : memref<2x2xbf16, #tpu.memory_space<vmem>>, vector<2x2xbf16>
    %cst = arith.constant dense<0.000000e+00> : vector<32x2xf32>
    %9 = tpu.matmul %7, %8, %cst {dimension_numbers = #tpu.dot_dimension_numbers<[1], [0], [0], [1], [0, 0, 1, 1], [], []>} : vector<32x2xbf16>, vector<2x2xbf16>, vector<32x2xf32> -> vector<32x2xf32>
    %10 = arith.truncf %9 : vector<32x2xf32> to vector<32x2xbf16>
    %c0_7 = arith.constant 0 : index
    %c0_8 = arith.constant 0 : index
    %11 = vector.load %arg4[%c0_7, %c0_8] : memref<16x32xbf16, #tpu.memory_space<vmem>>, vector<16x32xbf16>
    %cst_9 = arith.constant dense<0.000000e+00> : vector<16x2xf32>
    %12 = tpu.matmul %11, %10, %cst_9 {dimension_numbers = #tpu.dot_dimension_numbers<[1], [0], [0], [1], [0, 0, 1, 1], [], []>} : vector<16x32xbf16>, vector<32x2xbf16>, vector<16x2xf32> -> vector<16x2xf32>
    %c0_10 = arith.constant 0 : index
    %c0_11 = arith.constant 0 : index
    %13 = vector.load %arg5[%c0_10, %c0_11] : memref<16x1xf32, #tpu.memory_space<vmem>>, vector<16x1xf32>
    %14 = vector.broadcast %13 : vector<16x1xf32> to vector<16x2xf32>
    %15 = arith.addf %12, %14 : vector<16x2xf32>
    %c0_12 = arith.constant 0 : index
    %c0_13 = arith.constant 0 : index
    %16 = vector.load %arg6[%c0_12, %c0_13] : memref<16x2xf32, #tpu.memory_space<vmem>>, vector<16x2xf32>
    tpu.vector_store %arg6[%c0_12, %c0_13], %15 {strides = array<i32>} : memref<16x2xf32, #tpu.memory_space<vmem>>, vector<16x2xf32>,
    return
  }
}

</mosaic_0001>

<bundles_post_ra>
// kernel: densenet_forward.16
= control target key start
LH: loop header
LB: loop body
LE: loop exit
PB: predicated region body
PF: predicated region fallthrough
CT: control target
= control target key end

     0   :  { %v354_v0 = vmov 0   ;;  %v355_v7 = vmov 0.0   ;;  %vm356_vm0 = vmmov 0   ;;  %vm116_vm1 = vcmask 261120   ;;  %s495_s5 = inlined_call_operand.vmem [shape: f32[8,1], index: 5, kind: input, shape index: {}]   ;;  %s496_s4 = inlined_call_operand.vmem [shape: f32[8,1], index: 4, kind: input, shape index: {}]   ;;  %s497_s8 = inlined_call_operand.vmem [shape: f32[8,1], index: 8, kind: input, shape index: {}]   ;;  %s498_s7 = inlined_call_operand.vmem [shape: f32[8,1], index: 7, kind: input, shape index: {}]   ;;  %s499_s1 = inlined_call_operand.vmem [shape: f32[16,1], index: 1, kind: input, shape index: {}]   ;;  %s500_s2 = inlined_call_operand.vmem [shape: f32[16,1], index: 2, kind: input, shape index: {}]   ;;  %s501_s9 = inlined_call_operand.vmem [shape: bf16[16,32], index: 9, kind: input, shape index: {}]   ;;  %s502_s10 = inlined_call_operand.vmem [shape: bf16[128,32], index: 10, kind: input, shape index: {}]   ;;  %s503_s3 = inlined_call_operand.vmem [shape: bf16[8,128], index: 3, kind: input, shape index: {}]   ;;  %s504_s6 = inlined_call_operand.vmem [shape: bf16[8,128], index: 6, kind: input, shape index: {}]   ;;  %s505_s0 = inlined_call_operand.vmem [shape: bf16[16,128], index: 0, kind: input, shape index: {}]   ;;  %s506_s11 = inlined_call_operand.vmem [shape: bf16[16,32], index: 11, kind: output, shape index: {}]  }
   0x1   :  { %344 = vset.pattern.permute.xlu1 %v354_v0  ;;  %343 = vset.pattern.permute.xlu0 %v354_v0  ;;  %v75_v1 = vld [vmem:[%s495_s5] sm:$0xff]  ;;  %v42_v5 = vld [vmem:[%s499_s1 + $0x8] sm:$0xff]  ;;  %v346_v10 = vld [vmem:[%s502_s10 + $0x38] sm:$0xff]   ;;  %vm275_vm2 = vcmask 257024  }
   0x2   :  { %v74_v2 = vld [vmem:[%s496_s4] sm:$0xff]  ;;  %85 = vperm.xlu1 %344, %v75_v1   ;;  %312 = vmatprep.subr.bf16.mxu0 %v355_v7  ;;  %v44_v8 = vld [vmem:[%s500_s2 + $0x8] sm:$0xff]  ;;  %v347_v11 = vld [vmem:[%s502_s10 + $0x30] sm:$0xff]  }
   0x3   :  { %79 = vperm.xlu0 %343, %v74_v2   ;;  %v92_v3 = vld [vmem:[%s497_s8] sm:$0xff]  ;;  %320 = vmatprep.subr.bf16.mxu1 %v355_v7  ;;  %v348_v12 = vld [vmem:[%s502_s10 + $0x28] sm:$0xff]   ;;  %v350_v14 = vld [vmem:[%s502_s10 + $0x18] sm:$0xff]  }
   0x4   :  { %v91_v4 = vld [vmem:[%s498_s7] sm:$0xff]  ;;  %316 = vmatprep.mubr.msk.bf16.mxu0 %vm356_vm0, %v355_v7  ;;  %336 = vmatprep.mubr.msk.bf16.mxu1 %vm356_vm0, %v355_v7  ;;  %v351_v15 = vld [vmem:[%s502_s10 + $0x10] sm:$0xff]   ;;  %v352_v46 = vld [vmem:[%s502_s10 + $0x8] sm:$0xff]  }
   0x5   :  { %v41_v6 = vld [vmem:[%s499_s1] sm:$0xff]  ;;  %321 = vmatpush3.bf16.msra.mxu1 %v346_v10 }
   0x6   :  { %102 = vperm.xlu1 %344, %v92_v3   ;;  %v43_v9 = vld [vmem:[%s500_s2] sm:$0xff]  ;;  %322 = vmatprep.subr.bf16.mxu1 %v355_v7 }
   0x7   :  { %96 = vperm.xlu0 %343, %v91_v4   ;;  %v349_v13 = vld [vmem:[%s502_s10 + $0x20] sm:$0xff]  }
   0x8   :  { %v73_v16 = vld [vmem:[%s503_s3] sm:$0xf] }
   0x9   :  { %323 = vmatpush3.bf16.msra.mxu1 %v347_v11  ;;  %v76_v17 = vunpack.c.l.bf16 %v73_v16  ;;  %v90_v18 = vld [vmem:[%s504_s6] sm:$0xf] }
   0xa   :  { %54 = vperm.xlu1 %344, %v42_v5   ;;  %324 = vmatprep.subr.bf16.mxu1 %v355_v7  ;;  %v93_v22 = vunpack.c.l.bf16 %v90_v18  ;;  %v297_v25 = vld [vmem:[%s505_s0] sm:$0xff]  }
   0xb   :  { %49 = vperm.xlu0 %343, %v41_v6   ;;  %v299_v29 = vunpack.c.h.bf16 %v297_v25  ;;  %v298_v30 = vunpack.c.l.bf16 %v297_v25  ;;  %v345_v45 = vld [vmem:[%s501_s9] sm:$0xff]  }
   0xc   :  { %v353_v47 = vld [vmem:[%s502_s10] sm:$0xff]  }
   0xd   :  { %325 = vmatpush3.bf16.msra.mxu1 %v348_v12 }
   0xe   :  { %66 = vperm.xlu1 %344, %v44_v8   ;;  %326 = vmatprep.subr.bf16.mxu1 %v355_v7 }
   0xf   :  { %61 = vperm.xlu0 %343, %v43_v9  }
  0x11   :  { %327 = vmatpush3.bf16.msra.mxu1 %v349_v13 }
  0x12   :  { %328 = vmatprep.subr.bf16.mxu1 %v355_v7 }
  0x15   :  { %329 = vmatpush3.bf16.msra.mxu1 %v350_v14 }
  0x16   :  { %330 = vmatprep.subr.bf16.mxu1 %v355_v7 }
  0x19   :  { %331 = vmatpush3.bf16.msra.mxu1 %v351_v15 }
  0x1a   :  { %332 = vmatprep.subr.bf16.mxu1 %v355_v7 }
  0x1d   :  { %333 = vmatpush3.bf16.msra.mxu1 %v352_v46 }
  0x1e   :  { %334 = vmatprep.subr.bf16.mxu1 %v355_v7 }
  0x21   :  { %335 = vmatpush3.bf16.msra.mxu1 %v353_v47 }
  0x7d   :  { %v86_v19 = vpop.permute.xlu1 %85 }
  0x7e   :  { %v80_v20 = vpop.permute.xlu0 %79 }
  0x7f   :  { %v82_v21 = vmul.f32 %v80_v20, %v76_v17 }
  0x81   :  { %v103_v23 = vpop.permute.xlu1 %102  ;;  %v88_v26 = vadd.f32 %v86_v19, %v82_v21 }
  0x82   :  { %v97_v24 = vpop.permute.xlu0 %96 }
  0x83   :  { %v99_v27 = vmul.f32 %v97_v24, %v93_v22  ;;  %v89_v33 = vmax.f32 %v88_v26, 0.0 }
  0x85   :  { %v105_v28 = vadd.f32 %v103_v23, %v99_v27  ;;  %v55_v31 = vpop.permute.xlu1 %54 }
  0x86   :  { %v50_v32 = vpop.permute.xlu0 %49  ;;  %v58_v35 = vmul.f32 %v299_v29, %v55_v31 }
  0x87   :  { %v106_v34 = vmax.f32 %v105_v28, 0.0  ;;  %v57_v36 = vmul.f32 %v298_v30, %v50_v32 }
  0x89   :  { %v108_v37 = vpack.c.bf16 %v106_v34, %v89_v33  ;;  %v67_v38 = vpop.permute.xlu1 %66 }
  0x8a   :  { %v62_v39 = vpop.permute.xlu0 %61  ;;  %v70_v40 = vadd.f32 %v67_v38, %v58_v35 }
  0x8b   :  { %v69_v41 = vadd.f32 %v62_v39, %v57_v36  ;;  %313 = vmatpush3.bf16.msra.mxu0 %v108_v37 }
  0x8c   :  { %314 = vmatprep.subr.bf16.mxu0 %v355_v7  ;;  %v72_v42 = vmax.f32 %v70_v40, 0.0 }
  0x8d   :  { %v71_v43 = vmax.f32 %v69_v41, 0.0 }
  0x8f   :  { %v107_v44 = vpack.c.bf16 %v72_v42, %v71_v43 }
  0x91   :  { %315 = vmatpush3.bf16.msra.mxu0 %v107_v44 }
  0x94   :  { %317 = vmatmul.mubr.msk.bf16.vlgmr.msra.gmra.mxu0 %vm116_vm1, %v345_v45 }
 0x154   :  { %v154_v48 = vpop.f32.mrf.mxu0 }
 0x156   :  { %v318_v49 = vpop.f32.mrf.mxu0 }
 0x158   :  { %v157_v50 = vpop.f32.mrf.mxu0 }
 0x159   :  { %v161_v51 = vpack.c.bf16 %v157_v50, %v154_v48 }
 0x15a   :  { %v319_v52 = vpop.f32.mrf.mxu0 }
 0x15b   :  { %337 = vmatmul.mubr.bf16.vlgmr.msra.gmra.mxu1 %v161_v51 }
 0x21b   :  { %v260_v53 = vpop.f32.mrf.mxu1 }
 0x21c   :  { %v294_v54 = vpack.c.bf16 %v260_v53, %v260_v53 }
 0x21d   :  { %v338_v55 = vpop.f32.mrf.mxu1 }
 0x21e   :  { %276 = vst.msk [vmem:[%s506_s11] sm:$0xf] %vm275_vm2, %v294_v54 }
 0x21f   :  { %v263_v56 = vpop.f32.mrf.mxu1 }
 0x220   :  { %v295_v57 = vpack.c.bf16 %v263_v56, %v263_v56 }
 0x221   :  { %v339_v58 = vpop.f32.mrf.mxu1 }
 0x222   :  { %277 = vst.msk [vmem:[%s506_s11 + $0x4] sm:$0xf] %vm275_vm2, %v295_v57 }

// kernel: densenet_forward.15
= control target key start
LH: loop header
LB: loop body
LE: loop exit
PB: predicated region body
PF: predicated region fallthrough
CT: control target
= control target key end

     0   :  { %v1948_v0 = vmov 0   ;;  %vm127_vm0 = vcmask 195584   ;;  %vm134_vm1 = vcmask 1043456   ;;  %vm1950_vm2 = vmmov 0   ;;  %s2309_s4 = inlined_call_operand.vmem [shape: f32[8,1], index: 4, kind: input, shape index: {}]   ;;  %s2310_s1 = inlined_call_operand.vmem [shape: f32[16,1], index: 1, kind: input, shape index: {}]   ;;  %s2311_s5 = inlined_call_operand.vmem [shape: f32[8,1], index: 5, kind: input, shape index: {}]   ;;  %s2312_s2 = inlined_call_operand.vmem [shape: f32[16,1], index: 2, kind: input, shape index: {}]   ;;  %s2313_s7 = inlined_call_operand.vmem [shape: f32[32,1], index: 7, kind: input, shape index: {}]   ;;  %s2314_s6 = inlined_call_operand.vmem [shape: bf16[32,24], index: 6, kind: input, shape index: {}]   ;;  %s2315_s8 = inlined_call_operand.vmem [shape: bf16[9,128,128], index: 8, kind: input, shape index: {}]   ;;  %s2316_s3 = inlined_call_operand.vmem [shape: bf16[8,128], index: 3, kind: input, shape index: {}]   ;;  %s2317_s0 = inlined_call_operand.vmem [shape: bf16[16,128], index: 0, kind: input, shape index: {}]   ;;  %s2318_s9 = inlined_call_operand.vmem [shape: bf16[8,288], index: 9, kind: input, shape index: {}]   ;;  %s2319_s10 = inlined_call_operand.vmem [shape: bf16[8,128], index: 10, kind: output, shape index: {}]  }
   0x1   :  { %1870 = vset.pattern.permute.xlu1 %v1948_v0  ;;  %1869 = vset.pattern.permute.xlu0 %v1948_v0  ;;  %v71_v1 = vld [vmem:[%s2309_s4] sm:$0xff]  ;;  %v39_v4 = vld [vmem:[%s2310_s1 + $0x8] sm:$0xff]  ;;  %v95_v10 = vld [vmem:[%s2313_s7 + $0x10] sm:$0xff]  ;;  %vm1248_vm3 = vcmask 261120  }
   0x2   :  { %v38_v2 = vld [vmem:[%s2310_s1] sm:$0xff]  ;;  %76 = vperm.xlu0 %1869, %v71_v1   ;;  %v41_v6 = vld [vmem:[%s2312_s2 + $0x8] sm:$0xff]  ;;  %v96_v11 = vld [vmem:[%s2313_s7 + $0x18] sm:$0xff] }
   0x3   :  { %46 = vperm.xlu1 %1870, %v38_v2   ;;  %v72_v3 = vld [vmem:[%s2311_s5] sm:$0xff]  ;;  %v94_v8 = vld [vmem:[%s2313_s7 + $0x8] sm:$0xff]  ;;  %v1873_v12 = vld [vmem:[%s2315_s8 + $0x38] sm:$0xff]  }
   0x4   :  { %v40_v5 = vld [vmem:[%s2312_s2] sm:$0xff]  ;;  %1677 = vmatprep.subr.bf16.mxu1 %v1873_v12  ;;  %v1875_v13 = vld [vmem:[%s2315_s8 + $0x30] sm:$0xff]   ;;  %v1877_v14 = vld [vmem:[%s2315_s8 + $0x28] sm:$0xff]  }
   0x5   :  { %v93_v7 = vld [vmem:[%s2313_s7] sm:$0xff]  ;;  %1678 = vmatpush3.bf16.msra.mxu1 %v1873_v12  ;;  %v1881_v16 = vld [vmem:[%s2315_s8 + $0x18] sm:$0xff]   ;;  %v1872_v41 = vld [vmem:[%s2314_s6 + $0x8] sm:$0xff]  }
   0x6   :  { %82 = vperm.xlu0 %1869, %v72_v3   ;;  %v1871_v9 = vld [vmem:[%s2314_s6] sm:$0xff]   ;;  %1679 = vmatprep.subr.bf16.mxu1 %v1875_v13  ;;  %v1874_v40 = vld [vmem:[%s2315_s8 + $0x78] sm:$0xff]   ;;  %v1876_v42 = vld [vmem:[%s2315_s8 + $0x70] sm:$0xff]  }
   0x7   :  { %51 = vperm.xlu1 %1870, %v39_v4   ;;  %1673 = vmatprep.mubr.msk.bf16.mxu0 %vm127_vm0, %v1871_v9  ;;  %v1879_v15 = vld [vmem:[%s2315_s8 + $0x20] sm:$0xff]   ;;  %v1878_v43 = vld [vmem:[%s2315_s8 + $0x68] sm:$0xff]   ;;  %v1882_v45 = vld [vmem:[%s2315_s8 + $0x58] sm:$0xff]  }
   0x8   :  { %v70_v17 = vld [vmem:[%s2316_s3] sm:$0xf]  ;;  %v1883_v46 = vld [vmem:[%s2315_s8 + $0x10] sm:$0xff]   ;;  %v1885_v48 = vld [vmem:[%s2315_s8 + $0x8] sm:$0xff]  }
   0x9   :  { %1680 = vmatpush3.bf16.msra.mxu1 %v1875_v13  ;;  %v73_v18 = vunpack.c.l.bf16 %v70_v17  ;;  %v1547_v21 = vld [vmem:[%s2317_s0] sm:$0xff]   ;;  %v1884_v47 = vld [vmem:[%s2315_s8 + $0x50] sm:$0xff]   ;;  %v1886_v49 = vld [vmem:[%s2315_s8 + $0x48] sm:$0xff]  }
   0xa   :  { %58 = vperm.xlu0 %1869, %v40_v5   ;;  %1681 = vmatprep.subr.bf16.mxu1 %v1877_v14  ;;  %v1548_v23 = vunpack.c.l.bf16 %v1547_v21  ;;  %v1549_v24 = vunpack.c.h.bf16 %v1547_v21  ;;  %v1880_v44 = vld [vmem:[%s2315_s8 + $0x60] sm:$0xff]   ;;  %v1889_v52 = vld [vmem:[%s2315_s8 + $0xb8] sm:$0xff]   ;;  %v1892_v9 = vld [vmem:[%s2315_s8 + $0xf0] sm:$0xff]  }
   0xb   :  { %63 = vperm.xlu1 %1870, %v41_v6   ;;  %v1887_v50 = vld [vmem:[%s2315_s8] sm:$0xff]   ;;  %v1890_v53 = vld [vmem:[%s2315_s8 + $0xf8] sm:$0xff]   ;;  %v1900_v17 = vld [vmem:[%s2315_s8 + $0xd0] sm:$0xff]  }
   0xc   :  { %v1888_v51 = vld [vmem:[%s2315_s8 + $0x40] sm:$0xff]  }
   0xd   :  { %1682 = vmatpush3.bf16.msra.mxu1 %v1877_v14  ;;  %v1895_v12 = vld [vmem:[%s2315_s8 + $0xa0] sm:$0xff]   ;;  %v1897_v14 = vld [vmem:[%s2315_s8 + $0x98] sm:$0xff]  }
   0xe   :  { %99 = vperm.xlu0 %1869, %v93_v7   ;;  %1683 = vmatprep.subr.bf16.mxu1 %v1879_v15  ;;  %v1896_v13 = vld [vmem:[%s2315_s8 + $0xe0] sm:$0xff]  }
   0xf   :  { %104 = vperm.xlu1 %1870, %v94_v8   ;;  %v1891_v8 = vld [vmem:[%s2315_s8 + $0xb0] sm:$0xff]   ;;  %v1904_v21 = vld [vmem:[%s2315_s8 + $0xc0] sm:$0xff]  }
  0x11   :  { %1684 = vmatpush3.bf16.msra.mxu1 %v1879_v15  ;;  %v1898_v15 = vld [vmem:[%s2315_s8 + $0xd8] sm:$0xff]  }
  0x12   :  { %109 = vperm.xlu0 %1869, %v95_v10   ;;  %1685 = vmatprep.subr.bf16.mxu1 %v1881_v16  ;;  %v1893_v10 = vld [vmem:[%s2315_s8 + $0xa8] sm:$0xff]  }
  0x13   :  { %114 = vperm.xlu1 %1870, %v96_v11   ;;  %v1894_v11 = vld [vmem:[%s2315_s8 + $0xe8] sm:$0xff]  }
  0x15   :  { %1686 = vmatpush3.bf16.msra.mxu1 %v1881_v16  ;;  %v1899_v16 = vld [vmem:[%s2315_s8 + $0x90] sm:$0xff]  }
  0x16   :  { %1687 = vmatprep.subr.bf16.mxu1 %v1883_v46 }
  0x19   :  { %1688 = vmatpush3.bf16.msra.mxu1 %v1883_v46  ;;  %v1929_v46 = vld [vmem:[%s2315_s8 + $0x198] sm:$0xff]  }
  0x1a   :  { %1689 = vmatprep.subr.bf16.mxu1 %v1885_v48 }
  0x1d   :  { %1690 = vmatpush3.bf16.msra.mxu1 %v1885_v48  ;;  %v1931_v48 = vld [vmem:[%s2315_s8 + $0x190] sm:$0xff]  }
  0x1e   :  { %1691 = vmatprep.subr.bf16.mxu1 %v1887_v50 }
  0x21   :  { %1692 = vmatpush3.bf16.msra.mxu1 %v1887_v50  ;;  %v1933_v50 = vld [vmem:[%s2315_s8 + $0x188] sm:$0xff]  }
  0x22   :  { %1717 = vmatprep.subr.bf16.mxu1 %v1889_v52 }
  0x7d   :  { %v77_v19 = vpop.permute.xlu0 %76 }
  0x7e   :  { %v47_v20 = vpop.permute.xlu1 %46  ;;  %v79_v22 = vmul.f32 %v77_v19, %v73_v18  ;;  %v1901_v18 = vld [vmem:[%s2315_s8 + $0x88] sm:$0xff]  }
  0x7f   :  { %v54_v28 = vmul.f32 %v1548_v23, %v47_v20  ;;  %v1902_v19 = vld [vmem:[%s2315_s8 + $0xc8] sm:$0xff]   ;;  %v1903_v20 = vld [vmem:[%s2315_s8 + $0x80] sm:$0xff]   ;;  %v1906_v23 = vld [vmem:[%s2315_s8 + $0x178] sm:$0xff]  }
  0x81   :  { %v83_v25 = vpop.permute.xlu0 %82 }
  0x82   :  { %v52_v26 = vpop.permute.xlu1 %51  ;;  %v85_v27 = vadd.f32 %v83_v25, %v79_v22  ;;  %v1905_v22 = vld [vmem:[%s2315_s8 + $0x138] sm:$0xff]   ;;  %v1908_v25 = vld [vmem:[%s2315_s8 + $0x170] sm:$0xff]  }
  0x83   :  { %v55_v30 = vmul.f32 %v1549_v24, %v52_v26  ;;  %v1907_v24 = vld [vmem:[%s2315_s8 + $0x130] sm:$0xff]   ;;  %v1909_v26 = vld [vmem:[%s2315_s8 + $0x128] sm:$0xff]  }
  0x84   :  { %v86_v29 = vmax.f32 %v85_v27, 0.0  ;;  %v1910_v27 = vld [vmem:[%s2315_s8 + $0x168] sm:$0xff]  }
  0x85   :  { %v59_v31 = vpop.permute.xlu0 %58 }
  0x86   :  { %v64_v32 = vpop.permute.xlu1 %63  ;;  %v66_v33 = vadd.f32 %v59_v31, %v54_v28  ;;  %v88_v35 = vpack.c.bf16 %v86_v29, %v86_v29  ;;  %v1911_v28 = vld [vmem:[%s2315_s8 + $0x120] sm:$0xff]   ;;  %v1914_v31 = vld [vmem:[%s2315_s8 + $0x158] sm:$0xff]  }
  0x87   :  { %v67_v34 = vadd.f32 %v64_v32, %v55_v30  ;;  %v1912_v29 = vld [vmem:[%s2315_s8 + $0x160] sm:$0xff]   ;;  %v1913_v30 = vld [vmem:[%s2315_s8 + $0x118] sm:$0xff]   ;;  %v1915_v32 = vld [vmem:[%s2315_s8 + $0x110] sm:$0xff]  }
  0x88   :  { %v68_v36 = vmax.f32 %v66_v33, 0.0  ;;  %1865 = vmatprep.subr.msk.bf16.mxu0 %vm134_vm1, %v88_v35  ;;  %v136_v38 = vsel %vm134_vm1, %v88_v35, 0  ;;  %v1916_v33 = vld [vmem:[%s2315_s8 + $0x150] sm:$0xff]   ;;  %v1918_v35 = vld [vmem:[%s2315_s8 + $0x148] sm:$0xff]  }
  0x89   :  { %v69_v37 = vmax.f32 %v67_v34, 0.0  ;;  %1670 = vmatpush3.bf16.msra.mxu0 %v136_v38  ;;  %v100_v55 = vpop.permute.xlu0 %99  ;;  %v1917_v34 = vld [vmem:[%s2315_s8 + $0x108] sm:$0xff]   ;;  %v1921_v38 = vld [vmem:[%s2315_s8 + $0x1b8] sm:$0xff]  }
  0x8a   :  { %v105_v54 = vpop.permute.xlu1 %104 }
  0x8b   :  { %v87_v39 = vpack.c.bf16 %v69_v37, %v68_v36  ;;  %v1919_v36 = vld [vmem:[%s2315_s8 + $0x100] sm:$0xff]  }
  0x8c   :  { %v1920_v37 = vld [vmem:[%s2315_s8 + $0x140] sm:$0xff]  }
  0x8d   :  { %1671 = vmatprep.subr.bf16.mxu0 %v87_v39  ;;  %v110_v60 = vpop.permute.xlu0 %109 }
  0x8e   :  { %1672 = vmatpush3.bf16.msra.mxu0 %v87_v39  ;;  %v115_v58 = vpop.permute.xlu1 %114  ;;  %v1922_v39 = vld [vmem:[%s2315_s8 + $0x1f8] sm:$0xff]  }
  0x8f   :  { %1697 = vmatprep.subr.bf16.mxu0 %v1874_v40 }
  0x91   :  { %1674 = vmatmul.mubr.msk.bf16.vlgmr.msra.gmra.mxu0 %vm127_vm0, %v1872_v41  ;;  %v1924_v41 = vld [vmem:[%s2315_s8 + $0x1f0] sm:$0xff]  }
  0x92   :  { %1698 = vmatpush3.bf16.msra.mxu0 %v1874_v40  ;;  %v1923_v40 = vld [vmem:[%s2315_s8 + $0x1b0] sm:$0xff]  }
  0x93   :  { %1699 = vmatprep.subr.bf16.mxu0 %v1876_v42 }
  0x96   :  { %1700 = vmatpush3.bf16.msra.mxu0 %v1876_v42  ;;  %v1925_v42 = vld [vmem:[%s2315_s8 + $0x1a8] sm:$0xff]  }
  0x97   :  { %1701 = vmatprep.subr.bf16.mxu0 %v1878_v43 }
  0x9a   :  { %1702 = vmatpush3.bf16.msra.mxu0 %v1878_v43  ;;  %v1926_v43 = vld [vmem:[%s2315_s8 + $0x1e8] sm:$0xff]  }
  0x9b   :  { %1703 = vmatprep.subr.bf16.mxu0 %v1880_v44 }
  0x9e   :  { %1704 = vmatpush3.bf16.msra.mxu0 %v1880_v44  ;;  %v1927_v44 = vld [vmem:[%s2315_s8 + $0x1a0] sm:$0xff]  }
  0x9f   :  { %1705 = vmatprep.subr.bf16.mxu0 %v1882_v45 }
  0xa2   :  { %1706 = vmatpush3.bf16.msra.mxu0 %v1882_v45  ;;  %v1928_v45 = vld [vmem:[%s2315_s8 + $0x1e0] sm:$0xff]  }
  0xa3   :  { %1707 = vmatprep.subr.bf16.mxu0 %v1884_v47 }
  0xa6   :  { %1708 = vmatpush3.bf16.msra.mxu0 %v1884_v47  ;;  %v1930_v47 = vld [vmem:[%s2315_s8 + $0x1d8] sm:$0xff]  }
  0xa7   :  { %1709 = vmatprep.subr.bf16.mxu0 %v1886_v49 }
  0xaa   :  { %1710 = vmatpush3.bf16.msra.mxu0 %v1886_v49  ;;  %v1932_v49 = vld [vmem:[%s2315_s8 + $0x1d0] sm:$0xff]  }
  0xab   :  { %1711 = vmatprep.subr.bf16.mxu0 %v1888_v51 }
  0xae   :  { %1712 = vmatpush3.bf16.msra.mxu0 %v1888_v51  ;;  %v1934_v51 = vld [vmem:[%s2315_s8 + $0x1c8] sm:$0xff]  }
  0xaf   :  { %1737 = vmatprep.subr.bf16.mxu0 %v1890_v53 }
 0x151   :  { %v1675_v56 = vpop.f32.mrf.mxu0 }
 0x152   :  { %v181_v63 = vadd.f32 %v1675_v56, %v110_v60  ;;  %v1939_v56 = vld [vmem:[%s2315_s8 + $0x228] sm:$0xff]  }
 0x153   :  { %v172_v57 = vpop.f32.mrf.mxu0  ;;  %v1943_v60 = vld [vmem:[%s2315_s8 + $0x208] sm:$0xff]  }
 0x154   :  { %v173_v61 = vadd.f32 %v172_v57, %v100_v55  ;;  %v189_v5 = vmax.f32 %v181_v63, 0.0  ;;  %v1938_v55 = vld [vmem:[%s2315_s8 + $0x230] sm:$0xff]   ;;  %v1940_v57 = vld [vmem:[%s2315_s8 + $0x220] sm:$0xff]  }
 0x155   :  { %v1676_v59 = vpop.f32.mrf.mxu0 }
 0x156   :  { %v184_v62 = vadd.f32 %v1676_v59, %v115_v58  ;;  %v187_v3 = vmax.f32 %v173_v61, 0.0  ;;  %v1941_v58 = vld [vmem:[%s2315_s8 + $0x218] sm:$0xff]   ;;  %v1942_v59 = vld [vmem:[%s2315_s8 + $0x210] sm:$0xff]   ;;  %v1944_v61 = vld [vmem:[%s2315_s8 + $0x200] sm:$0xff]  }
 0x157   :  { %v175_v0 = vpop.f32.mrf.mxu0 }
 0x158   :  { %v176_v1 = vadd.f32 %v175_v0, %v105_v54  ;;  %v190_v2 = vmax.f32 %v184_v62, 0.0  ;;  %v1937_v54 = vld [vmem:[%s2315_s8 + $0x238] sm:$0xff]   ;;  %v2291_v62 = vld [vmem:[%s2318_s9] sm:$0xff]  ;;  %v1949_v0 = vmov 0.0  }
 0x159   :  { %v1543_v63 = vcombine.high %v2291_v62, %v2291_v62 }
 0x15a   :  { %v188_v4 = vmax.f32 %v176_v1, 0.0  ;;  %v2106_v7 = vpack.c.bf16 %v190_v2, %v189_v5 }
 0x15c   :  { %v2104_v6 = vpack.c.bf16 %v188_v4, %v187_v3 }
 0x15e   :  { %1693 = vmatprep.mubr.bf16.mxu1 %v2104_v6  ;;  %1713 = vmatprep.mubr.bf16.mxu0 %v2104_v6 }
 0x15f   :  { %1694 = vmatmul.mubr.bf16.vlgmr.msra.gmra.mxu1 %v2106_v7  ;;  %1714 = vmatmul.mubr.bf16.vlgmr.msra.gmra.mxu0 %v2106_v7 }
 0x160   :  { %1718 = vmatpush3.bf16.msra.mxu1 %v1889_v52  ;;  %1738 = vmatpush3.bf16.msra.mxu0 %v1890_v53  ;;  %v1935_v52 = vld [vmem:[%s2315_s8 + $0x180] sm:$0xff]  }
 0x161   :  { %1733 = vmatprep.mubr.bf16.mxu1 %v2104_v6  ;;  %1753 = vmatprep.mubr.bf16.mxu0 %v2104_v6  ;;  %v1936_v53 = vld [vmem:[%s2315_s8 + $0x1c0] sm:$0xff]  }
 0x162   :  { %1719 = vmatprep.subr.bf16.mxu1 %v1891_v8  ;;  %1739 = vmatprep.subr.bf16.mxu0 %v1892_v9 }
 0x164   :  { %1720 = vmatpush3.bf16.msra.mxu1 %v1891_v8  ;;  %1740 = vmatpush3.bf16.msra.mxu0 %v1892_v9 }
 0x165   :  { %1721 = vmatprep.subr.bf16.mxu1 %v1893_v10  ;;  %1741 = vmatprep.subr.bf16.mxu0 %v1894_v11 }
 0x168   :  { %1722 = vmatpush3.bf16.msra.mxu1 %v1893_v10  ;;  %1742 = vmatpush3.bf16.msra.mxu0 %v1894_v11 }
 0x169   :  { %1723 = vmatprep.subr.bf16.mxu1 %v1895_v12  ;;  %1743 = vmatprep.subr.bf16.mxu0 %v1896_v13 }
 0x16c   :  { %1724 = vmatpush3.bf16.msra.mxu1 %v1895_v12  ;;  %1744 = vmatpush3.bf16.msra.mxu0 %v1896_v13 }
 0x16d   :  { %1725 = vmatprep.subr.bf16.mxu1 %v1897_v14  ;;  %1745 = vmatprep.subr.bf16.mxu0 %v1898_v15 }
 0x170   :  { %1726 = vmatpush3.bf16.msra.mxu1 %v1897_v14  ;;  %1746 = vmatpush3.bf16.msra.mxu0 %v1898_v15 }
 0x171   :  { %1727 = vmatprep.subr.bf16.mxu1 %v1899_v16  ;;  %1747 = vmatprep.subr.bf16.mxu0 %v1900_v17 }
 0x174   :  { %1728 = vmatpush3.bf16.msra.mxu1 %v1899_v16  ;;  %1748 = vmatpush3.bf16.msra.mxu0 %v1900_v17 }
 0x175   :  { %1729 = vmatprep.subr.bf16.mxu1 %v1901_v18  ;;  %1749 = vmatprep.subr.bf16.mxu0 %v1902_v19 }
 0x178   :  { %1730 = vmatpush3.bf16.msra.mxu1 %v1901_v18  ;;  %1750 = vmatpush3.bf16.msra.mxu0 %v1902_v19 }
 0x179   :  { %1731 = vmatprep.subr.bf16.mxu1 %v1903_v20  ;;  %1751 = vmatprep.subr.bf16.mxu0 %v1904_v21 }
 0x17c   :  { %1732 = vmatpush3.bf16.msra.mxu1 %v1903_v20  ;;  %1752 = vmatpush3.bf16.msra.mxu0 %v1904_v21 }
 0x17d   :  { %1757 = vmatprep.subr.bf16.mxu1 %v1905_v22  ;;  %1777 = vmatprep.subr.bf16.mxu0 %v1906_v23 }
 0x17f   :  { %1734 = vmatmul.mubr.bf16.vlgmr.msra.gmra.mxu1 %v2106_v7  ;;  %1754 = vmatmul.mubr.bf16.vlgmr.msra.gmra.mxu0 %v2106_v7 }
 0x180   :  { %1758 = vmatpush3.bf16.msra.mxu1 %v1905_v22  ;;  %1773 = vmatprep.mubr.bf16.mxu1 %v2104_v6 }
 0x181   :  { %1778 = vmatpush3.bf16.msra.mxu0 %v1906_v23  ;;  %1793 = vmatprep.mubr.bf16.mxu0 %v2104_v6 }
 0x182   :  { %1759 = vmatprep.subr.bf16.mxu1 %v1907_v24  ;;  %1779 = vmatprep.subr.bf16.mxu0 %v1908_v25 }
 0x184   :  { %1760 = vmatpush3.bf16.msra.mxu1 %v1907_v24 }
 0x185   :  { %1780 = vmatpush3.bf16.msra.mxu0 %v1908_v25  ;;  %1761 = vmatprep.subr.bf16.mxu1 %v1909_v26 }
 0x186   :  { %1781 = vmatprep.subr.bf16.mxu0 %v1910_v27 }
 0x188   :  { %1762 = vmatpush3.bf16.msra.mxu1 %v1909_v26 }
 0x189   :  { %1782 = vmatpush3.bf16.msra.mxu0 %v1910_v27  ;;  %1763 = vmatprep.subr.bf16.mxu1 %v1911_v28 }
 0x18a   :  { %1783 = vmatprep.subr.bf16.mxu0 %v1912_v29 }
 0x18c   :  { %1764 = vmatpush3.bf16.msra.mxu1 %v1911_v28 }
 0x18d   :  { %1784 = vmatpush3.bf16.msra.mxu0 %v1912_v29  ;;  %1765 = vmatprep.subr.bf16.mxu1 %v1913_v30 }
 0x18e   :  { %1785 = vmatprep.subr.bf16.mxu0 %v1914_v31 }
 0x190   :  { %1766 = vmatpush3.bf16.msra.mxu1 %v1913_v30 }
 0x191   :  { %1786 = vmatpush3.bf16.msra.mxu0 %v1914_v31  ;;  %1767 = vmatprep.subr.bf16.mxu1 %v1915_v32 }
 0x192   :  { %1787 = vmatprep.subr.bf16.mxu0 %v1916_v33 }
 0x194   :  { %1768 = vmatpush3.bf16.msra.mxu1 %v1915_v32 }
 0x195   :  { %1788 = vmatpush3.bf16.msra.mxu0 %v1916_v33  ;;  %1769 = vmatprep.subr.bf16.mxu1 %v1917_v34 }
 0x196   :  { %1789 = vmatprep.subr.bf16.mxu0 %v1918_v35 }
 0x198   :  { %1770 = vmatpush3.bf16.msra.mxu1 %v1917_v34 }
 0x199   :  { %1790 = vmatpush3.bf16.msra.mxu0 %v1918_v35  ;;  %1771 = vmatprep.subr.bf16.mxu1 %v1919_v36 }
 0x19a   :  { %1791 = vmatprep.subr.bf16.mxu0 %v1920_v37 }
 0x19c   :  { %1772 = vmatpush3.bf16.msra.mxu1 %v1919_v36 }
 0x19d   :  { %1792 = vmatpush3.bf16.msra.mxu0 %v1920_v37  ;;  %1797 = vmatprep.subr.bf16.mxu1 %v1921_v38 }
 0x19e   :  { %1817 = vmatprep.subr.bf16.mxu0 %v1922_v39 }
 0x19f   :  { %1774 = vmatmul.mubr.bf16.vlgmr.msra.gmra.mxu1 %v2106_v7 }
 0x1a0   :  { %1794 = vmatmul.mubr.bf16.vlgmr.msra.gmra.mxu0 %v2106_v7  ;;  %1798 = vmatpush3.bf16.msra.mxu1 %v1921_v38 }
 0x1a1   :  { %1813 = vmatprep.mubr.bf16.mxu1 %v2104_v6  ;;  %1818 = vmatpush3.bf16.msra.mxu0 %v1922_v39 }
 0x1a2   :  { %1833 = vmatprep.mubr.bf16.mxu0 %v2104_v6  ;;  %1799 = vmatprep.subr.bf16.mxu1 %v1923_v40 }
 0x1a3   :  { %1819 = vmatprep.subr.bf16.mxu0 %v1924_v41 }
 0x1a4   :  { %1800 = vmatpush3.bf16.msra.mxu1 %v1923_v40 }
 0x1a5   :  { %1820 = vmatpush3.bf16.msra.mxu0 %v1924_v41  ;;  %1801 = vmatprep.subr.bf16.mxu1 %v1925_v42 }
 0x1a6   :  { %1821 = vmatprep.subr.bf16.mxu0 %v1926_v43 }
 0x1a8   :  { %1802 = vmatpush3.bf16.msra.mxu1 %v1925_v42 }
 0x1a9   :  { %1822 = vmatpush3.bf16.msra.mxu0 %v1926_v43  ;;  %1803 = vmatprep.subr.bf16.mxu1 %v1927_v44 }
 0x1aa   :  { %1823 = vmatprep.subr.bf16.mxu0 %v1928_v45 }
 0x1ac   :  { %1804 = vmatpush3.bf16.msra.mxu1 %v1927_v44 }
 0x1ad   :  { %1824 = vmatpush3.bf16.msra.mxu0 %v1928_v45  ;;  %1805 = vmatprep.subr.bf16.mxu1 %v1929_v46 }
 0x1ae   :  { %1825 = vmatprep.subr.bf16.mxu0 %v1930_v47 }
 0x1b0   :  { %1806 = vmatpush3.bf16.msra.mxu1 %v1929_v46 }
 0x1b1   :  { %1826 = vmatpush3.bf16.msra.mxu0 %v1930_v47  ;;  %1807 = vmatprep.subr.bf16.mxu1 %v1931_v48 }
 0x1b2   :  { %1827 = vmatprep.subr.bf16.mxu0 %v1932_v49 }
 0x1b4   :  { %1808 = vmatpush3.bf16.msra.mxu1 %v1931_v48 }
 0x1b5   :  { %1828 = vmatpush3.bf16.msra.mxu0 %v1932_v49  ;;  %1809 = vmatprep.subr.bf16.mxu1 %v1933_v50 }
 0x1b6   :  { %1829 = vmatprep.subr.bf16.mxu0 %v1934_v51 }
 0x1b8   :  { %1810 = vmatpush3.bf16.msra.mxu1 %v1933_v50 }
 0x1b9   :  { %1830 = vmatpush3.bf16.msra.mxu0 %v1934_v51  ;;  %1811 = vmatprep.subr.bf16.mxu1 %v1935_v52 }
 0x1ba   :  { %1831 = vmatprep.subr.bf16.mxu0 %v1936_v53 }
 0x1bc   :  { %1812 = vmatpush3.bf16.msra.mxu1 %v1935_v52  ;;  %v1542_v52 = vcombine.low %v2291_v62, %v2291_v62 }
 0x1bd   :  { %1832 = vmatpush3.bf16.msra.mxu0 %v1936_v53  ;;  %1837 = vmatprep.subr.bf16.mxu1 %v1937_v54 }
 0x1bf   :  { %1814 = vmatmul.mubr.bf16.vlgmr.msra.gmra.mxu1 %v2106_v7 }
 0x1c0   :  { %1834 = vmatmul.mubr.bf16.vlgmr.msra.gmra.mxu0 %v2106_v7  ;;  %1838 = vmatpush3.bf16.msra.mxu1 %v1937_v54 }
 0x1c1   :  { %1853 = vmatprep.mubr.bf16.mxu1 %v2104_v6  ;;  %1839 = vmatprep.subr.bf16.mxu1 %v1938_v55 }
 0x1c2   :  { %1284 = vmatprep.mubr.bf16.mxu0 %v1543_v63 }
 0x1c4   :  { %1840 = vmatpush3.bf16.msra.mxu1 %v1938_v55 }
 0x1c5   :  { %1841 = vmatprep.subr.bf16.mxu1 %v1939_v56 }
 0x1c8   :  { %1842 = vmatpush3.bf16.msra.mxu1 %v1939_v56  ;;  %v1947_v56 = vld [vmem:[%s2318_s9 + $0x8] ss:$0 sps:$4 sm:$0xff]  }
 0x1c9   :  { %1843 = vmatprep.subr.bf16.mxu1 %v1940_v57 }
 0x1cc   :  { %1844 = vmatpush3.bf16.msra.mxu1 %v1940_v57 }
 0x1cd   :  { %1845 = vmatprep.subr.bf16.mxu1 %v1941_v58 }
 0x1d0   :  { %1846 = vmatpush3.bf16.msra.mxu1 %v1941_v58 }
 0x1d1   :  { %1847 = vmatprep.subr.bf16.mxu1 %v1942_v59 }
 0x1d4   :  { %1848 = vmatpush3.bf16.msra.mxu1 %v1942_v59 }
 0x1d5   :  { %1849 = vmatprep.subr.bf16.mxu1 %v1943_v60 }
 0x1d8   :  { %1850 = vmatpush3.bf16.msra.mxu1 %v1943_v60 }
 0x1d9   :  { %1851 = vmatprep.subr.bf16.mxu1 %v1944_v61 }
 0x1dc   :  { %1852 = vmatpush3.bf16.msra.mxu1 %v1944_v61 }
 0x1dd   :  { %1857 = vmatprep.subr.bf16.mxu1 %v1949_v0 }
 0x1df   :  { %1854 = vmatmul.mubr.bf16.vlgmr.msra.gmra.mxu1 %v2106_v7 }
 0x1e0   :  { %1861 = vmatprep.mubr.msk.bf16.mxu1 %vm1950_vm2, %v1949_v0 }
 0x21f   :  { %v1695_v1 = vpop.f32.mrf.mxu1  ;;  %v1715_v2 = vpop.f32.mrf.mxu0 }
 0x221   :  { %v2297_v3 = vpop.f32.mrf.mxu1  ;;  %v405_v4 = vpop.f32.mrf.mxu0 }
 0x223   :  { %v1696_v5 = vpop.f32.mrf.mxu1  ;;  %v1716_v6 = vpop.f32.mrf.mxu0 }
 0x224   :  { %v1221_v42 = vpack.c.bf16 %v1716_v6, %v1715_v2  ;;  %v1219_v46 = vpack.c.bf16 %v1696_v5, %v1695_v1 }
 0x225   :  { %v294_v7 = vpop.f32.mrf.mxu1  ;;  %v408_v8 = vpop.f32.mrf.mxu0 }
 0x226   :  { %v1220_v44 = vpack.c.bf16 %v408_v8, %v405_v4  ;;  %v1218_v50 = vpack.c.bf16 %v294_v7, %v2297_v3 }
 0x23f   :  { %v1735_v9 = vpop.f32.mrf.mxu1  ;;  %v1755_v10 = vpop.f32.mrf.mxu0 }
 0x241   :  { %v519_v11 = vpop.f32.mrf.mxu1  ;;  %v633_v12 = vpop.f32.mrf.mxu0 }
 0x243   :  { %v1736_v13 = vpop.f32.mrf.mxu1  ;;  %v1756_v14 = vpop.f32.mrf.mxu0 }
 0x244   :  { %v1225_v31 = vpack.c.bf16 %v1756_v14, %v1755_v10  ;;  %v1223_v38 = vpack.c.bf16 %v1736_v13, %v1735_v9 }
 0x245   :  { %v522_v15 = vpop.f32.mrf.mxu1  ;;  %v636_v16 = vpop.f32.mrf.mxu0 }
 0x246   :  { %v1224_v35 = vpack.c.bf16 %v636_v16, %v633_v12  ;;  %v1222_v40 = vpack.c.bf16 %v522_v15, %v519_v11 }
 0x25f   :  { %v1775_v17 = vpop.f32.mrf.mxu1 }
 0x260   :  { %v1795_v18 = vpop.f32.mrf.mxu0 }
 0x261   :  { %v747_v19 = vpop.f32.mrf.mxu1 }
 0x262   :  { %v861_v20 = vpop.f32.mrf.mxu0 }
 0x263   :  { %v1776_v21 = vpop.f32.mrf.mxu1 }
 0x264   :  { %v1796_v22 = vpop.f32.mrf.mxu0  ;;  %v1227_v45 = vpack.c.bf16 %v1776_v21, %v1775_v17 }
 0x265   :  { %v750_v23 = vpop.f32.mrf.mxu1  ;;  %v1229_v41 = vpack.c.bf16 %v1796_v22, %v1795_v18 }
 0x266   :  { %v864_v24 = vpop.f32.mrf.mxu0  ;;  %v1226_v47 = vpack.c.bf16 %v750_v23, %v747_v19 }
 0x267   :  { %v1228_v43 = vpack.c.bf16 %v864_v24, %v861_v20 }
 0x27f   :  { %v1815_v25 = vpop.f32.mrf.mxu1 }
 0x280   :  { %v1835_v26 = vpop.f32.mrf.mxu0 }
 0x281   :  { %v975_v28 = vpop.f32.mrf.mxu1 }
 0x282   :  { %v1089_v27 = vpop.f32.mrf.mxu0 }
 0x283   :  { %v1816_v34 = vpop.f32.mrf.mxu1 }
 0x284   :  { %v1836_v29 = vpop.f32.mrf.mxu0  ;;  %v1231_v36 = vpack.c.bf16 %v1816_v34, %v1815_v25 }
 0x285   :  { %v1233_v30 = vpack.c.bf16 %v1836_v29, %v1835_v26  ;;  %v978_v37 = vpop.f32.mrf.mxu1 }
 0x286   :  { %v1092_v32 = vpop.f32.mrf.mxu0  ;;  %v1230_v39 = vpack.c.bf16 %v978_v37, %v975_v28 }
 0x287   :  { %v1232_v33 = vpack.c.bf16 %v1092_v32, %v1089_v27  ;;  %1644 = vmatprep.subr.bf16.mxu0 %v1233_v30 }
 0x288   :  { %1645 = vmatpush3.bf16.msra.mxu0 %v1225_v31 }
 0x289   :  { %1646 = vmatprep.subr.bf16.mxu0 %v1232_v33 }
 0x28c   :  { %1647 = vmatpush3.bf16.msra.mxu0 %v1224_v35 }
 0x28d   :  { %1648 = vmatprep.subr.bf16.mxu0 %v1231_v36 }
 0x290   :  { %1649 = vmatpush3.bf16.msra.mxu0 %v1223_v38 }
 0x291   :  { %1650 = vmatprep.subr.bf16.mxu0 %v1230_v39 }
 0x294   :  { %1651 = vmatpush3.bf16.msra.mxu0 %v1222_v40 }
 0x295   :  { %1652 = vmatprep.subr.bf16.mxu0 %v1229_v41 }
 0x298   :  { %1653 = vmatpush3.bf16.msra.mxu0 %v1221_v42 }
 0x299   :  { %1654 = vmatprep.subr.bf16.mxu0 %v1228_v43 }
 0x29c   :  { %1655 = vmatpush3.bf16.msra.mxu0 %v1220_v44 }
 0x29d   :  { %1656 = vmatprep.subr.bf16.mxu0 %v1227_v45 }
 0x29f   :  { %v1855_v48 = vpop.f32.mrf.mxu1 }
 0x2a0   :  { %1657 = vmatpush3.bf16.msra.mxu0 %v1219_v46 }
 0x2a1   :  { %1658 = vmatprep.subr.bf16.mxu0 %v1226_v47  ;;  %v1203_v49 = vpop.f32.mrf.mxu1 }
 0x2a3   :  { %v1856_v51 = vpop.f32.mrf.mxu1 }
 0x2a4   :  { %v1235_v53 = vpack.c.bf16 %v1856_v51, %v1855_v48  ;;  %1659 = vmatpush3.bf16.msra.mxu0 %v1218_v50 }
 0x2a5   :  { %v1206_v54 = vpop.f32.mrf.mxu1 }
 0x2a6   :  { %1858 = vmatpush3.bf16.msra.mxu1 %v1235_v53  ;;  %v1234_v55 = vpack.c.bf16 %v1206_v54, %v1203_v49 }
 0x2a7   :  { %1285 = vmatmul.mubr.bf16.vlgmr.msra.gmra.mxu0 %v1542_v52  ;;  %1859 = vmatprep.subr.bf16.mxu1 %v1949_v0 }
 0x2aa   :  { %1860 = vmatpush3.bf16.msra.mxu1 %v1234_v55 }
 0x2ad   :  { %1862 = vmatmul.mubr.msk.bf16.vlgmr.msra.gmra.mxu1 %vm1248_vm3, %v1947_v56 }
 0x367   :  { %v1660_v57 = vpop.f32.mrf.mxu0 }
 0x369   :  { %v1661_v58 = vpop.f32.mrf.mxu0 }
 0x36a   :  { %v1662_v59 = vadd.f32 %v1661_v58, %v1660_v57 }
 0x36b   :  { %v1663_v60 = vpop.f32.mrf.mxu0 }
 0x36d   :  { %v1664_v61 = vpop.f32.mrf.mxu0  ;;  %v1326_v62 = vpop.f32.mrf.mxu1 }
 0x36e   :  { %v1327_v63 = vadd.f32 %v1662_v59, %v1326_v62 }
 0x36f   :  { %v1863_v1 = vpop.f32.mrf.mxu1 }
 0x370   :  { %v1332_v2 = vpack.c.bf16 %v1327_v63, %v1327_v63 }
 0x371   :  { %v1329_v3 = vpop.f32.mrf.mxu1 }
 0x372   :  { %1333 = vst [vmem:[%s2319_s10] sm:$0xf] %v1332_v2 }
 0x373   :  { %v1864_v0 = vpop.f32.mrf.mxu1 }

// kernel: densenet_forward.14
= control target key start
LH: loop header
LB: loop body
LE: loop exit
PB: predicated region body
PF: predicated region fallthrough
CT: control target
= control target key end

     0   :  { %v1913_v0 = vmov 0   ;;  %vm100_vm0 = vcmask 130048   ;;  %vm1915_vm1 = vmmov 0   ;;  %vm1217_vm2 = vcmask 261120   ;;  %s2250_s2 = inlined_call_operand.vmem [shape: f32[16,1], index: 2, kind: input, shape index: {}]   ;;  %s2251_s1 = inlined_call_operand.vmem [shape: f32[16,1], index: 1, kind: input, shape index: {}]   ;;  %s2252_s4 = inlined_call_operand.vmem [shape: f32[32,1], index: 4, kind: input, shape index: {}]   ;;  %s2253_s3 = inlined_call_operand.vmem [shape: bf16[32,16], index: 3, kind: input, shape index: {}]   ;;  %s2254_s5 = inlined_call_operand.vmem [shape: bf16[9,128,128], index: 5, kind: input, shape index: {}]   ;;  %s2255_s0 = inlined_call_operand.vmem [shape: bf16[16,128], index: 0, kind: input, shape index: {}]   ;;  %s2256_s6 = inlined_call_operand.vmem [shape: bf16[8,288], index: 6, kind: input, shape index: {}]   ;;  %s2257_s7 = inlined_call_operand.vmem [shape: bf16[8,128], index: 7, kind: output, shape index: {}]  }
   0x1   :  { %1835 = vset.pattern.permute.xlu1 %v1913_v0  ;;  %1834 = vset.pattern.permute.xlu0 %v1913_v0  ;;  %v31_v1 = vld [vmem:[%s2250_s2] sm:$0xff]  ;;  %v32_v3 = vld [vmem:[%s2250_s2 + $0x8] sm:$0xff]  ;;  %v69_v7 = vld [vmem:[%s2252_s4 + $0x18] sm:$0xff] }
   0x2   :  { %v29_v2 = vld [vmem:[%s2251_s1] sm:$0xff]  ;;  %49 = vperm.xlu1 %1835, %v31_v1   ;;  %v30_v4 = vld [vmem:[%s2251_s1 + $0x8] sm:$0xff]  ;;  %v68_v8 = vld [vmem:[%s2252_s4 + $0x10] sm:$0xff] }
   0x3   :  { %37 = vperm.xlu0 %1834, %v29_v2   ;;  %v67_v5 = vld [vmem:[%s2252_s4 + $0x8] sm:$0xff]  ;;  %v66_v6 = vld [vmem:[%s2252_s4] sm:$0xff]  ;;  %v1838_v10 = vld [vmem:[%s2254_s5 + $0x38] sm:$0xff]  }
   0x4   :  { %v1836_v9 = vld [vmem:[%s2253_s3] sm:$0xff]   ;;  %1643 = vmatprep.subr.bf16.mxu1 %v1838_v10  ;;  %v1840_v11 = vld [vmem:[%s2254_s5 + $0x30] sm:$0xff]   ;;  %v1842_v12 = vld [vmem:[%s2254_s5 + $0x28] sm:$0xff]  }
   0x5   :  { %1639 = vmatprep.mubr.msk.bf16.mxu0 %vm100_vm0, %v1836_v9  ;;  %1644 = vmatpush3.bf16.msra.mxu1 %v1838_v10  ;;  %v1844_v13 = vld [vmem:[%s2254_s5 + $0x20] sm:$0xff]   ;;  %v1846_v14 = vld [vmem:[%s2254_s5 + $0x18] sm:$0xff]   ;;  %v1837_v30 = vld [vmem:[%s2253_s3 + $0x8] sm:$0xff]  }
   0x6   :  { %54 = vperm.xlu1 %1835, %v32_v3   ;;  %1645 = vmatprep.subr.bf16.mxu1 %v1840_v11  ;;  %v1516_v15 = vld [vmem:[%s2255_s0] sm:$0xff]   ;;  %v1839_v29 = vld [vmem:[%s2254_s5 + $0x78] sm:$0xff]   ;;  %v1841_v31 = vld [vmem:[%s2254_s5 + $0x70] sm:$0xff]  }
   0x7   :  { %42 = vperm.xlu0 %1834, %v30_v4   ;;  %v1517_v16 = vunpack.c.l.bf16 %v1516_v15  ;;  %v1518_v20 = vunpack.c.h.bf16 %v1516_v15  ;;  %v1843_v32 = vld [vmem:[%s2254_s5 + $0x68] sm:$0xff]   ;;  %v1845_v33 = vld [vmem:[%s2254_s5 + $0x60] sm:$0xff]   ;;  %v1847_v34 = vld [vmem:[%s2254_s5 + $0x58] sm:$0xff]  }
   0x8   :  { %v1848_v35 = vld [vmem:[%s2254_s5 + $0x10] sm:$0xff]   ;;  %v1850_v37 = vld [vmem:[%s2254_s5 + $0x8] sm:$0xff]   ;;  %v1852_v39 = vld [vmem:[%s2254_s5] sm:$0xff]  }
   0x9   :  { %1646 = vmatpush3.bf16.msra.mxu1 %v1840_v11  ;;  %v1849_v36 = vld [vmem:[%s2254_s5 + $0x50] sm:$0xff]   ;;  %v1851_v38 = vld [vmem:[%s2254_s5 + $0x48] sm:$0xff]   ;;  %v1853_v40 = vld [vmem:[%s2254_s5 + $0x40] sm:$0xff]  }
   0xa   :  { %77 = vperm.xlu1 %1835, %v67_v5   ;;  %1647 = vmatprep.subr.bf16.mxu1 %v1842_v12  ;;  %v1854_v41 = vld [vmem:[%s2254_s5 + $0xb8] sm:$0xff]   ;;  %v1856_v61 = vld [vmem:[%s2254_s5 + $0xb0] sm:$0xff]   ;;  %v1858_v63 = vld [vmem:[%s2254_s5 + $0xa8] sm:$0xff]  }
   0xb   :  { %72 = vperm.xlu0 %1834, %v66_v6   ;;  %v1855_v42 = vld [vmem:[%s2254_s5 + $0xf8] sm:$0xff]   ;;  %v1857_v62 = vld [vmem:[%s2254_s5 + $0xf0] sm:$0xff]   ;;  %v1859_v0 = vld [vmem:[%s2254_s5 + $0xe8] sm:$0xff]  }
   0xc   :  { %v1860_v1 = vld [vmem:[%s2254_s5 + $0xa0] sm:$0xff]   ;;  %v1862_v3 = vld [vmem:[%s2254_s5 + $0x98] sm:$0xff]   ;;  %v1864_v5 = vld [vmem:[%s2254_s5 + $0x90] sm:$0xff]  }
   0xd   :  { %1648 = vmatpush3.bf16.msra.mxu1 %v1842_v12  ;;  %v1861_v2 = vld [vmem:[%s2254_s5 + $0xe0] sm:$0xff]   ;;  %v1863_v4 = vld [vmem:[%s2254_s5 + $0xd8] sm:$0xff]   ;;  %v1865_v6 = vld [vmem:[%s2254_s5 + $0xd0] sm:$0xff]  }
   0xe   :  { %87 = vperm.xlu1 %1835, %v69_v7   ;;  %1649 = vmatprep.subr.bf16.mxu1 %v1844_v13  ;;  %v1866_v7 = vld [vmem:[%s2254_s5 + $0x88] sm:$0xff]   ;;  %v1868_v9 = vld [vmem:[%s2254_s5 + $0x80] sm:$0xff]   ;;  %v1870_v11 = vld [vmem:[%s2254_s5 + $0x138] sm:$0xff]  }
   0xf   :  { %82 = vperm.xlu0 %1834, %v68_v8   ;;  %v1867_v8 = vld [vmem:[%s2254_s5 + $0xc8] sm:$0xff]   ;;  %v1869_v10 = vld [vmem:[%s2254_s5 + $0xc0] sm:$0xff]   ;;  %v1871_v12 = vld [vmem:[%s2254_s5 + $0x178] sm:$0xff]  }
  0x10   :  { %v1874_v15 = vld [vmem:[%s2254_s5 + $0x128] sm:$0xff]  }
  0x11   :  { %1650 = vmatpush3.bf16.msra.mxu1 %v1844_v13  ;;  %v1872_v13 = vld [vmem:[%s2254_s5 + $0x130] sm:$0xff]  }
  0x12   :  { %1651 = vmatprep.subr.bf16.mxu1 %v1846_v14 }
  0x15   :  { %1652 = vmatpush3.bf16.msra.mxu1 %v1846_v14  ;;  %v1873_v14 = vld [vmem:[%s2254_s5 + $0x170] sm:$0xff]  }
  0x16   :  { %1653 = vmatprep.subr.bf16.mxu1 %v1848_v35 }
  0x19   :  { %1654 = vmatpush3.bf16.msra.mxu1 %v1848_v35  ;;  %v1894_v35 = vld [vmem:[%s2254_s5 + $0x198] sm:$0xff]  }
  0x1a   :  { %1655 = vmatprep.subr.bf16.mxu1 %v1850_v37 }
  0x1d   :  { %1656 = vmatpush3.bf16.msra.mxu1 %v1850_v37  ;;  %v1896_v37 = vld [vmem:[%s2254_s5 + $0x190] sm:$0xff]  }
  0x1e   :  { %1657 = vmatprep.subr.bf16.mxu1 %v1852_v39 }
  0x21   :  { %1658 = vmatpush3.bf16.msra.mxu1 %v1852_v39  ;;  %v1898_v39 = vld [vmem:[%s2254_s5 + $0x188] sm:$0xff]  }
  0x22   :  { %1683 = vmatprep.subr.bf16.mxu1 %v1854_v41 }
  0x7d   :  { %v50_v17 = vpop.permute.xlu1 %49 }
  0x7e   :  { %v38_v18 = vpop.permute.xlu0 %37 }
  0x7f   :  { %v45_v19 = vmul.f32 %v1517_v16, %v38_v18  ;;  %v1875_v16 = vld [vmem:[%s2254_s5 + $0x168] sm:$0xff]   ;;  %v1877_v18 = vld [vmem:[%s2254_s5 + $0x160] sm:$0xff]  }
  0x81   :  { %v57_v22 = vadd.f32 %v50_v17, %v45_v19  ;;  %v55_v24 = vpop.permute.xlu1 %54  ;;  %v1876_v17 = vld [vmem:[%s2254_s5 + $0x120] sm:$0xff]   ;;  %v1878_v19 = vld [vmem:[%s2254_s5 + $0x118] sm:$0xff]  }
  0x82   :  { %v43_v21 = vpop.permute.xlu0 %42 }
  0x83   :  { %v46_v23 = vmul.f32 %v1518_v20, %v43_v21  ;;  %v59_v26 = vmax.f32 %v57_v22, 0.0  ;;  %v1879_v20 = vld [vmem:[%s2254_s5 + $0x158] sm:$0xff]   ;;  %v1880_v21 = vld [vmem:[%s2254_s5 + $0x110] sm:$0xff]  }
  0x84   :  { %v1881_v22 = vld [vmem:[%s2254_s5 + $0x150] sm:$0xff]  }
  0x85   :  { %v58_v25 = vadd.f32 %v55_v24, %v46_v23  ;;  %v78_v43 = vpop.permute.xlu1 %77  ;;  %v1882_v23 = vld [vmem:[%s2254_s5 + $0x108] sm:$0xff]  }
  0x86   :  { %v73_v44 = vpop.permute.xlu0 %72  ;;  %v1883_v24 = vld [vmem:[%s2254_s5 + $0x148] sm:$0xff]  }
  0x87   :  { %v60_v27 = vmax.f32 %v58_v25, 0.0  ;;  %v1884_v25 = vld [vmem:[%s2254_s5 + $0x100] sm:$0xff]  }
  0x89   :  { %v61_v28 = vpack.c.bf16 %v60_v27, %v59_v26  ;;  %v88_v47 = vpop.permute.xlu1 %87  ;;  %v1885_v26 = vld [vmem:[%s2254_s5 + $0x140] sm:$0xff]   ;;  %v1886_v27 = vld [vmem:[%s2254_s5 + $0x1b8] sm:$0xff]  }
  0x8a   :  { %v83_v49 = vpop.permute.xlu0 %82 }
  0x8b   :  { %1637 = vmatprep.subr.bf16.mxu0 %v61_v28 }
  0x8c   :  { %1638 = vmatpush3.bf16.msra.mxu0 %v61_v28  ;;  %v1887_v28 = vld [vmem:[%s2254_s5 + $0x1f8] sm:$0xff]  }
  0x8d   :  { %1663 = vmatprep.subr.bf16.mxu0 %v1839_v29 }
  0x8f   :  { %1640 = vmatmul.mubr.msk.bf16.vlgmr.msra.gmra.mxu0 %vm100_vm0, %v1837_v30  ;;  %v1889_v30 = vld [vmem:[%s2254_s5 + $0x1f0] sm:$0xff]  }
  0x90   :  { %1664 = vmatpush3.bf16.msra.mxu0 %v1839_v29  ;;  %v1888_v29 = vld [vmem:[%s2254_s5 + $0x1b0] sm:$0xff]  }
  0x91   :  { %1665 = vmatprep.subr.bf16.mxu0 %v1841_v31 }
  0x94   :  { %1666 = vmatpush3.bf16.msra.mxu0 %v1841_v31  ;;  %v1890_v31 = vld [vmem:[%s2254_s5 + $0x1a8] sm:$0xff]  }
  0x95   :  { %1667 = vmatprep.subr.bf16.mxu0 %v1843_v32 }
  0x98   :  { %1668 = vmatpush3.bf16.msra.mxu0 %v1843_v32  ;;  %v1891_v32 = vld [vmem:[%s2254_s5 + $0x1e8] sm:$0xff]  }
  0x99   :  { %1669 = vmatprep.subr.bf16.mxu0 %v1845_v33 }
  0x9c   :  { %1670 = vmatpush3.bf16.msra.mxu0 %v1845_v33  ;;  %v1892_v33 = vld [vmem:[%s2254_s5 + $0x1a0] sm:$0xff]  }
  0x9d   :  { %1671 = vmatprep.subr.bf16.mxu0 %v1847_v34 }
  0xa0   :  { %1672 = vmatpush3.bf16.msra.mxu0 %v1847_v34  ;;  %v1893_v34 = vld [vmem:[%s2254_s5 + $0x1e0] sm:$0xff]  }
  0xa1   :  { %1673 = vmatprep.subr.bf16.mxu0 %v1849_v36 }
  0xa4   :  { %1674 = vmatpush3.bf16.msra.mxu0 %v1849_v36  ;;  %v1895_v36 = vld [vmem:[%s2254_s5 + $0x1d8] sm:$0xff]  }
  0xa5   :  { %1675 = vmatprep.subr.bf16.mxu0 %v1851_v38 }
  0xa8   :  { %1676 = vmatpush3.bf16.msra.mxu0 %v1851_v38  ;;  %v1897_v38 = vld [vmem:[%s2254_s5 + $0x1d0] sm:$0xff]  }
  0xa9   :  { %1677 = vmatprep.subr.bf16.mxu0 %v1853_v40 }
  0xac   :  { %1678 = vmatpush3.bf16.msra.mxu0 %v1853_v40  ;;  %v1899_v40 = vld [vmem:[%s2254_s5 + $0x1c8] sm:$0xff]  }
  0xad   :  { %1703 = vmatprep.subr.bf16.mxu0 %v1855_v42 }
 0x14f   :  { %v1641_v45 = vpop.f32.mrf.mxu0 }
 0x150   :  { %v150_v52 = vadd.f32 %v1641_v45, %v83_v49  ;;  %v1904_v45 = vld [vmem:[%s2254_s5 + $0x228] sm:$0xff]  }
 0x151   :  { %v141_v46 = vpop.f32.mrf.mxu0  ;;  %v1908_v49 = vld [vmem:[%s2254_s5 + $0x208] sm:$0xff]  }
 0x152   :  { %v142_v50 = vadd.f32 %v141_v46, %v73_v44  ;;  %v158_v58 = vmax.f32 %v150_v52, 0.0  ;;  %v1903_v44 = vld [vmem:[%s2254_s5 + $0x230] sm:$0xff]   ;;  %v1905_v46 = vld [vmem:[%s2254_s5 + $0x220] sm:$0xff]  }
 0x153   :  { %v1642_v48 = vpop.f32.mrf.mxu0 }
 0x154   :  { %v153_v51 = vadd.f32 %v1642_v48, %v88_v47  ;;  %v156_v56 = vmax.f32 %v142_v50, 0.0  ;;  %v1906_v47 = vld [vmem:[%s2254_s5 + $0x218] sm:$0xff]   ;;  %v1907_v48 = vld [vmem:[%s2254_s5 + $0x210] sm:$0xff]   ;;  %v1909_v50 = vld [vmem:[%s2254_s5 + $0x200] sm:$0xff]  }
 0x155   :  { %v144_v53 = vpop.f32.mrf.mxu0 }
 0x156   :  { %v145_v54 = vadd.f32 %v144_v53, %v78_v43  ;;  %v159_v55 = vmax.f32 %v153_v51, 0.0  ;;  %v1902_v43 = vld [vmem:[%s2254_s5 + $0x238] sm:$0xff]   ;;  %v2232_v51 = vld [vmem:[%s2256_s6] sm:$0xff]  ;;  %v1914_v53 = vmov 0.0  }
 0x157   :  { %v1512_v52 = vcombine.high %v2232_v51, %v2232_v51 }
 0x158   :  { %v157_v57 = vmax.f32 %v145_v54, 0.0  ;;  %v2047_v60 = vpack.c.bf16 %v159_v55, %v158_v58 }
 0x15a   :  { %v2045_v59 = vpack.c.bf16 %v157_v57, %v156_v56 }
 0x15c   :  { %1659 = vmatprep.mubr.bf16.mxu1 %v2045_v59  ;;  %1679 = vmatprep.mubr.bf16.mxu0 %v2045_v59 }
 0x15d   :  { %1660 = vmatmul.mubr.bf16.vlgmr.msra.gmra.mxu1 %v2047_v60  ;;  %1680 = vmatmul.mubr.bf16.vlgmr.msra.gmra.mxu0 %v2047_v60 }
 0x15e   :  { %1684 = vmatpush3.bf16.msra.mxu1 %v1854_v41  ;;  %1704 = vmatpush3.bf16.msra.mxu0 %v1855_v42  ;;  %v1900_v41 = vld [vmem:[%s2254_s5 + $0x180] sm:$0xff]  }
 0x15f   :  { %1699 = vmatprep.mubr.bf16.mxu1 %v2045_v59  ;;  %1719 = vmatprep.mubr.bf16.mxu0 %v2045_v59  ;;  %v1901_v42 = vld [vmem:[%s2254_s5 + $0x1c0] sm:$0xff]  }
 0x160   :  { %1685 = vmatprep.subr.bf16.mxu1 %v1856_v61  ;;  %1705 = vmatprep.subr.bf16.mxu0 %v1857_v62 }
 0x162   :  { %1686 = vmatpush3.bf16.msra.mxu1 %v1856_v61  ;;  %1706 = vmatpush3.bf16.msra.mxu0 %v1857_v62 }
 0x163   :  { %1687 = vmatprep.subr.bf16.mxu1 %v1858_v63  ;;  %1707 = vmatprep.subr.bf16.mxu0 %v1859_v0 }
 0x166   :  { %1688 = vmatpush3.bf16.msra.mxu1 %v1858_v63  ;;  %1708 = vmatpush3.bf16.msra.mxu0 %v1859_v0 }
 0x167   :  { %1689 = vmatprep.subr.bf16.mxu1 %v1860_v1  ;;  %1709 = vmatprep.subr.bf16.mxu0 %v1861_v2 }
 0x16a   :  { %1690 = vmatpush3.bf16.msra.mxu1 %v1860_v1  ;;  %1710 = vmatpush3.bf16.msra.mxu0 %v1861_v2 }
 0x16b   :  { %1691 = vmatprep.subr.bf16.mxu1 %v1862_v3  ;;  %1711 = vmatprep.subr.bf16.mxu0 %v1863_v4 }
 0x16e   :  { %1692 = vmatpush3.bf16.msra.mxu1 %v1862_v3  ;;  %1712 = vmatpush3.bf16.msra.mxu0 %v1863_v4 }
 0x16f   :  { %1693 = vmatprep.subr.bf16.mxu1 %v1864_v5  ;;  %1713 = vmatprep.subr.bf16.mxu0 %v1865_v6 }
 0x172   :  { %1694 = vmatpush3.bf16.msra.mxu1 %v1864_v5  ;;  %1714 = vmatpush3.bf16.msra.mxu0 %v1865_v6 }
 0x173   :  { %1695 = vmatprep.subr.bf16.mxu1 %v1866_v7  ;;  %1715 = vmatprep.subr.bf16.mxu0 %v1867_v8 }
 0x176   :  { %1696 = vmatpush3.bf16.msra.mxu1 %v1866_v7  ;;  %1716 = vmatpush3.bf16.msra.mxu0 %v1867_v8 }
 0x177   :  { %1697 = vmatprep.subr.bf16.mxu1 %v1868_v9  ;;  %1717 = vmatprep.subr.bf16.mxu0 %v1869_v10 }
 0x17a   :  { %1698 = vmatpush3.bf16.msra.mxu1 %v1868_v9  ;;  %1718 = vmatpush3.bf16.msra.mxu0 %v1869_v10 }
 0x17b   :  { %1723 = vmatprep.subr.bf16.mxu1 %v1870_v11  ;;  %1743 = vmatprep.subr.bf16.mxu0 %v1871_v12 }
 0x17d   :  { %1700 = vmatmul.mubr.bf16.vlgmr.msra.gmra.mxu1 %v2047_v60  ;;  %1720 = vmatmul.mubr.bf16.vlgmr.msra.gmra.mxu0 %v2047_v60 }
 0x17e   :  { %1724 = vmatpush3.bf16.msra.mxu1 %v1870_v11  ;;  %1739 = vmatprep.mubr.bf16.mxu1 %v2045_v59 }
 0x17f   :  { %1744 = vmatpush3.bf16.msra.mxu0 %v1871_v12  ;;  %1759 = vmatprep.mubr.bf16.mxu0 %v2045_v59 }
 0x180   :  { %1725 = vmatprep.subr.bf16.mxu1 %v1872_v13  ;;  %1745 = vmatprep.subr.bf16.mxu0 %v1873_v14 }
 0x182   :  { %1726 = vmatpush3.bf16.msra.mxu1 %v1872_v13 }
 0x183   :  { %1746 = vmatpush3.bf16.msra.mxu0 %v1873_v14  ;;  %1727 = vmatprep.subr.bf16.mxu1 %v1874_v15 }
 0x184   :  { %1747 = vmatprep.subr.bf16.mxu0 %v1875_v16 }
 0x186   :  { %1728 = vmatpush3.bf16.msra.mxu1 %v1874_v15 }
 0x187   :  { %1748 = vmatpush3.bf16.msra.mxu0 %v1875_v16  ;;  %1729 = vmatprep.subr.bf16.mxu1 %v1876_v17 }
 0x188   :  { %1749 = vmatprep.subr.bf16.mxu0 %v1877_v18 }
 0x18a   :  { %1730 = vmatpush3.bf16.msra.mxu1 %v1876_v17 }
 0x18b   :  { %1750 = vmatpush3.bf16.msra.mxu0 %v1877_v18  ;;  %1731 = vmatprep.subr.bf16.mxu1 %v1878_v19 }
 0x18c   :  { %1751 = vmatprep.subr.bf16.mxu0 %v1879_v20 }
 0x18e   :  { %1732 = vmatpush3.bf16.msra.mxu1 %v1878_v19 }
 0x18f   :  { %1752 = vmatpush3.bf16.msra.mxu0 %v1879_v20  ;;  %1733 = vmatprep.subr.bf16.mxu1 %v1880_v21 }
 0x190   :  { %1753 = vmatprep.subr.bf16.mxu0 %v1881_v22 }
 0x192   :  { %1734 = vmatpush3.bf16.msra.mxu1 %v1880_v21 }
 0x193   :  { %1754 = vmatpush3.bf16.msra.mxu0 %v1881_v22  ;;  %1735 = vmatprep.subr.bf16.mxu1 %v1882_v23 }
 0x194   :  { %1755 = vmatprep.subr.bf16.mxu0 %v1883_v24 }
 0x196   :  { %1736 = vmatpush3.bf16.msra.mxu1 %v1882_v23 }
 0x197   :  { %1756 = vmatpush3.bf16.msra.mxu0 %v1883_v24  ;;  %1737 = vmatprep.subr.bf16.mxu1 %v1884_v25 }
 0x198   :  { %1757 = vmatprep.subr.bf16.mxu0 %v1885_v26 }
 0x19a   :  { %1738 = vmatpush3.bf16.msra.mxu1 %v1884_v25 }
 0x19b   :  { %1758 = vmatpush3.bf16.msra.mxu0 %v1885_v26  ;;  %1763 = vmatprep.subr.bf16.mxu1 %v1886_v27 }
 0x19c   :  { %1783 = vmatprep.subr.bf16.mxu0 %v1887_v28 }
 0x19d   :  { %1740 = vmatmul.mubr.bf16.vlgmr.msra.gmra.mxu1 %v2047_v60 }
 0x19e   :  { %1760 = vmatmul.mubr.bf16.vlgmr.msra.gmra.mxu0 %v2047_v60  ;;  %1764 = vmatpush3.bf16.msra.mxu1 %v1886_v27 }
 0x19f   :  { %1779 = vmatprep.mubr.bf16.mxu1 %v2045_v59  ;;  %1784 = vmatpush3.bf16.msra.mxu0 %v1887_v28 }
 0x1a0   :  { %1799 = vmatprep.mubr.bf16.mxu0 %v2045_v59  ;;  %1765 = vmatprep.subr.bf16.mxu1 %v1888_v29 }
 0x1a1   :  { %1785 = vmatprep.subr.bf16.mxu0 %v1889_v30 }
 0x1a2   :  { %1766 = vmatpush3.bf16.msra.mxu1 %v1888_v29 }
 0x1a3   :  { %1786 = vmatpush3.bf16.msra.mxu0 %v1889_v30  ;;  %1767 = vmatprep.subr.bf16.mxu1 %v1890_v31 }
 0x1a4   :  { %1787 = vmatprep.subr.bf16.mxu0 %v1891_v32 }
 0x1a6   :  { %1768 = vmatpush3.bf16.msra.mxu1 %v1890_v31 }
 0x1a7   :  { %1788 = vmatpush3.bf16.msra.mxu0 %v1891_v32  ;;  %1769 = vmatprep.subr.bf16.mxu1 %v1892_v33 }
 0x1a8   :  { %1789 = vmatprep.subr.bf16.mxu0 %v1893_v34 }
 0x1aa   :  { %1770 = vmatpush3.bf16.msra.mxu1 %v1892_v33 }
 0x1ab   :  { %1790 = vmatpush3.bf16.msra.mxu0 %v1893_v34  ;;  %1771 = vmatprep.subr.bf16.mxu1 %v1894_v35 }
 0x1ac   :  { %1791 = vmatprep.subr.bf16.mxu0 %v1895_v36 }
 0x1ae   :  { %1772 = vmatpush3.bf16.msra.mxu1 %v1894_v35 }
 0x1af   :  { %1792 = vmatpush3.bf16.msra.mxu0 %v1895_v36  ;;  %1773 = vmatprep.subr.bf16.mxu1 %v1896_v37 }
 0x1b0   :  { %1793 = vmatprep.subr.bf16.mxu0 %v1897_v38 }
 0x1b2   :  { %1774 = vmatpush3.bf16.msra.mxu1 %v1896_v37 }
 0x1b3   :  { %1794 = vmatpush3.bf16.msra.mxu0 %v1897_v38  ;;  %1775 = vmatprep.subr.bf16.mxu1 %v1898_v39 }
 0x1b4   :  { %1795 = vmatprep.subr.bf16.mxu0 %v1899_v40 }
 0x1b6   :  { %1776 = vmatpush3.bf16.msra.mxu1 %v1898_v39 }
 0x1b7   :  { %1796 = vmatpush3.bf16.msra.mxu0 %v1899_v40  ;;  %1777 = vmatprep.subr.bf16.mxu1 %v1900_v41 }
 0x1b8   :  { %1797 = vmatprep.subr.bf16.mxu0 %v1901_v42 }
 0x1ba   :  { %1778 = vmatpush3.bf16.msra.mxu1 %v1900_v41  ;;  %v1511_v41 = vcombine.low %v2232_v51, %v2232_v51 }
 0x1bb   :  { %1798 = vmatpush3.bf16.msra.mxu0 %v1901_v42  ;;  %1803 = vmatprep.subr.bf16.mxu1 %v1902_v43 }
 0x1bd   :  { %1780 = vmatmul.mubr.bf16.vlgmr.msra.gmra.mxu1 %v2047_v60 }
 0x1be   :  { %1800 = vmatmul.mubr.bf16.vlgmr.msra.gmra.mxu0 %v2047_v60  ;;  %1804 = vmatpush3.bf16.msra.mxu1 %v1902_v43 }
 0x1bf   :  { %1819 = vmatprep.mubr.bf16.mxu1 %v2045_v59  ;;  %1805 = vmatprep.subr.bf16.mxu1 %v1903_v44 }
 0x1c0   :  { %1253 = vmatprep.mubr.bf16.mxu0 %v1512_v52 }
 0x1c2   :  { %1806 = vmatpush3.bf16.msra.mxu1 %v1903_v44 }
 0x1c3   :  { %1807 = vmatprep.subr.bf16.mxu1 %v1904_v45 }
 0x1c6   :  { %1808 = vmatpush3.bf16.msra.mxu1 %v1904_v45  ;;  %v1912_v45 = vld [vmem:[%s2256_s6 + $0x8] ss:$0 sps:$4 sm:$0xff]  }
 0x1c7   :  { %1809 = vmatprep.subr.bf16.mxu1 %v1905_v46 }
 0x1ca   :  { %1810 = vmatpush3.bf16.msra.mxu1 %v1905_v46 }
 0x1cb   :  { %1811 = vmatprep.subr.bf16.mxu1 %v1906_v47 }
 0x1ce   :  { %1812 = vmatpush3.bf16.msra.mxu1 %v1906_v47 }
 0x1cf   :  { %1813 = vmatprep.subr.bf16.mxu1 %v1907_v48 }
 0x1d2   :  { %1814 = vmatpush3.bf16.msra.mxu1 %v1907_v48 }
 0x1d3   :  { %1815 = vmatprep.subr.bf16.mxu1 %v1908_v49 }
 0x1d6   :  { %1816 = vmatpush3.bf16.msra.mxu1 %v1908_v49 }
 0x1d7   :  { %1817 = vmatprep.subr.bf16.mxu1 %v1909_v50 }
 0x1da   :  { %1818 = vmatpush3.bf16.msra.mxu1 %v1909_v50 }
 0x1db   :  { %1823 = vmatprep.subr.bf16.mxu1 %v1914_v53 }
 0x1dd   :  { %1820 = vmatmul.mubr.bf16.vlgmr.msra.gmra.mxu1 %v2047_v60 }
 0x1de   :  { %1827 = vmatprep.mubr.msk.bf16.mxu1 %vm1915_vm1, %v1914_v53 }
 0x21d   :  { %v1661_v54 = vpop.f32.mrf.mxu1  ;;  %v1681_v55 = vpop.f32.mrf.mxu0 }
 0x21f   :  { %v2238_v56 = vpop.f32.mrf.mxu1  ;;  %v374_v57 = vpop.f32.mrf.mxu0 }
 0x221   :  { %v1662_v58 = vpop.f32.mrf.mxu1  ;;  %v1682_v59 = vpop.f32.mrf.mxu0 }
 0x222   :  { %v1190_v31 = vpack.c.bf16 %v1682_v59, %v1681_v55  ;;  %v1188_v35 = vpack.c.bf16 %v1662_v58, %v1661_v54 }
 0x223   :  { %v263_v60 = vpop.f32.mrf.mxu1  ;;  %v377_v61 = vpop.f32.mrf.mxu0 }
 0x224   :  { %v1189_v33 = vpack.c.bf16 %v377_v61, %v374_v57  ;;  %v1187_v39 = vpack.c.bf16 %v263_v60, %v2238_v56 }
 0x23d   :  { %v1701_v62 = vpop.f32.mrf.mxu1  ;;  %v1721_v63 = vpop.f32.mrf.mxu0 }
 0x23f   :  { %v488_v0 = vpop.f32.mrf.mxu1  ;;  %v602_v1 = vpop.f32.mrf.mxu0 }
 0x241   :  { %v1702_v2 = vpop.f32.mrf.mxu1  ;;  %v1722_v3 = vpop.f32.mrf.mxu0 }
 0x242   :  { %v1194_v20 = vpack.c.bf16 %v1722_v3, %v1721_v63  ;;  %v1192_v27 = vpack.c.bf16 %v1702_v2, %v1701_v62 }
 0x243   :  { %v491_v4 = vpop.f32.mrf.mxu1  ;;  %v605_v5 = vpop.f32.mrf.mxu0 }
 0x244   :  { %v1193_v24 = vpack.c.bf16 %v605_v5, %v602_v1  ;;  %v1191_v29 = vpack.c.bf16 %v491_v4, %v488_v0 }
 0x25d   :  { %v1741_v6 = vpop.f32.mrf.mxu1 }
 0x25e   :  { %v1761_v7 = vpop.f32.mrf.mxu0 }
 0x25f   :  { %v716_v8 = vpop.f32.mrf.mxu1 }
 0x260   :  { %v830_v9 = vpop.f32.mrf.mxu0 }
 0x261   :  { %v1742_v10 = vpop.f32.mrf.mxu1 }
 0x262   :  { %v1762_v11 = vpop.f32.mrf.mxu0  ;;  %v1196_v34 = vpack.c.bf16 %v1742_v10, %v1741_v6 }
 0x263   :  { %v719_v12 = vpop.f32.mrf.mxu1  ;;  %v1198_v30 = vpack.c.bf16 %v1762_v11, %v1761_v7 }
 0x264   :  { %v833_v13 = vpop.f32.mrf.mxu0  ;;  %v1195_v36 = vpack.c.bf16 %v719_v12, %v716_v8 }
 0x265   :  { %v1197_v32 = vpack.c.bf16 %v833_v13, %v830_v9 }
 0x27d   :  { %v1781_v14 = vpop.f32.mrf.mxu1 }
 0x27e   :  { %v1801_v15 = vpop.f32.mrf.mxu0 }
 0x27f   :  { %v944_v17 = vpop.f32.mrf.mxu1 }
 0x280   :  { %v1058_v16 = vpop.f32.mrf.mxu0 }
 0x281   :  { %v1782_v23 = vpop.f32.mrf.mxu1 }
 0x282   :  { %v1802_v18 = vpop.f32.mrf.mxu0  ;;  %v1200_v25 = vpack.c.bf16 %v1782_v23, %v1781_v14 }
 0x283   :  { %v1202_v19 = vpack.c.bf16 %v1802_v18, %v1801_v15  ;;  %v947_v26 = vpop.f32.mrf.mxu1 }
 0x284   :  { %v1061_v21 = vpop.f32.mrf.mxu0  ;;  %v1199_v28 = vpack.c.bf16 %v947_v26, %v944_v17 }
 0x285   :  { %v1201_v22 = vpack.c.bf16 %v1061_v21, %v1058_v16  ;;  %1612 = vmatprep.subr.bf16.mxu0 %v1202_v19 }
 0x286   :  { %1613 = vmatpush3.bf16.msra.mxu0 %v1194_v20 }
 0x287   :  { %1614 = vmatprep.subr.bf16.mxu0 %v1201_v22 }
 0x28a   :  { %1615 = vmatpush3.bf16.msra.mxu0 %v1193_v24 }
 0x28b   :  { %1616 = vmatprep.subr.bf16.mxu0 %v1200_v25 }
 0x28e   :  { %1617 = vmatpush3.bf16.msra.mxu0 %v1192_v27 }
 0x28f   :  { %1618 = vmatprep.subr.bf16.mxu0 %v1199_v28 }
 0x292   :  { %1619 = vmatpush3.bf16.msra.mxu0 %v1191_v29 }
 0x293   :  { %1620 = vmatprep.subr.bf16.mxu0 %v1198_v30 }
 0x296   :  { %1621 = vmatpush3.bf16.msra.mxu0 %v1190_v31 }
 0x297   :  { %1622 = vmatprep.subr.bf16.mxu0 %v1197_v32 }
 0x29a   :  { %1623 = vmatpush3.bf16.msra.mxu0 %v1189_v33 }
 0x29b   :  { %1624 = vmatprep.subr.bf16.mxu0 %v1196_v34 }
 0x29d   :  { %v1821_v37 = vpop.f32.mrf.mxu1 }
 0x29e   :  { %1625 = vmatpush3.bf16.msra.mxu0 %v1188_v35 }
 0x29f   :  { %1626 = vmatprep.subr.bf16.mxu0 %v1195_v36  ;;  %v1172_v38 = vpop.f32.mrf.mxu1 }
 0x2a1   :  { %v1822_v40 = vpop.f32.mrf.mxu1 }
 0x2a2   :  { %v1204_v42 = vpack.c.bf16 %v1822_v40, %v1821_v37  ;;  %1627 = vmatpush3.bf16.msra.mxu0 %v1187_v39 }
 0x2a3   :  { %v1175_v43 = vpop.f32.mrf.mxu1 }
 0x2a4   :  { %1824 = vmatpush3.bf16.msra.mxu1 %v1204_v42  ;;  %v1203_v44 = vpack.c.bf16 %v1175_v43, %v1172_v38 }
 0x2a5   :  { %1254 = vmatmul.mubr.bf16.vlgmr.msra.gmra.mxu0 %v1511_v41  ;;  %1825 = vmatprep.subr.bf16.mxu1 %v1914_v53 }
 0x2a8   :  { %1826 = vmatpush3.bf16.msra.mxu1 %v1203_v44 }
 0x2ab   :  { %1828 = vmatmul.mubr.msk.bf16.vlgmr.msra.gmra.mxu1 %vm1217_vm2, %v1912_v45 }
 0x365   :  { %v1628_v46 = vpop.f32.mrf.mxu0 }
 0x367   :  { %v1629_v47 = vpop.f32.mrf.mxu0 }
 0x368   :  { %v1630_v48 = vadd.f32 %v1629_v47, %v1628_v46 }
 0x369   :  { %v1631_v49 = vpop.f32.mrf.mxu0 }
 0x36b   :  { %v1632_v50 = vpop.f32.mrf.mxu0  ;;  %v1295_v51 = vpop.f32.mrf.mxu1 }
 0x36c   :  { %v1296_v52 = vadd.f32 %v1630_v48, %v1295_v51 }
 0x36d   :  { %v1829_v54 = vpop.f32.mrf.mxu1 }
 0x36e   :  { %v1301_v55 = vpack.c.bf16 %v1296_v52, %v1296_v52 }
 0x36f   :  { %v1298_v56 = vpop.f32.mrf.mxu1 }
 0x370   :  { %1302 = vst [vmem:[%s2257_s7] sm:$0xf] %v1301_v55 }
 0x371   :  { %v1830_v53 = vpop.f32.mrf.mxu1 }

// kernel: densenet_forward.18
= control target key start
LH: loop header
LB: loop body
LE: loop exit
PB: predicated region body
PF: predicated region fallthrough
CT: control target
= control target key end

     0   :  { %v1175_v0 = vmov 0   ;;  %vm127_vm0 = vcmask 195584   ;;  %vm134_vm1 = vcmask 1043456   ;;  %vm209_vm2 = vcmask 261120   ;;  %s1380_s4 = inlined_call_operand.vmem [shape: f32[8,1], index: 4, kind: input, shape index: {}]   ;;  %s1381_s1 = inlined_call_operand.vmem [shape: f32[16,1], index: 1, kind: input, shape index: {}]   ;;  %s1382_s5 = inlined_call_operand.vmem [shape: f32[8,1], index: 5, kind: input, shape index: {}]   ;;  %s1383_s2 = inlined_call_operand.vmem [shape: f32[16,1], index: 2, kind: input, shape index: {}]   ;;  %s1384_s7 = inlined_call_operand.vmem [shape: f32[32,1], index: 7, kind: input, shape index: {}]   ;;  %s1385_s6 = inlined_call_operand.vmem [shape: bf16[32,24], index: 6, kind: input, shape index: {}]   ;;  %s1386_s3 = inlined_call_operand.vmem [shape: bf16[8,32], index: 3, kind: input, shape index: {}]   ;;  %s1387_s0 = inlined_call_operand.vmem [shape: bf16[16,32], index: 0, kind: input, shape index: {}]   ;;  %s1388_s8 = inlined_call_operand.vmem [shape: bf16[9,32,32], index: 8, kind: input, shape index: {}]   ;;  %s1389_s9 = inlined_call_operand.vmem [shape: bf16[8,288], index: 9, kind: input, shape index: {}]   ;;  %s1390_s10 = inlined_call_operand.vmem [shape: bf16[8,32], index: 10, kind: output, shape index: {}]  }
   0x1   :  { %1151 = vset.pattern.permute.xlu1 %v1175_v0  ;;  %1150 = vset.pattern.permute.xlu0 %v1175_v0  ;;  %v71_v1 = vld [vmem:[%s1380_s4] sm:$0xff]  ;;  %v39_v4 = vld [vmem:[%s1381_s1 + $0x8] sm:$0xff]  ;;  %v95_v10 = vld [vmem:[%s1384_s7 + $0x10] sm:$0xff]  ;;  %vm1177_vm3 = vmmov 0   ;;  %vm907_vm4 = vcmask 257024  }
   0x2   :  { %v38_v2 = vld [vmem:[%s1381_s1] sm:$0xff]  ;;  %76 = vperm.xlu0 %1150, %v71_v1   ;;  %v41_v6 = vld [vmem:[%s1383_s2 + $0x8] sm:$0xff]  ;;  %v96_v11 = vld [vmem:[%s1384_s7 + $0x18] sm:$0xff] }
   0x3   :  { %46 = vperm.xlu1 %1151, %v38_v2   ;;  %v72_v3 = vld [vmem:[%s1382_s5] sm:$0xff]  ;;  %v94_v8 = vld [vmem:[%s1384_s7 + $0x8] sm:$0xff]  ;;  %v1154_v36 = vld [vmem:[%s1388_s8 + $0x18] sm:$0xff]  }
   0x4   :  { %v40_v5 = vld [vmem:[%s1383_s2] sm:$0xff]  ;;  %v1153_v35 = vld [vmem:[%s1385_s6 + $0x8] sm:$0xff]   ;;  %1074 = vmatprep.subr.bf16.mxu0 %v1154_v36  ;;  %v1156_v38 = vld [vmem:[%s1388_s8 + $0x10] sm:$0xff]  }
   0x5   :  { %v93_v7 = vld [vmem:[%s1384_s7] sm:$0xff]  ;;  %v1155_v37 = vld [vmem:[%s1388_s8 + $0x8] sm:$0xff]   ;;  %1075 = vmatpush3.bf16.msra.mxu0 %v1154_v36  ;;  %v1158_v40 = vld [vmem:[%s1388_s8 + $0x38] sm:$0xff]  }
   0x6   :  { %82 = vperm.xlu0 %1150, %v72_v3   ;;  %v1152_v9 = vld [vmem:[%s1385_s6] sm:$0xff]   ;;  %1076 = vmatprep.subr.bf16.mxu0 %v1156_v38  ;;  %v1159_v41 = vld [vmem:[%s1388_s8 + $0x28] sm:$0xff]   ;;  %v1160_v60 = vld [vmem:[%s1388_s8 + $0x30] sm:$0xff]  }
   0x7   :  { %51 = vperm.xlu1 %1151, %v39_v4   ;;  %1062 = vmatprep.mubr.msk.bf16.mxu1 %vm127_vm0, %v1152_v9  ;;  %v70_v12 = vld [vmem:[%s1386_s3] sm:$0xf]  ;;  %v1162_v62 = vld [vmem:[%s1388_s8 + $0x58] sm:$0xff]   ;;  %v1163_v63 = vld [vmem:[%s1388_s8 + $0x48] sm:$0xff]  }
   0x8   :  { %v73_v13 = vunpack.c.l.bf16 %v70_v12  ;;  %v990_v16 = vld [vmem:[%s1387_s0] sm:$0xff]   ;;  %v1164_v0 = vld [vmem:[%s1388_s8 + $0x50] sm:$0xff]   ;;  %v1166_v2 = vld [vmem:[%s1388_s8 + $0x78] sm:$0xff]  }
   0x9   :  { %v991_v18 = vunpack.c.l.bf16 %v990_v16  ;;  %v992_v19 = vunpack.c.h.bf16 %v990_v16  ;;  %v1157_v39 = vld [vmem:[%s1388_s8] sm:$0xff]   ;;  %1077 = vmatpush3.bf16.msra.mxu0 %v1156_v38  ;;  %v1167_v3 = vld [vmem:[%s1388_s8 + $0x68] sm:$0xff]   ;;  %v1168_v4 = vld [vmem:[%s1388_s8 + $0x70] sm:$0xff]  }
   0xa   :  { %58 = vperm.xlu0 %1150, %v40_v5   ;;  %1090 = vmatprep.subr.bf16.mxu0 %v1158_v40  ;;  %v1161_v61 = vld [vmem:[%s1388_s8 + $0x20] sm:$0xff]  }
   0xb   :  { %63 = vperm.xlu1 %1151, %v41_v6   ;;  %v1165_v1 = vld [vmem:[%s1388_s8 + $0x40] sm:$0xff]   ;;  %v1170_v6 = vld [vmem:[%s1388_s8 + $0x88] sm:$0xff]  }
   0xc   :  { %v1169_v5 = vld [vmem:[%s1388_s8 + $0x60] sm:$0xff]  }
   0xd   :  { %v1352_v9 = vld [vmem:[%s1389_s9] sm:$0xff] }
   0xe   :  { %99 = vperm.xlu0 %1150, %v93_v7   ;;  %v1171_v7 = vld [vmem:[%s1388_s8 + $0x80] sm:$0xff]  }
   0xf   :  { %104 = vperm.xlu1 %1151, %v94_v8   ;;  %v1176_v8 = vmov 0.0  }
  0x12   :  { %109 = vperm.xlu0 %1150, %v95_v10   ;;  %v986_v10 = vcombine.high %v1352_v9, %v1352_v9 }
  0x13   :  { %114 = vperm.xlu1 %1151, %v96_v11  }
  0x7d   :  { %v77_v14 = vpop.permute.xlu0 %76 }
  0x7e   :  { %v47_v15 = vpop.permute.xlu1 %46  ;;  %v79_v17 = vmul.f32 %v77_v14, %v73_v13 }
  0x7f   :  { %v54_v23 = vmul.f32 %v991_v18, %v47_v15 }
  0x81   :  { %v83_v20 = vpop.permute.xlu0 %82 }
  0x82   :  { %v52_v21 = vpop.permute.xlu1 %51  ;;  %v85_v22 = vadd.f32 %v83_v20, %v79_v17 }
  0x83   :  { %v55_v25 = vmul.f32 %v992_v19, %v52_v21 }
  0x84   :  { %v86_v24 = vmax.f32 %v85_v22, 0.0 }
  0x85   :  { %v59_v26 = vpop.permute.xlu0 %58 }
  0x86   :  { %v64_v27 = vpop.permute.xlu1 %63  ;;  %v66_v28 = vadd.f32 %v59_v26, %v54_v23  ;;  %v88_v30 = vpack.c.bf16 %v86_v24, %v86_v24 }
  0x87   :  { %v67_v29 = vadd.f32 %v64_v27, %v55_v25 }
  0x88   :  { %v68_v31 = vmax.f32 %v66_v28, 0.0  ;;  %1146 = vmatprep.subr.msk.bf16.mxu1 %vm134_vm1, %v88_v30  ;;  %v136_v33 = vsel %vm134_vm1, %v88_v30, 0 }
  0x89   :  { %v69_v32 = vmax.f32 %v67_v29, 0.0  ;;  %1059 = vmatpush3.bf16.msra.mxu1 %v136_v33  ;;  %v100_v43 = vpop.permute.xlu0 %99 }
  0x8a   :  { %v105_v42 = vpop.permute.xlu1 %104 }
  0x8b   :  { %v87_v34 = vpack.c.bf16 %v69_v32, %v68_v31 }
  0x8d   :  { %1060 = vmatprep.subr.bf16.mxu1 %v87_v34  ;;  %v110_v48 = vpop.permute.xlu0 %109 }
  0x8e   :  { %1061 = vmatpush3.bf16.msra.mxu1 %v87_v34  ;;  %v115_v46 = vpop.permute.xlu1 %114 }
  0x8f   :  { %1066 = vmatprep.subr.bf16.mxu1 %v1155_v37 }
  0x91   :  { %1063 = vmatmul.mubr.msk.bf16.vlgmr.msra.gmra.mxu1 %vm127_vm0, %v1153_v35 }
  0x92   :  { %1067 = vmatpush3.bf16.msra.mxu1 %v1155_v37 }
  0x93   :  { %1068 = vmatprep.subr.bf16.mxu1 %v1157_v39 }
  0x96   :  { %1069 = vmatpush3.bf16.msra.mxu1 %v1157_v39 }
  0x97   :  { %1082 = vmatprep.subr.bf16.mxu1 %v1159_v41 }
 0x151   :  { %v1064_v44 = vpop.f32.mrf.mxu1 }
 0x152   :  { %v181_v51 = vadd.f32 %v1064_v44, %v110_v48 }
 0x153   :  { %v172_v45 = vpop.f32.mrf.mxu1 }
 0x154   :  { %v173_v49 = vadd.f32 %v172_v45, %v100_v43  ;;  %v189_v57 = vmax.f32 %v181_v51, 0.0 }
 0x155   :  { %v1065_v47 = vpop.f32.mrf.mxu1 }
 0x156   :  { %v184_v50 = vadd.f32 %v1065_v47, %v115_v46  ;;  %v187_v55 = vmax.f32 %v173_v49, 0.0 }
 0x157   :  { %v175_v52 = vpop.f32.mrf.mxu1 }
 0x158   :  { %v176_v53 = vadd.f32 %v175_v52, %v105_v42  ;;  %v190_v54 = vmax.f32 %v184_v50, 0.0 }
 0x15a   :  { %v188_v56 = vmax.f32 %v176_v53, 0.0  ;;  %v192_v59 = vpack.c.bf16 %v190_v54, %v189_v57  ;;  %v1172_v57 = vld [vmem:[%s1389_s9 + $0x8] ss:$0 sps:$4 sm:$0xff]  }
 0x15c   :  { %v191_v58 = vpack.c.bf16 %v188_v56, %v187_v55 }
 0x15e   :  { %1070 = vmatprep.mubr.msk.bf16.mxu1 %vm209_vm2, %v191_v58  ;;  %1078 = vmatprep.mubr.msk.bf16.mxu0 %vm209_vm2, %v191_v58 }
 0x15f   :  { %1071 = vmatmul.mubr.msk.bf16.vlgmr.msra.gmra.mxu1 %vm209_vm2, %v192_v59  ;;  %1079 = vmatmul.mubr.msk.bf16.vlgmr.msra.gmra.mxu0 %vm209_vm2, %v192_v59 }
 0x160   :  { %1091 = vmatpush3.bf16.msra.mxu0 %v1158_v40  ;;  %1083 = vmatpush3.bf16.msra.mxu1 %v1159_v41 }
 0x161   :  { %1086 = vmatprep.mubr.msk.bf16.mxu1 %vm209_vm2, %v191_v58  ;;  %1094 = vmatprep.mubr.msk.bf16.mxu0 %vm209_vm2, %v191_v58 }
 0x162   :  { %1092 = vmatprep.subr.bf16.mxu0 %v1160_v60  ;;  %1084 = vmatprep.subr.bf16.mxu1 %v1161_v61 }
 0x164   :  { %1093 = vmatpush3.bf16.msra.mxu0 %v1160_v60  ;;  %1085 = vmatpush3.bf16.msra.mxu1 %v1161_v61 }
 0x165   :  { %1106 = vmatprep.subr.bf16.mxu0 %v1162_v62  ;;  %1098 = vmatprep.subr.bf16.mxu1 %v1163_v63 }
 0x167   :  { %1087 = vmatmul.mubr.msk.bf16.vlgmr.msra.gmra.mxu1 %vm209_vm2, %v192_v59  ;;  %1095 = vmatmul.mubr.msk.bf16.vlgmr.msra.gmra.mxu0 %vm209_vm2, %v192_v59 }
 0x168   :  { %1107 = vmatpush3.bf16.msra.mxu0 %v1162_v62  ;;  %1099 = vmatpush3.bf16.msra.mxu1 %v1163_v63 }
 0x169   :  { %1102 = vmatprep.mubr.msk.bf16.mxu1 %vm209_vm2, %v191_v58  ;;  %1110 = vmatprep.mubr.msk.bf16.mxu0 %vm209_vm2, %v191_v58 }
 0x16a   :  { %1108 = vmatprep.subr.bf16.mxu0 %v1164_v0  ;;  %1100 = vmatprep.subr.bf16.mxu1 %v1165_v1 }
 0x16c   :  { %1109 = vmatpush3.bf16.msra.mxu0 %v1164_v0  ;;  %1101 = vmatpush3.bf16.msra.mxu1 %v1165_v1 }
 0x16d   :  { %1122 = vmatprep.subr.bf16.mxu0 %v1166_v2  ;;  %1114 = vmatprep.subr.bf16.mxu1 %v1167_v3 }
 0x16f   :  { %1103 = vmatmul.mubr.msk.bf16.vlgmr.msra.gmra.mxu1 %vm209_vm2, %v192_v59  ;;  %1111 = vmatmul.mubr.msk.bf16.vlgmr.msra.gmra.mxu0 %vm209_vm2, %v192_v59 }
 0x170   :  { %1123 = vmatpush3.bf16.msra.mxu0 %v1166_v2  ;;  %1115 = vmatpush3.bf16.msra.mxu1 %v1167_v3  ;;  %v985_v2 = vcombine.low %v1352_v9, %v1352_v9 }
 0x171   :  { %1118 = vmatprep.mubr.msk.bf16.mxu1 %vm209_vm2, %v191_v58  ;;  %1126 = vmatprep.mubr.msk.bf16.mxu0 %vm209_vm2, %v191_v58 }
 0x172   :  { %1124 = vmatprep.subr.bf16.mxu0 %v1168_v4  ;;  %1116 = vmatprep.subr.bf16.mxu1 %v1169_v5 }
 0x174   :  { %1125 = vmatpush3.bf16.msra.mxu0 %v1168_v4  ;;  %1117 = vmatpush3.bf16.msra.mxu1 %v1169_v5 }
 0x175   :  { %1130 = vmatprep.subr.bf16.mxu1 %v1170_v6 }
 0x177   :  { %1119 = vmatmul.mubr.msk.bf16.vlgmr.msra.gmra.mxu1 %vm209_vm2, %v192_v59  ;;  %1127 = vmatmul.mubr.msk.bf16.vlgmr.msra.gmra.mxu0 %vm209_vm2, %v192_v59 }
 0x178   :  { %1131 = vmatpush3.bf16.msra.mxu1 %v1170_v6  ;;  %1134 = vmatprep.mubr.msk.bf16.mxu1 %vm209_vm2, %v191_v58 }
 0x179   :  { %1132 = vmatprep.subr.bf16.mxu1 %v1171_v7  ;;  %858 = vmatprep.mubr.bf16.mxu0 %v986_v10 }
 0x17c   :  { %1133 = vmatpush3.bf16.msra.mxu1 %v1171_v7 }
 0x17d   :  { %1138 = vmatprep.subr.bf16.mxu1 %v1176_v8 }
 0x17f   :  { %1135 = vmatmul.mubr.msk.bf16.vlgmr.msra.gmra.mxu1 %vm209_vm2, %v192_v59 }
 0x180   :  { %1142 = vmatprep.mubr.msk.bf16.mxu1 %vm1177_vm3, %v1176_v8 }
 0x21f   :  { %v1356_v11 = vpop.f32.mrf.mxu1  ;;  %v1080_v12 = vpop.f32.mrf.mxu0 }
 0x221   :  { %v1358_v13 = vpop.f32.mrf.mxu1  ;;  %v1360_v14 = vpop.f32.mrf.mxu0 }
 0x223   :  { %v1362_v15 = vpop.f32.mrf.mxu1  ;;  %v1081_v16 = vpop.f32.mrf.mxu0 }
 0x224   :  { %v796_v59 = vpack.c.bf16 %v1081_v16, %v1080_v12  ;;  %v794_v63 = vpack.c.bf16 %v1362_v15, %v1356_v11 }
 0x225   :  { %v1364_v17 = vpop.f32.mrf.mxu1  ;;  %v319_v18 = vpop.f32.mrf.mxu0 }
 0x226   :  { %v795_v61 = vpack.c.bf16 %v319_v18, %v1360_v14  ;;  %v793_v1 = vpack.c.bf16 %v1364_v17, %v1358_v13 }
 0x227   :  { %v1088_v19 = vpop.f32.mrf.mxu1  ;;  %v1096_v20 = vpop.f32.mrf.mxu0 }
 0x229   :  { %v382_v21 = vpop.f32.mrf.mxu1  ;;  %v448_v22 = vpop.f32.mrf.mxu0 }
 0x22b   :  { %v1089_v23 = vpop.f32.mrf.mxu1  ;;  %v1097_v24 = vpop.f32.mrf.mxu0 }
 0x22c   :  { %v800_v42 = vpack.c.bf16 %v1097_v24, %v1096_v20  ;;  %v798_v52 = vpack.c.bf16 %v1089_v23, %v1088_v19 }
 0x22d   :  { %v385_v25 = vpop.f32.mrf.mxu1  ;;  %v451_v26 = vpop.f32.mrf.mxu0 }
 0x22e   :  { %v799_v47 = vpack.c.bf16 %v451_v26, %v448_v22  ;;  %v797_v56 = vpack.c.bf16 %v385_v25, %v382_v21 }
 0x22f   :  { %v1104_v27 = vpop.f32.mrf.mxu1  ;;  %v1112_v28 = vpop.f32.mrf.mxu0 }
 0x231   :  { %v514_v29 = vpop.f32.mrf.mxu1  ;;  %v580_v30 = vpop.f32.mrf.mxu0 }
 0x233   :  { %v1105_v31 = vpop.f32.mrf.mxu1  ;;  %v1113_v32 = vpop.f32.mrf.mxu0 }
 0x234   :  { %v804_v58 = vpack.c.bf16 %v1113_v32, %v1112_v28  ;;  %v802_v62 = vpack.c.bf16 %v1105_v31, %v1104_v27 }
 0x235   :  { %v517_v33 = vpop.f32.mrf.mxu1  ;;  %v583_v34 = vpop.f32.mrf.mxu0 }
 0x236   :  { %v803_v60 = vpack.c.bf16 %v583_v34, %v580_v30  ;;  %v801_v0 = vpack.c.bf16 %v517_v33, %v514_v29 }
 0x237   :  { %v1120_v35 = vpop.f32.mrf.mxu1  ;;  %v1128_v36 = vpop.f32.mrf.mxu0 }
 0x239   :  { %v646_v37 = vpop.f32.mrf.mxu1  ;;  %v712_v38 = vpop.f32.mrf.mxu0 }
 0x23b   :  { %v1121_v39 = vpop.f32.mrf.mxu1  ;;  %v1129_v40 = vpop.f32.mrf.mxu0 }
 0x23c   :  { %v808_v41 = vpack.c.bf16 %v1129_v40, %v1128_v36  ;;  %v806_v49 = vpack.c.bf16 %v1121_v39, %v1120_v35 }
 0x23d   :  { %v649_v43 = vpop.f32.mrf.mxu1  ;;  %v715_v44 = vpop.f32.mrf.mxu0 }
 0x23e   :  { %v807_v45 = vpack.c.bf16 %v715_v44, %v712_v38  ;;  %1033 = vmatprep.subr.bf16.mxu0 %v808_v41  ;;  %v805_v54 = vpack.c.bf16 %v649_v43, %v646_v37 }
 0x23f   :  { %v1136_v46 = vpop.f32.mrf.mxu1  ;;  %1034 = vmatpush3.bf16.msra.mxu0 %v800_v42 }
 0x240   :  { %1035 = vmatprep.subr.bf16.mxu0 %v807_v45 }
 0x241   :  { %v778_v48 = vpop.f32.mrf.mxu1 }
 0x243   :  { %v1137_v50 = vpop.f32.mrf.mxu1  ;;  %1036 = vmatpush3.bf16.msra.mxu0 %v799_v47 }
 0x244   :  { %v810_v51 = vpack.c.bf16 %v1137_v50, %v1136_v46  ;;  %1037 = vmatprep.subr.bf16.mxu0 %v806_v49 }
 0x245   :  { %v781_v53 = vpop.f32.mrf.mxu1 }
 0x246   :  { %1139 = vmatpush3.bf16.msra.mxu1 %v810_v51  ;;  %v809_v55 = vpack.c.bf16 %v781_v53, %v778_v48 }
 0x247   :  { %1038 = vmatpush3.bf16.msra.mxu0 %v798_v52  ;;  %1140 = vmatprep.subr.bf16.mxu1 %v1176_v8 }
 0x248   :  { %1039 = vmatprep.subr.bf16.mxu0 %v805_v54 }
 0x24a   :  { %1141 = vmatpush3.bf16.msra.mxu1 %v809_v55 }
 0x24b   :  { %1040 = vmatpush3.bf16.msra.mxu0 %v797_v56 }
 0x24c   :  { %1041 = vmatprep.subr.bf16.mxu0 %v804_v58 }
 0x24d   :  { %1143 = vmatmul.mubr.msk.bf16.vlgmr.msra.gmra.mxu1 %vm209_vm2, %v1172_v57 }
 0x24f   :  { %1042 = vmatpush3.bf16.msra.mxu0 %v796_v59 }
 0x250   :  { %1043 = vmatprep.subr.bf16.mxu0 %v803_v60 }
 0x253   :  { %1044 = vmatpush3.bf16.msra.mxu0 %v795_v61 }
 0x254   :  { %1045 = vmatprep.subr.bf16.mxu0 %v802_v62 }
 0x257   :  { %1046 = vmatpush3.bf16.msra.mxu0 %v794_v63 }
 0x258   :  { %1047 = vmatprep.subr.bf16.mxu0 %v801_v0 }
 0x25b   :  { %1048 = vmatpush3.bf16.msra.mxu0 %v793_v1 }
 0x25e   :  { %859 = vmatmul.mubr.bf16.vlgmr.msra.gmra.mxu0 %v985_v2 }
 0x30d   :  { %v900_v3 = vpop.f32.mrf.mxu1 }
 0x30f   :  { %v1144_v4 = vpop.f32.mrf.mxu1 }
 0x311   :  { %v903_v5 = vpop.f32.mrf.mxu1 }
 0x313   :  { %v1145_v6 = vpop.f32.mrf.mxu1 }
 0x31e   :  { %v1049_v7 = vpop.f32.mrf.mxu0 }
 0x320   :  { %v1050_v8 = vpop.f32.mrf.mxu0 }
 0x321   :  { %v1051_v10 = vadd.f32 %v1050_v8, %v1049_v7 }
 0x322   :  { %v1052_v12 = vpop.f32.mrf.mxu0 }
 0x323   :  { %v901_v11 = vadd.f32 %v1051_v10, %v900_v3 }
 0x324   :  { %v1053_v14 = vpop.f32.mrf.mxu0 }
 0x325   :  { %v906_v15 = vpack.c.bf16 %v901_v11, %v901_v11 }
 0x327   :  { %908 = vst.msk [vmem:[%s1390_s10] sm:$0xf] %vm907_vm4, %v906_v15 }

// kernel: densenet_forward.17
= control target key start
LH: loop header
LB: loop body
LE: loop exit
PB: predicated region body
PF: predicated region fallthrough
CT: control target
= control target key end

     0   :  { %v1140_v0 = vmov 0   ;;  %vm100_vm0 = vcmask 130048   ;;  %vm178_vm1 = vcmask 261120   ;;  %v1141_v61 = vmov 0.0   ;;  %s1321_s2 = inlined_call_operand.vmem [shape: f32[16,1], index: 2, kind: input, shape index: {}]   ;;  %s1322_s1 = inlined_call_operand.vmem [shape: f32[16,1], index: 1, kind: input, shape index: {}]   ;;  %s1323_s4 = inlined_call_operand.vmem [shape: f32[32,1], index: 4, kind: input, shape index: {}]   ;;  %s1324_s3 = inlined_call_operand.vmem [shape: bf16[32,16], index: 3, kind: input, shape index: {}]   ;;  %s1325_s0 = inlined_call_operand.vmem [shape: bf16[16,32], index: 0, kind: input, shape index: {}]   ;;  %s1326_s5 = inlined_call_operand.vmem [shape: bf16[9,32,32], index: 5, kind: input, shape index: {}]   ;;  %s1327_s6 = inlined_call_operand.vmem [shape: bf16[8,288], index: 6, kind: input, shape index: {}]   ;;  %s1328_s7 = inlined_call_operand.vmem [shape: bf16[8,32], index: 7, kind: output, shape index: {}]  }
   0x1   :  { %1116 = vset.pattern.permute.xlu1 %v1140_v0  ;;  %1115 = vset.pattern.permute.xlu0 %v1140_v0  ;;  %v31_v1 = vld [vmem:[%s1321_s2] sm:$0xff]  ;;  %v32_v3 = vld [vmem:[%s1321_s2 + $0x8] sm:$0xff]  ;;  %v69_v7 = vld [vmem:[%s1323_s4 + $0x18] sm:$0xff]  ;;  %vm1142_vm2 = vmmov 0   ;;  %vm876_vm3 = vcmask 257024  }
   0x2   :  { %v29_v2 = vld [vmem:[%s1322_s1] sm:$0xff]  ;;  %49 = vperm.xlu1 %1116, %v31_v1   ;;  %v30_v4 = vld [vmem:[%s1322_s1 + $0x8] sm:$0xff]  ;;  %v68_v8 = vld [vmem:[%s1323_s4 + $0x10] sm:$0xff] }
   0x3   :  { %37 = vperm.xlu0 %1115, %v29_v2   ;;  %v67_v5 = vld [vmem:[%s1323_s4 + $0x8] sm:$0xff]  ;;  %v66_v6 = vld [vmem:[%s1323_s4] sm:$0xff]  ;;  %v1120_v26 = vld [vmem:[%s1326_s5 + $0x38] sm:$0xff]  }
   0x4   :  { %v1117_v9 = vld [vmem:[%s1324_s3] sm:$0xff]   ;;  %v1118_v24 = vld [vmem:[%s1324_s3 + $0x8] sm:$0xff]   ;;  %v1122_v28 = vld [vmem:[%s1326_s5 + $0x30] sm:$0xff]  }
   0x5   :  { %1028 = vmatprep.mubr.msk.bf16.mxu0 %vm100_vm0, %v1117_v9  ;;  %v959_v10 = vld [vmem:[%s1325_s0] sm:$0xff]   ;;  %v1119_v25 = vld [vmem:[%s1326_s5 + $0x8] sm:$0xff]   ;;  %v1123_v29 = vld [vmem:[%s1326_s5 + $0x18] sm:$0xff]  }
   0x6   :  { %54 = vperm.xlu1 %1116, %v32_v3   ;;  %v960_v11 = vunpack.c.l.bf16 %v959_v10  ;;  %v961_v15 = vunpack.c.h.bf16 %v959_v10  ;;  %1032 = vmatprep.subr.bf16.mxu1 %v1119_v25  ;;  %v1121_v27 = vld [vmem:[%s1326_s5] sm:$0xff]   ;;  %v1124_v30 = vld [vmem:[%s1326_s5 + $0x58] sm:$0xff]   ;;  %v1125_v49 = vld [vmem:[%s1326_s5 + $0x10] sm:$0xff]  }
   0x7   :  { %42 = vperm.xlu0 %1115, %v30_v4   ;;  %1033 = vmatpush3.bf16.msra.mxu1 %v1119_v25  ;;  %v1126_v50 = vld [vmem:[%s1326_s5 + $0x50] sm:$0xff]   ;;  %v1127_v51 = vld [vmem:[%s1326_s5 + $0x28] sm:$0xff]   ;;  %v1128_v52 = vld [vmem:[%s1326_s5 + $0x78] sm:$0xff]  }
   0x8   :  { %1034 = vmatprep.subr.bf16.mxu1 %v1121_v27  ;;  %v1129_v53 = vld [vmem:[%s1326_s5 + $0x20] sm:$0xff]   ;;  %v1130_v54 = vld [vmem:[%s1326_s5 + $0x70] sm:$0xff]   ;;  %v1131_v55 = vld [vmem:[%s1326_s5 + $0x48] sm:$0xff]  }
   0x9   :  { %v1132_v56 = vld [vmem:[%s1326_s5 + $0x40] sm:$0xff]   ;;  %v1133_v57 = vld [vmem:[%s1326_s5 + $0x68] sm:$0xff]  }
   0xa   :  { %77 = vperm.xlu1 %1116, %v67_v5   ;;  %v1134_v58 = vld [vmem:[%s1326_s5 + $0x60] sm:$0xff]   ;;  %v1135_v59 = vld [vmem:[%s1326_s5 + $0x88] sm:$0xff]  }
   0xb   :  { %72 = vperm.xlu0 %1115, %v66_v6   ;;  %1035 = vmatpush3.bf16.msra.mxu1 %v1121_v27  ;;  %v1136_v60 = vld [vmem:[%s1326_s5 + $0x80] sm:$0xff]  }
   0xc   :  { %1040 = vmatprep.subr.bf16.mxu1 %v1123_v29  ;;  %v1295_v62 = vld [vmem:[%s1327_s6] sm:$0xff] }
   0xd   :  { %v955_v63 = vcombine.high %v1295_v62, %v1295_v62 }
   0xe   :  { %87 = vperm.xlu1 %1116, %v69_v7  }
   0xf   :  { %82 = vperm.xlu0 %1115, %v68_v8  }
  0x7d   :  { %v50_v12 = vpop.permute.xlu1 %49 }
  0x7e   :  { %v38_v13 = vpop.permute.xlu0 %37 }
  0x7f   :  { %v45_v14 = vmul.f32 %v960_v11, %v38_v13 }
  0x81   :  { %v57_v17 = vadd.f32 %v50_v12, %v45_v14  ;;  %v55_v19 = vpop.permute.xlu1 %54 }
  0x82   :  { %v43_v16 = vpop.permute.xlu0 %42 }
  0x83   :  { %v46_v18 = vmul.f32 %v961_v15, %v43_v16  ;;  %v59_v21 = vmax.f32 %v57_v17, 0.0 }
  0x85   :  { %v58_v20 = vadd.f32 %v55_v19, %v46_v18  ;;  %v78_v31 = vpop.permute.xlu1 %77 }
  0x86   :  { %v73_v32 = vpop.permute.xlu0 %72 }
  0x87   :  { %v60_v22 = vmax.f32 %v58_v20, 0.0 }
  0x89   :  { %v61_v23 = vpack.c.bf16 %v60_v22, %v59_v21  ;;  %v88_v35 = vpop.permute.xlu1 %87 }
  0x8a   :  { %v83_v37 = vpop.permute.xlu0 %82 }
  0x8b   :  { %1026 = vmatprep.subr.bf16.mxu0 %v61_v23 }
  0x8c   :  { %1027 = vmatpush3.bf16.msra.mxu0 %v61_v23 }
  0x8d   :  { %1056 = vmatprep.subr.bf16.mxu0 %v1120_v26 }
  0x8f   :  { %1029 = vmatmul.mubr.msk.bf16.vlgmr.msra.gmra.mxu0 %vm100_vm0, %v1118_v24 }
  0x90   :  { %1057 = vmatpush3.bf16.msra.mxu0 %v1120_v26 }
  0x91   :  { %1058 = vmatprep.subr.bf16.mxu0 %v1122_v28 }
  0x94   :  { %1059 = vmatpush3.bf16.msra.mxu0 %v1122_v28 }
  0x95   :  { %1072 = vmatprep.subr.bf16.mxu0 %v1124_v30 }
 0x14f   :  { %v1030_v33 = vpop.f32.mrf.mxu0 }
 0x150   :  { %v150_v40 = vadd.f32 %v1030_v33, %v83_v37 }
 0x151   :  { %v141_v34 = vpop.f32.mrf.mxu0 }
 0x152   :  { %v142_v38 = vadd.f32 %v141_v34, %v73_v32  ;;  %v158_v46 = vmax.f32 %v150_v40, 0.0 }
 0x153   :  { %v1031_v36 = vpop.f32.mrf.mxu0 }
 0x154   :  { %v153_v39 = vadd.f32 %v1031_v36, %v88_v35  ;;  %v156_v44 = vmax.f32 %v142_v38, 0.0 }
 0x155   :  { %v144_v41 = vpop.f32.mrf.mxu0 }
 0x156   :  { %v145_v42 = vadd.f32 %v144_v41, %v78_v31  ;;  %v159_v43 = vmax.f32 %v153_v39, 0.0 }
 0x158   :  { %v157_v45 = vmax.f32 %v145_v42, 0.0  ;;  %v161_v48 = vpack.c.bf16 %v159_v43, %v158_v46 }
 0x15a   :  { %v160_v47 = vpack.c.bf16 %v157_v45, %v156_v44 }
 0x15c   :  { %1036 = vmatprep.mubr.msk.bf16.mxu1 %vm178_vm1, %v160_v47  ;;  %1060 = vmatprep.mubr.msk.bf16.mxu0 %vm178_vm1, %v160_v47 }
 0x15d   :  { %1037 = vmatmul.mubr.msk.bf16.vlgmr.msra.gmra.mxu1 %vm178_vm1, %v161_v48  ;;  %1061 = vmatmul.mubr.msk.bf16.vlgmr.msra.gmra.mxu0 %vm178_vm1, %v161_v48 }
 0x15e   :  { %1041 = vmatpush3.bf16.msra.mxu1 %v1123_v29  ;;  %1044 = vmatprep.mubr.msk.bf16.mxu1 %vm178_vm1, %v160_v47 }
 0x15f   :  { %1073 = vmatpush3.bf16.msra.mxu0 %v1124_v30  ;;  %1076 = vmatprep.mubr.msk.bf16.mxu0 %vm178_vm1, %v160_v47 }
 0x160   :  { %1042 = vmatprep.subr.bf16.mxu1 %v1125_v49  ;;  %1074 = vmatprep.subr.bf16.mxu0 %v1126_v50 }
 0x162   :  { %1043 = vmatpush3.bf16.msra.mxu1 %v1125_v49 }
 0x163   :  { %1075 = vmatpush3.bf16.msra.mxu0 %v1126_v50  ;;  %1048 = vmatprep.subr.bf16.mxu1 %v1127_v51  ;;  %v1137_v50 = vld [vmem:[%s1327_s6 + $0x8] ss:$0 sps:$4 sm:$0xff]  }
 0x164   :  { %1088 = vmatprep.subr.bf16.mxu0 %v1128_v52 }
 0x165   :  { %1045 = vmatmul.mubr.msk.bf16.vlgmr.msra.gmra.mxu1 %vm178_vm1, %v161_v48 }
 0x166   :  { %1049 = vmatpush3.bf16.msra.mxu1 %v1127_v51  ;;  %1077 = vmatmul.mubr.msk.bf16.vlgmr.msra.gmra.mxu0 %vm178_vm1, %v161_v48 }
 0x167   :  { %1052 = vmatprep.mubr.msk.bf16.mxu1 %vm178_vm1, %v160_v47  ;;  %1089 = vmatpush3.bf16.msra.mxu0 %v1128_v52 }
 0x168   :  { %1092 = vmatprep.mubr.msk.bf16.mxu0 %vm178_vm1, %v160_v47  ;;  %1050 = vmatprep.subr.bf16.mxu1 %v1129_v53 }
 0x169   :  { %1090 = vmatprep.subr.bf16.mxu0 %v1130_v54 }
 0x16a   :  { %1051 = vmatpush3.bf16.msra.mxu1 %v1129_v53 }
 0x16b   :  { %1091 = vmatpush3.bf16.msra.mxu0 %v1130_v54  ;;  %1064 = vmatprep.subr.bf16.mxu1 %v1131_v55 }
 0x16d   :  { %1053 = vmatmul.mubr.msk.bf16.vlgmr.msra.gmra.mxu1 %vm178_vm1, %v161_v48 }
 0x16e   :  { %1065 = vmatpush3.bf16.msra.mxu1 %v1131_v55  ;;  %1093 = vmatmul.mubr.msk.bf16.vlgmr.msra.gmra.mxu0 %vm178_vm1, %v161_v48  ;;  %v954_v55 = vcombine.low %v1295_v62, %v1295_v62 }
 0x16f   :  { %1068 = vmatprep.mubr.msk.bf16.mxu1 %vm178_vm1, %v160_v47  ;;  %1066 = vmatprep.subr.bf16.mxu1 %v1132_v56 }
 0x170   :  { %827 = vmatprep.mubr.bf16.mxu0 %v955_v63 }
 0x172   :  { %1067 = vmatpush3.bf16.msra.mxu1 %v1132_v56 }
 0x173   :  { %1080 = vmatprep.subr.bf16.mxu1 %v1133_v57 }
 0x175   :  { %1069 = vmatmul.mubr.msk.bf16.vlgmr.msra.gmra.mxu1 %vm178_vm1, %v161_v48 }
 0x176   :  { %1081 = vmatpush3.bf16.msra.mxu1 %v1133_v57  ;;  %1084 = vmatprep.mubr.msk.bf16.mxu1 %vm178_vm1, %v160_v47 }
 0x177   :  { %1082 = vmatprep.subr.bf16.mxu1 %v1134_v58 }
 0x17a   :  { %1083 = vmatpush3.bf16.msra.mxu1 %v1134_v58 }
 0x17b   :  { %1096 = vmatprep.subr.bf16.mxu1 %v1135_v59 }
 0x17d   :  { %1085 = vmatmul.mubr.msk.bf16.vlgmr.msra.gmra.mxu1 %vm178_vm1, %v161_v48 }
 0x17e   :  { %1097 = vmatpush3.bf16.msra.mxu1 %v1135_v59  ;;  %1100 = vmatprep.mubr.msk.bf16.mxu1 %vm178_vm1, %v160_v47 }
 0x17f   :  { %1098 = vmatprep.subr.bf16.mxu1 %v1136_v60 }
 0x182   :  { %1099 = vmatpush3.bf16.msra.mxu1 %v1136_v60 }
 0x183   :  { %1104 = vmatprep.subr.bf16.mxu1 %v1141_v61 }
 0x185   :  { %1101 = vmatmul.mubr.msk.bf16.vlgmr.msra.gmra.mxu1 %vm178_vm1, %v161_v48 }
 0x186   :  { %1108 = vmatprep.mubr.msk.bf16.mxu1 %vm1142_vm2, %v1141_v61 }
 0x21d   :  { %v1299_v0 = vpop.f32.mrf.mxu1  ;;  %v1062_v1 = vpop.f32.mrf.mxu0 }
 0x21f   :  { %v1301_v2 = vpop.f32.mrf.mxu1  ;;  %v417_v3 = vpop.f32.mrf.mxu0 }
 0x221   :  { %v1303_v4 = vpop.f32.mrf.mxu1  ;;  %v1063_v5 = vpop.f32.mrf.mxu0 }
 0x222   :  { %v769_v24 = vpack.c.bf16 %v1063_v5, %v1062_v1  ;;  %v763_v52 = vpack.c.bf16 %v1303_v4, %v1299_v0 }
 0x223   :  { %v1305_v6 = vpop.f32.mrf.mxu1  ;;  %v420_v7 = vpop.f32.mrf.mxu0 }
 0x224   :  { %v768_v29 = vpack.c.bf16 %v420_v7, %v417_v3  ;;  %v762_v54 = vpack.c.bf16 %v1305_v6, %v1301_v2 }
 0x225   :  { %v1046_v8 = vpop.f32.mrf.mxu1 }
 0x226   :  { %v1078_v9 = vpop.f32.mrf.mxu0 }
 0x227   :  { %v285_v10 = vpop.f32.mrf.mxu1 }
 0x228   :  { %v549_v11 = vpop.f32.mrf.mxu0 }
 0x229   :  { %v1047_v12 = vpop.f32.mrf.mxu1 }
 0x22a   :  { %v1079_v13 = vpop.f32.mrf.mxu0  ;;  %v765_v45 = vpack.c.bf16 %v1047_v12, %v1046_v8 }
 0x22b   :  { %v288_v14 = vpop.f32.mrf.mxu1  ;;  %v773_v42 = vpack.c.bf16 %v1079_v13, %v1078_v9 }
 0x22c   :  { %v552_v15 = vpop.f32.mrf.mxu0  ;;  %v764_v49 = vpack.c.bf16 %v288_v14, %v285_v10 }
 0x22d   :  { %v1054_v16 = vpop.f32.mrf.mxu1  ;;  %v772_v47 = vpack.c.bf16 %v552_v15, %v549_v11 }
 0x22e   :  { %v1094_v17 = vpop.f32.mrf.mxu0 }
 0x22f   :  { %v351_v18 = vpop.f32.mrf.mxu1 }
 0x230   :  { %v681_v19 = vpop.f32.mrf.mxu0 }
 0x231   :  { %v1055_v20 = vpop.f32.mrf.mxu1 }
 0x232   :  { %v1095_v21 = vpop.f32.mrf.mxu0  ;;  %v767_v36 = vpack.c.bf16 %v1055_v20, %v1054_v16 }
 0x233   :  { %v777_v22 = vpack.c.bf16 %v1095_v21, %v1094_v17  ;;  %v354_v23 = vpop.f32.mrf.mxu1 }
 0x234   :  { %v684_v25 = vpop.f32.mrf.mxu0  ;;  %v766_v40 = vpack.c.bf16 %v354_v23, %v351_v18 }
 0x235   :  { %v776_v26 = vpack.c.bf16 %v684_v25, %v681_v19  ;;  %1001 = vmatprep.subr.bf16.mxu0 %v777_v22  ;;  %v1070_v27 = vpop.f32.mrf.mxu1 }
 0x236   :  { %1002 = vmatpush3.bf16.msra.mxu0 %v769_v24 }
 0x237   :  { %1003 = vmatprep.subr.bf16.mxu0 %v776_v26  ;;  %v483_v28 = vpop.f32.mrf.mxu1 }
 0x239   :  { %v1071_v30 = vpop.f32.mrf.mxu1 }
 0x23a   :  { %1004 = vmatpush3.bf16.msra.mxu0 %v768_v29  ;;  %v771_v51 = vpack.c.bf16 %v1071_v30, %v1070_v27 }
 0x23b   :  { %v486_v31 = vpop.f32.mrf.mxu1 }
 0x23c   :  { %v770_v53 = vpack.c.bf16 %v486_v31, %v483_v28 }
 0x23d   :  { %v1086_v32 = vpop.f32.mrf.mxu1 }
 0x23f   :  { %v615_v33 = vpop.f32.mrf.mxu1 }
 0x241   :  { %v1087_v34 = vpop.f32.mrf.mxu1 }
 0x242   :  { %v775_v35 = vpack.c.bf16 %v1087_v34, %v1086_v32 }
 0x243   :  { %v618_v37 = vpop.f32.mrf.mxu1 }
 0x244   :  { %v774_v38 = vpack.c.bf16 %v618_v37, %v615_v33  ;;  %1005 = vmatprep.subr.bf16.mxu0 %v775_v35 }
 0x245   :  { %v1102_v39 = vpop.f32.mrf.mxu1  ;;  %1006 = vmatpush3.bf16.msra.mxu0 %v767_v36 }
 0x246   :  { %1007 = vmatprep.subr.bf16.mxu0 %v774_v38 }
 0x247   :  { %v747_v41 = vpop.f32.mrf.mxu1 }
 0x249   :  { %v1103_v43 = vpop.f32.mrf.mxu1  ;;  %1008 = vmatpush3.bf16.msra.mxu0 %v766_v40 }
 0x24a   :  { %v779_v44 = vpack.c.bf16 %v1103_v43, %v1102_v39  ;;  %1009 = vmatprep.subr.bf16.mxu0 %v773_v42 }
 0x24b   :  { %v750_v46 = vpop.f32.mrf.mxu1 }
 0x24c   :  { %1105 = vmatpush3.bf16.msra.mxu1 %v779_v44  ;;  %v778_v48 = vpack.c.bf16 %v750_v46, %v747_v41 }
 0x24d   :  { %1010 = vmatpush3.bf16.msra.mxu0 %v765_v45  ;;  %1106 = vmatprep.subr.bf16.mxu1 %v1141_v61 }
 0x24e   :  { %1011 = vmatprep.subr.bf16.mxu0 %v772_v47 }
 0x250   :  { %1107 = vmatpush3.bf16.msra.mxu1 %v778_v48 }
 0x251   :  { %1012 = vmatpush3.bf16.msra.mxu0 %v764_v49 }
 0x252   :  { %1013 = vmatprep.subr.bf16.mxu0 %v771_v51 }
 0x253   :  { %1109 = vmatmul.mubr.msk.bf16.vlgmr.msra.gmra.mxu1 %vm178_vm1, %v1137_v50 }
 0x255   :  { %1014 = vmatpush3.bf16.msra.mxu0 %v763_v52 }
 0x256   :  { %1015 = vmatprep.subr.bf16.mxu0 %v770_v53 }
 0x259   :  { %1016 = vmatpush3.bf16.msra.mxu0 %v762_v54 }
 0x25c   :  { %828 = vmatmul.mubr.bf16.vlgmr.msra.gmra.mxu0 %v954_v55 }
 0x313   :  { %v869_v56 = vpop.f32.mrf.mxu1 }
 0x315   :  { %v1110_v57 = vpop.f32.mrf.mxu1 }
 0x317   :  { %v872_v58 = vpop.f32.mrf.mxu1 }
 0x319   :  { %v1111_v59 = vpop.f32.mrf.mxu1 }
 0x31c   :  { %v1017_v60 = vpop.f32.mrf.mxu0 }
 0x31e   :  { %v1018_v61 = vpop.f32.mrf.mxu0 }
 0x31f   :  { %v1019_v63 = vadd.f32 %v1018_v61, %v1017_v60 }
 0x320   :  { %v1020_v0 = vpop.f32.mrf.mxu0 }
 0x321   :  { %v870_v1 = vadd.f32 %v1019_v63, %v869_v56 }
 0x322   :  { %v1021_v3 = vpop.f32.mrf.mxu0 }
 0x323   :  { %v875_v4 = vpack.c.bf16 %v870_v1, %v870_v1 }
 0x325   :  { %877 = vst.msk [vmem:[%s1328_s7] sm:$0xf] %vm876_vm3, %v875_v4 }

// kernel: densenet_forward.13
= control target key start
LH: loop header
LB: loop body
LE: loop exit
PB: predicated region body
PF: predicated region fallthrough
CT: control target
= control target key end

     0   :  { %v5068_v2 = vmov 0   ;;  %vm273_vm0 = vcmask 1040384   ;;  %vm274_vm1 = vcmask 1041408   ;;  %v5069_v30 = vmov 65535   ;;  %s6133_s0 = inlined_call_operand.vmem [shape: bf16[147,512], index: 0, kind: input, shape index: {}]   ;;  %s6134_s1 = inlined_call_operand.vmem [shape: bf16[16,147], index: 1, kind: input, shape index: {}]   ;;  %s6135_s2 = inlined_call_operand.vmem [shape: f32[16,1], index: 2, kind: input, shape index: {}]   ;;  %s6136_s3 = inlined_call_operand.vmem [shape: bf16[9,512,128], index: 3, kind: input, shape index: {}]   ;;  %s6137_s4 = inlined_call_operand.vmem [shape: bf16[16,128], index: 4, kind: output, shape index: {}]  }
   0x1   :  { %v4719_v0 = vld [vmem:[%s6133_s0 + $0xe4] ss:$16 sps:$4 sm:$0xff]   ;;  %v4721_v1 = vld [vmem:[%s6133_s0 + $0xec] ss:$16 sps:$4 sm:$0xff]   ;;  %4718 = vset.pattern.permute.xlu0 %v5068_v2  ;;  %v4723_v3 = vld [vmem:[%s6133_s0 + $0xe0] ss:$16 sps:$4 sm:$0xff]  }
   0x2   :  { %289 = vmatprep.subr.bf16.mxu0 %v4719_v0  ;;  %v4724_v4 = vld [vmem:[%s6133_s0 + $0xe8] ss:$16 sps:$4 sm:$0xff]   ;;  %332 = vmatprep.subr.bf16.mxu1 %v4721_v1  ;;  %v4725_v5 = vld [vmem:[%s6133_s0 + $0xc4] ss:$16 sps:$4 sm:$0xff]   ;;  %v4727_v6 = vld [vmem:[%s6133_s0 + $0xcc] ss:$16 sps:$4 sm:$0xff]  }
   0x3   :  { %290 = vmatpush1.bf16.msra.mxu0 %v4723_v3  ;;  %333 = vmatpush1.bf16.msra.mxu1 %v4724_v4  ;;  %v4729_v7 = vld [vmem:[%s6133_s0 + $0xc0] ss:$16 sps:$4 sm:$0xff]   ;;  %v4730_v8 = vld [vmem:[%s6133_s0 + $0xc8] ss:$16 sps:$4 sm:$0xff]   ;;  %v4731_v9 = vld [vmem:[%s6133_s0 + $0xa4] ss:$16 sps:$4 sm:$0xff]  }
   0x4   :  { %291 = vmatprep.subr.bf16.mxu0 %v4725_v5  ;;  %334 = vmatprep.subr.bf16.mxu1 %v4727_v6  ;;  %v4733_v10 = vld [vmem:[%s6133_s0 + $0xac] ss:$16 sps:$4 sm:$0xff]   ;;  %v4735_v11 = vld [vmem:[%s6133_s0 + $0xa0] ss:$16 sps:$4 sm:$0xff]   ;;  %v4736_v12 = vld [vmem:[%s6133_s0 + $0xa8] ss:$16 sps:$4 sm:$0xff]  }
   0x5   :  { %v4737_v13 = vld [vmem:[%s6133_s0 + $0x84] ss:$16 sps:$4 sm:$0xff]   ;;  %v4739_v14 = vld [vmem:[%s6133_s0 + $0x8c] ss:$16 sps:$4 sm:$0xff]   ;;  %v4741_v15 = vld [vmem:[%s6133_s0 + $0x80] ss:$16 sps:$4 sm:$0xff]  }
   0x6   :  { %v4742_v16 = vld [vmem:[%s6133_s0 + $0x88] ss:$16 sps:$4 sm:$0xff]   ;;  %v4743_v17 = vld [vmem:[%s6133_s0 + $0x64] ss:$16 sps:$4 sm:$0xff]   ;;  %v4745_v18 = vld [vmem:[%s6133_s0 + $0x6c] ss:$16 sps:$4 sm:$0xff]  }
   0x7   :  { %292 = vmatpush1.bf16.msra.mxu0 %v4729_v7  ;;  %335 = vmatpush1.bf16.msra.mxu1 %v4730_v8  ;;  %v4747_v19 = vld [vmem:[%s6133_s0 + $0x60] ss:$16 sps:$4 sm:$0xff]   ;;  %v4748_v20 = vld [vmem:[%s6133_s0 + $0x68] ss:$16 sps:$4 sm:$0xff]   ;;  %v4749_v21 = vld [vmem:[%s6133_s0 + $0x44] ss:$16 sps:$4 sm:$0xff]  }
   0x8   :  { %293 = vmatprep.subr.bf16.mxu0 %v4731_v9  ;;  %336 = vmatprep.subr.bf16.mxu1 %v4733_v10  ;;  %v4751_v22 = vld [vmem:[%s6133_s0 + $0x4c] ss:$16 sps:$4 sm:$0xff]   ;;  %v4753_v23 = vld [vmem:[%s6133_s0 + $0x40] ss:$16 sps:$4 sm:$0xff]   ;;  %v4754_v24 = vld [vmem:[%s6133_s0 + $0x48] ss:$16 sps:$4 sm:$0xff]  }
   0x9   :  { %v4755_v25 = vld [vmem:[%s6133_s0 + $0x24] ss:$16 sps:$4 sm:$0xff]   ;;  %v4757_v26 = vld [vmem:[%s6133_s0 + $0x2c] ss:$16 sps:$4 sm:$0xff]   ;;  %v4759_v29 = vld [vmem:[%s6133_s0 + $0x20] ss:$16 sps:$4 sm:$0xff]  }
   0xa   :  { %v56_v27 = vld [vmem:[%s6133_s0 + $0x120] sm:$0x33]  ;;  %v57_v28 = vld [vmem:[%s6133_s0 + $0x128] sm:$0x33]  ;;  %v275_v31 = vsel %vm273_vm0, 4294967295, %v5069_v30  ;;  %vm269_vm2 = vcmask 154624  }
   0xb   :  { %294 = vmatpush1.bf16.msra.mxu0 %v4735_v11  ;;  %337 = vmatpush1.bf16.msra.mxu1 %v4736_v12  ;;  %v4760_v32 = vld [vmem:[%s6133_s0 + $0x28] ss:$16 sps:$4 sm:$0xff]   ;;  %v4761_v33 = vld [vmem:[%s6133_s0 + $0x4] ss:$16 sps:$4 sm:$0xff]   ;;  %v4763_v34 = vld [vmem:[%s6133_s0 + $0xc] ss:$16 sps:$4 sm:$0xff]   ;;  %v3506_v35 = vcombine.high %v56_v27, %v56_v27  ;;  %v3508_v36 = vcombine.high %v57_v28, %v57_v28  ;;  %v3505_v42 = vcombine.low %v56_v27, %v56_v27 }
   0xc   :  { %295 = vmatprep.subr.bf16.mxu0 %v4737_v13  ;;  %338 = vmatprep.subr.bf16.mxu1 %v4739_v14  ;;  %v4779_v37 = vld [vmem:[%s6134_s1 + $0x4] ss:$8 sps:$4 sm:$0xff]   ;;  %v4765_v38 = vld [vmem:[%s6133_s0] ss:$16 sps:$4 sm:$0xff]   ;;  %v276_v39 = vsel %vm274_vm1, %v275_v31, 0  ;;  %v3507_v43 = vcombine.low %v57_v28, %v57_v28  ;;  %v4780_v53 = vld [vmem:[%s6136_s3 + $0x78] sm:$0xff]  }
   0xd   :  { %3509 = vmatprep.mubr.msk.bf16.mxu0 %vm269_vm2, %v4779_v37  ;;  %3510 = vmatprep.mubr.msk.bf16.mxu1 %vm269_vm2, %v4779_v37  ;;  %v58_v40 = vld [vmem:[%s6135_s2] sm:$0xff]  ;;  %v4766_v41 = vld [vmem:[%s6133_s0 + $0x8] ss:$16 sps:$4 sm:$0xff]   ;;  %v281_v44 = vand.u32 %v3506_v35, %v276_v39  ;;  %v287_v45 = vand.u32 %v3508_v36, %v276_v39  ;;  %v278_v47 = vand.u32 %v3505_v42, %v276_v39  ;;  %v4773_v50 = vld [vmem:[%s6133_s0 + $0x10c] ss:$16 sps:$4 sm:$0xff]  }
   0xe   :  { %62 = vperm.xlu0 %4718, %v58_v40   ;;  %v59_v46 = vld [vmem:[%s6135_s2 + $0x8] sm:$0xff]  ;;  %v284_v48 = vand.u32 %v3507_v43, %v276_v39  ;;  %v4771_v49 = vld [vmem:[%s6133_s0 + $0x104] ss:$16 sps:$4 sm:$0xff]   ;;  %v4775_v51 = vld [vmem:[%s6133_s0 + $0x100] ss:$16 sps:$4 sm:$0xff]  }
   0xf   :  { %296 = vmatpush1.bf16.msra.mxu0 %v4741_v15  ;;  %339 = vmatpush1.bf16.msra.mxu1 %v4742_v16  ;;  %v4776_v52 = vld [vmem:[%s6133_s0 + $0x108] ss:$16 sps:$4 sm:$0xff]   ;;  %v4784_v58 = vld [vmem:[%s6136_s3 + $0x70] sm:$0xff]   ;;  %v4792_v2 = vld [vmem:[%s6136_s3 + $0x60] sm:$0xff]  }
  0x10   :  { %297 = vmatprep.subr.bf16.mxu0 %v4743_v17  ;;  %340 = vmatprep.subr.bf16.mxu1 %v4745_v18  ;;  %v4777_v54 = vld [vmem:[%s6134_s1] ss:$8 sps:$4 sm:$0xff]   ;;  %v4781_v55 = vld [vmem:[%s6136_s3 + $0xf8] sm:$0xff]   ;;  %v4785_v59 = vld [vmem:[%s6136_s3 + $0xf0] sm:$0xff]  }
  0x11   :  { %v4782_v56 = vld [vmem:[%s6136_s3 + $0x38] sm:$0xff]   ;;  %v4786_v60 = vld [vmem:[%s6136_s3 + $0x30] sm:$0xff]   ;;  %v4788_v62 = vld [vmem:[%s6136_s3 + $0x68] sm:$0xff]  }
  0x12   :  { %67 = vperm.xlu0 %4718, %v59_v46   ;;  %v4783_v57 = vld [vmem:[%s6136_s3 + $0xb8] sm:$0xff]   ;;  %v4787_v61 = vld [vmem:[%s6136_s3 + $0xb0] sm:$0xff]   ;;  %v4789_v63 = vld [vmem:[%s6136_s3 + $0xe8] sm:$0xff]  }
  0x13   :  { %298 = vmatpush1.bf16.msra.mxu0 %v4747_v19  ;;  %341 = vmatpush1.bf16.msra.mxu1 %v4748_v20  ;;  %v4790_v0 = vld [vmem:[%s6136_s3 + $0x28] sm:$0xff]   ;;  %v4793_v3 = vld [vmem:[%s6136_s3 + $0xe0] sm:$0xff]   ;;  %v4796_v6 = vld [vmem:[%s6136_s3 + $0x58] sm:$0xff]  }
  0x14   :  { %299 = vmatprep.subr.bf16.mxu0 %v4749_v21  ;;  %342 = vmatprep.subr.bf16.mxu1 %v4751_v22  ;;  %v4791_v1 = vld [vmem:[%s6136_s3 + $0xa8] sm:$0xff]   ;;  %v4794_v4 = vld [vmem:[%s6136_s3 + $0x20] sm:$0xff]   ;;  %v4797_v7 = vld [vmem:[%s6136_s3 + $0xd8] sm:$0xff]  }
  0x15   :  { %v4795_v5 = vld [vmem:[%s6136_s3 + $0xa0] sm:$0xff]   ;;  %v4798_v8 = vld [vmem:[%s6136_s3 + $0x18] sm:$0xff]   ;;  %v4800_v10 = vld [vmem:[%s6136_s3 + $0x50] sm:$0xff]  }
  0x16   :  { %v4799_v9 = vld [vmem:[%s6136_s3 + $0x98] sm:$0xff]   ;;  %v4801_v11 = vld [vmem:[%s6136_s3 + $0xd0] sm:$0xff]   ;;  %v4804_v14 = vld [vmem:[%s6136_s3 + $0x48] sm:$0xff]  }
  0x17   :  { %300 = vmatpush1.bf16.msra.mxu0 %v4753_v23  ;;  %343 = vmatpush1.bf16.msra.mxu1 %v4754_v24  ;;  %v4802_v12 = vld [vmem:[%s6136_s3 + $0x10] sm:$0xff]   ;;  %v4805_v15 = vld [vmem:[%s6136_s3 + $0xc8] sm:$0xff]   ;;  %v4808_v18 = vld [vmem:[%s6136_s3 + $0x40] sm:$0xff]  }
  0x18   :  { %301 = vmatprep.subr.bf16.mxu0 %v4755_v25  ;;  %344 = vmatprep.subr.bf16.mxu1 %v4757_v26  ;;  %v4803_v13 = vld [vmem:[%s6136_s3 + $0x90] sm:$0xff]   ;;  %v4806_v16 = vld [vmem:[%s6136_s3 + $0x8] sm:$0xff]   ;;  %v4809_v19 = vld [vmem:[%s6136_s3 + $0xc0] sm:$0xff]  }
  0x19   :  { %v4807_v17 = vld [vmem:[%s6136_s3 + $0x88] sm:$0xff]   ;;  %v4810_v20 = vld [vmem:[%s6136_s3] sm:$0xff]   ;;  %v4812_v22 = vld [vmem:[%s6136_s3 + $0x178] sm:$0xff]  }
  0x1a   :  { %v4811_v21 = vld [vmem:[%s6136_s3 + $0x80] sm:$0xff]   ;;  %v4813_v23 = vld [vmem:[%s6136_s3 + $0x1f8] sm:$0xff]  }
  0x1b   :  { %302 = vmatpush1.bf16.msra.mxu0 %v4759_v29  ;;  %345 = vmatpush1.bf16.msra.mxu1 %v4760_v32 }
  0x1c   :  { %303 = vmatprep.subr.bf16.mxu0 %v4761_v33  ;;  %346 = vmatprep.subr.bf16.mxu1 %v4763_v34 }
  0x1f   :  { %304 = vmatpush1.bf16.msra.mxu0 %v4765_v38  ;;  %347 = vmatpush1.bf16.msra.mxu1 %v4766_v41 }
  0x20   :  { %317 = vmatprep.subr.bf16.mxu0 %v281_v44  ;;  %360 = vmatprep.subr.bf16.mxu1 %v287_v45 }
  0x23   :  { %318 = vmatpush2.bf16.msra.mxu0 %v278_v47  ;;  %361 = vmatpush2.bf16.msra.mxu1 %v284_v48 }
  0x24   :  { %319 = vmatprep.subr.bf16.mxu0 %v4771_v49  ;;  %362 = vmatprep.subr.bf16.mxu1 %v4773_v50  ;;  %v4814_v50 = vld [vmem:[%s6136_s3 + $0x138] sm:$0xff]  }
  0x27   :  { %320 = vmatpush2.bf16.msra.mxu0 %v4775_v51  ;;  %363 = vmatpush2.bf16.msra.mxu1 %v4776_v52  ;;  %v4815_v51 = vld [vmem:[%s6136_s3 + $0x1b8] sm:$0xff]  }
  0x28   :  { %4320 = vmatprep.subr.bf16.mxu0 %v4780_v53  ;;  %4342 = vmatprep.subr.bf16.mxu1 %v4781_v55  ;;  %v4817_v55 = vld [vmem:[%s6136_s3 + $0x1f0] sm:$0xff]  }
  0x2a   :  { %322 = vmatmul.mubr.bf16.vlgmr.msra.gmra.mxu0 %v4777_v54  ;;  %365 = vmatmul.mubr.bf16.vlgmr.msra.gmra.mxu1 %v4777_v54  ;;  %v4816_v54 = vld [vmem:[%s6136_s3 + $0x170] sm:$0xff]  }
  0x2b   :  { %4321 = vmatpush3.bf16.msra.mxu0 %v4782_v56  ;;  %4343 = vmatpush3.bf16.msra.mxu1 %v4783_v57 }
  0x2c   :  { %4322 = vmatprep.subr.bf16.mxu0 %v4784_v58  ;;  %4344 = vmatprep.subr.bf16.mxu1 %v4785_v59  ;;  %v4818_v58 = vld [vmem:[%s6136_s3 + $0x130] sm:$0xff]  }
  0x2d   :  { %v4819_v59 = vld [vmem:[%s6136_s3 + $0x1b0] sm:$0xff]  }
  0x2f   :  { %4323 = vmatpush3.bf16.msra.mxu0 %v4786_v60  ;;  %4345 = vmatpush3.bf16.msra.mxu1 %v4787_v61  ;;  %v4820_v60 = vld [vmem:[%s6136_s3 + $0x168] sm:$0xff]  }
  0x30   :  { %4324 = vmatprep.subr.bf16.mxu0 %v4788_v62  ;;  %4346 = vmatprep.subr.bf16.mxu1 %v4789_v63  ;;  %v4821_v61 = vld [vmem:[%s6136_s3 + $0x1e8] sm:$0xff]  }
  0x31   :  { %v4822_v62 = vld [vmem:[%s6136_s3 + $0x128] sm:$0xff]  }
  0x32   :  { %v4823_v63 = vld [vmem:[%s6136_s3 + $0x1a8] sm:$0xff]  }
  0x33   :  { %4325 = vmatpush3.bf16.msra.mxu0 %v4790_v0  ;;  %4347 = vmatpush3.bf16.msra.mxu1 %v4791_v1  ;;  %v4824_v0 = vld [vmem:[%s6136_s3 + $0x160] sm:$0xff]  }
  0x34   :  { %4326 = vmatprep.subr.bf16.mxu0 %v4792_v2  ;;  %4348 = vmatprep.subr.bf16.mxu1 %v4793_v3  ;;  %v4825_v1 = vld [vmem:[%s6136_s3 + $0x1e0] sm:$0xff]  }
  0x35   :  { %v4826_v2 = vld [vmem:[%s6136_s3 + $0x120] sm:$0xff]  }
  0x36   :  { %v4827_v3 = vld [vmem:[%s6136_s3 + $0x1a0] sm:$0xff]  }
  0x37   :  { %4327 = vmatpush3.bf16.msra.mxu0 %v4794_v4  ;;  %4349 = vmatpush3.bf16.msra.mxu1 %v4795_v5  ;;  %v4828_v4 = vld [vmem:[%s6136_s3 + $0x158] sm:$0xff]  }
  0x38   :  { %4328 = vmatprep.subr.bf16.mxu0 %v4796_v6  ;;  %4350 = vmatprep.subr.bf16.mxu1 %v4797_v7  ;;  %v4829_v5 = vld [vmem:[%s6136_s3 + $0x1d8] sm:$0xff]  }
  0x39   :  { %v4830_v6 = vld [vmem:[%s6136_s3 + $0x118] sm:$0xff]  }
  0x3a   :  { %v4831_v7 = vld [vmem:[%s6136_s3 + $0x198] sm:$0xff]  }
  0x3b   :  { %4329 = vmatpush3.bf16.msra.mxu0 %v4798_v8  ;;  %4351 = vmatpush3.bf16.msra.mxu1 %v4799_v9  ;;  %v4832_v8 = vld [vmem:[%s6136_s3 + $0x150] sm:$0xff]  }
  0x3c   :  { %4330 = vmatprep.subr.bf16.mxu0 %v4800_v10  ;;  %4352 = vmatprep.subr.bf16.mxu1 %v4801_v11  ;;  %v4833_v9 = vld [vmem:[%s6136_s3 + $0x1d0] sm:$0xff]  }
  0x3d   :  { %v4834_v10 = vld [vmem:[%s6136_s3 + $0x110] sm:$0xff]  }
  0x3e   :  { %v4835_v11 = vld [vmem:[%s6136_s3 + $0x190] sm:$0xff]  }
  0x3f   :  { %4331 = vmatpush3.bf16.msra.mxu0 %v4802_v12  ;;  %4353 = vmatpush3.bf16.msra.mxu1 %v4803_v13  ;;  %v4836_v12 = vld [vmem:[%s6136_s3 + $0x148] sm:$0xff]  }
  0x40   :  { %4332 = vmatprep.subr.bf16.mxu0 %v4804_v14  ;;  %4354 = vmatprep.subr.bf16.mxu1 %v4805_v15  ;;  %v4837_v13 = vld [vmem:[%s6136_s3 + $0x1c8] sm:$0xff]  }
  0x41   :  { %v4838_v14 = vld [vmem:[%s6136_s3 + $0x108] sm:$0xff]  }
  0x42   :  { %v4839_v15 = vld [vmem:[%s6136_s3 + $0x188] sm:$0xff]  }
  0x43   :  { %4333 = vmatpush3.bf16.msra.mxu0 %v4806_v16  ;;  %4355 = vmatpush3.bf16.msra.mxu1 %v4807_v17  ;;  %v4840_v16 = vld [vmem:[%s6136_s3 + $0x140] sm:$0xff]  }
  0x44   :  { %4334 = vmatprep.subr.bf16.mxu0 %v4808_v18  ;;  %4356 = vmatprep.subr.bf16.mxu1 %v4809_v19  ;;  %v4841_v17 = vld [vmem:[%s6136_s3 + $0x1c0] sm:$0xff]  }
  0x45   :  { %v4842_v18 = vld [vmem:[%s6136_s3 + $0x100] sm:$0xff]  }
  0x46   :  { %v4843_v19 = vld [vmem:[%s6136_s3 + $0x180] sm:$0xff]  }
  0x47   :  { %4335 = vmatpush3.bf16.msra.mxu0 %v4810_v20  ;;  %4357 = vmatpush3.bf16.msra.mxu1 %v4811_v21  ;;  %v4844_v20 = vld [vmem:[%s6136_s3 + $0x278] sm:$0xff]  }
  0x48   :  { %4364 = vmatprep.subr.bf16.mxu0 %v4812_v22  ;;  %4386 = vmatprep.subr.bf16.mxu1 %v4813_v23  ;;  %v4845_v21 = vld [vmem:[%s6136_s3 + $0x2f8] sm:$0xff]  }
  0x49   :  { %v4846_v22 = vld [vmem:[%s6136_s3 + $0x238] sm:$0xff]  }
  0x4a   :  { %v4847_v23 = vld [vmem:[%s6136_s3 + $0x2b8] sm:$0xff]  }
  0x89   :  { %v63_v24 = vpop.permute.xlu0 %62 }
  0x8d   :  { %v68_v29 = vpop.permute.xlu0 %67 }
  0xea   :  { %v323_v25 = vpop.f32.mrf.mxu0  ;;  %v366_v26 = vpop.f32.mrf.mxu1 }
  0xeb   :  { %v324_v30 = vadd.f32 %v323_v25, %v63_v24  ;;  %v367_v31 = vadd.f32 %v366_v26, %v63_v24  ;;  %v4849_v25 = vld [vmem:[%s6136_s3 + $0x2f0] sm:$0xff]  }
  0xec   :  { %v325_v27 = vpop.f32.mrf.mxu0  ;;  %v368_v28 = vpop.f32.mrf.mxu1  ;;  %v4850_v26 = vld [vmem:[%s6136_s3 + $0x230] sm:$0xff]  }
  0xed   :  { %v326_v34 = vadd.f32 %v325_v27, %v63_v24  ;;  %v369_v35 = vadd.f32 %v368_v28, %v63_v24  ;;  %v375_v42 = vmax.f32 %v324_v30, 0.0  ;;  %v377_v43 = vmax.f32 %v367_v31, 0.0  ;;  %v4848_v24 = vld [vmem:[%s6136_s3 + $0x270] sm:$0xff]   ;;  %v4852_v28 = vld [vmem:[%s6136_s3 + $0x268] sm:$0xff]  }
  0xee   :  { %v327_v32 = vpop.f32.mrf.mxu0  ;;  %v370_v33 = vpop.f32.mrf.mxu1  ;;  %v4851_v27 = vld [vmem:[%s6136_s3 + $0x2b0] sm:$0xff]   ;;  %v4854_v30 = vld [vmem:[%s6136_s3 + $0x228] sm:$0xff]  }
  0xef   :  { %v328_v36 = vadd.f32 %v327_v32, %v68_v29  ;;  %v371_v37 = vadd.f32 %v370_v33, %v68_v29  ;;  %v376_v46 = vmax.f32 %v326_v34, 0.0  ;;  %v378_v47 = vmax.f32 %v369_v35, 0.0  ;;  %v4855_v31 = vld [vmem:[%s6136_s3 + $0x2a8] sm:$0xff]   ;;  %v4856_v32 = vld [vmem:[%s6136_s3 + $0x260] sm:$0xff]  }
  0xf0   :  { %v329_v38 = vpop.f32.mrf.mxu0  ;;  %v372_v39 = vpop.f32.mrf.mxu1  ;;  %v4857_v33 = vld [vmem:[%s6136_s3 + $0x2e0] sm:$0xff]  }
  0xf1   :  { %v330_v40 = vadd.f32 %v329_v38, %v68_v29  ;;  %v373_v41 = vadd.f32 %v372_v39, %v68_v29  ;;  %v379_v44 = vmax.f32 %v328_v36, 0.0  ;;  %v381_v45 = vmax.f32 %v371_v37, 0.0  ;;  %v4853_v29 = vld [vmem:[%s6136_s3 + $0x2e8] sm:$0xff]   ;;  %v4858_v34 = vld [vmem:[%s6136_s3 + $0x220] sm:$0xff]   ;;  %v4860_v36 = vld [vmem:[%s6136_s3 + $0x258] sm:$0xff]  }
  0xf2   :  { %v4859_v35 = vld [vmem:[%s6136_s3 + $0x2a0] sm:$0xff]   ;;  %v4861_v37 = vld [vmem:[%s6136_s3 + $0x2d8] sm:$0xff]  }
  0xf3   :  { %v380_v48 = vmax.f32 %v330_v40, 0.0  ;;  %v382_v49 = vmax.f32 %v373_v41, 0.0  ;;  %v5340_v56 = vpack.c.bf16 %v379_v44, %v375_v42  ;;  %v5342_v57 = vpack.c.bf16 %v381_v45, %v377_v43  ;;  %v4862_v38 = vld [vmem:[%s6136_s3 + $0x218] sm:$0xff]   ;;  %v4864_v40 = vld [vmem:[%s6136_s3 + $0x250] sm:$0xff]   ;;  %v4868_v44 = vld [vmem:[%s6136_s3 + $0x248] sm:$0xff]  }
  0xf4   :  { %v4863_v39 = vld [vmem:[%s6136_s3 + $0x298] sm:$0xff]   ;;  %v4865_v41 = vld [vmem:[%s6136_s3 + $0x2d0] sm:$0xff]   ;;  %v4869_v45 = vld [vmem:[%s6136_s3 + $0x2c8] sm:$0xff]  }
  0xf5   :  { %v5330_v52 = vpack.c.bf16 %v380_v48, %v376_v46  ;;  %v5332_v53 = vpack.c.bf16 %v382_v49, %v378_v47  ;;  %v4866_v42 = vld [vmem:[%s6136_s3 + $0x210] sm:$0xff]   ;;  %v4870_v46 = vld [vmem:[%s6136_s3 + $0x208] sm:$0xff]   ;;  %v4872_v48 = vld [vmem:[%s6136_s3 + $0x240] sm:$0xff]  }
  0xf6   :  { %v4867_v43 = vld [vmem:[%s6136_s3 + $0x290] sm:$0xff]   ;;  %v4871_v47 = vld [vmem:[%s6136_s3 + $0x288] sm:$0xff]   ;;  %v4873_v49 = vld [vmem:[%s6136_s3 + $0x2c0] sm:$0xff]  }
  0xf7   :  { %675 = vmatprep.mubr.bf16.mxu0 %v5330_v52  ;;  %716 = vmatprep.mubr.bf16.mxu1 %v5332_v53 }
  0xf8   :  { %676 = vmatmul.mubr.bf16.vlgmr.msra.gmra.mxu0 %v5340_v56  ;;  %717 = vmatmul.mubr.bf16.vlgmr.msra.gmra.mxu1 %v5342_v57 }
  0xf9   :  { %4365 = vmatpush3.bf16.msra.mxu0 %v4814_v50  ;;  %4387 = vmatpush3.bf16.msra.mxu1 %v4815_v51  ;;  %v4874_v50 = vld [vmem:[%s6136_s3 + $0x200] sm:$0xff]  }
  0xfa   :  { %1014 = vmatprep.mubr.bf16.mxu0 %v5330_v52  ;;  %1055 = vmatprep.mubr.bf16.mxu1 %v5332_v53  ;;  %v4875_v51 = vld [vmem:[%s6136_s3 + $0x280] sm:$0xff]  }
  0xfb   :  { %4366 = vmatprep.subr.bf16.mxu0 %v4816_v54  ;;  %4388 = vmatprep.subr.bf16.mxu1 %v4817_v55  ;;  %v4876_v54 = vld [vmem:[%s6136_s3 + $0x378] sm:$0xff]  }
  0xfc   :  { %v4877_v55 = vld [vmem:[%s6136_s3 + $0x3f8] sm:$0xff]  }
  0xfd   :  { %4367 = vmatpush3.bf16.msra.mxu0 %v4818_v58  ;;  %4389 = vmatpush3.bf16.msra.mxu1 %v4819_v59  ;;  %v4878_v58 = vld [vmem:[%s6136_s3 + $0x338] sm:$0xff]  }
  0xfe   :  { %4368 = vmatprep.subr.bf16.mxu0 %v4820_v60  ;;  %4390 = vmatprep.subr.bf16.mxu1 %v4821_v61  ;;  %v4879_v59 = vld [vmem:[%s6136_s3 + $0x3b8] sm:$0xff]   ;;  %v4880_v60 = vld [vmem:[%s6136_s3 + $0x370] sm:$0xff]  }
  0xff   :  { %v4881_v61 = vld [vmem:[%s6136_s3 + $0x3f0] sm:$0xff]  }
 0x101   :  { %4369 = vmatpush3.bf16.msra.mxu0 %v4822_v62  ;;  %4391 = vmatpush3.bf16.msra.mxu1 %v4823_v63  ;;  %v4882_v62 = vld [vmem:[%s6136_s3 + $0x330] sm:$0xff]  }
 0x102   :  { %4370 = vmatprep.subr.bf16.mxu0 %v4824_v0  ;;  %4392 = vmatprep.subr.bf16.mxu1 %v4825_v1  ;;  %v4883_v63 = vld [vmem:[%s6136_s3 + $0x3b0] sm:$0xff]   ;;  %v4884_v0 = vld [vmem:[%s6136_s3 + $0x368] sm:$0xff]  }
 0x103   :  { %v4885_v1 = vld [vmem:[%s6136_s3 + $0x3e8] sm:$0xff]  }
 0x105   :  { %4371 = vmatpush3.bf16.msra.mxu0 %v4826_v2  ;;  %4393 = vmatpush3.bf16.msra.mxu1 %v4827_v3  ;;  %v4886_v2 = vld [vmem:[%s6136_s3 + $0x328] sm:$0xff]  }
 0x106   :  { %4372 = vmatprep.subr.bf16.mxu0 %v4828_v4  ;;  %4394 = vmatprep.subr.bf16.mxu1 %v4829_v5  ;;  %v4887_v3 = vld [vmem:[%s6136_s3 + $0x3a8] sm:$0xff]   ;;  %v4888_v4 = vld [vmem:[%s6136_s3 + $0x360] sm:$0xff]  }
 0x107   :  { %v4889_v5 = vld [vmem:[%s6136_s3 + $0x3e0] sm:$0xff]  }
 0x109   :  { %4373 = vmatpush3.bf16.msra.mxu0 %v4830_v6  ;;  %4395 = vmatpush3.bf16.msra.mxu1 %v4831_v7  ;;  %v4890_v6 = vld [vmem:[%s6136_s3 + $0x320] sm:$0xff]  }
 0x10a   :  { %4374 = vmatprep.subr.bf16.mxu0 %v4832_v8  ;;  %4396 = vmatprep.subr.bf16.mxu1 %v4833_v9  ;;  %v4891_v7 = vld [vmem:[%s6136_s3 + $0x3a0] sm:$0xff]   ;;  %v4892_v8 = vld [vmem:[%s6136_s3 + $0x358] sm:$0xff]  }
 0x10b   :  { %v4893_v9 = vld [vmem:[%s6136_s3 + $0x3d8] sm:$0xff]  }
 0x10d   :  { %4375 = vmatpush3.bf16.msra.mxu0 %v4834_v10  ;;  %4397 = vmatpush3.bf16.msra.mxu1 %v4835_v11  ;;  %v4894_v10 = vld [vmem:[%s6136_s3 + $0x318] sm:$0xff]  }
 0x10e   :  { %4376 = vmatprep.subr.bf16.mxu0 %v4836_v12  ;;  %4398 = vmatprep.subr.bf16.mxu1 %v4837_v13  ;;  %v4895_v11 = vld [vmem:[%s6136_s3 + $0x398] sm:$0xff]   ;;  %v4896_v12 = vld [vmem:[%s6136_s3 + $0x350] sm:$0xff]  }
 0x10f   :  { %v4897_v13 = vld [vmem:[%s6136_s3 + $0x3d0] sm:$0xff]  }
 0x111   :  { %4377 = vmatpush3.bf16.msra.mxu0 %v4838_v14  ;;  %4399 = vmatpush3.bf16.msra.mxu1 %v4839_v15  ;;  %v4898_v14 = vld [vmem:[%s6136_s3 + $0x310] sm:$0xff]  }
 0x112   :  { %4378 = vmatprep.subr.bf16.mxu0 %v4840_v16  ;;  %4400 = vmatprep.subr.bf16.mxu1 %v4841_v17  ;;  %v4899_v15 = vld [vmem:[%s6136_s3 + $0x390] sm:$0xff]   ;;  %v4900_v16 = vld [vmem:[%s6136_s3 + $0x348] sm:$0xff]  }
 0x113   :  { %v4901_v17 = vld [vmem:[%s6136_s3 + $0x3c8] sm:$0xff]  }
 0x115   :  { %4379 = vmatpush3.bf16.msra.mxu0 %v4842_v18  ;;  %4401 = vmatpush3.bf16.msra.mxu1 %v4843_v19  ;;  %v4902_v18 = vld [vmem:[%s6136_s3 + $0x308] sm:$0xff]  }
 0x116   :  { %4408 = vmatprep.subr.bf16.mxu0 %v4844_v20  ;;  %4430 = vmatprep.subr.bf16.mxu1 %v4845_v21  ;;  %v4903_v19 = vld [vmem:[%s6136_s3 + $0x388] sm:$0xff]   ;;  %v4904_v20 = vld [vmem:[%s6136_s3 + $0x340] sm:$0xff]  }
 0x117   :  { %v4905_v21 = vld [vmem:[%s6136_s3 + $0x3c0] sm:$0xff]  }
 0x118   :  { %1015 = vmatmul.mubr.bf16.vlgmr.msra.gmra.mxu0 %v5340_v56  ;;  %1056 = vmatmul.mubr.bf16.vlgmr.msra.gmra.mxu1 %v5342_v57 }
 0x119   :  { %4409 = vmatpush3.bf16.msra.mxu0 %v4846_v22  ;;  %1355 = vmatprep.mubr.bf16.mxu0 %v5330_v52  ;;  %v4906_v22 = vld [vmem:[%s6136_s3 + $0x300] sm:$0xff]  }
 0x11a   :  { %4431 = vmatpush3.bf16.msra.mxu1 %v4847_v23  ;;  %1396 = vmatprep.mubr.bf16.mxu1 %v5332_v53  ;;  %v4907_v23 = vld [vmem:[%s6136_s3 + $0x380] sm:$0xff]  }
 0x11b   :  { %4410 = vmatprep.subr.bf16.mxu0 %v4848_v24  ;;  %4432 = vmatprep.subr.bf16.mxu1 %v4849_v25  ;;  %v4908_v24 = vld [vmem:[%s6136_s3 + $0x478] sm:$0xff]  }
 0x11c   :  { %v4909_v25 = vld [vmem:[%s6136_s3 + $0x4f8] sm:$0xff]  }
 0x11d   :  { %4411 = vmatpush3.bf16.msra.mxu0 %v4850_v26  ;;  %v4910_v26 = vld [vmem:[%s6136_s3 + $0x438] sm:$0xff]  }
 0x11e   :  { %4433 = vmatpush3.bf16.msra.mxu1 %v4851_v27  ;;  %4412 = vmatprep.subr.bf16.mxu0 %v4852_v28  ;;  %v4911_v27 = vld [vmem:[%s6136_s3 + $0x4b8] sm:$0xff]   ;;  %v4912_v28 = vld [vmem:[%s6136_s3 + $0x470] sm:$0xff]  }
 0x11f   :  { %4434 = vmatprep.subr.bf16.mxu1 %v4853_v29  ;;  %v4913_v29 = vld [vmem:[%s6136_s3 + $0x4f0] sm:$0xff]  }
 0x121   :  { %4413 = vmatpush3.bf16.msra.mxu0 %v4854_v30  ;;  %v4914_v30 = vld [vmem:[%s6136_s3 + $0x430] sm:$0xff]  }
 0x122   :  { %4435 = vmatpush3.bf16.msra.mxu1 %v4855_v31  ;;  %4414 = vmatprep.subr.bf16.mxu0 %v4856_v32  ;;  %v4915_v31 = vld [vmem:[%s6136_s3 + $0x4b0] sm:$0xff]   ;;  %v4916_v32 = vld [vmem:[%s6136_s3 + $0x468] sm:$0xff]  }
 0x123   :  { %4436 = vmatprep.subr.bf16.mxu1 %v4857_v33  ;;  %v4917_v33 = vld [vmem:[%s6136_s3 + $0x4e8] sm:$0xff]  }
 0x125   :  { %4415 = vmatpush3.bf16.msra.mxu0 %v4858_v34  ;;  %v4918_v34 = vld [vmem:[%s6136_s3 + $0x428] sm:$0xff]  }
 0x126   :  { %4437 = vmatpush3.bf16.msra.mxu1 %v4859_v35  ;;  %4416 = vmatprep.subr.bf16.mxu0 %v4860_v36  ;;  %v4919_v35 = vld [vmem:[%s6136_s3 + $0x4a8] sm:$0xff]   ;;  %v4920_v36 = vld [vmem:[%s6136_s3 + $0x460] sm:$0xff]  }
 0x127   :  { %4438 = vmatprep.subr.bf16.mxu1 %v4861_v37  ;;  %v4921_v37 = vld [vmem:[%s6136_s3 + $0x4e0] sm:$0xff]  }
 0x129   :  { %4417 = vmatpush3.bf16.msra.mxu0 %v4862_v38  ;;  %v4922_v38 = vld [vmem:[%s6136_s3 + $0x420] sm:$0xff]  }
 0x12a   :  { %4439 = vmatpush3.bf16.msra.mxu1 %v4863_v39  ;;  %4418 = vmatprep.subr.bf16.mxu0 %v4864_v40  ;;  %v4923_v39 = vld [vmem:[%s6136_s3 + $0x4a0] sm:$0xff]   ;;  %v4924_v40 = vld [vmem:[%s6136_s3 + $0x458] sm:$0xff]  }
 0x12b   :  { %4440 = vmatprep.subr.bf16.mxu1 %v4865_v41  ;;  %v4925_v41 = vld [vmem:[%s6136_s3 + $0x4d8] sm:$0xff]  }
 0x12d   :  { %4419 = vmatpush3.bf16.msra.mxu0 %v4866_v42  ;;  %v4926_v42 = vld [vmem:[%s6136_s3 + $0x418] sm:$0xff]  }
 0x12e   :  { %4441 = vmatpush3.bf16.msra.mxu1 %v4867_v43  ;;  %4420 = vmatprep.subr.bf16.mxu0 %v4868_v44  ;;  %v4927_v43 = vld [vmem:[%s6136_s3 + $0x498] sm:$0xff]   ;;  %v4928_v44 = vld [vmem:[%s6136_s3 + $0x450] sm:$0xff]  }
 0x12f   :  { %4442 = vmatprep.subr.bf16.mxu1 %v4869_v45  ;;  %v4929_v45 = vld [vmem:[%s6136_s3 + $0x4d0] sm:$0xff]  }
 0x131   :  { %4421 = vmatpush3.bf16.msra.mxu0 %v4870_v46  ;;  %v4930_v46 = vld [vmem:[%s6136_s3 + $0x410] sm:$0xff]  }
 0x132   :  { %4443 = vmatpush3.bf16.msra.mxu1 %v4871_v47  ;;  %4422 = vmatprep.subr.bf16.mxu0 %v4872_v48  ;;  %v4931_v47 = vld [vmem:[%s6136_s3 + $0x490] sm:$0xff]   ;;  %v4932_v48 = vld [vmem:[%s6136_s3 + $0x448] sm:$0xff]  }
 0x133   :  { %4444 = vmatprep.subr.bf16.mxu1 %v4873_v49  ;;  %v4933_v49 = vld [vmem:[%s6136_s3 + $0x4c8] sm:$0xff]  }
 0x135   :  { %4423 = vmatpush3.bf16.msra.mxu0 %v4874_v50  ;;  %v4934_v50 = vld [vmem:[%s6136_s3 + $0x408] sm:$0xff]  }
 0x136   :  { %4445 = vmatpush3.bf16.msra.mxu1 %v4875_v51  ;;  %4452 = vmatprep.subr.bf16.mxu0 %v4876_v54  ;;  %v4935_v51 = vld [vmem:[%s6136_s3 + $0x488] sm:$0xff]   ;;  %v4936_v54 = vld [vmem:[%s6136_s3 + $0x440] sm:$0xff]  }
 0x137   :  { %4474 = vmatprep.subr.bf16.mxu1 %v4877_v55  ;;  %v4937_v55 = vld [vmem:[%s6136_s3 + $0x4c0] sm:$0xff]  }
 0x138   :  { %1356 = vmatmul.mubr.bf16.vlgmr.msra.gmra.mxu0 %v5340_v56 }
 0x139   :  { %1397 = vmatmul.mubr.bf16.vlgmr.msra.gmra.mxu1 %v5342_v57  ;;  %4453 = vmatpush3.bf16.msra.mxu0 %v4878_v58  ;;  %v4938_v58 = vld [vmem:[%s6136_s3 + $0x400] sm:$0xff]  }
 0x13a   :  { %1696 = vmatprep.mubr.bf16.mxu0 %v5330_v52  ;;  %4475 = vmatpush3.bf16.msra.mxu1 %v4879_v59  ;;  %v4939_v59 = vld [vmem:[%s6136_s3 + $0x480] sm:$0xff]  }
 0x13b   :  { %1737 = vmatprep.mubr.bf16.mxu1 %v5332_v53  ;;  %4454 = vmatprep.subr.bf16.mxu0 %v4880_v60  ;;  %v4940_v60 = vld [vmem:[%s6136_s3 + $0x578] sm:$0xff]  }
 0x13c   :  { %4476 = vmatprep.subr.bf16.mxu1 %v4881_v61  ;;  %v4941_v61 = vld [vmem:[%s6136_s3 + $0x5f8] sm:$0xff]  }
 0x13d   :  { %4455 = vmatpush3.bf16.msra.mxu0 %v4882_v62  ;;  %v4942_v62 = vld [vmem:[%s6136_s3 + $0x538] sm:$0xff]  }
 0x13e   :  { %4477 = vmatpush3.bf16.msra.mxu1 %v4883_v63  ;;  %4456 = vmatprep.subr.bf16.mxu0 %v4884_v0  ;;  %v4943_v63 = vld [vmem:[%s6136_s3 + $0x5b8] sm:$0xff]   ;;  %v4944_v0 = vld [vmem:[%s6136_s3 + $0x570] sm:$0xff]  }
 0x13f   :  { %4478 = vmatprep.subr.bf16.mxu1 %v4885_v1  ;;  %v4945_v1 = vld [vmem:[%s6136_s3 + $0x5f0] sm:$0xff]  }
 0x141   :  { %4457 = vmatpush3.bf16.msra.mxu0 %v4886_v2  ;;  %v4946_v2 = vld [vmem:[%s6136_s3 + $0x530] sm:$0xff]  }
 0x142   :  { %4479 = vmatpush3.bf16.msra.mxu1 %v4887_v3  ;;  %4458 = vmatprep.subr.bf16.mxu0 %v4888_v4  ;;  %v4947_v3 = vld [vmem:[%s6136_s3 + $0x5b0] sm:$0xff]   ;;  %v4948_v4 = vld [vmem:[%s6136_s3 + $0x568] sm:$0xff]  }
 0x143   :  { %4480 = vmatprep.subr.bf16.mxu1 %v4889_v5  ;;  %v4949_v5 = vld [vmem:[%s6136_s3 + $0x5e8] sm:$0xff]  }
 0x145   :  { %4459 = vmatpush3.bf16.msra.mxu0 %v4890_v6  ;;  %v4950_v6 = vld [vmem:[%s6136_s3 + $0x528] sm:$0xff]  }
 0x146   :  { %4481 = vmatpush3.bf16.msra.mxu1 %v4891_v7  ;;  %4460 = vmatprep.subr.bf16.mxu0 %v4892_v8  ;;  %v4951_v7 = vld [vmem:[%s6136_s3 + $0x5a8] sm:$0xff]   ;;  %v4952_v8 = vld [vmem:[%s6136_s3 + $0x560] sm:$0xff]  }
 0x147   :  { %4482 = vmatprep.subr.bf16.mxu1 %v4893_v9  ;;  %v4953_v9 = vld [vmem:[%s6136_s3 + $0x5e0] sm:$0xff]  }
 0x149   :  { %4461 = vmatpush3.bf16.msra.mxu0 %v4894_v10  ;;  %v4954_v10 = vld [vmem:[%s6136_s3 + $0x520] sm:$0xff]  }
 0x14a   :  { %4483 = vmatpush3.bf16.msra.mxu1 %v4895_v11  ;;  %4462 = vmatprep.subr.bf16.mxu0 %v4896_v12  ;;  %v4955_v11 = vld [vmem:[%s6136_s3 + $0x5a0] sm:$0xff]   ;;  %v4956_v12 = vld [vmem:[%s6136_s3 + $0x558] sm:$0xff]  }
 0x14b   :  { %4484 = vmatprep.subr.bf16.mxu1 %v4897_v13  ;;  %v4957_v13 = vld [vmem:[%s6136_s3 + $0x5d8] sm:$0xff]  }
 0x14d   :  { %4463 = vmatpush3.bf16.msra.mxu0 %v4898_v14  ;;  %v4958_v14 = vld [vmem:[%s6136_s3 + $0x518] sm:$0xff]  }
 0x14e   :  { %4485 = vmatpush3.bf16.msra.mxu1 %v4899_v15  ;;  %4464 = vmatprep.subr.bf16.mxu0 %v4900_v16  ;;  %v4959_v15 = vld [vmem:[%s6136_s3 + $0x598] sm:$0xff]   ;;  %v4960_v16 = vld [vmem:[%s6136_s3 + $0x550] sm:$0xff]  }
 0x14f   :  { %4486 = vmatprep.subr.bf16.mxu1 %v4901_v17  ;;  %v4961_v17 = vld [vmem:[%s6136_s3 + $0x5d0] sm:$0xff]  }
 0x151   :  { %4465 = vmatpush3.bf16.msra.mxu0 %v4902_v18  ;;  %v4962_v18 = vld [vmem:[%s6136_s3 + $0x510] sm:$0xff]  }
 0x152   :  { %4487 = vmatpush3.bf16.msra.mxu1 %v4903_v19  ;;  %4466 = vmatprep.subr.bf16.mxu0 %v4904_v20  ;;  %v4963_v19 = vld [vmem:[%s6136_s3 + $0x590] sm:$0xff]   ;;  %v4964_v20 = vld [vmem:[%s6136_s3 + $0x548] sm:$0xff]  }
 0x153   :  { %4488 = vmatprep.subr.bf16.mxu1 %v4905_v21  ;;  %v4965_v21 = vld [vmem:[%s6136_s3 + $0x5c8] sm:$0xff]  }
 0x155   :  { %4467 = vmatpush3.bf16.msra.mxu0 %v4906_v22  ;;  %v4966_v22 = vld [vmem:[%s6136_s3 + $0x508] sm:$0xff]  }
 0x156   :  { %4489 = vmatpush3.bf16.msra.mxu1 %v4907_v23  ;;  %4496 = vmatprep.subr.bf16.mxu0 %v4908_v24  ;;  %v4967_v23 = vld [vmem:[%s6136_s3 + $0x588] sm:$0xff]   ;;  %v4968_v24 = vld [vmem:[%s6136_s3 + $0x540] sm:$0xff]  }
 0x157   :  { %4518 = vmatprep.subr.bf16.mxu1 %v4909_v25  ;;  %v4969_v25 = vld [vmem:[%s6136_s3 + $0x5c0] sm:$0xff]  }
 0x158   :  { %1697 = vmatmul.mubr.bf16.vlgmr.msra.gmra.mxu0 %v5340_v56 }
 0x159   :  { %1738 = vmatmul.mubr.bf16.vlgmr.msra.gmra.mxu1 %v5342_v57  ;;  %4497 = vmatpush3.bf16.msra.mxu0 %v4910_v26  ;;  %v4970_v26 = vld [vmem:[%s6136_s3 + $0x500] sm:$0xff]  }
 0x15a   :  { %2037 = vmatprep.mubr.bf16.mxu0 %v5330_v52  ;;  %4519 = vmatpush3.bf16.msra.mxu1 %v4911_v27  ;;  %v4971_v27 = vld [vmem:[%s6136_s3 + $0x580] sm:$0xff]  }
 0x15b   :  { %2078 = vmatprep.mubr.bf16.mxu1 %v5332_v53  ;;  %4498 = vmatprep.subr.bf16.mxu0 %v4912_v28  ;;  %v4972_v28 = vld [vmem:[%s6136_s3 + $0x678] sm:$0xff]  }
 0x15c   :  { %4520 = vmatprep.subr.bf16.mxu1 %v4913_v29  ;;  %v4973_v29 = vld [vmem:[%s6136_s3 + $0x6f8] sm:$0xff]  }
 0x15d   :  { %4499 = vmatpush3.bf16.msra.mxu0 %v4914_v30  ;;  %v4974_v30 = vld [vmem:[%s6136_s3 + $0x638] sm:$0xff]  }
 0x15e   :  { %4521 = vmatpush3.bf16.msra.mxu1 %v4915_v31  ;;  %4500 = vmatprep.subr.bf16.mxu0 %v4916_v32  ;;  %v4975_v31 = vld [vmem:[%s6136_s3 + $0x6b8] sm:$0xff]   ;;  %v4976_v32 = vld [vmem:[%s6136_s3 + $0x670] sm:$0xff]  }
 0x15f   :  { %4522 = vmatprep.subr.bf16.mxu1 %v4917_v33  ;;  %v4977_v33 = vld [vmem:[%s6136_s3 + $0x6f0] sm:$0xff]  }
 0x161   :  { %4501 = vmatpush3.bf16.msra.mxu0 %v4918_v34  ;;  %v4978_v34 = vld [vmem:[%s6136_s3 + $0x630] sm:$0xff]  }
 0x162   :  { %4523 = vmatpush3.bf16.msra.mxu1 %v4919_v35  ;;  %4502 = vmatprep.subr.bf16.mxu0 %v4920_v36  ;;  %v4979_v35 = vld [vmem:[%s6136_s3 + $0x6b0] sm:$0xff]   ;;  %v4980_v36 = vld [vmem:[%s6136_s3 + $0x668] sm:$0xff]  }
 0x163   :  { %4524 = vmatprep.subr.bf16.mxu1 %v4921_v37  ;;  %v4981_v37 = vld [vmem:[%s6136_s3 + $0x6e8] sm:$0xff]  }
 0x165   :  { %4503 = vmatpush3.bf16.msra.mxu0 %v4922_v38  ;;  %v4982_v38 = vld [vmem:[%s6136_s3 + $0x628] sm:$0xff]  }
 0x166   :  { %4525 = vmatpush3.bf16.msra.mxu1 %v4923_v39  ;;  %4504 = vmatprep.subr.bf16.mxu0 %v4924_v40  ;;  %v4983_v39 = vld [vmem:[%s6136_s3 + $0x6a8] sm:$0xff]   ;;  %v4984_v40 = vld [vmem:[%s6136_s3 + $0x660] sm:$0xff]  }
 0x167   :  { %4526 = vmatprep.subr.bf16.mxu1 %v4925_v41  ;;  %v4985_v41 = vld [vmem:[%s6136_s3 + $0x6e0] sm:$0xff]  }
 0x169   :  { %4505 = vmatpush3.bf16.msra.mxu0 %v4926_v42  ;;  %v4986_v42 = vld [vmem:[%s6136_s3 + $0x620] sm:$0xff]  }
 0x16a   :  { %4527 = vmatpush3.bf16.msra.mxu1 %v4927_v43  ;;  %4506 = vmatprep.subr.bf16.mxu0 %v4928_v44  ;;  %v4987_v43 = vld [vmem:[%s6136_s3 + $0x6a0] sm:$0xff]   ;;  %v4988_v44 = vld [vmem:[%s6136_s3 + $0x658] sm:$0xff]  }
 0x16b   :  { %4528 = vmatprep.subr.bf16.mxu1 %v4929_v45  ;;  %v4989_v45 = vld [vmem:[%s6136_s3 + $0x6d8] sm:$0xff]  }
 0x16d   :  { %4507 = vmatpush3.bf16.msra.mxu0 %v4930_v46  ;;  %v4990_v46 = vld [vmem:[%s6136_s3 + $0x618] sm:$0xff]  }
 0x16e   :  { %4529 = vmatpush3.bf16.msra.mxu1 %v4931_v47  ;;  %4508 = vmatprep.subr.bf16.mxu0 %v4932_v48  ;;  %v4991_v47 = vld [vmem:[%s6136_s3 + $0x698] sm:$0xff]   ;;  %v4992_v48 = vld [vmem:[%s6136_s3 + $0x650] sm:$0xff]  }
 0x16f   :  { %4530 = vmatprep.subr.bf16.mxu1 %v4933_v49  ;;  %v4993_v49 = vld [vmem:[%s6136_s3 + $0x6d0] sm:$0xff]  }
 0x171   :  { %4509 = vmatpush3.bf16.msra.mxu0 %v4934_v50  ;;  %v4994_v50 = vld [vmem:[%s6136_s3 + $0x610] sm:$0xff]  }
 0x172   :  { %4531 = vmatpush3.bf16.msra.mxu1 %v4935_v51  ;;  %4510 = vmatprep.subr.bf16.mxu0 %v4936_v54  ;;  %v4995_v51 = vld [vmem:[%s6136_s3 + $0x690] sm:$0xff]   ;;  %v4996_v54 = vld [vmem:[%s6136_s3 + $0x648] sm:$0xff]  }
 0x173   :  { %4532 = vmatprep.subr.bf16.mxu1 %v4937_v55  ;;  %v4997_v55 = vld [vmem:[%s6136_s3 + $0x6c8] sm:$0xff]  }
 0x175   :  { %4511 = vmatpush3.bf16.msra.mxu0 %v4938_v58  ;;  %v4998_v58 = vld [vmem:[%s6136_s3 + $0x608] sm:$0xff]  }
 0x176   :  { %4533 = vmatpush3.bf16.msra.mxu1 %v4939_v59  ;;  %4540 = vmatprep.subr.bf16.mxu0 %v4940_v60  ;;  %v4999_v59 = vld [vmem:[%s6136_s3 + $0x688] sm:$0xff]   ;;  %v5000_v60 = vld [vmem:[%s6136_s3 + $0x640] sm:$0xff]  }
 0x177   :  { %4562 = vmatprep.subr.bf16.mxu1 %v4941_v61  ;;  %v5001_v61 = vld [vmem:[%s6136_s3 + $0x6c0] sm:$0xff]  }
 0x178   :  { %2038 = vmatmul.mubr.bf16.vlgmr.msra.gmra.mxu0 %v5340_v56 }
 0x179   :  { %2079 = vmatmul.mubr.bf16.vlgmr.msra.gmra.mxu1 %v5342_v57  ;;  %4541 = vmatpush3.bf16.msra.mxu0 %v4942_v62  ;;  %v5002_v62 = vld [vmem:[%s6136_s3 + $0x600] sm:$0xff]  }
 0x17a   :  { %2378 = vmatprep.mubr.bf16.mxu0 %v5330_v52  ;;  %4563 = vmatpush3.bf16.msra.mxu1 %v4943_v63  ;;  %v5003_v63 = vld [vmem:[%s6136_s3 + $0x680] sm:$0xff]  }
 0x17b   :  { %2419 = vmatprep.mubr.bf16.mxu1 %v5332_v53  ;;  %4542 = vmatprep.subr.bf16.mxu0 %v4944_v0  ;;  %v5004_v0 = vld [vmem:[%s6136_s3 + $0x778] sm:$0xff]  }
 0x17c   :  { %4564 = vmatprep.subr.bf16.mxu1 %v4945_v1  ;;  %v5005_v1 = vld [vmem:[%s6136_s3 + $0x7f8] sm:$0xff]  }
 0x17d   :  { %4543 = vmatpush3.bf16.msra.mxu0 %v4946_v2  ;;  %v5006_v2 = vld [vmem:[%s6136_s3 + $0x738] sm:$0xff]  }
 0x17e   :  { %4565 = vmatpush3.bf16.msra.mxu1 %v4947_v3  ;;  %4544 = vmatprep.subr.bf16.mxu0 %v4948_v4  ;;  %v5007_v3 = vld [vmem:[%s6136_s3 + $0x7b8] sm:$0xff]   ;;  %v5008_v4 = vld [vmem:[%s6136_s3 + $0x770] sm:$0xff]  }
 0x17f   :  { %4566 = vmatprep.subr.bf16.mxu1 %v4949_v5  ;;  %v5009_v5 = vld [vmem:[%s6136_s3 + $0x7f0] sm:$0xff]  }
 0x181   :  { %4545 = vmatpush3.bf16.msra.mxu0 %v4950_v6  ;;  %v5010_v6 = vld [vmem:[%s6136_s3 + $0x730] sm:$0xff]  }
 0x182   :  { %4567 = vmatpush3.bf16.msra.mxu1 %v4951_v7  ;;  %4546 = vmatprep.subr.bf16.mxu0 %v4952_v8  ;;  %v5011_v7 = vld [vmem:[%s6136_s3 + $0x7b0] sm:$0xff]   ;;  %v5012_v8 = vld [vmem:[%s6136_s3 + $0x768] sm:$0xff]  }
 0x183   :  { %4568 = vmatprep.subr.bf16.mxu1 %v4953_v9  ;;  %v5013_v9 = vld [vmem:[%s6136_s3 + $0x7e8] sm:$0xff]  }
 0x185   :  { %4547 = vmatpush3.bf16.msra.mxu0 %v4954_v10  ;;  %v5014_v10 = vld [vmem:[%s6136_s3 + $0x728] sm:$0xff]  }
 0x186   :  { %4569 = vmatpush3.bf16.msra.mxu1 %v4955_v11  ;;  %4548 = vmatprep.subr.bf16.mxu0 %v4956_v12  ;;  %v5015_v11 = vld [vmem:[%s6136_s3 + $0x7a8] sm:$0xff]   ;;  %v5016_v12 = vld [vmem:[%s6136_s3 + $0x760] sm:$0xff]  }
 0x187   :  { %4570 = vmatprep.subr.bf16.mxu1 %v4957_v13  ;;  %v5017_v13 = vld [vmem:[%s6136_s3 + $0x7e0] sm:$0xff]  }
 0x189   :  { %4549 = vmatpush3.bf16.msra.mxu0 %v4958_v14  ;;  %v5018_v14 = vld [vmem:[%s6136_s3 + $0x720] sm:$0xff]  }
 0x18a   :  { %4571 = vmatpush3.bf16.msra.mxu1 %v4959_v15  ;;  %4550 = vmatprep.subr.bf16.mxu0 %v4960_v16  ;;  %v5019_v15 = vld [vmem:[%s6136_s3 + $0x7a0] sm:$0xff]   ;;  %v5020_v16 = vld [vmem:[%s6136_s3 + $0x758] sm:$0xff]  }
 0x18b   :  { %4572 = vmatprep.subr.bf16.mxu1 %v4961_v17  ;;  %v5021_v17 = vld [vmem:[%s6136_s3 + $0x7d8] sm:$0xff]  }
 0x18d   :  { %4551 = vmatpush3.bf16.msra.mxu0 %v4962_v18  ;;  %v5022_v18 = vld [vmem:[%s6136_s3 + $0x718] sm:$0xff]  }
 0x18e   :  { %4573 = vmatpush3.bf16.msra.mxu1 %v4963_v19  ;;  %4552 = vmatprep.subr.bf16.mxu0 %v4964_v20  ;;  %v5023_v19 = vld [vmem:[%s6136_s3 + $0x798] sm:$0xff]   ;;  %v5024_v20 = vld [vmem:[%s6136_s3 + $0x750] sm:$0xff]  }
 0x18f   :  { %4574 = vmatprep.subr.bf16.mxu1 %v4965_v21  ;;  %v5025_v21 = vld [vmem:[%s6136_s3 + $0x7d0] sm:$0xff]  }
 0x191   :  { %4553 = vmatpush3.bf16.msra.mxu0 %v4966_v22  ;;  %v5026_v22 = vld [vmem:[%s6136_s3 + $0x710] sm:$0xff]  }
 0x192   :  { %4575 = vmatpush3.bf16.msra.mxu1 %v4967_v23  ;;  %4554 = vmatprep.subr.bf16.mxu0 %v4968_v24  ;;  %v5027_v23 = vld [vmem:[%s6136_s3 + $0x790] sm:$0xff]   ;;  %v5028_v24 = vld [vmem:[%s6136_s3 + $0x748] sm:$0xff]  }
 0x193   :  { %4576 = vmatprep.subr.bf16.mxu1 %v4969_v25  ;;  %v5029_v25 = vld [vmem:[%s6136_s3 + $0x7c8] sm:$0xff]  }
 0x195   :  { %4555 = vmatpush3.bf16.msra.mxu0 %v4970_v26  ;;  %v5030_v26 = vld [vmem:[%s6136_s3 + $0x708] sm:$0xff]  }
 0x196   :  { %4577 = vmatpush3.bf16.msra.mxu1 %v4971_v27  ;;  %4584 = vmatprep.subr.bf16.mxu0 %v4972_v28  ;;  %v5031_v27 = vld [vmem:[%s6136_s3 + $0x788] sm:$0xff]   ;;  %v5032_v28 = vld [vmem:[%s6136_s3 + $0x740] sm:$0xff]  }
 0x197   :  { %4606 = vmatprep.subr.bf16.mxu1 %v4973_v29  ;;  %v5033_v29 = vld [vmem:[%s6136_s3 + $0x7c0] sm:$0xff]  }
 0x198   :  { %2379 = vmatmul.mubr.bf16.vlgmr.msra.gmra.mxu0 %v5340_v56 }
 0x199   :  { %2420 = vmatmul.mubr.bf16.vlgmr.msra.gmra.mxu1 %v5342_v57  ;;  %4585 = vmatpush3.bf16.msra.mxu0 %v4974_v30  ;;  %v5034_v30 = vld [vmem:[%s6136_s3 + $0x700] sm:$0xff]  }
 0x19a   :  { %2719 = vmatprep.mubr.bf16.mxu0 %v5330_v52  ;;  %4607 = vmatpush3.bf16.msra.mxu1 %v4975_v31  ;;  %v5035_v31 = vld [vmem:[%s6136_s3 + $0x780] sm:$0xff]  }
 0x19b   :  { %2760 = vmatprep.mubr.bf16.mxu1 %v5332_v53  ;;  %4586 = vmatprep.subr.bf16.mxu0 %v4976_v32  ;;  %v5036_v32 = vld [vmem:[%s6136_s3 + $0x878] sm:$0xff]  }
 0x19c   :  { %4608 = vmatprep.subr.bf16.mxu1 %v4977_v33  ;;  %v5037_v33 = vld [vmem:[%s6136_s3 + $0x8f8] sm:$0xff]  }
 0x19d   :  { %4587 = vmatpush3.bf16.msra.mxu0 %v4978_v34  ;;  %v5038_v34 = vld [vmem:[%s6136_s3 + $0x838] sm:$0xff]  }
 0x19e   :  { %4609 = vmatpush3.bf16.msra.mxu1 %v4979_v35  ;;  %4588 = vmatprep.subr.bf16.mxu0 %v4980_v36  ;;  %v5039_v35 = vld [vmem:[%s6136_s3 + $0x8b8] sm:$0xff]   ;;  %v5040_v36 = vld [vmem:[%s6136_s3 + $0x870] sm:$0xff]  }
 0x19f   :  { %4610 = vmatprep.subr.bf16.mxu1 %v4981_v37  ;;  %v5041_v37 = vld [vmem:[%s6136_s3 + $0x8f0] sm:$0xff]  }
 0x1a1   :  { %4589 = vmatpush3.bf16.msra.mxu0 %v4982_v38  ;;  %v5042_v38 = vld [vmem:[%s6136_s3 + $0x830] sm:$0xff]  }
 0x1a2   :  { %4611 = vmatpush3.bf16.msra.mxu1 %v4983_v39  ;;  %4590 = vmatprep.subr.bf16.mxu0 %v4984_v40  ;;  %v5043_v39 = vld [vmem:[%s6136_s3 + $0x8b0] sm:$0xff]   ;;  %v5044_v40 = vld [vmem:[%s6136_s3 + $0x868] sm:$0xff]  }
 0x1a3   :  { %4612 = vmatprep.subr.bf16.mxu1 %v4985_v41  ;;  %v5045_v41 = vld [vmem:[%s6136_s3 + $0x8e8] sm:$0xff]  }
 0x1a5   :  { %4591 = vmatpush3.bf16.msra.mxu0 %v4986_v42  ;;  %v5047_v42 = vld [vmem:[%s6136_s3 + $0x8a8] sm:$0xff]  }
 0x1a6   :  { %4613 = vmatpush3.bf16.msra.mxu1 %v4987_v43  ;;  %4592 = vmatprep.subr.bf16.mxu0 %v4988_v44  ;;  %v5049_v43 = vld [vmem:[%s6136_s3 + $0x8e0] sm:$0xff]  }
 0x1a7   :  { %4614 = vmatprep.subr.bf16.mxu1 %v4989_v45  ;;  %v5050_v44 = vld [vmem:[%s6136_s3 + $0x820] sm:$0xff]  }
 0x1a8   :  { %v5051_v45 = vld [vmem:[%s6136_s3 + $0x8a0] sm:$0xff]  }
 0x1a9   :  { %4593 = vmatpush3.bf16.msra.mxu0 %v4990_v46  ;;  %v5052_v46 = vld [vmem:[%s6136_s3 + $0x858] sm:$0xff]  }
 0x1aa   :  { %4615 = vmatpush3.bf16.msra.mxu1 %v4991_v47  ;;  %4594 = vmatprep.subr.bf16.mxu0 %v4992_v48  ;;  %v5053_v47 = vld [vmem:[%s6136_s3 + $0x8d8] sm:$0xff]  }
 0x1ab   :  { %4616 = vmatprep.subr.bf16.mxu1 %v4993_v49  ;;  %v5054_v48 = vld [vmem:[%s6136_s3 + $0x818] sm:$0xff]  }
 0x1ac   :  { %v5055_v49 = vld [vmem:[%s6136_s3 + $0x898] sm:$0xff]  }
 0x1ad   :  { %4595 = vmatpush3.bf16.msra.mxu0 %v4994_v50  ;;  %v5056_v50 = vld [vmem:[%s6136_s3 + $0x850] sm:$0xff]  }
 0x1ae   :  { %4617 = vmatpush3.bf16.msra.mxu1 %v4995_v51  ;;  %4596 = vmatprep.subr.bf16.mxu0 %v4996_v54  ;;  %v5057_v51 = vld [vmem:[%s6136_s3 + $0x8d0] sm:$0xff]  }
 0x1af   :  { %4618 = vmatprep.subr.bf16.mxu1 %v4997_v55  ;;  %v5058_v54 = vld [vmem:[%s6136_s3 + $0x810] sm:$0xff]  }
 0x1b0   :  { %v5059_v55 = vld [vmem:[%s6136_s3 + $0x890] sm:$0xff]  }
 0x1b1   :  { %4597 = vmatpush3.bf16.msra.mxu0 %v4998_v58  ;;  %v5060_v58 = vld [vmem:[%s6136_s3 + $0x848] sm:$0xff]  }
 0x1b2   :  { %4619 = vmatpush3.bf16.msra.mxu1 %v4999_v59  ;;  %4598 = vmatprep.subr.bf16.mxu0 %v5000_v60  ;;  %v5061_v59 = vld [vmem:[%s6136_s3 + $0x8c8] sm:$0xff]  }
 0x1b3   :  { %4620 = vmatprep.subr.bf16.mxu1 %v5001_v61  ;;  %v5062_v60 = vld [vmem:[%s6136_s3 + $0x808] sm:$0xff]  }
 0x1b4   :  { %v5063_v61 = vld [vmem:[%s6136_s3 + $0x888] sm:$0xff]  }
 0x1b5   :  { %4599 = vmatpush3.bf16.msra.mxu0 %v5002_v62  ;;  %v5064_v62 = vld [vmem:[%s6136_s3 + $0x840] sm:$0xff]  }
 0x1b6   :  { %4621 = vmatpush3.bf16.msra.mxu1 %v5003_v63  ;;  %4628 = vmatprep.subr.bf16.mxu0 %v5004_v0  ;;  %v5065_v63 = vld [vmem:[%s6136_s3 + $0x8c0] sm:$0xff]  }
 0x1b7   :  { %4650 = vmatprep.subr.bf16.mxu1 %v5005_v1  ;;  %v5066_v0 = vld [vmem:[%s6136_s3 + $0x800] sm:$0xff]  }
 0x1b8   :  { %2720 = vmatmul.mubr.bf16.vlgmr.msra.gmra.mxu0 %v5340_v56  ;;  %v5067_v1 = vld [vmem:[%s6136_s3 + $0x880] sm:$0xff]  }
 0x1b9   :  { %2761 = vmatmul.mubr.bf16.vlgmr.msra.gmra.mxu1 %v5342_v57  ;;  %4629 = vmatpush3.bf16.msra.mxu0 %v5006_v2  ;;  %v4336_v2 = vpop.f32.mrf.mxu0 }
 0x1ba   :  { %3060 = vmatprep.mubr.bf16.mxu0 %v5330_v52  ;;  %4651 = vmatpush3.bf16.msra.mxu1 %v5007_v3  ;;  %v4358_v3 = vpop.f32.mrf.mxu1 }
 0x1bb   :  { %3101 = vmatprep.mubr.bf16.mxu1 %v5332_v53  ;;  %4630 = vmatprep.subr.bf16.mxu0 %v5008_v4  ;;  %v4337_v4 = vpop.f32.mrf.mxu0 }
 0x1bc   :  { %4652 = vmatprep.subr.bf16.mxu1 %v5009_v5  ;;  %v4359_v5 = vpop.f32.mrf.mxu1 }
 0x1bd   :  { %4631 = vmatpush3.bf16.msra.mxu0 %v5010_v6  ;;  %v4339_v6 = vpop.f32.mrf.mxu0 }
 0x1be   :  { %4653 = vmatpush3.bf16.msra.mxu1 %v5011_v7  ;;  %4632 = vmatprep.subr.bf16.mxu0 %v5012_v8  ;;  %v4361_v7 = vpop.f32.mrf.mxu1 }
 0x1bf   :  { %4654 = vmatprep.subr.bf16.mxu1 %v5013_v9  ;;  %v4340_v8 = vpop.f32.mrf.mxu0 }
 0x1c0   :  { %v4362_v9 = vpop.f32.mrf.mxu1 }
 0x1c1   :  { %4633 = vmatpush3.bf16.msra.mxu0 %v5014_v10 }
 0x1c2   :  { %4655 = vmatpush3.bf16.msra.mxu1 %v5015_v11  ;;  %4634 = vmatprep.subr.bf16.mxu0 %v5016_v12 }
 0x1c3   :  { %4656 = vmatprep.subr.bf16.mxu1 %v5017_v13 }
 0x1c5   :  { %4635 = vmatpush3.bf16.msra.mxu0 %v5018_v14 }
 0x1c6   :  { %4657 = vmatpush3.bf16.msra.mxu1 %v5019_v15  ;;  %4636 = vmatprep.subr.bf16.mxu0 %v5020_v16 }
 0x1c7   :  { %4658 = vmatprep.subr.bf16.mxu1 %v5021_v17 }
 0x1c9   :  { %4637 = vmatpush3.bf16.msra.mxu0 %v5022_v18 }
 0x1ca   :  { %4659 = vmatpush3.bf16.msra.mxu1 %v5023_v19  ;;  %4638 = vmatprep.subr.bf16.mxu0 %v5024_v20 }
 0x1cb   :  { %4660 = vmatprep.subr.bf16.mxu1 %v5025_v21 }
 0x1cd   :  { %4639 = vmatpush3.bf16.msra.mxu0 %v5026_v22 }
 0x1ce   :  { %4661 = vmatpush3.bf16.msra.mxu1 %v5027_v23  ;;  %4640 = vmatprep.subr.bf16.mxu0 %v5028_v24 }
 0x1cf   :  { %4662 = vmatprep.subr.bf16.mxu1 %v5029_v25 }
 0x1d1   :  { %4641 = vmatpush3.bf16.msra.mxu0 %v5030_v26 }
 0x1d2   :  { %4663 = vmatpush3.bf16.msra.mxu1 %v5031_v27  ;;  %4642 = vmatprep.subr.bf16.mxu0 %v5032_v28 }
 0x1d3   :  { %4664 = vmatprep.subr.bf16.mxu1 %v5033_v29 }
 0x1d5   :  { %4643 = vmatpush3.bf16.msra.mxu0 %v5034_v30 }
 0x1d6   :  { %4665 = vmatpush3.bf16.msra.mxu1 %v5035_v31  ;;  %4672 = vmatprep.subr.bf16.mxu0 %v5036_v32 }
 0x1d7   :  { %4694 = vmatprep.subr.bf16.mxu1 %v5037_v33 }
 0x1d8   :  { %3061 = vmatmul.mubr.bf16.vlgmr.msra.gmra.mxu0 %v5340_v56  ;;  %v4380_v10 = vpop.f32.mrf.mxu0  ;;  %v4402_v11 = vpop.f32.mrf.mxu1 }
 0x1d9   :  { %3102 = vmatmul.mubr.bf16.vlgmr.msra.gmra.mxu1 %v5342_v57  ;;  %4673 = vmatpush3.bf16.msra.mxu0 %v5038_v34 }
 0x1da   :  { %3401 = vmatprep.mubr.bf16.mxu0 %v5330_v52  ;;  %4695 = vmatpush3.bf16.msra.mxu1 %v5039_v35  ;;  %v5046_v52 = vld [vmem:[%s6136_s3 + $0x828] sm:$0xff]   ;;  %v4381_v12 = vpop.f32.mrf.mxu0  ;;  %v4403_v13 = vpop.f32.mrf.mxu1 }
 0x1db   :  { %3442 = vmatprep.mubr.bf16.mxu1 %v5332_v53  ;;  %4674 = vmatprep.subr.bf16.mxu0 %v5040_v36  ;;  %v5048_v53 = vld [vmem:[%s6136_s3 + $0x860] sm:$0xff]  }
 0x1dc   :  { %4696 = vmatprep.subr.bf16.mxu1 %v5041_v37  ;;  %v4383_v14 = vpop.f32.mrf.mxu0  ;;  %v4405_v15 = vpop.f32.mrf.mxu1 }
 0x1dd   :  { %4675 = vmatpush3.bf16.msra.mxu0 %v5042_v38 }
 0x1de   :  { %4697 = vmatpush3.bf16.msra.mxu1 %v5043_v39  ;;  %4676 = vmatprep.subr.bf16.mxu0 %v5044_v40  ;;  %v4384_v16 = vpop.f32.mrf.mxu0  ;;  %v4406_v17 = vpop.f32.mrf.mxu1 }
 0x1df   :  { %4698 = vmatprep.subr.bf16.mxu1 %v5045_v41 }
 0x1e1   :  { %4677 = vmatpush3.bf16.msra.mxu0 %v5046_v52 }
 0x1e2   :  { %4699 = vmatpush3.bf16.msra.mxu1 %v5047_v42  ;;  %4678 = vmatprep.subr.bf16.mxu0 %v5048_v53 }
 0x1e3   :  { %4700 = vmatprep.subr.bf16.mxu1 %v5049_v43 }
 0x1e5   :  { %4679 = vmatpush3.bf16.msra.mxu0 %v5050_v44 }
 0x1e6   :  { %4701 = vmatpush3.bf16.msra.mxu1 %v5051_v45  ;;  %4680 = vmatprep.subr.bf16.mxu0 %v5052_v46 }
 0x1e7   :  { %4702 = vmatprep.subr.bf16.mxu1 %v5053_v47 }
 0x1e9   :  { %4681 = vmatpush3.bf16.msra.mxu0 %v5054_v48 }
 0x1ea   :  { %4703 = vmatpush3.bf16.msra.mxu1 %v5055_v49  ;;  %4682 = vmatprep.subr.bf16.mxu0 %v5056_v50 }
 0x1eb   :  { %4704 = vmatprep.subr.bf16.mxu1 %v5057_v51 }
 0x1ed   :  { %4683 = vmatpush3.bf16.msra.mxu0 %v5058_v54 }
 0x1ee   :  { %4705 = vmatpush3.bf16.msra.mxu1 %v5059_v55  ;;  %4684 = vmatprep.subr.bf16.mxu0 %v5060_v58 }
 0x1ef   :  { %4706 = vmatprep.subr.bf16.mxu1 %v5061_v59  ;;  %v4382_v59 = vadd.f32 %v4381_v12, %v4380_v10  ;;  %v4341_v10 = vadd.f32 %v4340_v8, %v4339_v6  ;;  %v4363_v12 = vadd.f32 %v4362_v9, %v4361_v7 }
 0x1f1   :  { %4685 = vmatpush3.bf16.msra.mxu0 %v5062_v60  ;;  %v4404_v60 = vadd.f32 %v4403_v13, %v4402_v11  ;;  %v722_v9 = vadd.f32 %v4363_v12, %v4341_v10 }
 0x1f2   :  { %4707 = vmatpush3.bf16.msra.mxu1 %v5063_v61  ;;  %4686 = vmatprep.subr.bf16.mxu0 %v5064_v62  ;;  %v4385_v61 = vadd.f32 %v4384_v16, %v4383_v14  ;;  %v4407_v62 = vadd.f32 %v4406_v17, %v4405_v15 }
 0x1f3   :  { %4708 = vmatprep.subr.bf16.mxu1 %v5065_v63  ;;  %v1058_v17 = vadd.f32 %v4404_v60, %v4382_v59 }
 0x1f5   :  { %4687 = vmatpush3.bf16.msra.mxu0 %v5066_v0  ;;  %v4338_v0 = vadd.f32 %v4337_v4, %v4336_v2  ;;  %v1061_v2 = vadd.f32 %v4407_v62, %v4385_v61 }
 0x1f6   :  { %4709 = vmatpush3.bf16.msra.mxu1 %v5067_v1  ;;  %v4360_v1 = vadd.f32 %v4359_v5, %v4358_v3 }
 0x1f7   :  { %v1065_v60 = vmax.f32 %v722_v9, %v1061_v2 }
 0x1f8   :  { %3402 = vmatmul.mubr.bf16.vlgmr.msra.gmra.mxu0 %v5340_v56  ;;  %v4424_v18 = vpop.f32.mrf.mxu0  ;;  %v719_v7 = vadd.f32 %v4360_v1, %v4338_v0 }
 0x1f9   :  { %3443 = vmatmul.mubr.bf16.vlgmr.msra.gmra.mxu1 %v5342_v57  ;;  %v4446_v56 = vpop.f32.mrf.mxu1 }
 0x1fa   :  { %v4425_v19 = vpop.f32.mrf.mxu0  ;;  %v1064_v59 = vmax.f32 %v719_v7, %v1058_v17 }
 0x1fb   :  { %v4447_v57 = vpop.f32.mrf.mxu1  ;;  %v4426_v11 = vadd.f32 %v4425_v19, %v4424_v18 }
 0x1fc   :  { %v4427_v20 = vpop.f32.mrf.mxu0  ;;  %v4448_v13 = vadd.f32 %v4447_v57, %v4446_v56 }
 0x1fd   :  { %v4449_v21 = vpop.f32.mrf.mxu1 }
 0x1fe   :  { %v4428_v22 = vpop.f32.mrf.mxu0  ;;  %v1399_v18 = vadd.f32 %v4448_v13, %v4426_v11 }
 0x1ff   :  { %v4450_v23 = vpop.f32.mrf.mxu1  ;;  %v4429_v14 = vadd.f32 %v4428_v22, %v4427_v20 }
 0x200   :  { %v4451_v16 = vadd.f32 %v4450_v23, %v4449_v21 }
 0x202   :  { %v1402_v19 = vadd.f32 %v4451_v16, %v4429_v14 }
 0x218   :  { %v4468_v24 = vpop.f32.mrf.mxu0 }
 0x219   :  { %v4490_v25 = vpop.f32.mrf.mxu1 }
 0x21a   :  { %v4469_v26 = vpop.f32.mrf.mxu0 }
 0x21b   :  { %v4491_v27 = vpop.f32.mrf.mxu1  ;;  %v4470_v3 = vadd.f32 %v4469_v26, %v4468_v24 }
 0x21c   :  { %v4471_v28 = vpop.f32.mrf.mxu0  ;;  %v4492_v5 = vadd.f32 %v4491_v27, %v4490_v25 }
 0x21d   :  { %v4493_v29 = vpop.f32.mrf.mxu1 }
 0x21e   :  { %v4472_v30 = vpop.f32.mrf.mxu0  ;;  %v1740_v61 = vadd.f32 %v4492_v5, %v4470_v3 }
 0x21f   :  { %v4494_v31 = vpop.f32.mrf.mxu1  ;;  %v4473_v6 = vadd.f32 %v4472_v30, %v4471_v28  ;;  %v1406_v30 = vmax.f32 %v1065_v60, %v1402_v19 }
 0x220   :  { %v4495_v8 = vadd.f32 %v4494_v31, %v4493_v29  ;;  %v1405_v29 = vmax.f32 %v1064_v59, %v1399_v18 }
 0x222   :  { %v1743_v62 = vadd.f32 %v4495_v8, %v4473_v6 }
 0x238   :  { %v4512_v32 = vpop.f32.mrf.mxu0 }
 0x239   :  { %v4534_v33 = vpop.f32.mrf.mxu1 }
 0x23a   :  { %v4513_v34 = vpop.f32.mrf.mxu0 }
 0x23b   :  { %v4535_v35 = vpop.f32.mrf.mxu1  ;;  %v4514_v57 = vadd.f32 %v4513_v34, %v4512_v32 }
 0x23c   :  { %v4515_v36 = vpop.f32.mrf.mxu0  ;;  %v4536_v20 = vadd.f32 %v4535_v35, %v4534_v33 }
 0x23d   :  { %v4537_v37 = vpop.f32.mrf.mxu1 }
 0x23e   :  { %v4516_v38 = vpop.f32.mrf.mxu0  ;;  %v2081_v31 = vadd.f32 %v4536_v20, %v4514_v57 }
 0x23f   :  { %v4538_v39 = vpop.f32.mrf.mxu1  ;;  %v4517_v22 = vadd.f32 %v4516_v38, %v4515_v36  ;;  %v1746_v36 = vmax.f32 %v1405_v29, %v1740_v61 }
 0x240   :  { %v4539_v21 = vadd.f32 %v4538_v39, %v4537_v37  ;;  %v1747_v37 = vmax.f32 %v1406_v30, %v1743_v62 }
 0x242   :  { %v2084_v0 = vadd.f32 %v4539_v21, %v4517_v22 }
 0x258   :  { %v4556_v40 = vpop.f32.mrf.mxu0 }
 0x259   :  { %v4578_v41 = vpop.f32.mrf.mxu1 }
 0x25a   :  { %v4557_v52 = vpop.f32.mrf.mxu0 }
 0x25b   :  { %v4579_v42 = vpop.f32.mrf.mxu1  ;;  %v4558_v24 = vadd.f32 %v4557_v52, %v4556_v40 }
 0x25c   :  { %v4559_v53 = vpop.f32.mrf.mxu0  ;;  %v4580_v26 = vadd.f32 %v4579_v42, %v4578_v41 }
 0x25d   :  { %v4581_v43 = vpop.f32.mrf.mxu1 }
 0x25e   :  { %v4560_v44 = vpop.f32.mrf.mxu0  ;;  %v2422_v38 = vadd.f32 %v4580_v26, %v4558_v24 }
 0x25f   :  { %v4582_v45 = vpop.f32.mrf.mxu1  ;;  %v4561_v25 = vadd.f32 %v4560_v44, %v4559_v53  ;;  %v2088_v44 = vmax.f32 %v1747_v37, %v2084_v0 }
 0x260   :  { %v4583_v27 = vadd.f32 %v4582_v45, %v4581_v43  ;;  %v2087_v43 = vmax.f32 %v1746_v36, %v2081_v31 }
 0x262   :  { %v2425_v39 = vadd.f32 %v4583_v27, %v4561_v25 }
 0x278   :  { %v4600_v46 = vpop.f32.mrf.mxu0 }
 0x279   :  { %v4622_v47 = vpop.f32.mrf.mxu1 }
 0x27a   :  { %v4601_v48 = vpop.f32.mrf.mxu0 }
 0x27b   :  { %v4623_v49 = vpop.f32.mrf.mxu1  ;;  %v4602_v10 = vadd.f32 %v4601_v48, %v4600_v46 }
 0x27c   :  { %v4603_v50 = vpop.f32.mrf.mxu0  ;;  %v4624_v32 = vadd.f32 %v4623_v49, %v4622_v47 }
 0x27d   :  { %v4625_v51 = vpop.f32.mrf.mxu1 }
 0x27e   :  { %v4604_v54 = vpop.f32.mrf.mxu0  ;;  %v2763_v11 = vadd.f32 %v4624_v32, %v4602_v10 }
 0x27f   :  { %v4626_v55 = vpop.f32.mrf.mxu1  ;;  %v4605_v33 = vadd.f32 %v4604_v54, %v4603_v50  ;;  %v2428_v50 = vmax.f32 %v2087_v43, %v2422_v38 }
 0x280   :  { %v4627_v34 = vadd.f32 %v4626_v55, %v4625_v51  ;;  %v2429_v51 = vmax.f32 %v2088_v44, %v2425_v39 }
 0x282   :  { %v2766_v13 = vadd.f32 %v4627_v34, %v4605_v33 }
 0x298   :  { %v4644_v58 = vpop.f32.mrf.mxu0 }
 0x299   :  { %v4666_v63 = vpop.f32.mrf.mxu1 }
 0x29a   :  { %v4645_v15 = vpop.f32.mrf.mxu0 }
 0x29b   :  { %v4667_v4 = vpop.f32.mrf.mxu1  ;;  %v4646_v40 = vadd.f32 %v4645_v15, %v4644_v58  ;;  %v2770_v15 = vmax.f32 %v2429_v51, %v2766_v13 }
 0x29c   :  { %v4647_v56 = vpop.f32.mrf.mxu0  ;;  %v4668_v41 = vadd.f32 %v4667_v4, %v4666_v63  ;;  %v2769_v63 = vmax.f32 %v2428_v50, %v2763_v11 }
 0x29d   :  { %v4669_v23 = vpop.f32.mrf.mxu1 }
 0x29e   :  { %v4648_v28 = vpop.f32.mrf.mxu0  ;;  %v3104_v54 = vadd.f32 %v4668_v41, %v4646_v40 }
 0x29f   :  { %v4670_v1 = vpop.f32.mrf.mxu1  ;;  %v4649_v52 = vadd.f32 %v4648_v28, %v4647_v56 }
 0x2a0   :  { %v4671_v42 = vadd.f32 %v4670_v1, %v4669_v23  ;;  %v3110_v4 = vmax.f32 %v2769_v63, %v3104_v54 }
 0x2a2   :  { %v3107_v55 = vadd.f32 %v4671_v42, %v4649_v52 }
 0x2a4   :  { %v3111_v3 = vmax.f32 %v2770_v15, %v3107_v55 }
 0x2b8   :  { %v4688_v35 = vpop.f32.mrf.mxu0 }
 0x2b9   :  { %v4710_v12 = vpop.f32.mrf.mxu1 }
 0x2ba   :  { %v4689_v53 = vpop.f32.mrf.mxu0 }
 0x2bb   :  { %v4711_v45 = vpop.f32.mrf.mxu1  ;;  %v4690_v46 = vadd.f32 %v4689_v53, %v4688_v35 }
 0x2bc   :  { %v4712_v47 = vadd.f32 %v4711_v45, %v4710_v12  ;;  %v4691_v48 = vpop.f32.mrf.mxu0 }
 0x2bd   :  { %v4713_v49 = vpop.f32.mrf.mxu1 }
 0x2be   :  { %v4692_v14 = vpop.f32.mrf.mxu0  ;;  %v3445_v17 = vadd.f32 %v4712_v47, %v4690_v46 }
 0x2bf   :  { %v4693_v16 = vadd.f32 %v4692_v14, %v4691_v48  ;;  %v4714_v58 = vpop.f32.mrf.mxu1 }
 0x2c0   :  { %v4715_v2 = vadd.f32 %v4714_v58, %v4713_v49  ;;  %v3451_v6 = vmax.f32 %v3110_v4, %v3445_v17 }
 0x2c2   :  { %v3448_v5 = vadd.f32 %v4715_v2, %v4693_v16 }
 0x2c4   :  { %v3452_v8 = vmax.f32 %v3111_v3, %v3448_v5 }
 0x2c6   :  { %v4318_v7 = vpack.c.bf16 %v3452_v8, %v3451_v6 }
 0x2c8   :  { %4319 = vst [vmem:[%s6137_s4] sm:$0xff] %v4318_v7  }

// kernel: densenet_forward.19
= control target key start
LH: loop header
LB: loop body
LE: loop exit
PB: predicated region body
PF: predicated region fallthrough
CT: control target
= control target key end

     0   :  { %v280_v0 = vmov 0   ;;  %v281_v7 = vmov 0.0   ;;  %vm282_vm0 = vmmov 0   ;;  %vm116_vm1 = vcmask 261120   ;;  %s391_s5 = inlined_call_operand.vmem [shape: f32[8,1], index: 5, kind: input, shape index: {}]   ;;  %s392_s4 = inlined_call_operand.vmem [shape: f32[8,1], index: 4, kind: input, shape index: {}]   ;;  %s393_s8 = inlined_call_operand.vmem [shape: f32[8,1], index: 8, kind: input, shape index: {}]   ;;  %s394_s7 = inlined_call_operand.vmem [shape: f32[8,1], index: 7, kind: input, shape index: {}]   ;;  %s395_s1 = inlined_call_operand.vmem [shape: f32[16,1], index: 1, kind: input, shape index: {}]   ;;  %s396_s2 = inlined_call_operand.vmem [shape: f32[16,1], index: 2, kind: input, shape index: {}]   ;;  %s397_s9 = inlined_call_operand.vmem [shape: bf16[16,32], index: 9, kind: input, shape index: {}]   ;;  %s398_s3 = inlined_call_operand.vmem [shape: bf16[8,32], index: 3, kind: input, shape index: {}]   ;;  %s399_s6 = inlined_call_operand.vmem [shape: bf16[8,32], index: 6, kind: input, shape index: {}]   ;;  %s400_s0 = inlined_call_operand.vmem [shape: bf16[16,32], index: 0, kind: input, shape index: {}]   ;;  %s401_s10 = inlined_call_operand.vmem [shape: bf16[32,8], index: 10, kind: input, shape index: {}]   ;;  %s402_s11 = inlined_call_operand.vmem [shape: bf16[16,8], index: 11, kind: output, shape index: {}]  }
   0x1   :  { %276 = vset.pattern.permute.xlu1 %v280_v0  ;;  %275 = vset.pattern.permute.xlu0 %v280_v0  ;;  %v75_v1 = vld [vmem:[%s391_s5] sm:$0xff]  ;;  %v42_v5 = vld [vmem:[%s395_s1 + $0x8] sm:$0xff]  ;;  %vm230_vm2 = vcmask 60416  }
   0x2   :  { %v74_v2 = vld [vmem:[%s392_s4] sm:$0xff]  ;;  %85 = vperm.xlu1 %276, %v75_v1   ;;  %256 = vmatprep.subr.bf16.mxu0 %v281_v7  ;;  %v44_v8 = vld [vmem:[%s396_s2 + $0x8] sm:$0xff] }
   0x3   :  { %79 = vperm.xlu0 %275, %v74_v2   ;;  %v92_v3 = vld [vmem:[%s393_s8] sm:$0xff]  ;;  %264 = vmatprep.subr.bf16.mxu1 %v281_v7  ;;  %v278_v40 = vld [vmem:[%s401_s10 + $0x8] sm:$0xff]  }
   0x4   :  { %v91_v4 = vld [vmem:[%s394_s7] sm:$0xff]  ;;  %260 = vmatprep.mubr.msk.bf16.mxu0 %vm282_vm0, %v281_v7  ;;  %268 = vmatprep.mubr.msk.bf16.mxu1 %vm282_vm0, %v281_v7 }
   0x5   :  { %v41_v6 = vld [vmem:[%s395_s1] sm:$0xff]  ;;  %265 = vmatpush3.bf16.msra.mxu1 %v278_v40 }
   0x6   :  { %102 = vperm.xlu1 %276, %v92_v3   ;;  %v43_v9 = vld [vmem:[%s396_s2] sm:$0xff]  ;;  %266 = vmatprep.subr.bf16.mxu1 %v281_v7 }
   0x7   :  { %96 = vperm.xlu0 %275, %v91_v4   ;;  %v73_v10 = vld [vmem:[%s398_s3] sm:$0xf] }
   0x8   :  { %v76_v11 = vunpack.c.l.bf16 %v73_v10  ;;  %v90_v12 = vld [vmem:[%s399_s6] sm:$0xf] }
   0x9   :  { %v93_v16 = vunpack.c.l.bf16 %v90_v12  ;;  %v247_v19 = vld [vmem:[%s400_s0] sm:$0xff]  }
   0xa   :  { %54 = vperm.xlu1 %276, %v42_v5   ;;  %v249_v23 = vunpack.c.h.bf16 %v247_v19  ;;  %v248_v24 = vunpack.c.l.bf16 %v247_v19  ;;  %v277_v39 = vld [vmem:[%s397_s9] sm:$0xff]  }
   0xb   :  { %49 = vperm.xlu0 %275, %v41_v6   ;;  %v279_v41 = vld [vmem:[%s401_s10] sm:$0xff]  }
   0xc   :  { %267 = vmatpush3.bf16.msra.mxu1 %v279_v41 }
   0xe   :  { %66 = vperm.xlu1 %276, %v44_v8  }
   0xf   :  { %61 = vperm.xlu0 %275, %v43_v9  }
  0x7d   :  { %v86_v13 = vpop.permute.xlu1 %85 }
  0x7e   :  { %v80_v14 = vpop.permute.xlu0 %79 }
  0x7f   :  { %v82_v15 = vmul.f32 %v80_v14, %v76_v11 }
  0x81   :  { %v103_v17 = vpop.permute.xlu1 %102  ;;  %v88_v20 = vadd.f32 %v86_v13, %v82_v15 }
  0x82   :  { %v97_v18 = vpop.permute.xlu0 %96 }
  0x83   :  { %v99_v21 = vmul.f32 %v97_v18, %v93_v16  ;;  %v89_v27 = vmax.f32 %v88_v20, 0.0 }
  0x85   :  { %v105_v22 = vadd.f32 %v103_v17, %v99_v21  ;;  %v55_v25 = vpop.permute.xlu1 %54 }
  0x86   :  { %v50_v26 = vpop.permute.xlu0 %49  ;;  %v58_v29 = vmul.f32 %v249_v23, %v55_v25 }
  0x87   :  { %v106_v28 = vmax.f32 %v105_v22, 0.0  ;;  %v57_v30 = vmul.f32 %v248_v24, %v50_v26 }
  0x89   :  { %v108_v31 = vpack.c.bf16 %v106_v28, %v89_v27  ;;  %v67_v32 = vpop.permute.xlu1 %66 }
  0x8a   :  { %v62_v33 = vpop.permute.xlu0 %61  ;;  %v70_v34 = vadd.f32 %v67_v32, %v58_v29 }
  0x8b   :  { %v69_v35 = vadd.f32 %v62_v33, %v57_v30  ;;  %257 = vmatpush3.bf16.msra.mxu0 %v108_v31 }
  0x8c   :  { %258 = vmatprep.subr.bf16.mxu0 %v281_v7  ;;  %v72_v36 = vmax.f32 %v70_v34, 0.0 }
  0x8d   :  { %v71_v37 = vmax.f32 %v69_v35, 0.0 }
  0x8f   :  { %v107_v38 = vpack.c.bf16 %v72_v36, %v71_v37 }
  0x91   :  { %259 = vmatpush3.bf16.msra.mxu0 %v107_v38 }
  0x94   :  { %261 = vmatmul.mubr.msk.bf16.vlgmr.msra.gmra.mxu0 %vm116_vm1, %v277_v39 }
 0x154   :  { %v154_v42 = vpop.f32.mrf.mxu0 }
 0x156   :  { %v262_v43 = vpop.f32.mrf.mxu0 }
 0x158   :  { %v157_v44 = vpop.f32.mrf.mxu0 }
 0x159   :  { %v161_v45 = vpack.c.bf16 %v157_v44, %v154_v42 }
 0x15a   :  { %v263_v46 = vpop.f32.mrf.mxu0 }
 0x15b   :  { %269 = vmatmul.mubr.msk.bf16.vlgmr.msra.gmra.mxu1 %vm116_vm1, %v161_v45 }
 0x21b   :  { %v215_v47 = vpop.f32.mrf.mxu1 }
 0x21c   :  { %v244_v48 = vpack.c.bf16 %v215_v47, %v215_v47 }
 0x21d   :  { %v270_v49 = vpop.f32.mrf.mxu1 }
 0x21e   :  { %231 = vst.msk [vmem:[%s402_s11] sm:$0xf] %vm230_vm2, %v244_v48 }
 0x21f   :  { %v218_v50 = vpop.f32.mrf.mxu1 }
 0x220   :  { %v245_v51 = vpack.c.bf16 %v218_v50, %v218_v50 }
 0x221   :  { %v271_v52 = vpop.f32.mrf.mxu1 }
 0x222   :  { %232 = vst.msk [vmem:[%s402_s11 + $0x4] sm:$0xf] %vm230_vm2, %v245_v51 }

// kernel: densenet_forward.20
= control target key start
LH: loop header
LB: loop body
LE: loop exit
PB: predicated region body
PF: predicated region fallthrough
CT: control target
= control target key end

     0   :  { %v956_v0 = vmov 0   ;;  %vm100_vm0 = vcmask 130048   ;;  %vm170_vm1 = vcmask 1043456   ;;  %vm163_vm2 = vcmask 64512   ;;  %s1130_s2 = inlined_call_operand.vmem [shape: f32[16,1], index: 2, kind: input, shape index: {}]   ;;  %s1131_s1 = inlined_call_operand.vmem [shape: f32[16,1], index: 1, kind: input, shape index: {}]   ;;  %s1132_s4 = inlined_call_operand.vmem [shape: f32[32,1], index: 4, kind: input, shape index: {}]   ;;  %s1133_s3 = inlined_call_operand.vmem [shape: bf16[32,16], index: 3, kind: input, shape index: {}]   ;;  %s1134_s0 = inlined_call_operand.vmem [shape: bf16[16,8], index: 0, kind: input, shape index: {}]   ;;  %s1135_s5 = inlined_call_operand.vmem [shape: bf16[9,8,8], index: 5, kind: input, shape index: {}]   ;;  %s1136_s6 = inlined_call_operand.vmem [shape: bf16[8,288], index: 6, kind: input, shape index: {}]   ;;  %s1137_s7 = inlined_call_operand.vmem [shape: bf16[8,8], index: 7, kind: output, shape index: {}]  }
   0x1   :  { %950 = vset.pattern.permute.xlu1 %v956_v0  ;;  %949 = vset.pattern.permute.xlu0 %v956_v0  ;;  %v31_v1 = vld [vmem:[%s1130_s2] sm:$0xff]  ;;  %v32_v3 = vld [vmem:[%s1130_s2 + $0x8] sm:$0xff]  ;;  %v69_v7 = vld [vmem:[%s1132_s4 + $0x18] sm:$0xff]  ;;  %v957_v61 = vmov 0.0   ;;  %vm958_vm3 = vmmov 0   ;;  %vm685_vm4 = vcmask 261120  }
   0x2   :  { %v29_v2 = vld [vmem:[%s1131_s1] sm:$0xff]  ;;  %49 = vperm.xlu1 %950, %v31_v1   ;;  %v30_v4 = vld [vmem:[%s1131_s1 + $0x8] sm:$0xff]  ;;  %v68_v8 = vld [vmem:[%s1132_s4 + $0x10] sm:$0xff]  ;;  %vm770_vm5 = vcmask 60416  }
   0x3   :  { %37 = vperm.xlu0 %949, %v29_v2   ;;  %v67_v5 = vld [vmem:[%s1132_s4 + $0x8] sm:$0xff]  ;;  %v66_v6 = vld [vmem:[%s1132_s4] sm:$0xff]  ;;  %v794_v51 = vld [vmem:[%s1135_s5 + $0x14] sm:$0xf] }
   0x4   :  { %v951_v9 = vld [vmem:[%s1133_s3] sm:$0xff]   ;;  %v952_v24 = vld [vmem:[%s1133_s3 + $0x8] sm:$0xff]   ;;  %v791_v52 = vld [vmem:[%s1135_s5 + $0x10] sm:$0xf]  ;;  %v442_v53 = vsel %vm170_vm1, %v794_v51, 0 }
   0x5   :  { %871 = vmatprep.mubr.msk.bf16.mxu1 %vm100_vm0, %v951_v9  ;;  %v811_v10 = vld [vmem:[%s1134_s0] sm:$0xff]   ;;  %v788_v29 = vld [vmem:[%s1135_s5 + $0xc] sm:$0xf]  ;;  %v785_v30 = vld [vmem:[%s1135_s5 + $0x8] sm:$0xf]  ;;  %v388_v54 = vsel %vm170_vm1, %v791_v52, 0 }
   0x6   :  { %54 = vperm.xlu1 %950, %v32_v3   ;;  %v812_v11 = vunpack.c.l.bf16 %v811_v10  ;;  %v813_v15 = vunpack.c.h.bf16 %v811_v10  ;;  %v782_v25 = vld [vmem:[%s1135_s5 + $0x4] sm:$0xf]  ;;  %v162_v26 = vld [vmem:[%s1135_s5] sm:$0xf]  ;;  %v334_v49 = vsel %vm170_vm1, %v788_v29, 0  ;;  %v280_v50 = vsel %vm170_vm1, %v785_v30, 0 }
   0x7   :  { %42 = vperm.xlu0 %949, %v30_v4   ;;  %938 = vmatprep.subr.msk.bf16.mxu0 %vm170_vm1, %v782_v25  ;;  %v226_v27 = vsel %vm170_vm1, %v782_v25, 0  ;;  %v172_v28 = vsel %vm170_vm1, %v162_v26, 0  ;;  %v800_v55 = vld [vmem:[%s1135_s5 + $0x1c] sm:$0xf]  ;;  %v797_v56 = vld [vmem:[%s1135_s5 + $0x18] sm:$0xf] }
   0x8   :  { %882 = vmatpush3.bf16.msra.mxu0 %v226_v27  ;;  %v550_v57 = vsel %vm170_vm1, %v800_v55, 0  ;;  %v496_v58 = vsel %vm170_vm1, %v797_v56, 0  ;;  %v803_v59 = vld [vmem:[%s1135_s5 + $0x20] sm:$0xf] }
   0x9   :  { %940 = vmatprep.subr.msk.bf16.mxu0 %vm170_vm1, %v788_v29  ;;  %v604_v60 = vsel %vm170_vm1, %v803_v59, 0  ;;  %v1100_v62 = vld [vmem:[%s1136_s6] sm:$0xff] }
   0xa   :  { %77 = vperm.xlu1 %950, %v67_v5   ;;  %v807_v63 = vcombine.high %v1100_v62, %v1100_v62 }
   0xb   :  { %72 = vperm.xlu0 %949, %v66_v6  }
   0xe   :  { %87 = vperm.xlu1 %950, %v69_v7  }
   0xf   :  { %82 = vperm.xlu0 %949, %v68_v8  }
  0x7d   :  { %v50_v12 = vpop.permute.xlu1 %49 }
  0x7e   :  { %v38_v13 = vpop.permute.xlu0 %37 }
  0x7f   :  { %v45_v14 = vmul.f32 %v812_v11, %v38_v13 }
  0x81   :  { %v57_v17 = vadd.f32 %v50_v12, %v45_v14  ;;  %v55_v19 = vpop.permute.xlu1 %54 }
  0x82   :  { %v43_v16 = vpop.permute.xlu0 %42 }
  0x83   :  { %v46_v18 = vmul.f32 %v813_v15, %v43_v16  ;;  %v59_v21 = vmax.f32 %v57_v17, 0.0 }
  0x85   :  { %v58_v20 = vadd.f32 %v55_v19, %v46_v18  ;;  %v78_v31 = vpop.permute.xlu1 %77 }
  0x86   :  { %v73_v32 = vpop.permute.xlu0 %72 }
  0x87   :  { %v60_v22 = vmax.f32 %v58_v20, 0.0 }
  0x89   :  { %v61_v23 = vpack.c.bf16 %v60_v22, %v59_v21  ;;  %v88_v35 = vpop.permute.xlu1 %87 }
  0x8a   :  { %v83_v37 = vpop.permute.xlu0 %82 }
  0x8b   :  { %869 = vmatprep.subr.bf16.mxu1 %v61_v23 }
  0x8c   :  { %870 = vmatpush3.bf16.msra.mxu1 %v61_v23 }
  0x8d   :  { %937 = vmatprep.subr.msk.bf16.mxu1 %vm170_vm1, %v162_v26 }
  0x8f   :  { %872 = vmatmul.mubr.msk.bf16.vlgmr.msra.gmra.mxu1 %vm100_vm0, %v952_v24 }
  0x90   :  { %876 = vmatpush3.bf16.msra.mxu1 %v172_v28 }
  0x91   :  { %939 = vmatprep.subr.msk.bf16.mxu1 %vm170_vm1, %v785_v30 }
 0x14f   :  { %v873_v33 = vpop.f32.mrf.mxu1 }
 0x150   :  { %v150_v40 = vadd.f32 %v873_v33, %v83_v37 }
 0x151   :  { %v141_v34 = vpop.f32.mrf.mxu1 }
 0x152   :  { %v142_v38 = vadd.f32 %v141_v34, %v73_v32  ;;  %v158_v46 = vmax.f32 %v150_v40, 0.0 }
 0x153   :  { %v874_v36 = vpop.f32.mrf.mxu1 }
 0x154   :  { %v153_v39 = vadd.f32 %v874_v36, %v88_v35  ;;  %v156_v44 = vmax.f32 %v142_v38, 0.0 }
 0x155   :  { %v144_v41 = vpop.f32.mrf.mxu1 }
 0x156   :  { %v145_v42 = vadd.f32 %v144_v41, %v78_v31  ;;  %v159_v43 = vmax.f32 %v153_v39, 0.0 }
 0x158   :  { %v157_v45 = vmax.f32 %v145_v42, 0.0  ;;  %v161_v48 = vpack.c.bf16 %v159_v43, %v158_v46  ;;  %v953_v46 = vld [vmem:[%s1136_s6 + $0x8] ss:$0 sps:$4 sm:$0xff]  }
 0x15a   :  { %v160_v47 = vpack.c.bf16 %v157_v45, %v156_v44 }
 0x15c   :  { %877 = vmatprep.mubr.msk.bf16.mxu1 %vm163_vm2, %v160_v47  ;;  %883 = vmatprep.mubr.msk.bf16.mxu0 %vm163_vm2, %v160_v47 }
 0x15d   :  { %878 = vmatmul.mubr.msk.bf16.vlgmr.msra.gmra.mxu1 %vm163_vm2, %v161_v48  ;;  %884 = vmatmul.mubr.msk.bf16.vlgmr.msra.gmra.mxu0 %vm163_vm2, %v161_v48 }
 0x15e   :  { %894 = vmatpush3.bf16.msra.mxu0 %v334_v49  ;;  %889 = vmatprep.mubr.msk.bf16.mxu1 %vm163_vm2, %v160_v47 }
 0x15f   :  { %895 = vmatprep.mubr.msk.bf16.mxu0 %vm163_vm2, %v160_v47  ;;  %888 = vmatpush3.bf16.msra.mxu1 %v280_v50 }
 0x160   :  { %942 = vmatprep.subr.msk.bf16.mxu0 %vm170_vm1, %v794_v51  ;;  %941 = vmatprep.subr.msk.bf16.mxu1 %vm170_vm1, %v791_v52 }
 0x165   :  { %890 = vmatmul.mubr.msk.bf16.vlgmr.msra.gmra.mxu1 %vm163_vm2, %v161_v48  ;;  %896 = vmatmul.mubr.msk.bf16.vlgmr.msra.gmra.mxu0 %vm163_vm2, %v161_v48 }
 0x166   :  { %906 = vmatpush3.bf16.msra.mxu0 %v442_v53  ;;  %901 = vmatprep.mubr.msk.bf16.mxu1 %vm163_vm2, %v160_v47 }
 0x167   :  { %907 = vmatprep.mubr.msk.bf16.mxu0 %vm163_vm2, %v160_v47  ;;  %900 = vmatpush3.bf16.msra.mxu1 %v388_v54 }
 0x168   :  { %944 = vmatprep.subr.msk.bf16.mxu0 %vm170_vm1, %v800_v55  ;;  %943 = vmatprep.subr.msk.bf16.mxu1 %vm170_vm1, %v797_v56  ;;  %v806_v55 = vcombine.low %v1100_v62, %v1100_v62 }
 0x16d   :  { %902 = vmatmul.mubr.msk.bf16.vlgmr.msra.gmra.mxu1 %vm163_vm2, %v161_v48  ;;  %908 = vmatmul.mubr.msk.bf16.vlgmr.msra.gmra.mxu0 %vm163_vm2, %v161_v48 }
 0x16e   :  { %918 = vmatpush3.bf16.msra.mxu0 %v550_v57  ;;  %913 = vmatprep.mubr.msk.bf16.mxu1 %vm163_vm2, %v160_v47 }
 0x16f   :  { %919 = vmatprep.mubr.msk.bf16.mxu0 %vm163_vm2, %v160_v47  ;;  %912 = vmatpush3.bf16.msra.mxu1 %v496_v58 }
 0x170   :  { %945 = vmatprep.subr.msk.bf16.mxu1 %vm170_vm1, %v803_v59 }
 0x175   :  { %914 = vmatmul.mubr.msk.bf16.vlgmr.msra.gmra.mxu1 %vm163_vm2, %v161_v48  ;;  %920 = vmatmul.mubr.msk.bf16.vlgmr.msra.gmra.mxu0 %vm163_vm2, %v161_v48 }
 0x176   :  { %925 = vmatprep.mubr.msk.bf16.mxu1 %vm163_vm2, %v160_v47  ;;  %924 = vmatpush3.bf16.msra.mxu1 %v604_v60 }
 0x177   :  { %929 = vmatprep.subr.bf16.mxu1 %v957_v61  ;;  %721 = vmatprep.mubr.bf16.mxu0 %v807_v63 }
 0x17d   :  { %926 = vmatmul.mubr.msk.bf16.vlgmr.msra.gmra.mxu1 %vm163_vm2, %v161_v48 }
 0x17e   :  { %933 = vmatprep.mubr.msk.bf16.mxu1 %vm958_vm3, %v957_v61 }
 0x21d   :  { %v1104_v0 = vpop.f32.mrf.mxu1  ;;  %v1106_v1 = vpop.f32.mrf.mxu0 }
 0x21f   :  { %v1108_v2 = vpop.f32.mrf.mxu1  ;;  %v1110_v3 = vpop.f32.mrf.mxu0 }
 0x221   :  { %v1112_v4 = vpop.f32.mrf.mxu1  ;;  %v886_v5 = vpop.f32.mrf.mxu0 }
 0x222   :  { %v658_v48 = vpack.c.bf16 %v886_v5, %v1106_v1  ;;  %v656_v52 = vpack.c.bf16 %v1112_v4, %v1104_v0 }
 0x223   :  { %v1114_v6 = vpop.f32.mrf.mxu1  ;;  %v265_v7 = vpop.f32.mrf.mxu0 }
 0x224   :  { %v657_v50 = vpack.c.bf16 %v265_v7, %v1110_v3  ;;  %v655_v54 = vpack.c.bf16 %v1114_v6, %v1108_v2 }
 0x225   :  { %v891_v8 = vpop.f32.mrf.mxu1  ;;  %v897_v9 = vpop.f32.mrf.mxu0 }
 0x227   :  { %v316_v10 = vpop.f32.mrf.mxu1  ;;  %v370_v11 = vpop.f32.mrf.mxu0 }
 0x229   :  { %v892_v12 = vpop.f32.mrf.mxu1  ;;  %v898_v13 = vpop.f32.mrf.mxu0 }
 0x22a   :  { %v662_v31 = vpack.c.bf16 %v898_v13, %v897_v9  ;;  %v660_v41 = vpack.c.bf16 %v892_v12, %v891_v8 }
 0x22b   :  { %v319_v14 = vpop.f32.mrf.mxu1  ;;  %v373_v15 = vpop.f32.mrf.mxu0 }
 0x22c   :  { %v661_v36 = vpack.c.bf16 %v373_v15, %v370_v11  ;;  %v659_v45 = vpack.c.bf16 %v319_v14, %v316_v10 }
 0x22d   :  { %v903_v16 = vpop.f32.mrf.mxu1  ;;  %v909_v17 = vpop.f32.mrf.mxu0 }
 0x22f   :  { %v424_v18 = vpop.f32.mrf.mxu1  ;;  %v478_v19 = vpop.f32.mrf.mxu0 }
 0x231   :  { %v904_v20 = vpop.f32.mrf.mxu1  ;;  %v910_v21 = vpop.f32.mrf.mxu0 }
 0x232   :  { %v666_v47 = vpack.c.bf16 %v910_v21, %v909_v17  ;;  %v664_v51 = vpack.c.bf16 %v904_v20, %v903_v16 }
 0x233   :  { %v427_v22 = vpop.f32.mrf.mxu1  ;;  %v481_v23 = vpop.f32.mrf.mxu0 }
 0x234   :  { %v665_v49 = vpack.c.bf16 %v481_v23, %v478_v19  ;;  %v663_v53 = vpack.c.bf16 %v427_v22, %v424_v18 }
 0x235   :  { %v915_v24 = vpop.f32.mrf.mxu1  ;;  %v921_v25 = vpop.f32.mrf.mxu0 }
 0x237   :  { %v532_v26 = vpop.f32.mrf.mxu1  ;;  %v586_v27 = vpop.f32.mrf.mxu0 }
 0x239   :  { %v916_v28 = vpop.f32.mrf.mxu1  ;;  %v922_v29 = vpop.f32.mrf.mxu0 }
 0x23a   :  { %v670_v30 = vpack.c.bf16 %v922_v29, %v921_v25  ;;  %v668_v38 = vpack.c.bf16 %v916_v28, %v915_v24 }
 0x23b   :  { %v535_v32 = vpop.f32.mrf.mxu1  ;;  %v589_v33 = vpop.f32.mrf.mxu0 }
 0x23c   :  { %v669_v34 = vpack.c.bf16 %v589_v33, %v586_v27  ;;  %844 = vmatprep.subr.bf16.mxu0 %v670_v30  ;;  %v667_v43 = vpack.c.bf16 %v535_v32, %v532_v26 }
 0x23d   :  { %v927_v35 = vpop.f32.mrf.mxu1  ;;  %845 = vmatpush3.bf16.msra.mxu0 %v662_v31 }
 0x23e   :  { %846 = vmatprep.subr.bf16.mxu0 %v669_v34 }
 0x23f   :  { %v640_v37 = vpop.f32.mrf.mxu1 }
 0x241   :  { %v928_v39 = vpop.f32.mrf.mxu1  ;;  %847 = vmatpush3.bf16.msra.mxu0 %v661_v36 }
 0x242   :  { %v672_v40 = vpack.c.bf16 %v928_v39, %v927_v35  ;;  %848 = vmatprep.subr.bf16.mxu0 %v668_v38 }
 0x243   :  { %v643_v42 = vpop.f32.mrf.mxu1 }
 0x244   :  { %930 = vmatpush3.bf16.msra.mxu1 %v672_v40  ;;  %v671_v44 = vpack.c.bf16 %v643_v42, %v640_v37 }
 0x245   :  { %849 = vmatpush3.bf16.msra.mxu0 %v660_v41  ;;  %931 = vmatprep.subr.bf16.mxu1 %v957_v61 }
 0x246   :  { %850 = vmatprep.subr.bf16.mxu0 %v667_v43 }
 0x248   :  { %932 = vmatpush3.bf16.msra.mxu1 %v671_v44 }
 0x249   :  { %851 = vmatpush3.bf16.msra.mxu0 %v659_v45 }
 0x24a   :  { %852 = vmatprep.subr.bf16.mxu0 %v666_v47 }
 0x24b   :  { %934 = vmatmul.mubr.msk.bf16.vlgmr.msra.gmra.mxu1 %vm685_vm4, %v953_v46 }
 0x24d   :  { %853 = vmatpush3.bf16.msra.mxu0 %v658_v48 }
 0x24e   :  { %854 = vmatprep.subr.bf16.mxu0 %v665_v49 }
 0x251   :  { %855 = vmatpush3.bf16.msra.mxu0 %v657_v50 }
 0x252   :  { %856 = vmatprep.subr.bf16.mxu0 %v664_v51 }
 0x255   :  { %857 = vmatpush3.bf16.msra.mxu0 %v656_v52 }
 0x256   :  { %858 = vmatprep.subr.bf16.mxu0 %v663_v53 }
 0x259   :  { %859 = vmatpush3.bf16.msra.mxu0 %v655_v54 }
 0x25c   :  { %722 = vmatmul.mubr.bf16.vlgmr.msra.gmra.mxu0 %v806_v55 }
 0x30b   :  { %v763_v56 = vpop.f32.mrf.mxu1 }
 0x30d   :  { %v935_v57 = vpop.f32.mrf.mxu1 }
 0x30f   :  { %v766_v58 = vpop.f32.mrf.mxu1 }
 0x311   :  { %v936_v59 = vpop.f32.mrf.mxu1 }
 0x31c   :  { %v860_v60 = vpop.f32.mrf.mxu0 }
 0x31e   :  { %v861_v61 = vpop.f32.mrf.mxu0 }
 0x31f   :  { %v862_v63 = vadd.f32 %v861_v61, %v860_v60 }
 0x320   :  { %v863_v1 = vpop.f32.mrf.mxu0 }
 0x321   :  { %v764_v0 = vadd.f32 %v862_v63, %v763_v56 }
 0x322   :  { %v864_v3 = vpop.f32.mrf.mxu0 }
 0x323   :  { %v769_v4 = vpack.c.bf16 %v764_v0, %v764_v0 }
 0x325   :  { %771 = vst.msk [vmem:[%s1137_s7] sm:$0xf] %vm770_vm5, %v769_v4 }

// kernel: densenet_forward.22
= control target key start
LH: loop header
LB: loop body
LE: loop exit
PB: predicated region body
PF: predicated region fallthrough
CT: control target
= control target key end

     0   :  { %v263_v0 = vmov 0   ;;  %v264_v7 = vmov 0.0   ;;  %vm265_vm0 = vmmov 0   ;;  %vm116_vm1 = vcmask 261120   ;;  %s371_s5 = inlined_call_operand.vmem [shape: f32[8,1], index: 5, kind: input, shape index: {}]   ;;  %s372_s4 = inlined_call_operand.vmem [shape: f32[8,1], index: 4, kind: input, shape index: {}]   ;;  %s373_s8 = inlined_call_operand.vmem [shape: f32[8,1], index: 8, kind: input, shape index: {}]   ;;  %s374_s7 = inlined_call_operand.vmem [shape: f32[8,1], index: 7, kind: input, shape index: {}]   ;;  %s375_s1 = inlined_call_operand.vmem [shape: f32[16,1], index: 1, kind: input, shape index: {}]   ;;  %s376_s2 = inlined_call_operand.vmem [shape: f32[16,1], index: 2, kind: input, shape index: {}]   ;;  %s377_s9 = inlined_call_operand.vmem [shape: bf16[16,32], index: 9, kind: input, shape index: {}]   ;;  %s378_s3 = inlined_call_operand.vmem [shape: bf16[8,8], index: 3, kind: input, shape index: {}]   ;;  %s379_s6 = inlined_call_operand.vmem [shape: bf16[8,8], index: 6, kind: input, shape index: {}]   ;;  %s380_s0 = inlined_call_operand.vmem [shape: bf16[16,8], index: 0, kind: input, shape index: {}]   ;;  %s381_s10 = inlined_call_operand.vmem [shape: bf16[8,2], index: 10, kind: input, shape index: {}]   ;;  %s382_s11 = inlined_call_operand.vmem [shape: bf16[16,2], index: 11, kind: output, shape index: {}]  }
   0x1   :  { %261 = vset.pattern.permute.xlu1 %v263_v0  ;;  %260 = vset.pattern.permute.xlu0 %v263_v0  ;;  %v75_v1 = vld [vmem:[%s371_s5] sm:$0xff]  ;;  %v42_v5 = vld [vmem:[%s375_s1 + $0x8] sm:$0xff]  ;;  %vm167_vm2 = vcmask 1043456   ;;  %vm163_vm3 = vcmask 64512   ;;  %vm220_vm4 = vcmask 11264  }
   0x2   :  { %v74_v2 = vld [vmem:[%s372_s4] sm:$0xff]  ;;  %85 = vperm.xlu1 %261, %v75_v1   ;;  %243 = vmatprep.subr.bf16.mxu0 %v264_v7  ;;  %v44_v8 = vld [vmem:[%s376_s2 + $0x8] sm:$0xff] }
   0x3   :  { %79 = vperm.xlu0 %260, %v74_v2   ;;  %v92_v3 = vld [vmem:[%s373_s8] sm:$0xff]  ;;  %251 = vmatprep.subr.bf16.mxu1 %v264_v7 }
   0x4   :  { %v91_v4 = vld [vmem:[%s374_s7] sm:$0xff]  ;;  %247 = vmatprep.mubr.msk.bf16.mxu0 %vm265_vm0, %v264_v7  ;;  %253 = vmatprep.mubr.msk.bf16.mxu1 %vm265_vm0, %v264_v7 }
   0x5   :  { %v41_v6 = vld [vmem:[%s375_s1] sm:$0xff] }
   0x6   :  { %102 = vperm.xlu1 %261, %v92_v3   ;;  %v43_v9 = vld [vmem:[%s376_s2] sm:$0xff] }
   0x7   :  { %96 = vperm.xlu0 %260, %v91_v4   ;;  %v73_v10 = vld [vmem:[%s378_s3] sm:$0xf] }
   0x8   :  { %v76_v11 = vunpack.c.l.bf16 %v73_v10  ;;  %v90_v12 = vld [vmem:[%s379_s6] sm:$0xf] }
   0x9   :  { %v93_v16 = vunpack.c.l.bf16 %v90_v12  ;;  %v235_v19 = vld [vmem:[%s380_s0] sm:$0xff]  }
   0xa   :  { %54 = vperm.xlu1 %261, %v42_v5   ;;  %v237_v23 = vunpack.c.h.bf16 %v235_v19  ;;  %v236_v24 = vunpack.c.l.bf16 %v235_v19  ;;  %v262_v39 = vld [vmem:[%s377_s9] sm:$0xff]  }
   0xb   :  { %49 = vperm.xlu0 %260, %v41_v6   ;;  %v162_v40 = vld [vmem:[%s381_s10] sm:$0xf] }
   0xc   :  { %v169_v41 = vsel %vm167_vm2, %v162_v40, 0 }
   0xd   :  { %252 = vmatpush3.bf16.msra.mxu1 %v169_v41 }
   0xe   :  { %66 = vperm.xlu1 %261, %v44_v8  }
   0xf   :  { %61 = vperm.xlu0 %260, %v43_v9  }
  0x7d   :  { %v86_v13 = vpop.permute.xlu1 %85 }
  0x7e   :  { %v80_v14 = vpop.permute.xlu0 %79 }
  0x7f   :  { %v82_v15 = vmul.f32 %v80_v14, %v76_v11 }
  0x81   :  { %v103_v17 = vpop.permute.xlu1 %102  ;;  %v88_v20 = vadd.f32 %v86_v13, %v82_v15 }
  0x82   :  { %v97_v18 = vpop.permute.xlu0 %96 }
  0x83   :  { %v99_v21 = vmul.f32 %v97_v18, %v93_v16  ;;  %v89_v27 = vmax.f32 %v88_v20, 0.0 }
  0x85   :  { %v105_v22 = vadd.f32 %v103_v17, %v99_v21  ;;  %v55_v25 = vpop.permute.xlu1 %54 }
  0x86   :  { %v50_v26 = vpop.permute.xlu0 %49  ;;  %v58_v29 = vmul.f32 %v237_v23, %v55_v25 }
  0x87   :  { %v106_v28 = vmax.f32 %v105_v22, 0.0  ;;  %v57_v30 = vmul.f32 %v236_v24, %v50_v26 }
  0x89   :  { %v108_v31 = vpack.c.bf16 %v106_v28, %v89_v27  ;;  %v67_v32 = vpop.permute.xlu1 %66 }
  0x8a   :  { %v62_v33 = vpop.permute.xlu0 %61  ;;  %v70_v34 = vadd.f32 %v67_v32, %v58_v29 }
  0x8b   :  { %v69_v35 = vadd.f32 %v62_v33, %v57_v30  ;;  %244 = vmatpush3.bf16.msra.mxu0 %v108_v31 }
  0x8c   :  { %245 = vmatprep.subr.bf16.mxu0 %v264_v7  ;;  %v72_v36 = vmax.f32 %v70_v34, 0.0 }
  0x8d   :  { %v71_v37 = vmax.f32 %v69_v35, 0.0 }
  0x8f   :  { %v107_v38 = vpack.c.bf16 %v72_v36, %v71_v37 }
  0x91   :  { %246 = vmatpush3.bf16.msra.mxu0 %v107_v38 }
  0x94   :  { %248 = vmatmul.mubr.msk.bf16.vlgmr.msra.gmra.mxu0 %vm116_vm1, %v262_v39 }
 0x154   :  { %v154_v42 = vpop.f32.mrf.mxu0 }
 0x156   :  { %v249_v43 = vpop.f32.mrf.mxu0 }
 0x158   :  { %v157_v44 = vpop.f32.mrf.mxu0 }
 0x159   :  { %v161_v45 = vpack.c.bf16 %v157_v44, %v154_v42 }
 0x15a   :  { %v250_v46 = vpop.f32.mrf.mxu0 }
 0x15b   :  { %254 = vmatmul.mubr.msk.bf16.vlgmr.msra.gmra.mxu1 %vm163_vm3, %v161_v45 }
 0x21b   :  { %v205_v47 = vpop.f32.mrf.mxu1 }
 0x21c   :  { %v232_v48 = vpack.c.bf16 %v205_v47, %v205_v47 }
 0x21d   :  { %v255_v49 = vpop.f32.mrf.mxu1 }
 0x21e   :  { %221 = vst.msk [vmem:[%s382_s11] sm:$0xf] %vm220_vm4, %v232_v48 }
 0x21f   :  { %v208_v50 = vpop.f32.mrf.mxu1 }
 0x220   :  { %v233_v51 = vpack.c.bf16 %v208_v50, %v208_v50 }
 0x221   :  { %v256_v52 = vpop.f32.mrf.mxu1 }
 0x222   :  { %222 = vst.msk [vmem:[%s382_s11 + $0x4] sm:$0xf] %vm220_vm4, %v233_v51 }

// kernel: densenet_forward.21
= control target key start
LH: loop header
LB: loop body
LE: loop exit
PB: predicated region body
PF: predicated region fallthrough
CT: control target
= control target key end

     0   :  { %v990_v0 = vmov 0   ;;  %vm127_vm0 = vcmask 195584   ;;  %vm134_vm1 = vcmask 1043456   ;;  %vm194_vm2 = vcmask 64512   ;;  %s1190_s4 = inlined_call_operand.vmem [shape: f32[8,1], index: 4, kind: input, shape index: {}]   ;;  %s1191_s1 = inlined_call_operand.vmem [shape: f32[16,1], index: 1, kind: input, shape index: {}]   ;;  %s1192_s5 = inlined_call_operand.vmem [shape: f32[8,1], index: 5, kind: input, shape index: {}]   ;;  %s1193_s2 = inlined_call_operand.vmem [shape: f32[16,1], index: 2, kind: input, shape index: {}]   ;;  %s1194_s7 = inlined_call_operand.vmem [shape: f32[32,1], index: 7, kind: input, shape index: {}]   ;;  %s1195_s6 = inlined_call_operand.vmem [shape: bf16[32,24], index: 6, kind: input, shape index: {}]   ;;  %s1196_s3 = inlined_call_operand.vmem [shape: bf16[8,8], index: 3, kind: input, shape index: {}]   ;;  %s1197_s0 = inlined_call_operand.vmem [shape: bf16[16,8], index: 0, kind: input, shape index: {}]   ;;  %s1198_s8 = inlined_call_operand.vmem [shape: bf16[9,8,8], index: 8, kind: input, shape index: {}]   ;;  %s1199_s9 = inlined_call_operand.vmem [shape: bf16[8,288], index: 9, kind: input, shape index: {}]   ;;  %s1200_s10 = inlined_call_operand.vmem [shape: bf16[8,8], index: 10, kind: output, shape index: {}]  }
   0x1   :  { %984 = vset.pattern.permute.xlu1 %v990_v0  ;;  %983 = vset.pattern.permute.xlu0 %v990_v0  ;;  %v71_v1 = vld [vmem:[%s1190_s4] sm:$0xff]  ;;  %v39_v4 = vld [vmem:[%s1191_s1 + $0x8] sm:$0xff]  ;;  %v95_v10 = vld [vmem:[%s1194_s7 + $0x10] sm:$0xff]  ;;  %vm992_vm3 = vmmov 0   ;;  %vm715_vm4 = vcmask 261120   ;;  %vm800_vm5 = vcmask 60416  }
   0x2   :  { %v38_v2 = vld [vmem:[%s1191_s1] sm:$0xff]  ;;  %76 = vperm.xlu0 %983, %v71_v1   ;;  %v41_v6 = vld [vmem:[%s1193_s2 + $0x8] sm:$0xff]  ;;  %v96_v11 = vld [vmem:[%s1194_s7 + $0x18] sm:$0xff] }
   0x3   :  { %46 = vperm.xlu1 %984, %v38_v2   ;;  %v72_v3 = vld [vmem:[%s1192_s5] sm:$0xff]  ;;  %v94_v8 = vld [vmem:[%s1194_s7 + $0x8] sm:$0xff]  ;;  %v824_v62 = vld [vmem:[%s1198_s8 + $0x14] sm:$0xf] }
   0x4   :  { %v40_v5 = vld [vmem:[%s1193_s2] sm:$0xff]  ;;  %v986_v35 = vld [vmem:[%s1195_s6 + $0x8] sm:$0xff]   ;;  %v821_v63 = vld [vmem:[%s1198_s8 + $0x10] sm:$0xf]  ;;  %v472_v0 = vsel %vm134_vm1, %v824_v62, 0 }
   0x5   :  { %v93_v7 = vld [vmem:[%s1194_s7] sm:$0xff]  ;;  %v818_v40 = vld [vmem:[%s1198_s8 + $0xc] sm:$0xf]  ;;  %v815_v41 = vld [vmem:[%s1198_s8 + $0x8] sm:$0xf]  ;;  %v418_v1 = vsel %vm134_vm1, %v821_v63, 0 }
   0x6   :  { %82 = vperm.xlu0 %983, %v72_v3   ;;  %v985_v9 = vld [vmem:[%s1195_s6] sm:$0xff]   ;;  %v364_v60 = vsel %vm134_vm1, %v818_v40, 0  ;;  %v310_v61 = vsel %vm134_vm1, %v815_v41, 0  ;;  %v830_v2 = vld [vmem:[%s1198_s8 + $0x1c] sm:$0xf] }
   0x7   :  { %51 = vperm.xlu1 %984, %v39_v4   ;;  %904 = vmatprep.mubr.msk.bf16.mxu0 %vm127_vm0, %v985_v9  ;;  %v70_v12 = vld [vmem:[%s1196_s3] sm:$0xf]  ;;  %v812_v36 = vld [vmem:[%s1198_s8 + $0x4] sm:$0xf]  ;;  %v827_v3 = vld [vmem:[%s1198_s8 + $0x18] sm:$0xf] }
   0x8   :  { %v73_v13 = vunpack.c.l.bf16 %v70_v12  ;;  %v841_v16 = vld [vmem:[%s1197_s0] sm:$0xff]   ;;  %972 = vmatprep.subr.msk.bf16.mxu1 %vm134_vm1, %v812_v36  ;;  %v256_v38 = vsel %vm134_vm1, %v812_v36, 0  ;;  %v580_v4 = vsel %vm134_vm1, %v830_v2, 0 }
   0x9   :  { %v842_v18 = vunpack.c.l.bf16 %v841_v16  ;;  %v843_v19 = vunpack.c.h.bf16 %v841_v16  ;;  %v193_v37 = vld [vmem:[%s1198_s8] sm:$0xf]  ;;  %915 = vmatpush3.bf16.msra.mxu1 %v256_v38 }
   0xa   :  { %58 = vperm.xlu0 %983, %v40_v5   ;;  %v202_v39 = vsel %vm134_vm1, %v193_v37, 0  ;;  %974 = vmatprep.subr.msk.bf16.mxu1 %vm134_vm1, %v818_v40  ;;  %v526_v5 = vsel %vm134_vm1, %v827_v3, 0  ;;  %v1160_v9 = vld [vmem:[%s1199_s9] sm:$0xff] }
   0xb   :  { %63 = vperm.xlu1 %984, %v41_v6   ;;  %v833_v6 = vld [vmem:[%s1198_s8 + $0x20] sm:$0xf] }
   0xe   :  { %99 = vperm.xlu0 %983, %v93_v7   ;;  %v634_v7 = vsel %vm134_vm1, %v833_v6, 0 }
   0xf   :  { %104 = vperm.xlu1 %984, %v94_v8   ;;  %v991_v8 = vmov 0.0  }
  0x12   :  { %109 = vperm.xlu0 %983, %v95_v10   ;;  %v837_v10 = vcombine.high %v1160_v9, %v1160_v9 }
  0x13   :  { %114 = vperm.xlu1 %984, %v96_v11  }
  0x7d   :  { %v77_v14 = vpop.permute.xlu0 %76 }
  0x7e   :  { %v47_v15 = vpop.permute.xlu1 %46  ;;  %v79_v17 = vmul.f32 %v77_v14, %v73_v13 }
  0x7f   :  { %v54_v23 = vmul.f32 %v842_v18, %v47_v15 }
  0x81   :  { %v83_v20 = vpop.permute.xlu0 %82 }
  0x82   :  { %v52_v21 = vpop.permute.xlu1 %51  ;;  %v85_v22 = vadd.f32 %v83_v20, %v79_v17 }
  0x83   :  { %v55_v25 = vmul.f32 %v843_v19, %v52_v21 }
  0x84   :  { %v86_v24 = vmax.f32 %v85_v22, 0.0 }
  0x85   :  { %v59_v26 = vpop.permute.xlu0 %58 }
  0x86   :  { %v64_v27 = vpop.permute.xlu1 %63  ;;  %v66_v28 = vadd.f32 %v59_v26, %v54_v23  ;;  %v88_v30 = vpack.c.bf16 %v86_v24, %v86_v24 }
  0x87   :  { %v67_v29 = vadd.f32 %v64_v27, %v55_v25 }
  0x88   :  { %v68_v31 = vmax.f32 %v66_v28, 0.0  ;;  %970 = vmatprep.subr.msk.bf16.mxu0 %vm134_vm1, %v88_v30  ;;  %v136_v33 = vsel %vm134_vm1, %v88_v30, 0 }
  0x89   :  { %v69_v32 = vmax.f32 %v67_v29, 0.0  ;;  %901 = vmatpush3.bf16.msra.mxu0 %v136_v33  ;;  %v100_v43 = vpop.permute.xlu0 %99 }
  0x8a   :  { %v105_v42 = vpop.permute.xlu1 %104 }
  0x8b   :  { %v87_v34 = vpack.c.bf16 %v69_v32, %v68_v31 }
  0x8d   :  { %902 = vmatprep.subr.bf16.mxu0 %v87_v34  ;;  %v110_v48 = vpop.permute.xlu0 %109 }
  0x8e   :  { %903 = vmatpush3.bf16.msra.mxu0 %v87_v34  ;;  %v115_v46 = vpop.permute.xlu1 %114 }
  0x8f   :  { %971 = vmatprep.subr.msk.bf16.mxu0 %vm134_vm1, %v193_v37 }
  0x91   :  { %905 = vmatmul.mubr.msk.bf16.vlgmr.msra.gmra.mxu0 %vm127_vm0, %v986_v35 }
  0x92   :  { %909 = vmatpush3.bf16.msra.mxu0 %v202_v39 }
  0x93   :  { %973 = vmatprep.subr.msk.bf16.mxu0 %vm134_vm1, %v815_v41 }
 0x151   :  { %v906_v44 = vpop.f32.mrf.mxu0 }
 0x152   :  { %v181_v51 = vadd.f32 %v906_v44, %v110_v48 }
 0x153   :  { %v172_v45 = vpop.f32.mrf.mxu0 }
 0x154   :  { %v173_v49 = vadd.f32 %v172_v45, %v100_v43  ;;  %v189_v57 = vmax.f32 %v181_v51, 0.0 }
 0x155   :  { %v907_v47 = vpop.f32.mrf.mxu0 }
 0x156   :  { %v184_v50 = vadd.f32 %v907_v47, %v115_v46  ;;  %v187_v55 = vmax.f32 %v173_v49, 0.0 }
 0x157   :  { %v175_v52 = vpop.f32.mrf.mxu0 }
 0x158   :  { %v176_v53 = vadd.f32 %v175_v52, %v105_v42  ;;  %v190_v54 = vmax.f32 %v184_v50, 0.0 }
 0x15a   :  { %v188_v56 = vmax.f32 %v176_v53, 0.0  ;;  %v192_v59 = vpack.c.bf16 %v190_v54, %v189_v57  ;;  %v987_v57 = vld [vmem:[%s1199_s9 + $0x8] ss:$0 sps:$4 sm:$0xff]  }
 0x15c   :  { %v191_v58 = vpack.c.bf16 %v188_v56, %v187_v55 }
 0x15e   :  { %910 = vmatprep.mubr.msk.bf16.mxu0 %vm194_vm2, %v191_v58  ;;  %916 = vmatprep.mubr.msk.bf16.mxu1 %vm194_vm2, %v191_v58 }
 0x15f   :  { %911 = vmatmul.mubr.msk.bf16.vlgmr.msra.gmra.mxu0 %vm194_vm2, %v192_v59  ;;  %917 = vmatmul.mubr.msk.bf16.vlgmr.msra.gmra.mxu1 %vm194_vm2, %v192_v59 }
 0x160   :  { %927 = vmatpush3.bf16.msra.mxu1 %v364_v60  ;;  %922 = vmatprep.mubr.msk.bf16.mxu0 %vm194_vm2, %v191_v58 }
 0x161   :  { %928 = vmatprep.mubr.msk.bf16.mxu1 %vm194_vm2, %v191_v58  ;;  %921 = vmatpush3.bf16.msra.mxu0 %v310_v61 }
 0x162   :  { %976 = vmatprep.subr.msk.bf16.mxu1 %vm134_vm1, %v824_v62  ;;  %975 = vmatprep.subr.msk.bf16.mxu0 %vm134_vm1, %v821_v63 }
 0x167   :  { %923 = vmatmul.mubr.msk.bf16.vlgmr.msra.gmra.mxu0 %vm194_vm2, %v192_v59  ;;  %929 = vmatmul.mubr.msk.bf16.vlgmr.msra.gmra.mxu1 %vm194_vm2, %v192_v59 }
 0x168   :  { %939 = vmatpush3.bf16.msra.mxu1 %v472_v0  ;;  %934 = vmatprep.mubr.msk.bf16.mxu0 %vm194_vm2, %v191_v58 }
 0x169   :  { %940 = vmatprep.mubr.msk.bf16.mxu1 %vm194_vm2, %v191_v58  ;;  %933 = vmatpush3.bf16.msra.mxu0 %v418_v1 }
 0x16a   :  { %978 = vmatprep.subr.msk.bf16.mxu1 %vm134_vm1, %v830_v2  ;;  %977 = vmatprep.subr.msk.bf16.mxu0 %vm134_vm1, %v827_v3  ;;  %v836_v2 = vcombine.low %v1160_v9, %v1160_v9 }
 0x16f   :  { %935 = vmatmul.mubr.msk.bf16.vlgmr.msra.gmra.mxu0 %vm194_vm2, %v192_v59  ;;  %941 = vmatmul.mubr.msk.bf16.vlgmr.msra.gmra.mxu1 %vm194_vm2, %v192_v59 }
 0x170   :  { %951 = vmatpush3.bf16.msra.mxu1 %v580_v4  ;;  %946 = vmatprep.mubr.msk.bf16.mxu0 %vm194_vm2, %v191_v58 }
 0x171   :  { %952 = vmatprep.mubr.msk.bf16.mxu1 %vm194_vm2, %v191_v58  ;;  %945 = vmatpush3.bf16.msra.mxu0 %v526_v5 }
 0x172   :  { %979 = vmatprep.subr.msk.bf16.mxu0 %vm134_vm1, %v833_v6 }
 0x177   :  { %947 = vmatmul.mubr.msk.bf16.vlgmr.msra.gmra.mxu0 %vm194_vm2, %v192_v59  ;;  %953 = vmatmul.mubr.msk.bf16.vlgmr.msra.gmra.mxu1 %vm194_vm2, %v192_v59 }
 0x178   :  { %958 = vmatprep.mubr.msk.bf16.mxu0 %vm194_vm2, %v191_v58  ;;  %957 = vmatpush3.bf16.msra.mxu0 %v634_v7 }
 0x179   :  { %962 = vmatprep.subr.bf16.mxu0 %v991_v8  ;;  %751 = vmatprep.mubr.bf16.mxu1 %v837_v10 }
 0x17f   :  { %959 = vmatmul.mubr.msk.bf16.vlgmr.msra.gmra.mxu0 %vm194_vm2, %v192_v59 }
 0x180   :  { %966 = vmatprep.mubr.msk.bf16.mxu0 %vm992_vm3, %v991_v8 }
 0x21f   :  { %v1164_v11 = vpop.f32.mrf.mxu0  ;;  %v1166_v12 = vpop.f32.mrf.mxu1 }
 0x221   :  { %v1168_v13 = vpop.f32.mrf.mxu0  ;;  %v1170_v14 = vpop.f32.mrf.mxu1 }
 0x223   :  { %v1172_v15 = vpop.f32.mrf.mxu0  ;;  %v919_v16 = vpop.f32.mrf.mxu1 }
 0x224   :  { %v688_v59 = vpack.c.bf16 %v919_v16, %v1166_v12  ;;  %v686_v63 = vpack.c.bf16 %v1172_v15, %v1164_v11 }
 0x225   :  { %v1174_v17 = vpop.f32.mrf.mxu0  ;;  %v295_v18 = vpop.f32.mrf.mxu1 }
 0x226   :  { %v687_v61 = vpack.c.bf16 %v295_v18, %v1170_v14  ;;  %v685_v1 = vpack.c.bf16 %v1174_v17, %v1168_v13 }
 0x227   :  { %v924_v19 = vpop.f32.mrf.mxu0  ;;  %v930_v20 = vpop.f32.mrf.mxu1 }
 0x229   :  { %v346_v21 = vpop.f32.mrf.mxu0  ;;  %v400_v22 = vpop.f32.mrf.mxu1 }
 0x22b   :  { %v925_v23 = vpop.f32.mrf.mxu0  ;;  %v931_v24 = vpop.f32.mrf.mxu1 }
 0x22c   :  { %v692_v42 = vpack.c.bf16 %v931_v24, %v930_v20  ;;  %v690_v52 = vpack.c.bf16 %v925_v23, %v924_v19 }
 0x22d   :  { %v349_v25 = vpop.f32.mrf.mxu0  ;;  %v403_v26 = vpop.f32.mrf.mxu1 }
 0x22e   :  { %v691_v47 = vpack.c.bf16 %v403_v26, %v400_v22  ;;  %v689_v56 = vpack.c.bf16 %v349_v25, %v346_v21 }
 0x22f   :  { %v936_v27 = vpop.f32.mrf.mxu0  ;;  %v942_v28 = vpop.f32.mrf.mxu1 }
 0x231   :  { %v454_v29 = vpop.f32.mrf.mxu0  ;;  %v508_v30 = vpop.f32.mrf.mxu1 }
 0x233   :  { %v937_v31 = vpop.f32.mrf.mxu0  ;;  %v943_v32 = vpop.f32.mrf.mxu1 }
 0x234   :  { %v696_v58 = vpack.c.bf16 %v943_v32, %v942_v28  ;;  %v694_v62 = vpack.c.bf16 %v937_v31, %v936_v27 }
 0x235   :  { %v457_v33 = vpop.f32.mrf.mxu0  ;;  %v511_v34 = vpop.f32.mrf.mxu1 }
 0x236   :  { %v695_v60 = vpack.c.bf16 %v511_v34, %v508_v30  ;;  %v693_v0 = vpack.c.bf16 %v457_v33, %v454_v29 }
 0x237   :  { %v948_v35 = vpop.f32.mrf.mxu0  ;;  %v954_v36 = vpop.f32.mrf.mxu1 }
 0x239   :  { %v562_v37 = vpop.f32.mrf.mxu0  ;;  %v616_v38 = vpop.f32.mrf.mxu1 }
 0x23b   :  { %v949_v39 = vpop.f32.mrf.mxu0  ;;  %v955_v40 = vpop.f32.mrf.mxu1 }
 0x23c   :  { %v700_v41 = vpack.c.bf16 %v955_v40, %v954_v36  ;;  %v698_v49 = vpack.c.bf16 %v949_v39, %v948_v35 }
 0x23d   :  { %v565_v43 = vpop.f32.mrf.mxu0  ;;  %v619_v44 = vpop.f32.mrf.mxu1 }
 0x23e   :  { %v699_v45 = vpack.c.bf16 %v619_v44, %v616_v38  ;;  %875 = vmatprep.subr.bf16.mxu1 %v700_v41  ;;  %v697_v54 = vpack.c.bf16 %v565_v43, %v562_v37 }
 0x23f   :  { %v960_v46 = vpop.f32.mrf.mxu0  ;;  %876 = vmatpush3.bf16.msra.mxu1 %v692_v42 }
 0x240   :  { %877 = vmatprep.subr.bf16.mxu1 %v699_v45 }
 0x241   :  { %v670_v48 = vpop.f32.mrf.mxu0 }
 0x243   :  { %v961_v50 = vpop.f32.mrf.mxu0  ;;  %878 = vmatpush3.bf16.msra.mxu1 %v691_v47 }
 0x244   :  { %v702_v51 = vpack.c.bf16 %v961_v50, %v960_v46  ;;  %879 = vmatprep.subr.bf16.mxu1 %v698_v49 }
 0x245   :  { %v673_v53 = vpop.f32.mrf.mxu0 }
 0x246   :  { %963 = vmatpush3.bf16.msra.mxu0 %v702_v51  ;;  %v701_v55 = vpack.c.bf16 %v673_v53, %v670_v48 }
 0x247   :  { %880 = vmatpush3.bf16.msra.mxu1 %v690_v52  ;;  %964 = vmatprep.subr.bf16.mxu0 %v991_v8 }
 0x248   :  { %881 = vmatprep.subr.bf16.mxu1 %v697_v54 }
 0x24a   :  { %965 = vmatpush3.bf16.msra.mxu0 %v701_v55 }
 0x24b   :  { %882 = vmatpush3.bf16.msra.mxu1 %v689_v56 }
 0x24c   :  { %883 = vmatprep.subr.bf16.mxu1 %v696_v58 }
 0x24d   :  { %967 = vmatmul.mubr.msk.bf16.vlgmr.msra.gmra.mxu0 %vm715_vm4, %v987_v57 }
 0x24f   :  { %884 = vmatpush3.bf16.msra.mxu1 %v688_v59 }
 0x250   :  { %885 = vmatprep.subr.bf16.mxu1 %v695_v60 }
 0x253   :  { %886 = vmatpush3.bf16.msra.mxu1 %v687_v61 }
 0x254   :  { %887 = vmatprep.subr.bf16.mxu1 %v694_v62 }
 0x257   :  { %888 = vmatpush3.bf16.msra.mxu1 %v686_v63 }
 0x258   :  { %889 = vmatprep.subr.bf16.mxu1 %v693_v0 }
 0x25b   :  { %890 = vmatpush3.bf16.msra.mxu1 %v685_v1 }
 0x25e   :  { %752 = vmatmul.mubr.bf16.vlgmr.msra.gmra.mxu1 %v836_v2 }
 0x30d   :  { %v793_v3 = vpop.f32.mrf.mxu0 }
 0x30f   :  { %v968_v4 = vpop.f32.mrf.mxu0 }
 0x311   :  { %v796_v5 = vpop.f32.mrf.mxu0 }
 0x313   :  { %v969_v6 = vpop.f32.mrf.mxu0 }
 0x31e   :  { %v891_v7 = vpop.f32.mrf.mxu1 }
 0x320   :  { %v892_v8 = vpop.f32.mrf.mxu1 }
 0x321   :  { %v893_v10 = vadd.f32 %v892_v8, %v891_v7 }
 0x322   :  { %v894_v12 = vpop.f32.mrf.mxu1 }
 0x323   :  { %v794_v11 = vadd.f32 %v893_v10, %v793_v3 }
 0x324   :  { %v895_v14 = vpop.f32.mrf.mxu1 }
 0x325   :  { %v799_v15 = vpack.c.bf16 %v794_v11, %v794_v11 }
 0x327   :  { %801 = vst.msk [vmem:[%s1200_s10] sm:$0xf] %vm800_vm5, %v799_v15 }

// kernel: densenet_forward.23
= control target key start
LH: loop header
LB: loop body
LE: loop exit
PB: predicated region body
PF: predicated region fallthrough
CT: control target
= control target key end

     0   :  { %v956_v0 = vmov 0   ;;  %vm100_vm0 = vcmask 130048   ;;  %vm170_vm1 = vcmask 1040384   ;;  %vm163_vm2 = vcmask 15360   ;;  %s1130_s2 = inlined_call_operand.vmem [shape: f32[16,1], index: 2, kind: input, shape index: {}]   ;;  %s1131_s1 = inlined_call_operand.vmem [shape: f32[16,1], index: 1, kind: input, shape index: {}]   ;;  %s1132_s4 = inlined_call_operand.vmem [shape: f32[32,1], index: 4, kind: input, shape index: {}]   ;;  %s1133_s3 = inlined_call_operand.vmem [shape: bf16[32,16], index: 3, kind: input, shape index: {}]   ;;  %s1134_s0 = inlined_call_operand.vmem [shape: bf16[16,2], index: 0, kind: input, shape index: {}]   ;;  %s1135_s5 = inlined_call_operand.vmem [shape: bf16[9,2,2], index: 5, kind: input, shape index: {}]   ;;  %s1136_s6 = inlined_call_operand.vmem [shape: bf16[8,288], index: 6, kind: input, shape index: {}]   ;;  %s1137_s7 = inlined_call_operand.vmem [shape: bf16[8,2], index: 7, kind: output, shape index: {}]  }
   0x1   :  { %950 = vset.pattern.permute.xlu1 %v956_v0  ;;  %949 = vset.pattern.permute.xlu0 %v956_v0  ;;  %v31_v1 = vld [vmem:[%s1130_s2] sm:$0xff]  ;;  %v32_v3 = vld [vmem:[%s1130_s2 + $0x8] sm:$0xff]  ;;  %v69_v7 = vld [vmem:[%s1132_s4 + $0x18] sm:$0xff]  ;;  %v957_v61 = vmov 0.0   ;;  %vm958_vm3 = vmmov 0   ;;  %vm685_vm4 = vcmask 261120  }
   0x2   :  { %v29_v2 = vld [vmem:[%s1131_s1] sm:$0xff]  ;;  %49 = vperm.xlu1 %950, %v31_v1   ;;  %v30_v4 = vld [vmem:[%s1131_s1 + $0x8] sm:$0xff]  ;;  %v68_v8 = vld [vmem:[%s1132_s4 + $0x10] sm:$0xff]  ;;  %vm770_vm5 = vcmask 11264  }
   0x3   :  { %37 = vperm.xlu0 %949, %v29_v2   ;;  %v67_v5 = vld [vmem:[%s1132_s4 + $0x8] sm:$0xff]  ;;  %v66_v6 = vld [vmem:[%s1132_s4] sm:$0xff] }
   0x4   :  { %v951_v9 = vld [vmem:[%s1133_s3] sm:$0xff]   ;;  %v952_v24 = vld [vmem:[%s1133_s3 + $0x8] sm:$0xff]  }
   0x5   :  { %871 = vmatprep.mubr.msk.bf16.mxu1 %vm100_vm0, %v951_v9  ;;  %v811_v10 = vld [vmem:[%s1134_s0] sm:$0xff]   ;;  %v803_v59 = vld [vmem:[%s1135_s5 + $0x8] sm:$0x1] }
   0x6   :  { %54 = vperm.xlu1 %950, %v32_v3   ;;  %v812_v11 = vunpack.c.l.bf16 %v811_v10  ;;  %v813_v15 = vunpack.c.h.bf16 %v811_v10  ;;  %v782_v25 = vld [vmem:[%s1135_s5 + $0x1] sm:$0x1]  ;;  %v162_v26 = vld [vmem:[%s1135_s5] sm:$0x1]  ;;  %v788_v29 = vld [vmem:[%s1135_s5 + $0x3] sm:$0x1] }
   0x7   :  { %42 = vperm.xlu0 %949, %v30_v4   ;;  %938 = vmatprep.subr.msk.bf16.mxu0 %vm170_vm1, %v782_v25  ;;  %v226_v27 = vsel %vm170_vm1, %v782_v25, 0  ;;  %v172_v28 = vsel %vm170_vm1, %v162_v26, 0  ;;  %v785_v30 = vld [vmem:[%s1135_s5 + $0x2] sm:$0x1]  ;;  %v334_v49 = vsel %vm170_vm1, %v788_v29, 0  ;;  %v604_v60 = vsel %vm170_vm1, %v803_v59, 0 }
   0x8   :  { %882 = vmatpush3.bf16.msra.mxu0 %v226_v27  ;;  %v280_v50 = vsel %vm170_vm1, %v785_v30, 0  ;;  %v794_v51 = vld [vmem:[%s1135_s5 + $0x5] sm:$0x1]  ;;  %v791_v52 = vld [vmem:[%s1135_s5 + $0x4] sm:$0x1] }
   0x9   :  { %940 = vmatprep.subr.msk.bf16.mxu0 %vm170_vm1, %v788_v29  ;;  %v442_v53 = vsel %vm170_vm1, %v794_v51, 0  ;;  %v388_v54 = vsel %vm170_vm1, %v791_v52, 0  ;;  %v800_v55 = vld [vmem:[%s1135_s5 + $0x7] sm:$0x1]  ;;  %v797_v56 = vld [vmem:[%s1135_s5 + $0x6] sm:$0x1] }
   0xa   :  { %77 = vperm.xlu1 %950, %v67_v5   ;;  %v550_v57 = vsel %vm170_vm1, %v800_v55, 0  ;;  %v496_v58 = vsel %vm170_vm1, %v797_v56, 0  ;;  %v1100_v62 = vld [vmem:[%s1136_s6] sm:$0xff] }
   0xb   :  { %72 = vperm.xlu0 %949, %v66_v6   ;;  %v807_v63 = vcombine.high %v1100_v62, %v1100_v62 }
   0xe   :  { %87 = vperm.xlu1 %950, %v69_v7  }
   0xf   :  { %82 = vperm.xlu0 %949, %v68_v8  }
  0x7d   :  { %v50_v12 = vpop.permute.xlu1 %49 }
  0x7e   :  { %v38_v13 = vpop.permute.xlu0 %37 }
  0x7f   :  { %v45_v14 = vmul.f32 %v812_v11, %v38_v13 }
  0x81   :  { %v57_v17 = vadd.f32 %v50_v12, %v45_v14  ;;  %v55_v19 = vpop.permute.xlu1 %54 }
  0x82   :  { %v43_v16 = vpop.permute.xlu0 %42 }
  0x83   :  { %v46_v18 = vmul.f32 %v813_v15, %v43_v16  ;;  %v59_v21 = vmax.f32 %v57_v17, 0.0 }
  0x85   :  { %v58_v20 = vadd.f32 %v55_v19, %v46_v18  ;;  %v78_v31 = vpop.permute.xlu1 %77 }
  0x86   :  { %v73_v32 = vpop.permute.xlu0 %72 }
  0x87   :  { %v60_v22 = vmax.f32 %v58_v20, 0.0 }
  0x89   :  { %v61_v23 = vpack.c.bf16 %v60_v22, %v59_v21  ;;  %v88_v35 = vpop.permute.xlu1 %87 }
  0x8a   :  { %v83_v37 = vpop.permute.xlu0 %82 }
  0x8b   :  { %869 = vmatprep.subr.bf16.mxu1 %v61_v23 }
  0x8c   :  { %870 = vmatpush3.bf16.msra.mxu1 %v61_v23 }
  0x8d   :  { %937 = vmatprep.subr.msk.bf16.mxu1 %vm170_vm1, %v162_v26 }
  0x8f   :  { %872 = vmatmul.mubr.msk.bf16.vlgmr.msra.gmra.mxu1 %vm100_vm0, %v952_v24 }
  0x90   :  { %876 = vmatpush3.bf16.msra.mxu1 %v172_v28 }
  0x91   :  { %939 = vmatprep.subr.msk.bf16.mxu1 %vm170_vm1, %v785_v30 }
 0x14f   :  { %v873_v33 = vpop.f32.mrf.mxu1 }
 0x150   :  { %v150_v40 = vadd.f32 %v873_v33, %v83_v37 }
 0x151   :  { %v141_v34 = vpop.f32.mrf.mxu1 }
 0x152   :  { %v142_v38 = vadd.f32 %v141_v34, %v73_v32  ;;  %v158_v46 = vmax.f32 %v150_v40, 0.0 }
 0x153   :  { %v874_v36 = vpop.f32.mrf.mxu1 }
 0x154   :  { %v153_v39 = vadd.f32 %v874_v36, %v88_v35  ;;  %v156_v44 = vmax.f32 %v142_v38, 0.0 }
 0x155   :  { %v144_v41 = vpop.f32.mrf.mxu1 }
 0x156   :  { %v145_v42 = vadd.f32 %v144_v41, %v78_v31  ;;  %v159_v43 = vmax.f32 %v153_v39, 0.0 }
 0x158   :  { %v157_v45 = vmax.f32 %v145_v42, 0.0  ;;  %v161_v48 = vpack.c.bf16 %v159_v43, %v158_v46  ;;  %v953_v46 = vld [vmem:[%s1136_s6 + $0x8] ss:$0 sps:$4 sm:$0xff]  }
 0x15a   :  { %v160_v47 = vpack.c.bf16 %v157_v45, %v156_v44 }
 0x15c   :  { %877 = vmatprep.mubr.msk.bf16.mxu1 %vm163_vm2, %v160_v47  ;;  %883 = vmatprep.mubr.msk.bf16.mxu0 %vm163_vm2, %v160_v47 }
 0x15d   :  { %878 = vmatmul.mubr.msk.bf16.vlgmr.msra.gmra.mxu1 %vm163_vm2, %v161_v48  ;;  %884 = vmatmul.mubr.msk.bf16.vlgmr.msra.gmra.mxu0 %vm163_vm2, %v161_v48 }
 0x15e   :  { %894 = vmatpush3.bf16.msra.mxu0 %v334_v49  ;;  %889 = vmatprep.mubr.msk.bf16.mxu1 %vm163_vm2, %v160_v47 }
 0x15f   :  { %895 = vmatprep.mubr.msk.bf16.mxu0 %vm163_vm2, %v160_v47  ;;  %888 = vmatpush3.bf16.msra.mxu1 %v280_v50 }
 0x160   :  { %942 = vmatprep.subr.msk.bf16.mxu0 %vm170_vm1, %v794_v51  ;;  %941 = vmatprep.subr.msk.bf16.mxu1 %vm170_vm1, %v791_v52 }
 0x165   :  { %890 = vmatmul.mubr.msk.bf16.vlgmr.msra.gmra.mxu1 %vm163_vm2, %v161_v48  ;;  %896 = vmatmul.mubr.msk.bf16.vlgmr.msra.gmra.mxu0 %vm163_vm2, %v161_v48 }
 0x166   :  { %906 = vmatpush3.bf16.msra.mxu0 %v442_v53  ;;  %901 = vmatprep.mubr.msk.bf16.mxu1 %vm163_vm2, %v160_v47 }
 0x167   :  { %907 = vmatprep.mubr.msk.bf16.mxu0 %vm163_vm2, %v160_v47  ;;  %900 = vmatpush3.bf16.msra.mxu1 %v388_v54 }
 0x168   :  { %944 = vmatprep.subr.msk.bf16.mxu0 %vm170_vm1, %v800_v55  ;;  %943 = vmatprep.subr.msk.bf16.mxu1 %vm170_vm1, %v797_v56  ;;  %v806_v55 = vcombine.low %v1100_v62, %v1100_v62 }
 0x16d   :  { %902 = vmatmul.mubr.msk.bf16.vlgmr.msra.gmra.mxu1 %vm163_vm2, %v161_v48  ;;  %908 = vmatmul.mubr.msk.bf16.vlgmr.msra.gmra.mxu0 %vm163_vm2, %v161_v48 }
 0x16e   :  { %918 = vmatpush3.bf16.msra.mxu0 %v550_v57  ;;  %913 = vmatprep.mubr.msk.bf16.mxu1 %vm163_vm2, %v160_v47 }
 0x16f   :  { %919 = vmatprep.mubr.msk.bf16.mxu0 %vm163_vm2, %v160_v47  ;;  %912 = vmatpush3.bf16.msra.mxu1 %v496_v58 }
 0x170   :  { %945 = vmatprep.subr.msk.bf16.mxu1 %vm170_vm1, %v803_v59 }
 0x175   :  { %914 = vmatmul.mubr.msk.bf16.vlgmr.msra.gmra.mxu1 %vm163_vm2, %v161_v48  ;;  %920 = vmatmul.mubr.msk.bf16.vlgmr.msra.gmra.mxu0 %vm163_vm2, %v161_v48 }
 0x176   :  { %925 = vmatprep.mubr.msk.bf16.mxu1 %vm163_vm2, %v160_v47  ;;  %924 = vmatpush3.bf16.msra.mxu1 %v604_v60 }
 0x177   :  { %929 = vmatprep.subr.bf16.mxu1 %v957_v61  ;;  %721 = vmatprep.mubr.bf16.mxu0 %v807_v63 }
 0x17d   :  { %926 = vmatmul.mubr.msk.bf16.vlgmr.msra.gmra.mxu1 %vm163_vm2, %v161_v48 }
 0x17e   :  { %933 = vmatprep.mubr.msk.bf16.mxu1 %vm958_vm3, %v957_v61 }
 0x21d   :  { %v1104_v0 = vpop.f32.mrf.mxu1  ;;  %v1106_v1 = vpop.f32.mrf.mxu0 }
 0x21f   :  { %v1108_v2 = vpop.f32.mrf.mxu1  ;;  %v1110_v3 = vpop.f32.mrf.mxu0 }
 0x221   :  { %v1112_v4 = vpop.f32.mrf.mxu1  ;;  %v886_v5 = vpop.f32.mrf.mxu0 }
 0x222   :  { %v658_v48 = vpack.c.bf16 %v886_v5, %v1106_v1  ;;  %v656_v52 = vpack.c.bf16 %v1112_v4, %v1104_v0 }
 0x223   :  { %v1114_v6 = vpop.f32.mrf.mxu1  ;;  %v265_v7 = vpop.f32.mrf.mxu0 }
 0x224   :  { %v657_v50 = vpack.c.bf16 %v265_v7, %v1110_v3  ;;  %v655_v54 = vpack.c.bf16 %v1114_v6, %v1108_v2 }
 0x225   :  { %v891_v8 = vpop.f32.mrf.mxu1  ;;  %v897_v9 = vpop.f32.mrf.mxu0 }
 0x227   :  { %v316_v10 = vpop.f32.mrf.mxu1  ;;  %v370_v11 = vpop.f32.mrf.mxu0 }
 0x229   :  { %v892_v12 = vpop.f32.mrf.mxu1  ;;  %v898_v13 = vpop.f32.mrf.mxu0 }
 0x22a   :  { %v662_v31 = vpack.c.bf16 %v898_v13, %v897_v9  ;;  %v660_v41 = vpack.c.bf16 %v892_v12, %v891_v8 }
 0x22b   :  { %v319_v14 = vpop.f32.mrf.mxu1  ;;  %v373_v15 = vpop.f32.mrf.mxu0 }
 0x22c   :  { %v661_v36 = vpack.c.bf16 %v373_v15, %v370_v11  ;;  %v659_v45 = vpack.c.bf16 %v319_v14, %v316_v10 }
 0x22d   :  { %v903_v16 = vpop.f32.mrf.mxu1  ;;  %v909_v17 = vpop.f32.mrf.mxu0 }
 0x22f   :  { %v424_v18 = vpop.f32.mrf.mxu1  ;;  %v478_v19 = vpop.f32.mrf.mxu0 }
 0x231   :  { %v904_v20 = vpop.f32.mrf.mxu1  ;;  %v910_v21 = vpop.f32.mrf.mxu0 }
 0x232   :  { %v666_v47 = vpack.c.bf16 %v910_v21, %v909_v17  ;;  %v664_v51 = vpack.c.bf16 %v904_v20, %v903_v16 }
 0x233   :  { %v427_v22 = vpop.f32.mrf.mxu1  ;;  %v481_v23 = vpop.f32.mrf.mxu0 }
 0x234   :  { %v665_v49 = vpack.c.bf16 %v481_v23, %v478_v19  ;;  %v663_v53 = vpack.c.bf16 %v427_v22, %v424_v18 }
 0x235   :  { %v915_v24 = vpop.f32.mrf.mxu1  ;;  %v921_v25 = vpop.f32.mrf.mxu0 }
 0x237   :  { %v532_v26 = vpop.f32.mrf.mxu1  ;;  %v586_v27 = vpop.f32.mrf.mxu0 }
 0x239   :  { %v916_v28 = vpop.f32.mrf.mxu1  ;;  %v922_v29 = vpop.f32.mrf.mxu0 }
 0x23a   :  { %v670_v30 = vpack.c.bf16 %v922_v29, %v921_v25  ;;  %v668_v38 = vpack.c.bf16 %v916_v28, %v915_v24 }
 0x23b   :  { %v535_v32 = vpop.f32.mrf.mxu1  ;;  %v589_v33 = vpop.f32.mrf.mxu0 }
 0x23c   :  { %v669_v34 = vpack.c.bf16 %v589_v33, %v586_v27  ;;  %844 = vmatprep.subr.bf16.mxu0 %v670_v30  ;;  %v667_v43 = vpack.c.bf16 %v535_v32, %v532_v26 }
 0x23d   :  { %v927_v35 = vpop.f32.mrf.mxu1  ;;  %845 = vmatpush3.bf16.msra.mxu0 %v662_v31 }
 0x23e   :  { %846 = vmatprep.subr.bf16.mxu0 %v669_v34 }
 0x23f   :  { %v640_v37 = vpop.f32.mrf.mxu1 }
 0x241   :  { %v928_v39 = vpop.f32.mrf.mxu1  ;;  %847 = vmatpush3.bf16.msra.mxu0 %v661_v36 }
 0x242   :  { %v672_v40 = vpack.c.bf16 %v928_v39, %v927_v35  ;;  %848 = vmatprep.subr.bf16.mxu0 %v668_v38 }
 0x243   :  { %v643_v42 = vpop.f32.mrf.mxu1 }
 0x244   :  { %930 = vmatpush3.bf16.msra.mxu1 %v672_v40  ;;  %v671_v44 = vpack.c.bf16 %v643_v42, %v640_v37 }
 0x245   :  { %849 = vmatpush3.bf16.msra.mxu0 %v660_v41  ;;  %931 = vmatprep.subr.bf16.mxu1 %v957_v61 }
 0x246   :  { %850 = vmatprep.subr.bf16.mxu0 %v667_v43 }
 0x248   :  { %932 = vmatpush3.bf16.msra.mxu1 %v671_v44 }
 0x249   :  { %851 = vmatpush3.bf16.msra.mxu0 %v659_v45 }
 0x24a   :  { %852 = vmatprep.subr.bf16.mxu0 %v666_v47 }
 0x24b   :  { %934 = vmatmul.mubr.msk.bf16.vlgmr.msra.gmra.mxu1 %vm685_vm4, %v953_v46 }
 0x24d   :  { %853 = vmatpush3.bf16.msra.mxu0 %v658_v48 }
 0x24e   :  { %854 = vmatprep.subr.bf16.mxu0 %v665_v49 }
 0x251   :  { %855 = vmatpush3.bf16.msra.mxu0 %v657_v50 }
 0x252   :  { %856 = vmatprep.subr.bf16.mxu0 %v664_v51 }
 0x255   :  { %857 = vmatpush3.bf16.msra.mxu0 %v656_v52 }
 0x256   :  { %858 = vmatprep.subr.bf16.mxu0 %v663_v53 }
 0x259   :  { %859 = vmatpush3.bf16.msra.mxu0 %v655_v54 }
 0x25c   :  { %722 = vmatmul.mubr.bf16.vlgmr.msra.gmra.mxu0 %v806_v55 }
 0x30b   :  { %v763_v56 = vpop.f32.mrf.mxu1 }
 0x30d   :  { %v935_v57 = vpop.f32.mrf.mxu1 }
 0x30f   :  { %v766_v58 = vpop.f32.mrf.mxu1 }
 0x311   :  { %v936_v59 = vpop.f32.mrf.mxu1 }
 0x31c   :  { %v860_v60 = vpop.f32.mrf.mxu0 }
 0x31e   :  { %v861_v61 = vpop.f32.mrf.mxu0 }
 0x31f   :  { %v862_v63 = vadd.f32 %v861_v61, %v860_v60 }
 0x320   :  { %v863_v1 = vpop.f32.mrf.mxu0 }
 0x321   :  { %v764_v0 = vadd.f32 %v862_v63, %v763_v56 }
 0x322   :  { %v864_v3 = vpop.f32.mrf.mxu0 }
 0x323   :  { %v769_v4 = vpack.c.bf16 %v764_v0, %v764_v0 }
 0x325   :  { %771 = vst.msk [vmem:[%s1137_s7] sm:$0xf] %vm770_vm5, %v769_v4 }

// kernel: densenet_forward.25
= control target key start
LH: loop header
LB: loop body
LE: loop exit
PB: predicated region body
PF: predicated region fallthrough
CT: control target
= control target key end

     0   :  { %vm42_vm0 = vcmask 1040384   ;;  %vm35_vm1 = vcmask 15360   ;;  %v200_v6 = vmov 0.0   ;;  %vm201_vm2 = vmmov 0   ;;  %s269_s3 = inlined_call_operand.vmem [shape: bf16[2,2], index: 3, kind: input, shape index: {}]   ;;  %s270_s0 = inlined_call_operand.vmem [shape: bf16[16,2], index: 0, kind: input, shape index: {}]   ;;  %s271_s1 = inlined_call_operand.vmem [shape: bf16[8,2], index: 1, kind: input, shape index: {}]   ;;  %s272_s2 = inlined_call_operand.vmem [shape: bf16[8,2], index: 2, kind: input, shape index: {}]   ;;  %s273_s4 = inlined_call_operand.vmem [shape: bf16[16,32], index: 4, kind: input, shape index: {}]   ;;  %s274_s5 = inlined_call_operand.vmem [shape: f32[16,1], index: 5, kind: input, shape index: {}]   ;;  %s275_s6 = inlined_call_operand.vmem [shape: f32[16,2], index: 6, kind: output, shape index: {}]  }
   0x1   :  { %v34_v0 = vld [vmem:[%s269_s3] sm:$0x1]  ;;  %185 = vmatprep.subr.bf16.mxu1 %v200_v6  ;;  %189 = vmatprep.mubr.msk.bf16.mxu1 %vm201_vm2, %v200_v6  ;;  %v202_v7 = vmov 0   ;;  %v100_v9 = vld [vmem:[%s274_s5 + $0x8] sm:$0xff]  ;;  %vm116_vm3 = vcmask 261120  }
   0x2   :  { %193 = vmatprep.subr.msk.bf16.mxu0 %vm42_vm0, %v34_v0  ;;  %v44_v1 = vsel %vm42_vm0, %v34_v0, 0  ;;  %v198_v2 = vld [vmem:[%s270_s0] sm:$0xff]   ;;  %197 = vset.pattern.permute.xlu0 %v202_v7 }
   0x3   :  { %v28_v3 = vld [vmem:[%s271_s1] sm:$0xf]  ;;  %180 = vmatpush3.bf16.msra.mxu0 %v44_v1  ;;  %181 = vmatprep.mubr.msk.bf16.mxu0 %vm35_vm1, %v198_v2 }
   0x4   :  { %v30_v4 = vld [vmem:[%s272_s2] sm:$0xf] }
   0x5   :  { %v168_v5 = vcombine.low %v28_v3, %v30_v4  ;;  %v99_v8 = vld [vmem:[%s274_s5] sm:$0xff] }
   0x6   :  { %103 = vperm.xlu0 %197, %v99_v8   ;;  %v199_v16 = vld [vmem:[%s273_s4] sm:$0xff]  }
   0x7   :  { %182 = vmatmul.mubr.msk.bf16.vlgmr.msra.gmra.mxu0 %vm35_vm1, %v168_v5 }
   0xa   :  { %108 = vperm.xlu0 %197, %v100_v9  }
  0x81   :  { %v104_v17 = vpop.permute.xlu0 %103 }
  0x85   :  { %v109_v21 = vpop.permute.xlu0 %108 }
  0xc7   :  { %v183_v10 = vpop.f32.mrf.mxu0 }
  0xc9   :  { %v80_v11 = vpop.f32.mrf.mxu0 }
  0xcb   :  { %v184_v12 = vpop.f32.mrf.mxu0 }
  0xcc   :  { %v96_v13 = vpack.c.bf16 %v184_v12, %v183_v10 }
  0xcd   :  { %v83_v14 = vpop.f32.mrf.mxu0 }
  0xce   :  { %186 = vmatpush3.bf16.msra.mxu1 %v96_v13  ;;  %v95_v15 = vpack.c.bf16 %v83_v14, %v80_v11 }
  0xcf   :  { %187 = vmatprep.subr.bf16.mxu1 %v200_v6 }
  0xd2   :  { %188 = vmatpush3.bf16.msra.mxu1 %v95_v15 }
  0xd5   :  { %190 = vmatmul.mubr.msk.bf16.vlgmr.msra.gmra.mxu1 %vm116_vm3, %v199_v16 }
 0x195   :  { %v154_v18 = vpop.f32.mrf.mxu1 }
 0x196   :  { %v155_v19 = vadd.f32 %v154_v18, %v104_v17 }
 0x197   :  { %v191_v20 = vpop.f32.mrf.mxu1 }
 0x198   :  { %161 = vst.msk [vmem:[%s275_s6] sm:$0xff] %vm35_vm1, %v155_v19 }
 0x199   :  { %v157_v22 = vpop.f32.mrf.mxu1 }
 0x19a   :  { %v158_v23 = vadd.f32 %v157_v22, %v109_v21 }
 0x19b   :  { %v192_v24 = vpop.f32.mrf.mxu1 }
 0x19c   :  { %162 = vst.msk [vmem:[%s275_s6 + $0x8] sm:$0xff] %vm35_vm1, %v158_v23 }

// kernel: densenet_forward.24
= control target key start
LH: loop header
LB: loop body
LE: loop exit
PB: predicated region body
PF: predicated region fallthrough
CT: control target
= control target key end

     0   :  { %v991_v0 = vmov 0   ;;  %vm127_vm0 = vcmask 195584   ;;  %vm134_vm1 = vcmask 1043456   ;;  %vm201_vm2 = vcmask 1040384   ;;  %s1189_s4 = inlined_call_operand.vmem [shape: f32[8,1], index: 4, kind: input, shape index: {}]   ;;  %s1190_s1 = inlined_call_operand.vmem [shape: f32[16,1], index: 1, kind: input, shape index: {}]   ;;  %s1191_s5 = inlined_call_operand.vmem [shape: f32[8,1], index: 5, kind: input, shape index: {}]   ;;  %s1192_s2 = inlined_call_operand.vmem [shape: f32[16,1], index: 2, kind: input, shape index: {}]   ;;  %s1193_s7 = inlined_call_operand.vmem [shape: f32[32,1], index: 7, kind: input, shape index: {}]   ;;  %s1194_s6 = inlined_call_operand.vmem [shape: bf16[32,24], index: 6, kind: input, shape index: {}]   ;;  %s1195_s3 = inlined_call_operand.vmem [shape: bf16[8,2], index: 3, kind: input, shape index: {}]   ;;  %s1196_s0 = inlined_call_operand.vmem [shape: bf16[16,2], index: 0, kind: input, shape index: {}]   ;;  %s1197_s8 = inlined_call_operand.vmem [shape: bf16[9,2,2], index: 8, kind: input, shape index: {}]   ;;  %s1198_s9 = inlined_call_operand.vmem [shape: bf16[8,288], index: 9, kind: input, shape index: {}]   ;;  %s1199_s10 = inlined_call_operand.vmem [shape: bf16[8,2], index: 10, kind: output, shape index: {}]  }
   0x1   :  { %985 = vset.pattern.permute.xlu1 %v991_v0  ;;  %984 = vset.pattern.permute.xlu0 %v991_v0  ;;  %v71_v1 = vld [vmem:[%s1189_s4] sm:$0xff]  ;;  %v39_v4 = vld [vmem:[%s1190_s1 + $0x8] sm:$0xff]  ;;  %v95_v10 = vld [vmem:[%s1193_s7 + $0x10] sm:$0xff]  ;;  %vm194_vm3 = vcmask 15360   ;;  %vm993_vm4 = vmmov 0   ;;  %vm716_vm5 = vcmask 261120  }
   0x2   :  { %v38_v2 = vld [vmem:[%s1190_s1] sm:$0xff]  ;;  %76 = vperm.xlu0 %984, %v71_v1   ;;  %v41_v6 = vld [vmem:[%s1192_s2 + $0x8] sm:$0xff]  ;;  %v96_v11 = vld [vmem:[%s1193_s7 + $0x18] sm:$0xff]  ;;  %vm801_vm6 = vcmask 11264  }
   0x3   :  { %46 = vperm.xlu1 %985, %v38_v2   ;;  %v72_v3 = vld [vmem:[%s1191_s5] sm:$0xff]  ;;  %v94_v8 = vld [vmem:[%s1193_s7 + $0x8] sm:$0xff] }
   0x4   :  { %v40_v5 = vld [vmem:[%s1192_s2] sm:$0xff]  ;;  %v987_v35 = vld [vmem:[%s1194_s6 + $0x8] sm:$0xff]  }
   0x5   :  { %v93_v7 = vld [vmem:[%s1193_s7] sm:$0xff] }
   0x6   :  { %82 = vperm.xlu0 %984, %v72_v3   ;;  %v986_v9 = vld [vmem:[%s1194_s6] sm:$0xff]  }
   0x7   :  { %51 = vperm.xlu1 %985, %v39_v4   ;;  %905 = vmatprep.mubr.msk.bf16.mxu0 %vm127_vm0, %v986_v9  ;;  %v70_v12 = vld [vmem:[%s1195_s3] sm:$0xf]  ;;  %v825_v62 = vld [vmem:[%s1197_s8 + $0x5] sm:$0x1]  ;;  %v822_v63 = vld [vmem:[%s1197_s8 + $0x4] sm:$0x1] }
   0x8   :  { %v73_v13 = vunpack.c.l.bf16 %v70_v12  ;;  %v842_v16 = vld [vmem:[%s1196_s0] sm:$0xff]   ;;  %v473_v0 = vsel %vm201_vm2, %v825_v62, 0  ;;  %v419_v1 = vsel %vm201_vm2, %v822_v63, 0 }
   0x9   :  { %v843_v18 = vunpack.c.l.bf16 %v842_v16  ;;  %v844_v19 = vunpack.c.h.bf16 %v842_v16  ;;  %v813_v36 = vld [vmem:[%s1197_s8 + $0x1] sm:$0x1]  ;;  %v193_v37 = vld [vmem:[%s1197_s8] sm:$0x1]  ;;  %v819_v40 = vld [vmem:[%s1197_s8 + $0x3] sm:$0x1] }
   0xa   :  { %58 = vperm.xlu0 %984, %v40_v5   ;;  %973 = vmatprep.subr.msk.bf16.mxu1 %vm201_vm2, %v813_v36  ;;  %v257_v38 = vsel %vm201_vm2, %v813_v36, 0  ;;  %v203_v39 = vsel %vm201_vm2, %v193_v37, 0  ;;  %v816_v41 = vld [vmem:[%s1197_s8 + $0x2] sm:$0x1]  ;;  %v365_v60 = vsel %vm201_vm2, %v819_v40, 0 }
   0xb   :  { %63 = vperm.xlu1 %985, %v41_v6   ;;  %916 = vmatpush3.bf16.msra.mxu1 %v257_v38  ;;  %v311_v61 = vsel %vm201_vm2, %v816_v41, 0  ;;  %v831_v2 = vld [vmem:[%s1197_s8 + $0x7] sm:$0x1]  ;;  %v828_v3 = vld [vmem:[%s1197_s8 + $0x6] sm:$0x1] }
   0xc   :  { %975 = vmatprep.subr.msk.bf16.mxu1 %vm201_vm2, %v819_v40  ;;  %v581_v4 = vsel %vm201_vm2, %v831_v2, 0  ;;  %v527_v5 = vsel %vm201_vm2, %v828_v3, 0  ;;  %v834_v6 = vld [vmem:[%s1197_s8 + $0x8] sm:$0x1]  ;;  %v1159_v9 = vld [vmem:[%s1198_s9] sm:$0xff] }
   0xe   :  { %99 = vperm.xlu0 %984, %v93_v7   ;;  %v635_v7 = vsel %vm201_vm2, %v834_v6, 0 }
   0xf   :  { %104 = vperm.xlu1 %985, %v94_v8   ;;  %v992_v8 = vmov 0.0  }
  0x12   :  { %109 = vperm.xlu0 %984, %v95_v10   ;;  %v838_v10 = vcombine.high %v1159_v9, %v1159_v9 }
  0x13   :  { %114 = vperm.xlu1 %985, %v96_v11  }
  0x7d   :  { %v77_v14 = vpop.permute.xlu0 %76 }
  0x7e   :  { %v47_v15 = vpop.permute.xlu1 %46  ;;  %v79_v17 = vmul.f32 %v77_v14, %v73_v13 }
  0x7f   :  { %v54_v23 = vmul.f32 %v843_v18, %v47_v15 }
  0x81   :  { %v83_v20 = vpop.permute.xlu0 %82 }
  0x82   :  { %v52_v21 = vpop.permute.xlu1 %51  ;;  %v85_v22 = vadd.f32 %v83_v20, %v79_v17 }
  0x83   :  { %v55_v25 = vmul.f32 %v844_v19, %v52_v21 }
  0x84   :  { %v86_v24 = vmax.f32 %v85_v22, 0.0 }
  0x85   :  { %v59_v26 = vpop.permute.xlu0 %58 }
  0x86   :  { %v64_v27 = vpop.permute.xlu1 %63  ;;  %v66_v28 = vadd.f32 %v59_v26, %v54_v23  ;;  %v88_v30 = vpack.c.bf16 %v86_v24, %v86_v24 }
  0x87   :  { %v67_v29 = vadd.f32 %v64_v27, %v55_v25 }
  0x88   :  { %v68_v31 = vmax.f32 %v66_v28, 0.0  ;;  %971 = vmatprep.subr.msk.bf16.mxu0 %vm134_vm1, %v88_v30  ;;  %v136_v33 = vsel %vm134_vm1, %v88_v30, 0 }
  0x89   :  { %v69_v32 = vmax.f32 %v67_v29, 0.0  ;;  %902 = vmatpush3.bf16.msra.mxu0 %v136_v33  ;;  %v100_v43 = vpop.permute.xlu0 %99 }
  0x8a   :  { %v105_v42 = vpop.permute.xlu1 %104 }
  0x8b   :  { %v87_v34 = vpack.c.bf16 %v69_v32, %v68_v31 }
  0x8d   :  { %903 = vmatprep.subr.bf16.mxu0 %v87_v34  ;;  %v110_v48 = vpop.permute.xlu0 %109 }
  0x8e   :  { %904 = vmatpush3.bf16.msra.mxu0 %v87_v34  ;;  %v115_v46 = vpop.permute.xlu1 %114 }
  0x8f   :  { %972 = vmatprep.subr.msk.bf16.mxu0 %vm201_vm2, %v193_v37 }
  0x91   :  { %906 = vmatmul.mubr.msk.bf16.vlgmr.msra.gmra.mxu0 %vm127_vm0, %v987_v35 }
  0x92   :  { %910 = vmatpush3.bf16.msra.mxu0 %v203_v39 }
  0x93   :  { %974 = vmatprep.subr.msk.bf16.mxu0 %vm201_vm2, %v816_v41 }
 0x151   :  { %v907_v44 = vpop.f32.mrf.mxu0 }
 0x152   :  { %v181_v51 = vadd.f32 %v907_v44, %v110_v48 }
 0x153   :  { %v172_v45 = vpop.f32.mrf.mxu0 }
 0x154   :  { %v173_v49 = vadd.f32 %v172_v45, %v100_v43  ;;  %v189_v57 = vmax.f32 %v181_v51, 0.0 }
 0x155   :  { %v908_v47 = vpop.f32.mrf.mxu0 }
 0x156   :  { %v184_v50 = vadd.f32 %v908_v47, %v115_v46  ;;  %v187_v55 = vmax.f32 %v173_v49, 0.0 }
 0x157   :  { %v175_v52 = vpop.f32.mrf.mxu0 }
 0x158   :  { %v176_v53 = vadd.f32 %v175_v52, %v105_v42  ;;  %v190_v54 = vmax.f32 %v184_v50, 0.0 }
 0x15a   :  { %v188_v56 = vmax.f32 %v176_v53, 0.0  ;;  %v192_v59 = vpack.c.bf16 %v190_v54, %v189_v57  ;;  %v988_v57 = vld [vmem:[%s1198_s9 + $0x8] ss:$0 sps:$4 sm:$0xff]  }
 0x15c   :  { %v191_v58 = vpack.c.bf16 %v188_v56, %v187_v55 }
 0x15e   :  { %911 = vmatprep.mubr.msk.bf16.mxu0 %vm194_vm3, %v191_v58  ;;  %917 = vmatprep.mubr.msk.bf16.mxu1 %vm194_vm3, %v191_v58 }
 0x15f   :  { %912 = vmatmul.mubr.msk.bf16.vlgmr.msra.gmra.mxu0 %vm194_vm3, %v192_v59  ;;  %918 = vmatmul.mubr.msk.bf16.vlgmr.msra.gmra.mxu1 %vm194_vm3, %v192_v59 }
 0x160   :  { %928 = vmatpush3.bf16.msra.mxu1 %v365_v60  ;;  %923 = vmatprep.mubr.msk.bf16.mxu0 %vm194_vm3, %v191_v58 }
 0x161   :  { %929 = vmatprep.mubr.msk.bf16.mxu1 %vm194_vm3, %v191_v58  ;;  %922 = vmatpush3.bf16.msra.mxu0 %v311_v61 }
 0x162   :  { %977 = vmatprep.subr.msk.bf16.mxu1 %vm201_vm2, %v825_v62  ;;  %976 = vmatprep.subr.msk.bf16.mxu0 %vm201_vm2, %v822_v63 }
 0x167   :  { %924 = vmatmul.mubr.msk.bf16.vlgmr.msra.gmra.mxu0 %vm194_vm3, %v192_v59  ;;  %930 = vmatmul.mubr.msk.bf16.vlgmr.msra.gmra.mxu1 %vm194_vm3, %v192_v59 }
 0x168   :  { %940 = vmatpush3.bf16.msra.mxu1 %v473_v0  ;;  %935 = vmatprep.mubr.msk.bf16.mxu0 %vm194_vm3, %v191_v58 }
 0x169   :  { %941 = vmatprep.mubr.msk.bf16.mxu1 %vm194_vm3, %v191_v58  ;;  %934 = vmatpush3.bf16.msra.mxu0 %v419_v1 }
 0x16a   :  { %979 = vmatprep.subr.msk.bf16.mxu1 %vm201_vm2, %v831_v2  ;;  %978 = vmatprep.subr.msk.bf16.mxu0 %vm201_vm2, %v828_v3  ;;  %v837_v2 = vcombine.low %v1159_v9, %v1159_v9 }
 0x16f   :  { %936 = vmatmul.mubr.msk.bf16.vlgmr.msra.gmra.mxu0 %vm194_vm3, %v192_v59  ;;  %942 = vmatmul.mubr.msk.bf16.vlgmr.msra.gmra.mxu1 %vm194_vm3, %v192_v59 }
 0x170   :  { %952 = vmatpush3.bf16.msra.mxu1 %v581_v4  ;;  %947 = vmatprep.mubr.msk.bf16.mxu0 %vm194_vm3, %v191_v58 }
 0x171   :  { %953 = vmatprep.mubr.msk.bf16.mxu1 %vm194_vm3, %v191_v58  ;;  %946 = vmatpush3.bf16.msra.mxu0 %v527_v5 }
 0x172   :  { %980 = vmatprep.subr.msk.bf16.mxu0 %vm201_vm2, %v834_v6 }
 0x177   :  { %948 = vmatmul.mubr.msk.bf16.vlgmr.msra.gmra.mxu0 %vm194_vm3, %v192_v59  ;;  %954 = vmatmul.mubr.msk.bf16.vlgmr.msra.gmra.mxu1 %vm194_vm3, %v192_v59 }
 0x178   :  { %959 = vmatprep.mubr.msk.bf16.mxu0 %vm194_vm3, %v191_v58  ;;  %958 = vmatpush3.bf16.msra.mxu0 %v635_v7 }
 0x179   :  { %963 = vmatprep.subr.bf16.mxu0 %v992_v8  ;;  %752 = vmatprep.mubr.bf16.mxu1 %v838_v10 }
 0x17f   :  { %960 = vmatmul.mubr.msk.bf16.vlgmr.msra.gmra.mxu0 %vm194_vm3, %v192_v59 }
 0x180   :  { %967 = vmatprep.mubr.msk.bf16.mxu0 %vm993_vm4, %v992_v8 }
 0x21f   :  { %v1163_v11 = vpop.f32.mrf.mxu0  ;;  %v1165_v12 = vpop.f32.mrf.mxu1 }
 0x221   :  { %v1167_v13 = vpop.f32.mrf.mxu0  ;;  %v1169_v14 = vpop.f32.mrf.mxu1 }
 0x223   :  { %v1171_v15 = vpop.f32.mrf.mxu0  ;;  %v920_v16 = vpop.f32.mrf.mxu1 }
 0x224   :  { %v689_v59 = vpack.c.bf16 %v920_v16, %v1165_v12  ;;  %v687_v63 = vpack.c.bf16 %v1171_v15, %v1163_v11 }
 0x225   :  { %v1173_v17 = vpop.f32.mrf.mxu0  ;;  %v296_v18 = vpop.f32.mrf.mxu1 }
 0x226   :  { %v688_v61 = vpack.c.bf16 %v296_v18, %v1169_v14  ;;  %v686_v1 = vpack.c.bf16 %v1173_v17, %v1167_v13 }
 0x227   :  { %v925_v19 = vpop.f32.mrf.mxu0  ;;  %v931_v20 = vpop.f32.mrf.mxu1 }
 0x229   :  { %v347_v21 = vpop.f32.mrf.mxu0  ;;  %v401_v22 = vpop.f32.mrf.mxu1 }
 0x22b   :  { %v926_v23 = vpop.f32.mrf.mxu0  ;;  %v932_v24 = vpop.f32.mrf.mxu1 }
 0x22c   :  { %v693_v42 = vpack.c.bf16 %v932_v24, %v931_v20  ;;  %v691_v52 = vpack.c.bf16 %v926_v23, %v925_v19 }
 0x22d   :  { %v350_v25 = vpop.f32.mrf.mxu0  ;;  %v404_v26 = vpop.f32.mrf.mxu1 }
 0x22e   :  { %v692_v47 = vpack.c.bf16 %v404_v26, %v401_v22  ;;  %v690_v56 = vpack.c.bf16 %v350_v25, %v347_v21 }
 0x22f   :  { %v937_v27 = vpop.f32.mrf.mxu0  ;;  %v943_v28 = vpop.f32.mrf.mxu1 }
 0x231   :  { %v455_v29 = vpop.f32.mrf.mxu0  ;;  %v509_v30 = vpop.f32.mrf.mxu1 }
 0x233   :  { %v938_v31 = vpop.f32.mrf.mxu0  ;;  %v944_v32 = vpop.f32.mrf.mxu1 }
 0x234   :  { %v697_v58 = vpack.c.bf16 %v944_v32, %v943_v28  ;;  %v695_v62 = vpack.c.bf16 %v938_v31, %v937_v27 }
 0x235   :  { %v458_v33 = vpop.f32.mrf.mxu0  ;;  %v512_v34 = vpop.f32.mrf.mxu1 }
 0x236   :  { %v696_v60 = vpack.c.bf16 %v512_v34, %v509_v30  ;;  %v694_v0 = vpack.c.bf16 %v458_v33, %v455_v29 }
 0x237   :  { %v949_v35 = vpop.f32.mrf.mxu0  ;;  %v955_v36 = vpop.f32.mrf.mxu1 }
 0x239   :  { %v563_v37 = vpop.f32.mrf.mxu0  ;;  %v617_v38 = vpop.f32.mrf.mxu1 }
 0x23b   :  { %v950_v39 = vpop.f32.mrf.mxu0  ;;  %v956_v40 = vpop.f32.mrf.mxu1 }
 0x23c   :  { %v701_v41 = vpack.c.bf16 %v956_v40, %v955_v36  ;;  %v699_v49 = vpack.c.bf16 %v950_v39, %v949_v35 }
 0x23d   :  { %v566_v43 = vpop.f32.mrf.mxu0  ;;  %v620_v44 = vpop.f32.mrf.mxu1 }
 0x23e   :  { %v700_v45 = vpack.c.bf16 %v620_v44, %v617_v38  ;;  %876 = vmatprep.subr.bf16.mxu1 %v701_v41  ;;  %v698_v54 = vpack.c.bf16 %v566_v43, %v563_v37 }
 0x23f   :  { %v961_v46 = vpop.f32.mrf.mxu0  ;;  %877 = vmatpush3.bf16.msra.mxu1 %v693_v42 }
 0x240   :  { %878 = vmatprep.subr.bf16.mxu1 %v700_v45 }
 0x241   :  { %v671_v48 = vpop.f32.mrf.mxu0 }
 0x243   :  { %v962_v50 = vpop.f32.mrf.mxu0  ;;  %879 = vmatpush3.bf16.msra.mxu1 %v692_v47 }
 0x244   :  { %v703_v51 = vpack.c.bf16 %v962_v50, %v961_v46  ;;  %880 = vmatprep.subr.bf16.mxu1 %v699_v49 }
 0x245   :  { %v674_v53 = vpop.f32.mrf.mxu0 }
 0x246   :  { %964 = vmatpush3.bf16.msra.mxu0 %v703_v51  ;;  %v702_v55 = vpack.c.bf16 %v674_v53, %v671_v48 }
 0x247   :  { %881 = vmatpush3.bf16.msra.mxu1 %v691_v52  ;;  %965 = vmatprep.subr.bf16.mxu0 %v992_v8 }
 0x248   :  { %882 = vmatprep.subr.bf16.mxu1 %v698_v54 }
 0x24a   :  { %966 = vmatpush3.bf16.msra.mxu0 %v702_v55 }
 0x24b   :  { %883 = vmatpush3.bf16.msra.mxu1 %v690_v56 }
 0x24c   :  { %884 = vmatprep.subr.bf16.mxu1 %v697_v58 }
 0x24d   :  { %968 = vmatmul.mubr.msk.bf16.vlgmr.msra.gmra.mxu0 %vm716_vm5, %v988_v57 }
 0x24f   :  { %885 = vmatpush3.bf16.msra.mxu1 %v689_v59 }
 0x250   :  { %886 = vmatprep.subr.bf16.mxu1 %v696_v60 }
 0x253   :  { %887 = vmatpush3.bf16.msra.mxu1 %v688_v61 }
 0x254   :  { %888 = vmatprep.subr.bf16.mxu1 %v695_v62 }
 0x257   :  { %889 = vmatpush3.bf16.msra.mxu1 %v687_v63 }
 0x258   :  { %890 = vmatprep.subr.bf16.mxu1 %v694_v0 }
 0x25b   :  { %891 = vmatpush3.bf16.msra.mxu1 %v686_v1 }
 0x25e   :  { %753 = vmatmul.mubr.bf16.vlgmr.msra.gmra.mxu1 %v837_v2 }
 0x30d   :  { %v794_v3 = vpop.f32.mrf.mxu0 }
 0x30f   :  { %v969_v4 = vpop.f32.mrf.mxu0 }
 0x311   :  { %v797_v5 = vpop.f32.mrf.mxu0 }
 0x313   :  { %v970_v6 = vpop.f32.mrf.mxu0 }
 0x31e   :  { %v892_v7 = vpop.f32.mrf.mxu1 }
 0x320   :  { %v893_v8 = vpop.f32.mrf.mxu1 }
 0x321   :  { %v894_v10 = vadd.f32 %v893_v8, %v892_v7 }
 0x322   :  { %v895_v12 = vpop.f32.mrf.mxu1 }
 0x323   :  { %v795_v11 = vadd.f32 %v894_v10, %v794_v3 }
 0x324   :  { %v896_v14 = vpop.f32.mrf.mxu1 }
 0x325   :  { %v800_v15 = vpack.c.bf16 %v795_v11, %v795_v11 }
 0x327   :  { %802 = vst.msk [vmem:[%s1199_s10] sm:$0xf] %vm801_vm6, %v800_v15 }

</bundles_post_ra>
